<compile_context>
chip_gen: v6e
topology: v6e:2x2x1
jax: 0.10.0
libtpu: 0.0.40
codegen_flags: <defaults>
</compile_context>

<pallas_src>
import numpy as np
import jax
import jax.numpy as jnp
from jax import lax
from jax.experimental import pallas as pl
from jax.experimental.pallas import tpu as pltpu

# ---- static model config ----
DIM = 4          # self.dim
KSEQ = 16        # self.k (per-sample sequence length)
HIDDEN = 32      # self.hidden
DEPTH = 1
NUM_LAYERS = 5 * DEPTH
KERNEL = 9
BASE_DIL = [1, 1, 4, 16, 64]
BASE_PAD = [4, 4, 16, 64, 256]
DILATIONS = [d for d in BASE_DIL for _ in range(DEPTH)]
PADDINGS = [p for p in BASE_PAD for _ in range(DEPTH)]
LN_EPS = 1e-5
# TODO(synk): dropout is nn.Dropout(p=0.0) here (identity); classifier / cls-free-guidance
# branches are not exercised by this config and are not implemented.


def _taps_for(dilation):
    """Kernel taps whose shift stays inside one KSEQ-long sample ('same' padded conv)."""
    return [j for j in range(KERNEL) if abs((j - KERNEL // 2) * dilation) < KSEQ]


def _conv_folded(inp2d, w_stacked, bias, dilation, masks):
    """'same'-padded dilated 1-D conv as ONE MXU matmul.

    inp2d: (L, Cin) f32 row-fused over samples (L = bt*KSEQ);
    w_stacked: (ntaps*Cin, Cout) bf16, taps pre-stacked in j order in the wrapper;
    masks: dict shift -> (L,1) bool, True where the tap reads inside the same sample.
    """
    pieces = []
    for j in _taps_for(dilation):
        shift = (j - KERNEL // 2) * dilation
        if shift == 0:
            pieces.append(inp2d)
        else:
            xj = jnp.roll(inp2d, -shift, axis=0)
            pieces.append(jnp.where(masks[shift], xj, 0.0))
    stacked = pieces[0] if len(pieces) == 1 else jnp.concatenate(pieces, axis=-1)
    out = jnp.dot(stacked.astype(jnp.bfloat16), w_stacked,
                  preferred_element_type=jnp.float32)
    return out + bias


def cnn_kernel(*refs):
    (x_ref, tv_ref, w0_ref), wc_refs = refs[:3], refs[3:3 + NUM_LAYERS]
    lnp_ref, cb_ref, wf1_ref, wf2_ref, bf2_ref, out_ref = refs[3 + NUM_LAYERS:]

    bt = x_ref.shape[0]
    L = bt * KSEQ
    x = x_ref[...].reshape(L, DIM)                      # row-fused (bt*KSEQ, DIM)

    # Hoisted: position-within-sample iota and one mask per distinct non-zero shift.
    pos = lax.broadcasted_iota(jnp.int32, (L, 1), 0) % KSEQ
    shifts = sorted({(j - KERNEL // 2) * d
                     for d in set([1] + DILATIONS) for j in _taps_for(d)} - {0})
    masks = {s: (pos < KSEQ - s) if s > 0 else (pos >= -s) for s in shifts}

    # input conv: Conv1d(DIM -> HIDDEN, k=9, pad=4) + ReLU   (bias row NUM_LAYERS of cb)
    feat = jnp.maximum(_conv_folded(x, w0_ref[...], cb_ref[NUM_LAYERS], 1, masks), 0.0)

    for i in range(NUM_LAYERS):
        # dropout(p=0) == identity; add per-sample time projection (precomputed in wrapper)
        tfull = jnp.broadcast_to(tv_ref[i][:, None, :], (bt, KSEQ, HIDDEN)).reshape(L, HIDDEN)
        h = feat + tfull
        # LayerNorm over the channel dim
        mu = jnp.mean(h, axis=-1, keepdims=True)
        var = jnp.mean((h - mu) ** 2, axis=-1, keepdims=True)
        h = (h - mu) * lax.rsqrt(var + LN_EPS) * lnp_ref[i] + lnp_ref[NUM_LAYERS + i]
        # folded dilated conv + ReLU, residual
        h = jnp.maximum(_conv_folded(h, wc_refs[i][...], cb_ref[i], DILATIONS[i], masks), 0.0)
        feat = h + feat

    # final_conv: 1x1 conv -> ReLU -> 1x1 conv (per-position matmuls)
    f = jnp.maximum(jnp.dot(feat.astype(jnp.bfloat16), wf1_ref[...],
                            preferred_element_type=jnp.float32) + cb_ref[NUM_LAYERS + 1], 0.0)
    out = jnp.dot(f.astype(jnp.bfloat16), wf2_ref[...],
                  preferred_element_type=jnp.float32) + bf2_ref[...]           # (L, DIM)
    out_ref[...] = out.reshape(bt, KSEQ, DIM).astype(out_ref.dtype)


def cnn_forward(x, t, params, block_b=256):
    """x: (B, KSEQ, DIM) f32 (the `seq` after x.view(-1, k, dim)); t: (B,) f32.

    block_b = samples fused per grid step.  256 keeps per-step VMEM ~5 MiB (safe on v7x's
    64 MiB / 32 MiB scoped default) while giving >=2 grid steps (megacore) for realistic B;
    on 128 MiB parts (v5e/v6e) it can be raised further.
    """
    B = x.shape[0]
    bt = int(min(block_b, B))
    if bt < B:                       # when actually blocking, keep the tile sublane-aligned
        bt = max(8, (bt // 8) * 8)
    b_pad = -(-B // bt) * bt
    if b_pad != B:
        x = jnp.pad(x, ((0, b_pad - B), (0, 0), (0, 0)))
        t = jnp.pad(t, ((0, b_pad - B),))

    prec = lax.Precision.HIGHEST   # tiny per-sample path, keep it exact
    # --- time path precomputed per sample (GFP -> Linear+ReLU -> per-layer Linear) ---
    xp = t[:, None] * params["w_gfp"][None, :] * (2.0 * np.pi)
    gfp = jnp.concatenate([jnp.sin(xp), jnp.cos(xp)], axis=-1)                 # (B, H)
    temb = jax.nn.relu(jnp.dot(gfp, params["te_w"].T, precision=prec) + params["te_b"])
    tvec = (jnp.einsum("bh,lgh->lbg", temb, params["time_w"], precision=prec)
            + params["time_b"][:, None, :]).astype(jnp.float32)                # (NL, B, H)

    # --- re-layout / fold conv weights for the kernel (glue only) ---
    w0_t = jnp.transpose(params["w0"], (2, 1, 0))                  # (K, DIM, H)
    w0s = w0_t.reshape(KERNEL * DIM, HIDDEN).astype(jnp.bfloat16)  # (36, 32)
    convw_t = jnp.transpose(params["conv_w"], (0, 3, 2, 1))        # (NL, K, H_in, H_out)
    wc = [convw_t[i][np.asarray(_taps_for(DILATIONS[i]))].reshape(-1, HIDDEN)
          .astype(jnp.bfloat16) for i in range(NUM_LAYERS)]        # (ntaps*H, H) per layer
    lnp = jnp.concatenate([params["ln_g"], params["ln_b"]],
                          axis=0).reshape(2 * NUM_LAYERS, 1, HIDDEN)
    cb = jnp.concatenate([params["conv_b"], params["b0"][None, :], params["bf1"][None, :]],
                         axis=0).reshape(NUM_LAYERS + 2, 1, HIDDEN)
    wf1 = params["wf1"][:, :, 0].T.astype(jnp.bfloat16)            # (H, H)
    wf2 = params["wf2"][:, :, 0].T.astype(jnp.bfloat16)            # (H, DIM)
    bf2 = params["bf2"].reshape(1, DIM)

    def full(a):
        return pl.BlockSpec(a.shape, lambda b, nd=a.ndim: (0,) * nd)

    consts = [w0s] + wc + [lnp, cb, wf1, wf2, bf2]
    in_specs = ([pl.BlockSpec((bt, KSEQ, DIM), lambda b: (b, 0, 0)),            # x tile
                 pl.BlockSpec((NUM_LAYERS, bt, HIDDEN), lambda b: (0, b, 0))]   # time tile
                + [full(a) for a in consts])

    out = pl.pallas_call(
        cnn_kernel,
        out_shape=jax.ShapeDtypeStruct((b_pad, KSEQ, DIM), jnp.float32),
        grid=(b_pad // bt,),
        in_specs=in_specs,
        out_specs=pl.BlockSpec((bt, KSEQ, DIM), lambda b: (b, 0, 0)),
        compiler_params=pltpu.CompilerParams(dimension_semantics=("parallel",)),
    )(x, tvec, *consts)
    return out[:B]


# ------------------ pure-JAX reference (mirrors the PyTorch forward) ------------------
def _conv1d_ref(x, w, b, dilation, padding):
    # x: (B, Cin, L), w: (Cout, Cin, K) -- PyTorch layout
    out = lax.conv_general_dilated(
        x, w, window_strides=(1,), padding=[(padding, padding)],
        rhs_dilation=(dilation,), dimension_numbers=("NCH", "OIH", "NCH"),
        precision=lax.Precision.HIGHEST)
    return out + b[None, :, None]


def ref_forward(x, t, params):
    xp = t[:, None] * params["w_gfp"][None, :] * 2.0 * np.pi
    gfp = jnp.concatenate([jnp.sin(xp), jnp.cos(xp)], axis=-1)
    temb = jax.nn.relu(jnp.dot(gfp, params["te_w"].T, precision=lax.Precision.HIGHEST)
                       + params["te_b"])
    feat = jnp.transpose(x, (0, 2, 1))                                    # (B, DIM, L)
    feat = jax.nn.relu(_conv1d_ref(feat, params["w0"], params["b0"], 1, 4))
    for i in range(NUM_LAYERS):
        h = feat + (jnp.dot(temb, params["time_w"][i].T, precision=lax.Precision.HIGHEST)
                    + params["time_b"][i])[:, :, None]
        hp = jnp.transpose(h, (0, 2, 1))
        mu = jnp.mean(hp, axis=-1, keepdims=True)
        var = jnp.mean((hp - mu) ** 2, axis=-1, keepdims=True)
        hn = (hp - mu) / jnp.sqrt(var + LN_EPS) * params["ln_g"][i] + params["ln_b"][i]
        h = jax.nn.relu(_conv1d_ref(jnp.transpose(hn, (0, 2, 1)),
                                    params["conv_w"][i], params["conv_b"][i],
                                    DILATIONS[i], PADDINGS[i]))
        feat = h + feat
    f = jax.nn.relu(_conv1d_ref(feat, params["wf1"], params["bf1"], 1, 0))
    f = _conv1d_ref(f, params["wf2"], params["bf2"], 1, 0)
    return jnp.transpose(f, (0, 2, 1))


def init_params(key):
    ks = jax.random.split(key, 13)

    def u(k, shape, fan_in):
        bound = 1.0 / np.sqrt(fan_in)
        return jax.random.uniform(k, shape, jnp.float32, -bound, bound)

    p = {}
    p["w_gfp"] = jax.random.normal(ks[0], (HIDDEN // 2,), jnp.float32) * 30.0
    p["te_w"] = u(ks[1], (HIDDEN, HIDDEN), HIDDEN)
    p["te_b"] = u(ks[2], (HIDDEN,), HIDDEN)
    p["w0"] = u(ks[3], (HIDDEN, DIM, KERNEL), DIM * KERNEL)
    p["b0"] = u(ks[4], (HIDDEN,), DIM * KERNEL)
    p["conv_w"] = u(ks[5], (NUM_LAYERS, HIDDEN, HIDDEN, KERNEL), HIDDEN * KERNEL)
    p["conv_b"] = u(ks[6], (NUM_LAYERS, HIDDEN), HIDDEN * KERNEL)
    p["time_w"] = u(ks[7], (NUM_LAYERS, HIDDEN, HIDDEN), HIDDEN)
    p["time_b"] = u(ks[8], (NUM_LAYERS, HIDDEN), HIDDEN)
    p["ln_g"] = jnp.ones((NUM_LAYERS, HIDDEN), jnp.float32)
    p["ln_b"] = jnp.zeros((NUM_LAYERS, HIDDEN), jnp.float32)
    p["wf1"] = u(ks[9], (HIDDEN, HIDDEN, 1), HIDDEN)
    p["bf1"] = u(ks[10], (HIDDEN,), HIDDEN)
    p["wf2"] = u(ks[11], (DIM, HIDDEN, 1), HIDDEN)
    p["bf2"] = u(ks[12], (DIM,), HIDDEN)
    return p


if __name__ == "__main__":
    key = jax.random.PRNGKey(0)
    kp, kx, kt = jax.random.split(key, 3)
    params = init_params(kp)

    B = 16                                               # small demo; kernel targets large B
    logits = jax.random.normal(kx, (B, KSEQ, DIM), jnp.float32)
    x = jax.nn.softmax(logits, axis=-1)                  # simplex-valued sequence, (B, k, dim)
    t = jax.random.uniform(kt, (B,), jnp.float32)        # diffusion time per sample

    # block_b=8 -> 2 grid steps, exercising the batch-tiled pipeline on a small problem.
    out = cnn_forward(x, t, params, block_b=8)
    out = jax.block_until_ready(out)

    ref = ref_forward(x, t, params)
    # bf16 MXU operands (per perf feedback) vs. f32 reference: 2e-2 leaves ample margin.
    np.testing.assert_allclose(np.asarray(out), np.asarray(ref), atol=2e-2, rtol=2e-2)

    print("KERNEL_OK")
</pallas_src>

<mosaic_0001>
module attributes {stable_mosaic.version = 11 : i64} {
  func.func @cnn_kernel(%arg0: i32, %arg1: memref<8x16x4xf32, #tpu.memory_space<vmem>>, %arg2: memref<5x8x32xf32, #tpu.memory_space<vmem>>, %arg3: memref<36x32xbf16, #tpu.memory_space<vmem>>, %arg4: memref<288x32xbf16, #tpu.memory_space<vmem>>, %arg5: memref<288x32xbf16, #tpu.memory_space<vmem>>, %arg6: memref<224x32xbf16, #tpu.memory_space<vmem>>, %arg7: memref<32x32xbf16, #tpu.memory_space<vmem>>, %arg8: memref<32x32xbf16, #tpu.memory_space<vmem>>, %arg9: memref<10x1x32xf32, #tpu.memory_space<vmem>>, %arg10: memref<7x1x32xf32, #tpu.memory_space<vmem>>, %arg11: memref<32x32xbf16, #tpu.memory_space<vmem>>, %arg12: memref<32x4xbf16, #tpu.memory_space<vmem>>, %arg13: memref<1x4xf32, #tpu.memory_space<vmem>>, %arg14: memref<8x16x4xf32, #tpu.memory_space<vmem>>) attributes {dimension_semantics = [#tpu.dimension_semantics<parallel>], iteration_bounds = array<i64: 2>, scalar_prefetch = 0 : i64, scratch_operands = 0 : i64, tpu.core_type = #tpu.core_type<tc>, window_params = [{transform_indices = @transform_0, window_bounds = array<i64: 8, 16, 4>}, {transform_indices = @transform_1, window_bounds = array<i64: 5, 8, 32>}, {pipeline_mode = #tpu.pipeline_mode<synchronous>, transform_indices = @transform_2, window_bounds = array<i64: 36, 32>}, {pipeline_mode = #tpu.pipeline_mode<synchronous>, transform_indices = @transform_3, window_bounds = array<i64: 288, 32>}, {pipeline_mode = #tpu.pipeline_mode<synchronous>, transform_indices = @transform_4, window_bounds = array<i64: 288, 32>}, {pipeline_mode = #tpu.pipeline_mode<synchronous>, transform_indices = @transform_5, window_bounds = array<i64: 224, 32>}, {pipeline_mode = #tpu.pipeline_mode<synchronous>, transform_indices = @transform_6, window_bounds = array<i64: 32, 32>}, {pipeline_mode = #tpu.pipeline_mode<synchronous>, transform_indices = @transform_7, window_bounds = array<i64: 32, 32>}, {pipeline_mode = #tpu.pipeline_mode<synchronous>, transform_indices = @transform_8, window_bounds = array<i64: 10, 1, 32>}, {pipeline_mode = #tpu.pipeline_mode<synchronous>, transform_indices = @transform_9, window_bounds = array<i64: 7, 1, 32>}, {pipeline_mode = #tpu.pipeline_mode<synchronous>, transform_indices = @transform_10, window_bounds = array<i64: 32, 32>}, {pipeline_mode = #tpu.pipeline_mode<synchronous>, transform_indices = @transform_11, window_bounds = array<i64: 32, 4>}, {pipeline_mode = #tpu.pipeline_mode<synchronous>, transform_indices = @transform_12, window_bounds = array<i64: 1, 4>}, {transform_indices = @transform_13, window_bounds = array<i64: 8, 16, 4>}]} {
    %c0 = arith.constant 0 : index
    %c0_0 = arith.constant 0 : index
    %c0_1 = arith.constant 0 : index
    %0 = vector.load %arg1[%c0, %c0_0, %c0_1] : memref<8x16x4xf32, #tpu.memory_space<vmem>>, vector<8x16x4xf32>
    %1 = vector.shape_cast %0 : vector<8x16x4xf32> to vector<128x4xf32>
    %2 = tpu.iota {dimensions = array<i32: 0>} : vector<128x1xi32>
    %c16_i32 = arith.constant 16 : i32
    %c0_i32 = arith.constant 0 : i32
    %3 = arith.cmpi eq, %c16_i32, %c0_i32 : i32
    %c1_i32 = arith.constant 1 : i32
    %4 = arith.select %3, %c1_i32, %c16_i32 : i32
    %5 = vector.broadcast %4 : i32 to vector<128x1xi32>
    %6 = arith.remsi %2, %5 : vector<128x1xi32>
    %c0_i32_2 = arith.constant 0 : i32
    %7 = vector.broadcast %c0_i32_2 : i32 to vector<128x1xi32>
    %8 = arith.cmpi ne, %6, %7 : vector<128x1xi32>
    %c0_i32_3 = arith.constant 0 : i32
    %9 = vector.broadcast %c0_i32_3 : i32 to vector<128x1xi32>
    %10 = arith.cmpi slt, %6, %9 : vector<128x1xi32>
    %c0_i32_4 = arith.constant 0 : i32
    %11 = arith.cmpi slt, %4, %c0_i32_4 : i32
    %12 = vector.broadcast %11 : i1 to vector<128x1xi1>
    %13 = vector.broadcast %12 : vector<128x1xi1> to vector<128x1xi1>
    %14 = arith.xori %10, %13 : vector<128x1xi1>
    %15 = arith.andi %14, %8 : vector<128x1xi1>
    %16 = vector.broadcast %4 : i32 to vector<128x1xi32>
    %17 = arith.addi %6, %16 : vector<128x1xi32>
    %18 = arith.select %15, %17, %6 : vector<128x1xi1>, vector<128x1xi32>
    %c12_i32 = arith.constant 12 : i32
    %19 = vector.broadcast %c12_i32 : i32 to vector<128x1xi32>
    %20 = arith.cmpi sge, %18, %19 : vector<128x1xi32>
    %c8_i32 = arith.constant 8 : i32
    %21 = vector.broadcast %c8_i32 : i32 to vector<128x1xi32>
    %22 = arith.cmpi sge, %18, %21 : vector<128x1xi32>
    %c4_i32 = arith.constant 4 : i32
    %23 = vector.broadcast %c4_i32 : i32 to vector<128x1xi32>
    %24 = arith.cmpi sge, %18, %23 : vector<128x1xi32>
    %c3_i32 = arith.constant 3 : i32
    %25 = vector.broadcast %c3_i32 : i32 to vector<128x1xi32>
    %26 = arith.cmpi sge, %18, %25 : vector<128x1xi32>
    %c2_i32 = arith.constant 2 : i32
    %27 = vector.broadcast %c2_i32 : i32 to vector<128x1xi32>
    %28 = arith.cmpi sge, %18, %27 : vector<128x1xi32>
    %c1_i32_5 = arith.constant 1 : i32
    %29 = vector.broadcast %c1_i32_5 : i32 to vector<128x1xi32>
    %30 = arith.cmpi sge, %18, %29 : vector<128x1xi32>
    %c15_i32 = arith.constant 15 : i32
    %31 = vector.broadcast %c15_i32 : i32 to vector<128x1xi32>
    %32 = arith.cmpi slt, %18, %31 : vector<128x1xi32>
    %c14_i32 = arith.constant 14 : i32
    %33 = vector.broadcast %c14_i32 : i32 to vector<128x1xi32>
    %34 = arith.cmpi slt, %18, %33 : vector<128x1xi32>
    %c13_i32 = arith.constant 13 : i32
    %35 = vector.broadcast %c13_i32 : i32 to vector<128x1xi32>
    %36 = arith.cmpi slt, %18, %35 : vector<128x1xi32>
    %c12_i32_6 = arith.constant 12 : i32
    %37 = vector.broadcast %c12_i32_6 : i32 to vector<128x1xi32>
    %38 = arith.cmpi slt, %18, %37 : vector<128x1xi32>
    %c8_i32_7 = arith.constant 8 : i32
    %39 = vector.broadcast %c8_i32_7 : i32 to vector<128x1xi32>
    %40 = arith.cmpi slt, %18, %39 : vector<128x1xi32>
    %c4_i32_8 = arith.constant 4 : i32
    %41 = vector.broadcast %c4_i32_8 : i32 to vector<128x1xi32>
    %42 = arith.cmpi slt, %18, %41 : vector<128x1xi32>
    %c0_9 = arith.constant 0 : index
    %c0_10 = arith.constant 0 : index
    %43 = vector.load %arg3[%c0_9, %c0_10] : memref<36x32xbf16, #tpu.memory_space<vmem>>, vector<36x32xbf16>
    %c5 = arith.constant 5 : index
    %c0_11 = arith.constant 0 : index
    %c0_12 = arith.constant 0 : index
    %44 = vector.load %arg10[%c5, %c0_11, %c0_12] : memref<7x1x32xf32, #tpu.memory_space<vmem>>, vector<1x1x32xf32>
    %45 = vector.shape_cast %44 : vector<1x1x32xf32> to vector<1x32xf32>
    %46 = vector.extract_strided_slice %1 {offsets = [124, 0], sizes = [4, 4], strides = [1, 1]} : vector<128x4xf32> to vector<4x4xf32>
    %47 = vector.extract_strided_slice %1 {offsets = [0, 0], sizes = [124, 4], strides = [1, 1]} : vector<128x4xf32> to vector<124x4xf32>
    %48 = tpu.concatenate %46, %47 in 0 : vector<4x4xf32>, vector<124x4xf32> -> vector<128x4xf32>
    %cst = arith.constant 0.000000e+00 : f32
    %49 = vector.shape_cast %24 : vector<128x1xi1> to vector<128x1xi1>
    %50 = vector.broadcast %49 : vector<128x1xi1> to vector<128x4xi1>
    %51 = vector.broadcast %cst : f32 to vector<128x4xf32>
    %52 = arith.select %50, %48, %51 : vector<128x4xi1>, vector<128x4xf32>
    %53 = vector.extract_strided_slice %1 {offsets = [125, 0], sizes = [3, 4], strides = [1, 1]} : vector<128x4xf32> to vector<3x4xf32>
    %54 = vector.extract_strided_slice %1 {offsets = [0, 0], sizes = [125, 4], strides = [1, 1]} : vector<128x4xf32> to vector<125x4xf32>
    %55 = tpu.concatenate %53, %54 in 0 : vector<3x4xf32>, vector<125x4xf32> -> vector<128x4xf32>
    %cst_13 = arith.constant 0.000000e+00 : f32
    %56 = vector.shape_cast %26 : vector<128x1xi1> to vector<128x1xi1>
    %57 = vector.broadcast %56 : vector<128x1xi1> to vector<128x4xi1>
    %58 = vector.broadcast %cst_13 : f32 to vector<128x4xf32>
    %59 = arith.select %57, %55, %58 : vector<128x4xi1>, vector<128x4xf32>
    %60 = vector.extract_strided_slice %1 {offsets = [126, 0], sizes = [2, 4], strides = [1, 1]} : vector<128x4xf32> to vector<2x4xf32>
    %61 = vector.extract_strided_slice %1 {offsets = [0, 0], sizes = [126, 4], strides = [1, 1]} : vector<128x4xf32> to vector<126x4xf32>
    %62 = tpu.concatenate %60, %61 in 0 : vector<2x4xf32>, vector<126x4xf32> -> vector<128x4xf32>
    %cst_14 = arith.constant 0.000000e+00 : f32
    %63 = vector.shape_cast %28 : vector<128x1xi1> to vector<128x1xi1>
    %64 = vector.broadcast %63 : vector<128x1xi1> to vector<128x4xi1>
    %65 = vector.broadcast %cst_14 : f32 to vector<128x4xf32>
    %66 = arith.select %64, %62, %65 : vector<128x4xi1>, vector<128x4xf32>
    %67 = vector.extract_strided_slice %1 {offsets = [127, 0], sizes = [1, 4], strides = [1, 1]} : vector<128x4xf32> to vector<1x4xf32>
    %68 = vector.extract_strided_slice %1 {offsets = [0, 0], sizes = [127, 4], strides = [1, 1]} : vector<128x4xf32> to vector<127x4xf32>
    %69 = tpu.concatenate %67, %68 in 0 : vector<1x4xf32>, vector<127x4xf32> -> vector<128x4xf32>
    %cst_15 = arith.constant 0.000000e+00 : f32
    %70 = vector.shape_cast %30 : vector<128x1xi1> to vector<128x1xi1>
    %71 = vector.broadcast %70 : vector<128x1xi1> to vector<128x4xi1>
    %72 = vector.broadcast %cst_15 : f32 to vector<128x4xf32>
    %73 = arith.select %71, %69, %72 : vector<128x4xi1>, vector<128x4xf32>
    %74 = vector.extract_strided_slice %1 {offsets = [1, 0], sizes = [127, 4], strides = [1, 1]} : vector<128x4xf32> to vector<127x4xf32>
    %75 = vector.extract_strided_slice %1 {offsets = [0, 0], sizes = [1, 4], strides = [1, 1]} : vector<128x4xf32> to vector<1x4xf32>
    %76 = tpu.concatenate %74, %75 in 0 : vector<127x4xf32>, vector<1x4xf32> -> vector<128x4xf32>
    %cst_16 = arith.constant 0.000000e+00 : f32
    %77 = vector.shape_cast %32 : vector<128x1xi1> to vector<128x1xi1>
    %78 = vector.broadcast %77 : vector<128x1xi1> to vector<128x4xi1>
    %79 = vector.broadcast %cst_16 : f32 to vector<128x4xf32>
    %80 = arith.select %78, %76, %79 : vector<128x4xi1>, vector<128x4xf32>
    %81 = vector.extract_strided_slice %1 {offsets = [2, 0], sizes = [126, 4], strides = [1, 1]} : vector<128x4xf32> to vector<126x4xf32>
    %82 = vector.extract_strided_slice %1 {offsets = [0, 0], sizes = [2, 4], strides = [1, 1]} : vector<128x4xf32> to vector<2x4xf32>
    %83 = tpu.concatenate %81, %82 in 0 : vector<126x4xf32>, vector<2x4xf32> -> vector<128x4xf32>
    %cst_17 = arith.constant 0.000000e+00 : f32
    %84 = vector.shape_cast %34 : vector<128x1xi1> to vector<128x1xi1>
    %85 = vector.broadcast %84 : vector<128x1xi1> to vector<128x4xi1>
    %86 = vector.broadcast %cst_17 : f32 to vector<128x4xf32>
    %87 = arith.select %85, %83, %86 : vector<128x4xi1>, vector<128x4xf32>
    %88 = vector.extract_strided_slice %1 {offsets = [3, 0], sizes = [125, 4], strides = [1, 1]} : vector<128x4xf32> to vector<125x4xf32>
    %89 = vector.extract_strided_slice %1 {offsets = [0, 0], sizes = [3, 4], strides = [1, 1]} : vector<128x4xf32> to vector<3x4xf32>
    %90 = tpu.concatenate %88, %89 in 0 : vector<125x4xf32>, vector<3x4xf32> -> vector<128x4xf32>
    %cst_18 = arith.constant 0.000000e+00 : f32
    %91 = vector.shape_cast %36 : vector<128x1xi1> to vector<128x1xi1>
    %92 = vector.broadcast %91 : vector<128x1xi1> to vector<128x4xi1>
    %93 = vector.broadcast %cst_18 : f32 to vector<128x4xf32>
    %94 = arith.select %92, %90, %93 : vector<128x4xi1>, vector<128x4xf32>
    %95 = vector.extract_strided_slice %1 {offsets = [4, 0], sizes = [124, 4], strides = [1, 1]} : vector<128x4xf32> to vector<124x4xf32>
    %96 = vector.extract_strided_slice %1 {offsets = [0, 0], sizes = [4, 4], strides = [1, 1]} : vector<128x4xf32> to vector<4x4xf32>
    %97 = tpu.concatenate %95, %96 in 0 : vector<124x4xf32>, vector<4x4xf32> -> vector<128x4xf32>
    %cst_19 = arith.constant 0.000000e+00 : f32
    %98 = vector.shape_cast %38 : vector<128x1xi1> to vector<128x1xi1>
    %99 = vector.broadcast %98 : vector<128x1xi1> to vector<128x4xi1>
    %100 = vector.broadcast %cst_19 : f32 to vector<128x4xf32>
    %101 = arith.select %99, %97, %100 : vector<128x4xi1>, vector<128x4xf32>
    %102 = tpu.concatenate %52, %59, %66, %73, %1, %80, %87, %94, %101 in 1 : vector<128x4xf32>, vector<128x4xf32>, vector<128x4xf32>, vector<128x4xf32>, vector<128x4xf32>, vector<128x4xf32>, vector<128x4xf32>, vector<128x4xf32>, vector<128x4xf32> -> vector<128x36xf32>
    %103 = arith.truncf %102 : vector<128x36xf32> to vector<128x36xbf16>
    %cst_20 = arith.constant dense<0.000000e+00> : vector<128x32xf32>
    %104 = tpu.matmul %103, %43, %cst_20 {dimension_numbers = #tpu.dot_dimension_numbers<[1], [0], [0], [1], [0, 0, 1, 1], [], []>} : vector<128x36xbf16>, vector<36x32xbf16>, vector<128x32xf32> -> vector<128x32xf32>
    %105 = vector.broadcast %45 : vector<1x32xf32> to vector<128x32xf32>
    %106 = arith.addf %104, %105 : vector<128x32xf32>
    %cst_21 = arith.constant 0.000000e+00 : f32
    %107 = vector.broadcast %cst_21 : f32 to vector<128x32xf32>
    %108 = arith.maximumf %106, %107 : vector<128x32xf32>
    %c0_22 = arith.constant 0 : index
    %c0_23 = arith.constant 0 : index
    %c0_24 = arith.constant 0 : index
    %109 = vector.load %arg2[%c0_22, %c0_23, %c0_24] : memref<5x8x32xf32, #tpu.memory_space<vmem>>, vector<1x8x32xf32>
    %110 = vector.shape_cast %109 : vector<1x8x32xf32> to vector<8x32xf32>
    %111 = vector.shape_cast %110 : vector<8x32xf32> to vector<8x1x32xf32>
    %112 = vector.shape_cast %111 : vector<8x1x32xf32> to vector<8x1x32xf32>
    %113 = vector.broadcast %112 : vector<8x1x32xf32> to vector<8x16x32xf32>
    %114 = vector.shape_cast %113 : vector<8x16x32xf32> to vector<128x32xf32>
    %115 = arith.addf %108, %114 : vector<128x32xf32>
    %cst_25 = arith.constant dense<0.000000e+00> : vector<128xf32>
    %116 = vector.multi_reduction <add>, %115, %cst_25 [1] : vector<128x32xf32> to vector<128xf32>
    %117 = vector.shape_cast %116 : vector<128xf32> to vector<128x1xf32>
    %cst_26 = arith.constant 3.200000e+01 : f32
    %118 = vector.broadcast %cst_26 : f32 to vector<128x1xf32>
    %119 = arith.divf %117, %118 : vector<128x1xf32>
    %120 = vector.broadcast %119 : vector<128x1xf32> to vector<128x32xf32>
    %121 = arith.subf %115, %120 : vector<128x32xf32>
    %122 = arith.mulf %121, %121 : vector<128x32xf32>
    %cst_27 = arith.constant dense<0.000000e+00> : vector<128xf32>
    %123 = vector.multi_reduction <add>, %122, %cst_27 [1] : vector<128x32xf32> to vector<128xf32>
    %124 = vector.shape_cast %123 : vector<128xf32> to vector<128x1xf32>
    %cst_28 = arith.constant 3.200000e+01 : f32
    %125 = vector.broadcast %cst_28 : f32 to vector<128x1xf32>
    %126 = arith.divf %124, %125 : vector<128x1xf32>
    %127 = vector.broadcast %119 : vector<128x1xf32> to vector<128x32xf32>
    %128 = arith.subf %115, %127 : vector<128x32xf32>
    %cst_29 = arith.constant 9.99999974E-6 : f32
    %129 = vector.broadcast %cst_29 : f32 to vector<128x1xf32>
    %130 = arith.addf %126, %129 : vector<128x1xf32>
    %131 = math.rsqrt %130 : vector<128x1xf32>
    %132 = vector.broadcast %131 : vector<128x1xf32> to vector<128x32xf32>
    %133 = arith.mulf %128, %132 : vector<128x32xf32>
    %c0_30 = arith.constant 0 : index
    %c0_31 = arith.constant 0 : index
    %c0_32 = arith.constant 0 : index
    %134 = vector.load %arg9[%c0_30, %c0_31, %c0_32] : memref<10x1x32xf32, #tpu.memory_space<vmem>>, vector<1x1x32xf32>
    %135 = vector.shape_cast %134 : vector<1x1x32xf32> to vector<1x32xf32>
    %136 = vector.broadcast %135 : vector<1x32xf32> to vector<128x32xf32>
    %137 = arith.mulf %133, %136 : vector<128x32xf32>
    %c5_33 = arith.constant 5 : index
    %c0_34 = arith.constant 0 : index
    %c0_35 = arith.constant 0 : index
    %138 = vector.load %arg9[%c5_33, %c0_34, %c0_35] : memref<10x1x32xf32, #tpu.memory_space<vmem>>, vector<1x1x32xf32>
    %139 = vector.shape_cast %138 : vector<1x1x32xf32> to vector<1x32xf32>
    %140 = vector.broadcast %139 : vector<1x32xf32> to vector<128x32xf32>
    %141 = arith.addf %137, %140 : vector<128x32xf32>
    %c0_36 = arith.constant 0 : index
    %c0_37 = arith.constant 0 : index
    %142 = vector.load %arg4[%c0_36, %c0_37] : memref<288x32xbf16, #tpu.memory_space<vmem>>, vector<288x32xbf16>
    %c0_38 = arith.constant 0 : index
    %c0_39 = arith.constant 0 : index
    %c0_40 = arith.constant 0 : index
    %143 = vector.load %arg10[%c0_38, %c0_39, %c0_40] : memref<7x1x32xf32, #tpu.memory_space<vmem>>, vector<1x1x32xf32>
    %144 = vector.shape_cast %143 : vector<1x1x32xf32> to vector<1x32xf32>
    %145 = vector.extract_strided_slice %141 {offsets = [124, 0], sizes = [4, 32], strides = [1, 1]} : vector<128x32xf32> to vector<4x32xf32>
    %146 = vector.extract_strided_slice %141 {offsets = [0, 0], sizes = [124, 32], strides = [1, 1]} : vector<128x32xf32> to vector<124x32xf32>
    %147 = tpu.concatenate %145, %146 in 0 : vector<4x32xf32>, vector<124x32xf32> -> vector<128x32xf32>
    %cst_41 = arith.constant 0.000000e+00 : f32
    %148 = vector.shape_cast %24 : vector<128x1xi1> to vector<128x1xi1>
    %149 = vector.broadcast %148 : vector<128x1xi1> to vector<128x32xi1>
    %150 = vector.broadcast %cst_41 : f32 to vector<128x32xf32>
    %151 = arith.select %149, %147, %150 : vector<128x32xi1>, vector<128x32xf32>
    %152 = vector.extract_strided_slice %141 {offsets = [125, 0], sizes = [3, 32], strides = [1, 1]} : vector<128x32xf32> to vector<3x32xf32>
    %153 = vector.extract_strided_slice %141 {offsets = [0, 0], sizes = [125, 32], strides = [1, 1]} : vector<128x32xf32> to vector<125x32xf32>
    %154 = tpu.concatenate %152, %153 in 0 : vector<3x32xf32>, vector<125x32xf32> -> vector<128x32xf32>
    %cst_42 = arith.constant 0.000000e+00 : f32
    %155 = vector.shape_cast %26 : vector<128x1xi1> to vector<128x1xi1>
    %156 = vector.broadcast %155 : vector<128x1xi1> to vector<128x32xi1>
    %157 = vector.broadcast %cst_42 : f32 to vector<128x32xf32>
    %158 = arith.select %156, %154, %157 : vector<128x32xi1>, vector<128x32xf32>
    %159 = vector.extract_strided_slice %141 {offsets = [126, 0], sizes = [2, 32], strides = [1, 1]} : vector<128x32xf32> to vector<2x32xf32>
    %160 = vector.extract_strided_slice %141 {offsets = [0, 0], sizes = [126, 32], strides = [1, 1]} : vector<128x32xf32> to vector<126x32xf32>
    %161 = tpu.concatenate %159, %160 in 0 : vector<2x32xf32>, vector<126x32xf32> -> vector<128x32xf32>
    %cst_43 = arith.constant 0.000000e+00 : f32
    %162 = vector.shape_cast %28 : vector<128x1xi1> to vector<128x1xi1>
    %163 = vector.broadcast %162 : vector<128x1xi1> to vector<128x32xi1>
    %164 = vector.broadcast %cst_43 : f32 to vector<128x32xf32>
    %165 = arith.select %163, %161, %164 : vector<128x32xi1>, vector<128x32xf32>
    %166 = vector.extract_strided_slice %141 {offsets = [127, 0], sizes = [1, 32], strides = [1, 1]} : vector<128x32xf32> to vector<1x32xf32>
    %167 = vector.extract_strided_slice %141 {offsets = [0, 0], sizes = [127, 32], strides = [1, 1]} : vector<128x32xf32> to vector<127x32xf32>
    %168 = tpu.concatenate %166, %167 in 0 : vector<1x32xf32>, vector<127x32xf32> -> vector<128x32xf32>
    %cst_44 = arith.constant 0.000000e+00 : f32
    %169 = vector.shape_cast %30 : vector<128x1xi1> to vector<128x1xi1>
    %170 = vector.broadcast %169 : vector<128x1xi1> to vector<128x32xi1>
    %171 = vector.broadcast %cst_44 : f32 to vector<128x32xf32>
    %172 = arith.select %170, %168, %171 : vector<128x32xi1>, vector<128x32xf32>
    %173 = vector.extract_strided_slice %141 {offsets = [1, 0], sizes = [127, 32], strides = [1, 1]} : vector<128x32xf32> to vector<127x32xf32>
    %174 = vector.extract_strided_slice %141 {offsets = [0, 0], sizes = [1, 32], strides = [1, 1]} : vector<128x32xf32> to vector<1x32xf32>
    %175 = tpu.concatenate %173, %174 in 0 : vector<127x32xf32>, vector<1x32xf32> -> vector<128x32xf32>
    %cst_45 = arith.constant 0.000000e+00 : f32
    %176 = vector.shape_cast %32 : vector<128x1xi1> to vector<128x1xi1>
    %177 = vector.broadcast %176 : vector<128x1xi1> to vector<128x32xi1>
    %178 = vector.broadcast %cst_45 : f32 to vector<128x32xf32>
    %179 = arith.select %177, %175, %178 : vector<128x32xi1>, vector<128x32xf32>
    %180 = vector.extract_strided_slice %141 {offsets = [2, 0], sizes = [126, 32], strides = [1, 1]} : vector<128x32xf32> to vector<126x32xf32>
    %181 = vector.extract_strided_slice %141 {offsets = [0, 0], sizes = [2, 32], strides = [1, 1]} : vector<128x32xf32> to vector<2x32xf32>
    %182 = tpu.concatenate %180, %181 in 0 : vector<126x32xf32>, vector<2x32xf32> -> vector<128x32xf32>
    %cst_46 = arith.constant 0.000000e+00 : f32
    %183 = vector.shape_cast %34 : vector<128x1xi1> to vector<128x1xi1>
    %184 = vector.broadcast %183 : vector<128x1xi1> to vector<128x32xi1>
    %185 = vector.broadcast %cst_46 : f32 to vector<128x32xf32>
    %186 = arith.select %184, %182, %185 : vector<128x32xi1>, vector<128x32xf32>
    %187 = vector.extract_strided_slice %141 {offsets = [3, 0], sizes = [125, 32], strides = [1, 1]} : vector<128x32xf32> to vector<125x32xf32>
    %188 = vector.extract_strided_slice %141 {offsets = [0, 0], sizes = [3, 32], strides = [1, 1]} : vector<128x32xf32> to vector<3x32xf32>
    %189 = tpu.concatenate %187, %188 in 0 : vector<125x32xf32>, vector<3x32xf32> -> vector<128x32xf32>
    %cst_47 = arith.constant 0.000000e+00 : f32
    %190 = vector.shape_cast %36 : vector<128x1xi1> to vector<128x1xi1>
    %191 = vector.broadcast %190 : vector<128x1xi1> to vector<128x32xi1>
    %192 = vector.broadcast %cst_47 : f32 to vector<128x32xf32>
    %193 = arith.select %191, %189, %192 : vector<128x32xi1>, vector<128x32xf32>
    %194 = vector.extract_strided_slice %141 {offsets = [4, 0], sizes = [124, 32], strides = [1, 1]} : vector<128x32xf32> to vector<124x32xf32>
    %195 = vector.extract_strided_slice %141 {offsets = [0, 0], sizes = [4, 32], strides = [1, 1]} : vector<128x32xf32> to vector<4x32xf32>
    %196 = tpu.concatenate %194, %195 in 0 : vector<124x32xf32>, vector<4x32xf32> -> vector<128x32xf32>
    %cst_48 = arith.constant 0.000000e+00 : f32
    %197 = vector.shape_cast %38 : vector<128x1xi1> to vector<128x1xi1>
    %198 = vector.broadcast %197 : vector<128x1xi1> to vector<128x32xi1>
    %199 = vector.broadcast %cst_48 : f32 to vector<128x32xf32>
    %200 = arith.select %198, %196, %199 : vector<128x32xi1>, vector<128x32xf32>
    %201 = tpu.concatenate %151, %158, %165, %172, %141, %179, %186, %193, %200 in 1 : vector<128x32xf32>, vector<128x32xf32>, vector<128x32xf32>, vector<128x32xf32>, vector<128x32xf32>, vector<128x32xf32>, vector<128x32xf32>, vector<128x32xf32>, vector<128x32xf32> -> vector<128x288xf32>
    %202 = arith.truncf %201 : vector<128x288xf32> to vector<128x288xbf16>
    %cst_49 = arith.constant dense<0.000000e+00> : vector<128x32xf32>
    %203 = tpu.matmul %202, %142, %cst_49 {dimension_numbers = #tpu.dot_dimension_numbers<[1], [0], [0], [1], [0, 0, 1, 1], [], []>} : vector<128x288xbf16>, vector<288x32xbf16>, vector<128x32xf32> -> vector<128x32xf32>
    %204 = vector.broadcast %144 : vector<1x32xf32> to vector<128x32xf32>
    %205 = arith.addf %203, %204 : vector<128x32xf32>
    %cst_50 = arith.constant 0.000000e+00 : f32
    %206 = vector.broadcast %cst_50 : f32 to vector<128x32xf32>
    %207 = arith.maximumf %205, %206 : vector<128x32xf32>
    %208 = arith.addf %207, %108 : vector<128x32xf32>
    %c1 = arith.constant 1 : index
    %c0_51 = arith.constant 0 : index
    %c0_52 = arith.constant 0 : index
    %209 = vector.load %arg2[%c1, %c0_51, %c0_52] : memref<5x8x32xf32, #tpu.memory_space<vmem>>, vector<1x8x32xf32>
    %210 = vector.shape_cast %209 : vector<1x8x32xf32> to vector<8x32xf32>
    %211 = vector.shape_cast %210 : vector<8x32xf32> to vector<8x1x32xf32>
    %212 = vector.shape_cast %211 : vector<8x1x32xf32> to vector<8x1x32xf32>
    %213 = vector.broadcast %212 : vector<8x1x32xf32> to vector<8x16x32xf32>
    %214 = vector.shape_cast %213 : vector<8x16x32xf32> to vector<128x32xf32>
    %215 = arith.addf %208, %214 : vector<128x32xf32>
    %cst_53 = arith.constant dense<0.000000e+00> : vector<128xf32>
    %216 = vector.multi_reduction <add>, %215, %cst_53 [1] : vector<128x32xf32> to vector<128xf32>
    %217 = vector.shape_cast %216 : vector<128xf32> to vector<128x1xf32>
    %cst_54 = arith.constant 3.200000e+01 : f32
    %218 = vector.broadcast %cst_54 : f32 to vector<128x1xf32>
    %219 = arith.divf %217, %218 : vector<128x1xf32>
    %220 = vector.broadcast %219 : vector<128x1xf32> to vector<128x32xf32>
    %221 = arith.subf %215, %220 : vector<128x32xf32>
    %222 = arith.mulf %221, %221 : vector<128x32xf32>
    %cst_55 = arith.constant dense<0.000000e+00> : vector<128xf32>
    %223 = vector.multi_reduction <add>, %222, %cst_55 [1] : vector<128x32xf32> to vector<128xf32>
    %224 = vector.shape_cast %223 : vector<128xf32> to vector<128x1xf32>
    %cst_56 = arith.constant 3.200000e+01 : f32
    %225 = vector.broadcast %cst_56 : f32 to vector<128x1xf32>
    %226 = arith.divf %224, %225 : vector<128x1xf32>
    %227 = vector.broadcast %219 : vector<128x1xf32> to vector<128x32xf32>
    %228 = arith.subf %215, %227 : vector<128x32xf32>
    %cst_57 = arith.constant 9.99999974E-6 : f32
    %229 = vector.broadcast %cst_57 : f32 to vector<128x1xf32>
    %230 = arith.addf %226, %229 : vector<128x1xf32>
    %231 = math.rsqrt %230 : vector<128x1xf32>
    %232 = vector.broadcast %231 : vector<128x1xf32> to vector<128x32xf32>
    %233 = arith.mulf %228, %232 : vector<128x32xf32>
    %c1_58 = arith.constant 1 : index
    %c0_59 = arith.constant 0 : index
    %c0_60 = arith.constant 0 : index
    %234 = vector.load %arg9[%c1_58, %c0_59, %c0_60] : memref<10x1x32xf32, #tpu.memory_space<vmem>>, vector<1x1x32xf32>
    %235 = vector.shape_cast %234 : vector<1x1x32xf32> to vector<1x32xf32>
    %236 = vector.broadcast %235 : vector<1x32xf32> to vector<128x32xf32>
    %237 = arith.mulf %233, %236 : vector<128x32xf32>
    %c6 = arith.constant 6 : index
    %c0_61 = arith.constant 0 : index
    %c0_62 = arith.constant 0 : index
    %238 = vector.load %arg9[%c6, %c0_61, %c0_62] : memref<10x1x32xf32, #tpu.memory_space<vmem>>, vector<1x1x32xf32>
    %239 = vector.shape_cast %238 : vector<1x1x32xf32> to vector<1x32xf32>
    %240 = vector.broadcast %239 : vector<1x32xf32> to vector<128x32xf32>
    %241 = arith.addf %237, %240 : vector<128x32xf32>
    %c0_63 = arith.constant 0 : index
    %c0_64 = arith.constant 0 : index
    %242 = vector.load %arg5[%c0_63, %c0_64] : memref<288x32xbf16, #tpu.memory_space<vmem>>, vector<288x32xbf16>
    %c1_65 = arith.constant 1 : index
    %c0_66 = arith.constant 0 : index
    %c0_67 = arith.constant 0 : index
    %243 = vector.load %arg10[%c1_65, %c0_66, %c0_67] : memref<7x1x32xf32, #tpu.memory_space<vmem>>, vector<1x1x32xf32>
    %244 = vector.shape_cast %243 : vector<1x1x32xf32> to vector<1x32xf32>
    %245 = vector.extract_strided_slice %241 {offsets = [124, 0], sizes = [4, 32], strides = [1, 1]} : vector<128x32xf32> to vector<4x32xf32>
    %246 = vector.extract_strided_slice %241 {offsets = [0, 0], sizes = [124, 32], strides = [1, 1]} : vector<128x32xf32> to vector<124x32xf32>
    %247 = tpu.concatenate %245, %246 in 0 : vector<4x32xf32>, vector<124x32xf32> -> vector<128x32xf32>
    %cst_68 = arith.constant 0.000000e+00 : f32
    %248 = vector.shape_cast %24 : vector<128x1xi1> to vector<128x1xi1>
    %249 = vector.broadcast %248 : vector<128x1xi1> to vector<128x32xi1>
    %250 = vector.broadcast %cst_68 : f32 to vector<128x32xf32>
    %251 = arith.select %249, %247, %250 : vector<128x32xi1>, vector<128x32xf32>
    %252 = vector.extract_strided_slice %241 {offsets = [125, 0], sizes = [3, 32], strides = [1, 1]} : vector<128x32xf32> to vector<3x32xf32>
    %253 = vector.extract_strided_slice %241 {offsets = [0, 0], sizes = [125, 32], strides = [1, 1]} : vector<128x32xf32> to vector<125x32xf32>
    %254 = tpu.concatenate %252, %253 in 0 : vector<3x32xf32>, vector<125x32xf32> -> vector<128x32xf32>
    %cst_69 = arith.constant 0.000000e+00 : f32
    %255 = vector.shape_cast %26 : vector<128x1xi1> to vector<128x1xi1>
    %256 = vector.broadcast %255 : vector<128x1xi1> to vector<128x32xi1>
    %257 = vector.broadcast %cst_69 : f32 to vector<128x32xf32>
    %258 = arith.select %256, %254, %257 : vector<128x32xi1>, vector<128x32xf32>
    %259 = vector.extract_strided_slice %241 {offsets = [126, 0], sizes = [2, 32], strides = [1, 1]} : vector<128x32xf32> to vector<2x32xf32>
    %260 = vector.extract_strided_slice %241 {offsets = [0, 0], sizes = [126, 32], strides = [1, 1]} : vector<128x32xf32> to vector<126x32xf32>
    %261 = tpu.concatenate %259, %260 in 0 : vector<2x32xf32>, vector<126x32xf32> -> vector<128x32xf32>
    %cst_70 = arith.constant 0.000000e+00 : f32
    %262 = vector.shape_cast %28 : vector<128x1xi1> to vector<128x1xi1>
    %263 = vector.broadcast %262 : vector<128x1xi1> to vector<128x32xi1>
    %264 = vector.broadcast %cst_70 : f32 to vector<128x32xf32>
    %265 = arith.select %263, %261, %264 : vector<128x32xi1>, vector<128x32xf32>
    %266 = vector.extract_strided_slice %241 {offsets = [127, 0], sizes = [1, 32], strides = [1, 1]} : vector<128x32xf32> to vector<1x32xf32>
    %267 = vector.extract_strided_slice %241 {offsets = [0, 0], sizes = [127, 32], strides = [1, 1]} : vector<128x32xf32> to vector<127x32xf32>
    %268 = tpu.concatenate %266, %267 in 0 : vector<1x32xf32>, vector<127x32xf32> -> vector<128x32xf32>
    %cst_71 = arith.constant 0.000000e+00 : f32
    %269 = vector.shape_cast %30 : vector<128x1xi1> to vector<128x1xi1>
    %270 = vector.broadcast %269 : vector<128x1xi1> to vector<128x32xi1>
    %271 = vector.broadcast %cst_71 : f32 to vector<128x32xf32>
    %272 = arith.select %270, %268, %271 : vector<128x32xi1>, vector<128x32xf32>
    %273 = vector.extract_strided_slice %241 {offsets = [1, 0], sizes = [127, 32], strides = [1, 1]} : vector<128x32xf32> to vector<127x32xf32>
    %274 = vector.extract_strided_slice %241 {offsets = [0, 0], sizes = [1, 32], strides = [1, 1]} : vector<128x32xf32> to vector<1x32xf32>
    %275 = tpu.concatenate %273, %274 in 0 : vector<127x32xf32>, vector<1x32xf32> -> vector<128x32xf32>
    %cst_72 = arith.constant 0.000000e+00 : f32
    %276 = vector.shape_cast %32 : vector<128x1xi1> to vector<128x1xi1>
    %277 = vector.broadcast %276 : vector<128x1xi1> to vector<128x32xi1>
    %278 = vector.broadcast %cst_72 : f32 to vector<128x32xf32>
    %279 = arith.select %277, %275, %278 : vector<128x32xi1>, vector<128x32xf32>
    %280 = vector.extract_strided_slice %241 {offsets = [2, 0], sizes = [126, 32], strides = [1, 1]} : vector<128x32xf32> to vector<126x32xf32>
    %281 = vector.extract_strided_slice %241 {offsets = [0, 0], sizes = [2, 32], strides = [1, 1]} : vector<128x32xf32> to vector<2x32xf32>
    %282 = tpu.concatenate %280, %281 in 0 : vector<126x32xf32>, vector<2x32xf32> -> vector<128x32xf32>
    %cst_73 = arith.constant 0.000000e+00 : f32
    %283 = vector.shape_cast %34 : vector<128x1xi1> to vector<128x1xi1>
    %284 = vector.broadcast %283 : vector<128x1xi1> to vector<128x32xi1>
    %285 = vector.broadcast %cst_73 : f32 to vector<128x32xf32>
    %286 = arith.select %284, %282, %285 : vector<128x32xi1>, vector<128x32xf32>
    %287 = vector.extract_strided_slice %241 {offsets = [3, 0], sizes = [125, 32], strides = [1, 1]} : vector<128x32xf32> to vector<125x32xf32>
    %288 = vector.extract_strided_slice %241 {offsets = [0, 0], sizes = [3, 32], strides = [1, 1]} : vector<128x32xf32> to vector<3x32xf32>
    %289 = tpu.concatenate %287, %288 in 0 : vector<125x32xf32>, vector<3x32xf32> -> vector<128x32xf32>
    %cst_74 = arith.constant 0.000000e+00 : f32
    %290 = vector.shape_cast %36 : vector<128x1xi1> to vector<128x1xi1>
    %291 = vector.broadcast %290 : vector<128x1xi1> to vector<128x32xi1>
    %292 = vector.broadcast %cst_74 : f32 to vector<128x32xf32>
    %293 = arith.select %291, %289, %292 : vector<128x32xi1>, vector<128x32xf32>
    %294 = vector.extract_strided_slice %241 {offsets = [4, 0], sizes = [124, 32], strides = [1, 1]} : vector<128x32xf32> to vector<124x32xf32>
    %295 = vector.extract_strided_slice %241 {offsets = [0, 0], sizes = [4, 32], strides = [1, 1]} : vector<128x32xf32> to vector<4x32xf32>
    %296 = tpu.concatenate %294, %295 in 0 : vector<124x32xf32>, vector<4x32xf32> -> vector<128x32xf32>
    %cst_75 = arith.constant 0.000000e+00 : f32
    %297 = vector.shape_cast %38 : vector<128x1xi1> to vector<128x1xi1>
    %298 = vector.broadcast %297 : vector<128x1xi1> to vector<128x32xi1>
    %299 = vector.broadcast %cst_75 : f32 to vector<128x32xf32>
    %300 = arith.select %298, %296, %299 : vector<128x32xi1>, vector<128x32xf32>
    %301 = tpu.concatenate %251, %258, %265, %272, %241, %279, %286, %293, %300 in 1 : vector<128x32xf32>, vector<128x32xf32>, vector<128x32xf32>, vector<128x32xf32>, vector<128x32xf32>, vector<128x32xf32>, vector<128x32xf32>, vector<128x32xf32>, vector<128x32xf32> -> vector<128x288xf32>
    %302 = arith.truncf %301 : vector<128x288xf32> to vector<128x288xbf16>
    %cst_76 = arith.constant dense<0.000000e+00> : vector<128x32xf32>
    %303 = tpu.matmul %302, %242, %cst_76 {dimension_numbers = #tpu.dot_dimension_numbers<[1], [0], [0], [1], [0, 0, 1, 1], [], []>} : vector<128x288xbf16>, vector<288x32xbf16>, vector<128x32xf32> -> vector<128x32xf32>
    %304 = vector.broadcast %244 : vector<1x32xf32> to vector<128x32xf32>
    %305 = arith.addf %303, %304 : vector<128x32xf32>
    %cst_77 = arith.constant 0.000000e+00 : f32
    %306 = vector.broadcast %cst_77 : f32 to vector<128x32xf32>
    %307 = arith.maximumf %305, %306 : vector<128x32xf32>
    %308 = arith.addf %307, %208 : vector<128x32xf32>
    %c2 = arith.constant 2 : index
    %c0_78 = arith.constant 0 : index
    %c0_79 = arith.constant 0 : index
    %309 = vector.load %arg2[%c2, %c0_78, %c0_79] : memref<5x8x32xf32, #tpu.memory_space<vmem>>, vector<1x8x32xf32>
    %310 = vector.shape_cast %309 : vector<1x8x32xf32> to vector<8x32xf32>
    %311 = vector.shape_cast %310 : vector<8x32xf32> to vector<8x1x32xf32>
    %312 = vector.shape_cast %311 : vector<8x1x32xf32> to vector<8x1x32xf32>
    %313 = vector.broadcast %312 : vector<8x1x32xf32> to vector<8x16x32xf32>
    %314 = vector.shape_cast %313 : vector<8x16x32xf32> to vector<128x32xf32>
    %315 = arith.addf %308, %314 : vector<128x32xf32>
    %cst_80 = arith.constant dense<0.000000e+00> : vector<128xf32>
    %316 = vector.multi_reduction <add>, %315, %cst_80 [1] : vector<128x32xf32> to vector<128xf32>
    %317 = vector.shape_cast %316 : vector<128xf32> to vector<128x1xf32>
    %cst_81 = arith.constant 3.200000e+01 : f32
    %318 = vector.broadcast %cst_81 : f32 to vector<128x1xf32>
    %319 = arith.divf %317, %318 : vector<128x1xf32>
    %320 = vector.broadcast %319 : vector<128x1xf32> to vector<128x32xf32>
    %321 = arith.subf %315, %320 : vector<128x32xf32>
    %322 = arith.mulf %321, %321 : vector<128x32xf32>
    %cst_82 = arith.constant dense<0.000000e+00> : vector<128xf32>
    %323 = vector.multi_reduction <add>, %322, %cst_82 [1] : vector<128x32xf32> to vector<128xf32>
    %324 = vector.shape_cast %323 : vector<128xf32> to vector<128x1xf32>
    %cst_83 = arith.constant 3.200000e+01 : f32
    %325 = vector.broadcast %cst_83 : f32 to vector<128x1xf32>
    %326 = arith.divf %324, %325 : vector<128x1xf32>
    %327 = vector.broadcast %319 : vector<128x1xf32> to vector<128x32xf32>
    %328 = arith.subf %315, %327 : vector<128x32xf32>
    %cst_84 = arith.constant 9.99999974E-6 : f32
    %329 = vector.broadcast %cst_84 : f32 to vector<128x1xf32>
    %330 = arith.addf %326, %329 : vector<128x1xf32>
    %331 = math.rsqrt %330 : vector<128x1xf32>
    %332 = vector.broadcast %331 : vector<128x1xf32> to vector<128x32xf32>
    %333 = arith.mulf %328, %332 : vector<128x32xf32>
    %c2_85 = arith.constant 2 : index
    %c0_86 = arith.constant 0 : index
    %c0_87 = arith.constant 0 : index
    %334 = vector.load %arg9[%c2_85, %c0_86, %c0_87] : memref<10x1x32xf32, #tpu.memory_space<vmem>>, vector<1x1x32xf32>
    %335 = vector.shape_cast %334 : vector<1x1x32xf32> to vector<1x32xf32>
    %336 = vector.broadcast %335 : vector<1x32xf32> to vector<128x32xf32>
    %337 = arith.mulf %333, %336 : vector<128x32xf32>
    %c7 = arith.constant 7 : index
    %c0_88 = arith.constant 0 : index
    %c0_89 = arith.constant 0 : index
    %338 = vector.load %arg9[%c7, %c0_88, %c0_89] : memref<10x1x32xf32, #tpu.memory_space<vmem>>, vector<1x1x32xf32>
    %339 = vector.shape_cast %338 : vector<1x1x32xf32> to vector<1x32xf32>
    %340 = vector.broadcast %339 : vector<1x32xf32> to vector<128x32xf32>
    %341 = arith.addf %337, %340 : vector<128x32xf32>
    %c0_90 = arith.constant 0 : index
    %c0_91 = arith.constant 0 : index
    %342 = vector.load %arg6[%c0_90, %c0_91] : memref<224x32xbf16, #tpu.memory_space<vmem>>, vector<224x32xbf16>
    %c2_92 = arith.constant 2 : index
    %c0_93 = arith.constant 0 : index
    %c0_94 = arith.constant 0 : index
    %343 = vector.load %arg10[%c2_92, %c0_93, %c0_94] : memref<7x1x32xf32, #tpu.memory_space<vmem>>, vector<1x1x32xf32>
    %344 = vector.shape_cast %343 : vector<1x1x32xf32> to vector<1x32xf32>
    %345 = vector.extract_strided_slice %341 {offsets = [116, 0], sizes = [12, 32], strides = [1, 1]} : vector<128x32xf32> to vector<12x32xf32>
    %346 = vector.extract_strided_slice %341 {offsets = [0, 0], sizes = [116, 32], strides = [1, 1]} : vector<128x32xf32> to vector<116x32xf32>
    %347 = tpu.concatenate %345, %346 in 0 : vector<12x32xf32>, vector<116x32xf32> -> vector<128x32xf32>
    %cst_95 = arith.constant 0.000000e+00 : f32
    %348 = vector.shape_cast %20 : vector<128x1xi1> to vector<128x1xi1>
    %349 = vector.broadcast %348 : vector<128x1xi1> to vector<128x32xi1>
    %350 = vector.broadcast %cst_95 : f32 to vector<128x32xf32>
    %351 = arith.select %349, %347, %350 : vector<128x32xi1>, vector<128x32xf32>
    %352 = vector.extract_strided_slice %341 {offsets = [120, 0], sizes = [8, 32], strides = [1, 1]} : vector<128x32xf32> to vector<8x32xf32>
    %353 = vector.extract_strided_slice %341 {offsets = [0, 0], sizes = [120, 32], strides = [1, 1]} : vector<128x32xf32> to vector<120x32xf32>
    %354 = tpu.concatenate %352, %353 in 0 : vector<8x32xf32>, vector<120x32xf32> -> vector<128x32xf32>
    %cst_96 = arith.constant 0.000000e+00 : f32
    %355 = vector.shape_cast %22 : vector<128x1xi1> to vector<128x1xi1>
    %356 = vector.broadcast %355 : vector<128x1xi1> to vector<128x32xi1>
    %357 = vector.broadcast %cst_96 : f32 to vector<128x32xf32>
    %358 = arith.select %356, %354, %357 : vector<128x32xi1>, vector<128x32xf32>
    %359 = vector.extract_strided_slice %341 {offsets = [124, 0], sizes = [4, 32], strides = [1, 1]} : vector<128x32xf32> to vector<4x32xf32>
    %360 = vector.extract_strided_slice %341 {offsets = [0, 0], sizes = [124, 32], strides = [1, 1]} : vector<128x32xf32> to vector<124x32xf32>
    %361 = tpu.concatenate %359, %360 in 0 : vector<4x32xf32>, vector<124x32xf32> -> vector<128x32xf32>
    %cst_97 = arith.constant 0.000000e+00 : f32
    %362 = vector.shape_cast %24 : vector<128x1xi1> to vector<128x1xi1>
    %363 = vector.broadcast %362 : vector<128x1xi1> to vector<128x32xi1>
    %364 = vector.broadcast %cst_97 : f32 to vector<128x32xf32>
    %365 = arith.select %363, %361, %364 : vector<128x32xi1>, vector<128x32xf32>
    %366 = vector.extract_strided_slice %341 {offsets = [4, 0], sizes = [124, 32], strides = [1, 1]} : vector<128x32xf32> to vector<124x32xf32>
    %367 = vector.extract_strided_slice %341 {offsets = [0, 0], sizes = [4, 32], strides = [1, 1]} : vector<128x32xf32> to vector<4x32xf32>
    %368 = tpu.concatenate %366, %367 in 0 : vector<124x32xf32>, vector<4x32xf32> -> vector<128x32xf32>
    %cst_98 = arith.constant 0.000000e+00 : f32
    %369 = vector.shape_cast %38 : vector<128x1xi1> to vector<128x1xi1>
    %370 = vector.broadcast %369 : vector<128x1xi1> to vector<128x32xi1>
    %371 = vector.broadcast %cst_98 : f32 to vector<128x32xf32>
    %372 = arith.select %370, %368, %371 : vector<128x32xi1>, vector<128x32xf32>
    %373 = vector.extract_strided_slice %341 {offsets = [8, 0], sizes = [120, 32], strides = [1, 1]} : vector<128x32xf32> to vector<120x32xf32>
    %374 = vector.extract_strided_slice %341 {offsets = [0, 0], sizes = [8, 32], strides = [1, 1]} : vector<128x32xf32> to vector<8x32xf32>
    %375 = tpu.concatenate %373, %374 in 0 : vector<120x32xf32>, vector<8x32xf32> -> vector<128x32xf32>
    %cst_99 = arith.constant 0.000000e+00 : f32
    %376 = vector.shape_cast %40 : vector<128x1xi1> to vector<128x1xi1>
    %377 = vector.broadcast %376 : vector<128x1xi1> to vector<128x32xi1>
    %378 = vector.broadcast %cst_99 : f32 to vector<128x32xf32>
    %379 = arith.select %377, %375, %378 : vector<128x32xi1>, vector<128x32xf32>
    %380 = vector.extract_strided_slice %341 {offsets = [12, 0], sizes = [116, 32], strides = [1, 1]} : vector<128x32xf32> to vector<116x32xf32>
    %381 = vector.extract_strided_slice %341 {offsets = [0, 0], sizes = [12, 32], strides = [1, 1]} : vector<128x32xf32> to vector<12x32xf32>
    %382 = tpu.concatenate %380, %381 in 0 : vector<116x32xf32>, vector<12x32xf32> -> vector<128x32xf32>
    %cst_100 = arith.constant 0.000000e+00 : f32
    %383 = vector.shape_cast %42 : vector<128x1xi1> to vector<128x1xi1>
    %384 = vector.broadcast %383 : vector<128x1xi1> to vector<128x32xi1>
    %385 = vector.broadcast %cst_100 : f32 to vector<128x32xf32>
    %386 = arith.select %384, %382, %385 : vector<128x32xi1>, vector<128x32xf32>
    %387 = tpu.concatenate %351, %358, %365, %341, %372, %379, %386 in 1 : vector<128x32xf32>, vector<128x32xf32>, vector<128x32xf32>, vector<128x32xf32>, vector<128x32xf32>, vector<128x32xf32>, vector<128x32xf32> -> vector<128x224xf32>
    %388 = arith.truncf %387 : vector<128x224xf32> to vector<128x224xbf16>
    %cst_101 = arith.constant dense<0.000000e+00> : vector<128x32xf32>
    %389 = tpu.matmul %388, %342, %cst_101 {dimension_numbers = #tpu.dot_dimension_numbers<[1], [0], [0], [1], [0, 0, 1, 1], [], []>} : vector<128x224xbf16>, vector<224x32xbf16>, vector<128x32xf32> -> vector<128x32xf32>
    %390 = vector.broadcast %344 : vector<1x32xf32> to vector<128x32xf32>
    %391 = arith.addf %389, %390 : vector<128x32xf32>
    %cst_102 = arith.constant 0.000000e+00 : f32
    %392 = vector.broadcast %cst_102 : f32 to vector<128x32xf32>
    %393 = arith.maximumf %391, %392 : vector<128x32xf32>
    %394 = arith.addf %393, %308 : vector<128x32xf32>
    %c3 = arith.constant 3 : index
    %c0_103 = arith.constant 0 : index
    %c0_104 = arith.constant 0 : index
    %395 = vector.load %arg2[%c3, %c0_103, %c0_104] : memref<5x8x32xf32, #tpu.memory_space<vmem>>, vector<1x8x32xf32>
    %396 = vector.shape_cast %395 : vector<1x8x32xf32> to vector<8x32xf32>
    %397 = vector.shape_cast %396 : vector<8x32xf32> to vector<8x1x32xf32>
    %398 = vector.shape_cast %397 : vector<8x1x32xf32> to vector<8x1x32xf32>
    %399 = vector.broadcast %398 : vector<8x1x32xf32> to vector<8x16x32xf32>
    %400 = vector.shape_cast %399 : vector<8x16x32xf32> to vector<128x32xf32>
    %401 = arith.addf %394, %400 : vector<128x32xf32>
    %cst_105 = arith.constant dense<0.000000e+00> : vector<128xf32>
    %402 = vector.multi_reduction <add>, %401, %cst_105 [1] : vector<128x32xf32> to vector<128xf32>
    %403 = vector.shape_cast %402 : vector<128xf32> to vector<128x1xf32>
    %cst_106 = arith.constant 3.200000e+01 : f32
    %404 = vector.broadcast %cst_106 : f32 to vector<128x1xf32>
    %405 = arith.divf %403, %404 : vector<128x1xf32>
    %406 = vector.broadcast %405 : vector<128x1xf32> to vector<128x32xf32>
    %407 = arith.subf %401, %406 : vector<128x32xf32>
    %408 = arith.mulf %407, %407 : vector<128x32xf32>
    %cst_107 = arith.constant dense<0.000000e+00> : vector<128xf32>
    %409 = vector.multi_reduction <add>, %408, %cst_107 [1] : vector<128x32xf32> to vector<128xf32>
    %410 = vector.shape_cast %409 : vector<128xf32> to vector<128x1xf32>
    %cst_108 = arith.constant 3.200000e+01 : f32
    %411 = vector.broadcast %cst_108 : f32 to vector<128x1xf32>
    %412 = arith.divf %410, %411 : vector<128x1xf32>
    %413 = vector.broadcast %405 : vector<128x1xf32> to vector<128x32xf32>
    %414 = arith.subf %401, %413 : vector<128x32xf32>
    %cst_109 = arith.constant 9.99999974E-6 : f32
    %415 = vector.broadcast %cst_109 : f32 to vector<128x1xf32>
    %416 = arith.addf %412, %415 : vector<128x1xf32>
    %417 = math.rsqrt %416 : vector<128x1xf32>
    %418 = vector.broadcast %417 : vector<128x1xf32> to vector<128x32xf32>
    %419 = arith.mulf %414, %418 : vector<128x32xf32>
    %c3_110 = arith.constant 3 : index
    %c0_111 = arith.constant 0 : index
    %c0_112 = arith.constant 0 : index
    %420 = vector.load %arg9[%c3_110, %c0_111, %c0_112] : memref<10x1x32xf32, #tpu.memory_space<vmem>>, vector<1x1x32xf32>
    %421 = vector.shape_cast %420 : vector<1x1x32xf32> to vector<1x32xf32>
    %422 = vector.broadcast %421 : vector<1x32xf32> to vector<128x32xf32>
    %423 = arith.mulf %419, %422 : vector<128x32xf32>
    %c8 = arith.constant 8 : index
    %c0_113 = arith.constant 0 : index
    %c0_114 = arith.constant 0 : index
    %424 = vector.load %arg9[%c8, %c0_113, %c0_114] : memref<10x1x32xf32, #tpu.memory_space<vmem>>, vector<1x1x32xf32>
    %425 = vector.shape_cast %424 : vector<1x1x32xf32> to vector<1x32xf32>
    %426 = vector.broadcast %425 : vector<1x32xf32> to vector<128x32xf32>
    %427 = arith.addf %423, %426 : vector<128x32xf32>
    %c0_115 = arith.constant 0 : index
    %c0_116 = arith.constant 0 : index
    %428 = vector.load %arg7[%c0_115, %c0_116] : memref<32x32xbf16, #tpu.memory_space<vmem>>, vector<32x32xbf16>
    %c3_117 = arith.constant 3 : index
    %c0_118 = arith.constant 0 : index
    %c0_119 = arith.constant 0 : index
    %429 = vector.load %arg10[%c3_117, %c0_118, %c0_119] : memref<7x1x32xf32, #tpu.memory_space<vmem>>, vector<1x1x32xf32>
    %430 = vector.shape_cast %429 : vector<1x1x32xf32> to vector<1x32xf32>
    %431 = arith.truncf %427 : vector<128x32xf32> to vector<128x32xbf16>
    %cst_120 = arith.constant dense<0.000000e+00> : vector<128x32xf32>
    %432 = tpu.matmul %431, %428, %cst_120 {dimension_numbers = #tpu.dot_dimension_numbers<[1], [0], [0], [1], [0, 0, 1, 1], [], []>} : vector<128x32xbf16>, vector<32x32xbf16>, vector<128x32xf32> -> vector<128x32xf32>
    %433 = vector.broadcast %430 : vector<1x32xf32> to vector<128x32xf32>
    %434 = arith.addf %432, %433 : vector<128x32xf32>
    %cst_121 = arith.constant 0.000000e+00 : f32
    %435 = vector.broadcast %cst_121 : f32 to vector<128x32xf32>
    %436 = arith.maximumf %434, %435 : vector<128x32xf32>
    %437 = arith.addf %436, %394 : vector<128x32xf32>
    %c4 = arith.constant 4 : index
    %c0_122 = arith.constant 0 : index
    %c0_123 = arith.constant 0 : index
    %438 = vector.load %arg2[%c4, %c0_122, %c0_123] : memref<5x8x32xf32, #tpu.memory_space<vmem>>, vector<1x8x32xf32>
    %439 = vector.shape_cast %438 : vector<1x8x32xf32> to vector<8x32xf32>
    %440 = vector.shape_cast %439 : vector<8x32xf32> to vector<8x1x32xf32>
    %441 = vector.shape_cast %440 : vector<8x1x32xf32> to vector<8x1x32xf32>
    %442 = vector.broadcast %441 : vector<8x1x32xf32> to vector<8x16x32xf32>
    %443 = vector.shape_cast %442 : vector<8x16x32xf32> to vector<128x32xf32>
    %444 = arith.addf %437, %443 : vector<128x32xf32>
    %cst_124 = arith.constant dense<0.000000e+00> : vector<128xf32>
    %445 = vector.multi_reduction <add>, %444, %cst_124 [1] : vector<128x32xf32> to vector<128xf32>
    %446 = vector.shape_cast %445 : vector<128xf32> to vector<128x1xf32>
    %cst_125 = arith.constant 3.200000e+01 : f32
    %447 = vector.broadcast %cst_125 : f32 to vector<128x1xf32>
    %448 = arith.divf %446, %447 : vector<128x1xf32>
    %449 = vector.broadcast %448 : vector<128x1xf32> to vector<128x32xf32>
    %450 = arith.subf %444, %449 : vector<128x32xf32>
    %451 = arith.mulf %450, %450 : vector<128x32xf32>
    %cst_126 = arith.constant dense<0.000000e+00> : vector<128xf32>
    %452 = vector.multi_reduction <add>, %451, %cst_126 [1] : vector<128x32xf32> to vector<128xf32>
    %453 = vector.shape_cast %452 : vector<128xf32> to vector<128x1xf32>
    %cst_127 = arith.constant 3.200000e+01 : f32
    %454 = vector.broadcast %cst_127 : f32 to vector<128x1xf32>
    %455 = arith.divf %453, %454 : vector<128x1xf32>
    %456 = vector.broadcast %448 : vector<128x1xf32> to vector<128x32xf32>
    %457 = arith.subf %444, %456 : vector<128x32xf32>
    %cst_128 = arith.constant 9.99999974E-6 : f32
    %458 = vector.broadcast %cst_128 : f32 to vector<128x1xf32>
    %459 = arith.addf %455, %458 : vector<128x1xf32>
    %460 = math.rsqrt %459 : vector<128x1xf32>
    %461 = vector.broadcast %460 : vector<128x1xf32> to vector<128x32xf32>
    %462 = arith.mulf %457, %461 : vector<128x32xf32>
    %c4_129 = arith.constant 4 : index
    %c0_130 = arith.constant 0 : index
    %c0_131 = arith.constant 0 : index
    %463 = vector.load %arg9[%c4_129, %c0_130, %c0_131] : memref<10x1x32xf32, #tpu.memory_space<vmem>>, vector<1x1x32xf32>
    %464 = vector.shape_cast %463 : vector<1x1x32xf32> to vector<1x32xf32>
    %465 = vector.broadcast %464 : vector<1x32xf32> to vector<128x32xf32>
    %466 = arith.mulf %462, %465 : vector<128x32xf32>
    %c9 = arith.constant 9 : index
    %c0_132 = arith.constant 0 : index
    %c0_133 = arith.constant 0 : index
    %467 = vector.load %arg9[%c9, %c0_132, %c0_133] : memref<10x1x32xf32, #tpu.memory_space<vmem>>, vector<1x1x32xf32>
    %468 = vector.shape_cast %467 : vector<1x1x32xf32> to vector<1x32xf32>
    %469 = vector.broadcast %468 : vector<1x32xf32> to vector<128x32xf32>
    %470 = arith.addf %466, %469 : vector<128x32xf32>
    %c0_134 = arith.constant 0 : index
    %c0_135 = arith.constant 0 : index
    %471 = vector.load %arg8[%c0_134, %c0_135] : memref<32x32xbf16, #tpu.memory_space<vmem>>, vector<32x32xbf16>
    %c4_136 = arith.constant 4 : index
    %c0_137 = arith.constant 0 : index
    %c0_138 = arith.constant 0 : index
    %472 = vector.load %arg10[%c4_136, %c0_137, %c0_138] : memref<7x1x32xf32, #tpu.memory_space<vmem>>, vector<1x1x32xf32>
    %473 = vector.shape_cast %472 : vector<1x1x32xf32> to vector<1x32xf32>
    %474 = arith.truncf %470 : vector<128x32xf32> to vector<128x32xbf16>
    %cst_139 = arith.constant dense<0.000000e+00> : vector<128x32xf32>
    %475 = tpu.matmul %474, %471, %cst_139 {dimension_numbers = #tpu.dot_dimension_numbers<[1], [0], [0], [1], [0, 0, 1, 1], [], []>} : vector<128x32xbf16>, vector<32x32xbf16>, vector<128x32xf32> -> vector<128x32xf32>
    %476 = vector.broadcast %473 : vector<1x32xf32> to vector<128x32xf32>
    %477 = arith.addf %475, %476 : vector<128x32xf32>
    %cst_140 = arith.constant 0.000000e+00 : f32
    %478 = vector.broadcast %cst_140 : f32 to vector<128x32xf32>
    %479 = arith.maximumf %477, %478 : vector<128x32xf32>
    %480 = arith.addf %479, %437 : vector<128x32xf32>
    %481 = arith.truncf %480 : vector<128x32xf32> to vector<128x32xbf16>
    %c0_141 = arith.constant 0 : index
    %c0_142 = arith.constant 0 : index
    %482 = vector.load %arg11[%c0_141, %c0_142] : memref<32x32xbf16, #tpu.memory_space<vmem>>, vector<32x32xbf16>
    %cst_143 = arith.constant dense<0.000000e+00> : vector<128x32xf32>
    %483 = tpu.matmul %481, %482, %cst_143 {dimension_numbers = #tpu.dot_dimension_numbers<[1], [0], [0], [1], [0, 0, 1, 1], [], []>} : vector<128x32xbf16>, vector<32x32xbf16>, vector<128x32xf32> -> vector<128x32xf32>
    %c6_144 = arith.constant 6 : index
    %c0_145 = arith.constant 0 : index
    %c0_146 = arith.constant 0 : index
    %484 = vector.load %arg10[%c6_144, %c0_145, %c0_146] : memref<7x1x32xf32, #tpu.memory_space<vmem>>, vector<1x1x32xf32>
    %485 = vector.shape_cast %484 : vector<1x1x32xf32> to vector<1x32xf32>
    %486 = vector.broadcast %485 : vector<1x32xf32> to vector<128x32xf32>
    %487 = arith.addf %483, %486 : vector<128x32xf32>
    %cst_147 = arith.constant 0.000000e+00 : f32
    %488 = vector.broadcast %cst_147 : f32 to vector<128x32xf32>
    %489 = arith.maximumf %487, %488 : vector<128x32xf32>
    %490 = arith.truncf %489 : vector<128x32xf32> to vector<128x32xbf16>
    %c0_148 = arith.constant 0 : index
    %c0_149 = arith.constant 0 : index
    %491 = vector.load %arg12[%c0_148, %c0_149] : memref<32x4xbf16, #tpu.memory_space<vmem>>, vector<32x4xbf16>
    %cst_150 = arith.constant dense<0.000000e+00> : vector<128x4xf32>
    %492 = tpu.matmul %490, %491, %cst_150 {dimension_numbers = #tpu.dot_dimension_numbers<[1], [0], [0], [1], [0, 0, 1, 1], [], []>} : vector<128x32xbf16>, vector<32x4xbf16>, vector<128x4xf32> -> vector<128x4xf32>
    %c0_151 = arith.constant 0 : index
    %c0_152 = arith.constant 0 : index
    %493 = vector.load %arg13[%c0_151, %c0_152] : memref<1x4xf32, #tpu.memory_space<vmem>>, vector<1x4xf32>
    %494 = vector.broadcast %493 : vector<1x4xf32> to vector<128x4xf32>
    %495 = arith.addf %492, %494 : vector<128x4xf32>
    %496 = vector.shape_cast %495 : vector<128x4xf32> to vector<8x16x4xf32>
    %c0_153 = arith.constant 0 : index
    %c0_154 = arith.constant 0 : index
    %c0_155 = arith.constant 0 : index
    %497 = vector.load %arg14[%c0_153, %c0_154, %c0_155] : memref<8x16x4xf32, #tpu.memory_space<vmem>>, vector<8x16x4xf32>
    tpu.vector_store %arg14[%c0_153, %c0_154, %c0_155], %496 {strides = array<i32>} : memref<8x16x4xf32, #tpu.memory_space<vmem>>, vector<8x16x4xf32>,
    return
  }
  func.func @transform_0(%arg0: i32) -> (i32, i32, i32) {
    %c0_i32 = arith.constant 0 : i32
    %c0_i32_0 = arith.constant 0 : i32
    %c0_i32_1 = arith.constant 0 : i32
    return %arg0, %c0_i32, %c0_i32_0 : i32, i32, i32
  }
  func.func @transform_1(%arg0: i32) -> (i32, i32, i32) {
    %c0_i32 = arith.constant 0 : i32
    %c0_i32_0 = arith.constant 0 : i32
    %c0_i32_1 = arith.constant 0 : i32
    return %c0_i32, %arg0, %c0_i32_0 : i32, i32, i32
  }
  func.func @transform_2(%arg0: i32) -> (i32, i32) {
    %c0_i32 = arith.constant 0 : i32
    %c0_i32_0 = arith.constant 0 : i32
    %c0_i32_1 = arith.constant 0 : i32
    return %c0_i32, %c0_i32_0 : i32, i32
  }
  func.func @transform_3(%arg0: i32) -> (i32, i32) {
    %c0_i32 = arith.constant 0 : i32
    %c0_i32_0 = arith.constant 0 : i32
    %c0_i32_1 = arith.constant 0 : i32
    return %c0_i32, %c0_i32_0 : i32, i32
  }
  func.func @transform_4(%arg0: i32) -> (i32, i32) {
    %c0_i32 = arith.constant 0 : i32
    %c0_i32_0 = arith.constant 0 : i32
    %c0_i32_1 = arith.constant 0 : i32
    return %c0_i32, %c0_i32_0 : i32, i32
  }
  func.func @transform_5(%arg0: i32) -> (i32, i32) {
    %c0_i32 = arith.constant 0 : i32
    %c0_i32_0 = arith.constant 0 : i32
    %c0_i32_1 = arith.constant 0 : i32
    return %c0_i32, %c0_i32_0 : i32, i32
  }
  func.func @transform_6(%arg0: i32) -> (i32, i32) {
    %c0_i32 = arith.constant 0 : i32
    %c0_i32_0 = arith.constant 0 : i32
    %c0_i32_1 = arith.constant 0 : i32
    return %c0_i32, %c0_i32_0 : i32, i32
  }
  func.func @transform_7(%arg0: i32) -> (i32, i32) {
    %c0_i32 = arith.constant 0 : i32
    %c0_i32_0 = arith.constant 0 : i32
    %c0_i32_1 = arith.constant 0 : i32
    return %c0_i32, %c0_i32_0 : i32, i32
  }
  func.func @transform_8(%arg0: i32) -> (i32, i32, i32) {
    %c0_i32 = arith.constant 0 : i32
    %c0_i32_0 = arith.constant 0 : i32
    %c0_i32_1 = arith.constant 0 : i32
    %c0_i32_2 = arith.constant 0 : i32
    return %c0_i32, %c0_i32_0, %c0_i32_1 : i32, i32, i32
  }
  func.func @transform_9(%arg0: i32) -> (i32, i32, i32) {
    %c0_i32 = arith.constant 0 : i32
    %c0_i32_0 = arith.constant 0 : i32
    %c0_i32_1 = arith.constant 0 : i32
    %c0_i32_2 = arith.constant 0 : i32
    return %c0_i32, %c0_i32_0, %c0_i32_1 : i32, i32, i32
  }
  func.func @transform_10(%arg0: i32) -> (i32, i32) {
    %c0_i32 = arith.constant 0 : i32
    %c0_i32_0 = arith.constant 0 : i32
    %c0_i32_1 = arith.constant 0 : i32
    return %c0_i32, %c0_i32_0 : i32, i32
  }
  func.func @transform_11(%arg0: i32) -> (i32, i32) {
    %c0_i32 = arith.constant 0 : i32
    %c0_i32_0 = arith.constant 0 : i32
    %c0_i32_1 = arith.constant 0 : i32
    return %c0_i32, %c0_i32_0 : i32, i32
  }
  func.func @transform_12(%arg0: i32) -> (i32, i32) {
    %c0_i32 = arith.constant 0 : i32
    %c0_i32_0 = arith.constant 0 : i32
    %c0_i32_1 = arith.constant 0 : i32
    return %c0_i32, %c0_i32_0 : i32, i32
  }
  func.func @transform_13(%arg0: i32) -> (i32, i32, i32) {
    %c0_i32 = arith.constant 0 : i32
    %c0_i32_0 = arith.constant 0 : i32
    %c0_i32_1 = arith.constant 0 : i32
    return %arg0, %c0_i32, %c0_i32_0 : i32, i32, i32
  }
}

</mosaic_0001>

<bundles_post_ra>
// kernel: tpu_custom_call.1
= control target key start
LH: loop header
LB: loop body
LE: loop exit
PB: predicated region body
PF: predicated region fallthrough
CT: control target
= control target key end

     0   :  { %s10757_s25 = smov 0   ;;  %s10759_s26 = smov 0   ;;  %s15955_s0 = inlined_call_operand.vmem [shape: f32[16,16,4], index: 0, kind: input, shape index: {}]   ;;  %s15956_s1 = inlined_call_operand.vmem [shape: f32[5,16,32], index: 1, kind: input, shape index: {}]   ;;  %s15957_s2 = inlined_call_operand.vmem [shape: bf16[36,32], index: 2, kind: input, shape index: {}]   ;;  %s15958_s3 = inlined_call_operand.vmem [shape: bf16[288,32], index: 3, kind: input, shape index: {}]   ;;  %s15959_s4 = inlined_call_operand.vmem [shape: bf16[288,32], index: 4, kind: input, shape index: {}]   ;;  %s15960_s5 = inlined_call_operand.vmem [shape: bf16[224,32], index: 5, kind: input, shape index: {}]   ;;  %s15961_s6 = inlined_call_operand.vmem [shape: bf16[32,32], index: 6, kind: input, shape index: {}]   ;;  %s15962_s7 = inlined_call_operand.vmem [shape: bf16[32,32], index: 7, kind: input, shape index: {}]   ;;  %s15963_s8 = inlined_call_operand.vmem [shape: f32[10,1,32], index: 8, kind: input, shape index: {}]   ;;  %s15964_s9 = inlined_call_operand.vmem [shape: f32[7,1,32], index: 9, kind: input, shape index: {}]   ;;  %s15965_s10 = inlined_call_operand.vmem [shape: bf16[32,32], index: 10, kind: input, shape index: {}]   ;;  %s15966_s11 = inlined_call_operand.vmem [shape: bf16[32,4], index: 11, kind: input, shape index: {}]   ;;  %s15967_s12 = inlined_call_operand.vmem [shape: f32[1,4], index: 12, kind: input, shape index: {}]   ;;  %s15968_s13 = inlined_call_operand.vmem [shape: f32[16,16,4], index: 13, kind: output, shape index: {}]  }
   0x1   :  { %s10761_s27 = smov 0  }
   0x2 LB: > { %s8848_s28 = sadd.s32 4294967295, %s10672_s27   ;;  %s10774_s29 = sadd.s32 1, %s10672_s27   ;;  %s10672_s27 = sphi %s10761_s27, %s16712_s27   ;;  %s10668_s26 = sphi %s10759_s26, %s16711_s26   ;;  %s10664_s25 = sphi %s10757_s25, %s16710_s25  }
   0x3   : > { %s53_s30 = ssub.s32 %s10672_s27, %s10774_s29  ;;  %s56_s14 = sadd.s32 1, %s10668_s26 }
   0x4   : > { %p54_p0 = scmp.eq.s32.totalorder %s53_s30, 0  ;;  %p63_p1 = scmp.ne.s32.totalorder %s10668_s26, %s10664_s25 }
   0x5   : > { %p64_p2 = scmp.eq.s32.totalorder %s10672_s27, 0  ;;  %p8851_p4 = scmp.ge.s32.totalorder %s10672_s27, 2 }
   0x6   : > { %s10783_s15 = scalar_select %p54_p0, %s10668_s26, %s56_s14  }
   0x7   : > { %p65_p3 = por %p64_p2, %p63_p1  ;;  %379 = sbr.rel (%p8851_p4) target bundleno = 19 (0x13), region = 60 }
   0xc   : > { %392 = sbr.rel (!%p65_p3) target bundleno = 19 (0x13), region = 68  ;;  %s394_s16 = sand.u32 (%p65_p3), 1, %s10668_s26  }
   0xd   : > { %s8852_s17 = sshll.u32 (%p65_p3), %s10672_s27, 3  ;;  %s9384_s18 = smul.u32 (%p65_p3), 40, %s394_s16 }
   0xe   : > { %s398_s21 = scalar_lea.vmem (%p65_p3), %s15956_s1, %s8852_s17 }
   0xf   : > { %v435_v0 = vld [vmem:[%s398_s21] sm:$0xff] (%p65_p3)  ;;  %v437_v1 = vld [vmem:[%s398_s21 + $0x10] sm:$0xff] (%p65_p3)  ;;  %s396_s22 = scalar_lea.vmem (%p65_p3), [#allocation2], %s9384_s18 }
  0x10   : > { %v439_v2 = vld [vmem:[%s398_s21 + $0x20] sm:$0xff] (%p65_p3)  ;;  %v441_v3 = vld [vmem:[%s398_s21 + $0x30] sm:$0xff] (%p65_p3)  ;;  %436 = vst [vmem:[%s396_s22] sm:$0xff] (%p65_p3), %v435_v0  ;;  %438 = vst [vmem:[%s396_s22 + $0x8] sm:$0xff] (%p65_p3), %v437_v1 }
  0x11   : > { %v443_v4 = vld [vmem:[%s398_s21 + $0x40] sm:$0xff]  ;;  %440 = vst [vmem:[%s396_s22 + $0x10] sm:$0xff] %v439_v2  ;;  %442 = vst [vmem:[%s396_s22 + $0x18] sm:$0xff] %v441_v3 }
  0x12   : > { %444 = vst [vmem:[%s396_s22 + $0x20] sm:$0xff] %v443_v4 }
  0x13 PF: > { %p8853_p5 = scmp.ge.s32.totalorder %s10672_s27, 1  ;;  %p449_p6 = scmp.lt.s32.totalorder %s10672_s27, 3 }
  0x15   : > { %p450_p7 = pnand %p8853_p5, %p449_p6 }
  0x17   : > { %453 = sbr.rel (%p450_p7) target bundleno = 4120 (0x1018), region = 106 }
  0x1c   : > { %s8854_s23 = sshll.u32 %s8848_s28, 3  ;;  %v537_v5 = vlaneseq  ;;  %vm16025_vm0 = vcmask 1041408   ;;  %vm16027_vm1 = vcmask 1042432   ;;  %vm16024_vm3 = vcmask 1040384   ;;  %s10674_s14 = smov 16  }
  0x1d   : > { %p507_p8 = scmp.lt.s32.totalorder %s8854_s23, 15  ;;  %vm1353_vm7 = vcmask 1046528   ;;  %vm16031_vm9 = vcmask 1045504   ;;  %s10675_s16 = smov 8   ;;  %vm1549_vm12 = vcmask 1044480  }
  0x1e   : > { %v10795_v6 = vshrl.u32 %v537_v5, 7  ;;  %s10676_s17 = smov 4   ;;  %s10677_s20 = smov 12  }
  0x1f   : > { %s16714_s23 = smov (!%p507_p8, %s8854_s23), 15  ;;  %s10678_s21 = smov 20  }
  0x20   : > { %v10800_v7 = vand.u32 15, %v10795_v6  ;;  %v540_v8 = vadd.s32 16, %v10795_v6  ;;  %v541_v9 = vadd.s32 24, %v10795_v6  ;;  %s9024_s24 = sshll.u32 %s16714_s23, 4  ;;  %v539_v10 = vadd.s32 8, %v10795_v6  ;;  %s10679_s22 = smov 24  }
  0x21   : > { %s10811_s30 = scalar_lea.vmem %s15955_s0, %s9024_s24  ;;  %v10817_v12 = vadd.s32 32, %v10795_v6  ;;  %v10820_v13 = vadd.s32 48, %v10795_v6  ;;  %s10680_s27 = smov 28  }
  0x22   : > { %16190 = vst [vmem:[#allocation3_spill] sm:$0xff] %v10800_v7  ;;  %vm15971_vm2 = vcmp.ge.s32.totalorder %v10800_v7, 2  ;;  %v10814_v11 = vand.u32 15, %v540_v8  ;;  %v10823_v14 = vld [vmem:[%s10811_s30 + $0x10] sm:$0xff]  ;;  %v10826_v15 = vld [vmem:[%s10811_s30 + $0x18] sm:$0xff]  ;;  %v10829_v16 = vld [vmem:[%s10811_s30] sm:$0xff] }
  0x23   : > { %vm15969_vm4 = vcmp.ge.s32.totalorder %v10800_v7, 3  ;;  %v10832_v17 = vand.u32 15, %v541_v9  ;;  %v10834_v18 = vand.u32 15, %v539_v10  ;;  %v9428_v19 = vpack.i.bf16 %v10826_v15, %v10823_v14  ;;  %v10839_v20 = vld [vmem:[%s10811_s30 + $0x8] sm:$0xff]  ;;  %v10842_v21 = vld [vmem:[%s10811_s30 + $0x78] sm:$0xff]  ;;  %v10894_v53 = vld [vmem:[%s10811_s30 + $0x20] sm:$0xff] }
  0x24   : > { %16191 = vst [vmem:[#allocation4_spill] sm:$0xff] %v10814_v11  ;;  %v1160_v22 = vrot.slane %v10829_v16, 6  ;;  %v1062_v23 = vrot.slane %v10829_v16, 5  ;;  %vm15984_vm5 = vcmp.ge.s32.totalorder %v10814_v11, 2  ;;  %vm15970_vm6 = vcmp.ge.s32.totalorder %v10800_v7, 1  ;;  %s10681_s28 = smov 32  }
  0x25   : > { %16192 = vst [vmem:[#allocation5_spill] sm:$0xff] %v10832_v17  ;;  %16193 = vst [vmem:[#allocation6_spill] sm:$0xff] %v10834_v18  ;;  %v9423_v24 = vpack.i.bf16 %v10839_v20, %v10829_v16  ;;  %v1157_v25 = vrot.slane %v10842_v21, 6  ;;  %v1161_v26 = vrot.slane %v10839_v20, 6  ;;  %v1059_v27 = vrot.slane %v10842_v21, 5  ;;  %9429 = vrot.lane.b32.xlu1 %v9428_v19, %s10674_s14  ;;  %s456_s18 = sand.u32 1, %s10664_s25  }
  0x26   : > { %v1063_v28 = vrot.slane %v10839_v20, 5  ;;  %v1163_v29 = vrot.slane %v10823_v14, 6  ;;  %v1165_v30 = vrot.slane %v10826_v15, 6  ;;  %vm16026_vm8 = vcmp.ge.s32.totalorder %v10814_v11, 3  ;;  %s9385_s19 = smul.u32 40, %s456_s18  ;;  %s10683_s25 = smov 96  }
  0x27   : > { %9424 = vrot.lane.b32.xlu0 %v9423_v24, %s10674_s14  ;;  %v1162_v31 = vsel %vm16025_vm0, %v1160_v22, %v1161_v26  ;;  %v1206_v32 = vsel %vm16025_vm0, %v1157_v25, %v1160_v22  ;;  %v1108_v33 = vsel %vm16027_vm1, %v1059_v27, %v1062_v23  ;;  %v1065_v34 = vrot.slane %v10823_v14, 5  ;;  %v10927_v10 = vld [vmem:[%s15957_s2 + $0x10] ss:$0 sps:$4 sm:$0x33]  }
  0x28   : > { %v1239_v35 = vsel %vm15971_vm2, %v1206_v32, 0.0  ;;  %v1064_v36 = vsel %vm16027_vm1, %v1062_v23, %v1063_v28  ;;  %v1141_v37 = vsel %vm15969_vm4, %v1108_v33, 0.0  ;;  %v1164_v38 = vsel %vm16025_vm0, %v1161_v26, %v1163_v29  ;;  %9383 = vmatprep.subr.msk.bf16.mxu0 %vm16025_vm0, %v10927_v10 }
  0x29   : > { %v9443_v39 = vpack.i.bf16 %v1162_v31, %v1239_v35  ;;  %v9433_v40 = vpack.i.bf16 %v1064_v36, %v1141_v37  ;;  %v1166_v41 = vsel %vm16025_vm0, %v1163_v29, %v1165_v30  ;;  %v1241_v42 = vsel %vm15984_vm5, %v1164_v38, 0.0  ;;  %v10954_v38 = vld [vmem:[%s10811_s30 + $0x28] sm:$0xff] }
  0x2a   : > { %v9448_v43 = vpack.i.bf16 %v1166_v41, %v1241_v42  ;;  %v1066_v44 = vsel %vm16027_vm1, %v1063_v28, %v1065_v34  ;;  %v1067_v45 = vrot.slane %v10826_v15, 5  ;;  %vm15976_vm10 = vcmp.ge.s32.totalorder %v10814_v11, 1 }
  0x2b   : > { %9444 = vrot.lane.b32.xlu1 %v9443_v39, %s10675_s16  ;;  %9434 = vrot.lane.b32.xlu0 %v9433_v40, %s10676_s17  ;;  %v1143_v46 = vsel %vm16026_vm8, %v1066_v44, 0.0  ;;  %v1259_v47 = vrot.slane %v10839_v20, 7  ;;  %v1261_v48 = vrot.slane %v10823_v14, 7  ;;  %v1263_v49 = vrot.slane %v10826_v15, 7 }
  0x2c   : > { %v1068_v50 = vsel %vm16027_vm1, %v1065_v34, %v1067_v45  ;;  %v1255_v51 = vrot.slane %v10842_v21, 7  ;;  %v1258_v52 = vrot.slane %v10829_v16, 7  ;;  %vm15973_vm11 = vcmp.lt.s32.totalorder %v10832_v17, 15 }
  0x2d   : > { %v9438_v54 = vpack.i.bf16 %v1068_v50, %v1143_v46  ;;  %v1262_v55 = vsel %vm16024_vm3, %v1259_v47, %v1261_v48  ;;  %v1264_v56 = vsel %vm16024_vm3, %v1261_v48, %v1263_v49  ;;  %v1357_v57 = vrot.slane %v10823_v14, 1 }
  0x2e   : > { %v1339_v58 = vsel %vm15976_vm10, %v1262_v55, 0.0  ;;  %v1260_v59 = vsel %vm16024_vm3, %v1258_v52, %v1259_v47  ;;  %v1304_v60 = vsel %vm16024_vm3, %v1255_v51, %v1258_v52  ;;  %v1359_v61 = vrot.slane %v10826_v15, 1 }
  0x2f   : > { %9449 = vrot.lane.b32.xlu1 %v9448_v43, %s10675_s16  ;;  %9439 = vrot.lane.b32.xlu0 %v9438_v54, %s10676_s17  ;;  %v9458_v62 = vpack.i.bf16 %v1264_v56, %v1339_v58  ;;  %v1337_v63 = vsel %vm15970_vm6, %v1304_v60, 0.0  ;;  %v1361_v0 = vrot.slane %v10894_v53, 1  ;;  %vm843_vm13 = vcmp.lt.s32.totalorder %v10834_v18, 15  ;;  %v10982_v56 = vld [vmem:[%s10811_s30 + $0x30] sm:$0xff]  ;;  %v10990_v60 = vld [vmem:[%s10811_s30 + $0x38] sm:$0xff] }
  0x30   : > { %v9453_v1 = vpack.i.bf16 %v1260_v59, %v1337_v63  ;;  %v1360_v2 = vsel %vm1353_vm7, %v1357_v57, %v1359_v61  ;;  %v1354_v3 = vrot.slane %v10829_v16, 1  ;;  %v1355_v4 = vrot.slane %v10839_v20, 1 }
  0x31   : > { %v1362_v5 = vsel %vm1353_vm7, %v1359_v61, %v1361_v0  ;;  %vm15972_vm14 = vcmp.lt.s32.totalorder %v10832_v17, 14  ;;  %v1455_v8 = vrot.slane %v10823_v14, 2  ;;  %v1457_v9 = vrot.slane %v10826_v15, 2 }
  0x32   : > { %v1438_v19 = vsel %vm15973_vm11, %v1362_v5, 0.0  ;;  %v1356_v22 = vsel %vm1353_vm7, %v1354_v3, %v1355_v4  ;;  %v1358_v23 = vsel %vm1353_vm7, %v1355_v4, %v1357_v57  ;;  %v1459_v24 = vrot.slane %v10894_v53, 2 }
  0x33   : > { %9459 = vrot.lane.b32.xlu1 %v9458_v62, %s10677_s20  ;;  %9454 = vrot.lane.b32.xlu0 %v9453_v1, %s10677_s20  ;;  %v9468_v26 = vpack.i.bf16 %v1438_v19, %v1360_v2  ;;  %v1436_v28 = vsel %vm843_vm13, %v1358_v23, 0.0  ;;  %v1458_v29 = vsel %vm16031_vm9, %v1455_v8, %v1457_v9  ;;  %vm16028_vm15 = vcmp.lt.s32.totalorder %v10834_v18, 14 }
  0x34   : > { %vm963_vm4 = vcmask 1043456   ;;  %v9463_v31 = vpack.i.bf16 %v1436_v28, %v1356_v22  ;;  %v1460_v32 = vsel %vm16031_vm9, %v1457_v9, %v1459_v24  ;;  %v1452_v33 = vrot.slane %v10829_v16, 2 }
  0x35   : > { %v1453_v34 = vrot.slane %v10839_v20, 2  ;;  %v1536_v35 = vsel %vm15972_vm14, %v1460_v32, 0.0  ;;  %v1553_v36 = vrot.slane %v10823_v14, 3  ;;  %v1555_v37 = vrot.slane %v10826_v15, 3 }
  0x36   : > { %v10957_v39 = vand.u32 15, %v10817_v12  ;;  %vm15974_vm6 = vcmp.lt.s32.totalorder %v10832_v17, 13  ;;  %v1557_v42 = vrot.slane %v10894_v53, 3  ;;  %v9478_v43 = vpack.i.bf16 %v1536_v35, %v1458_v29 }
  0x37   : > { %v1454_v40 = vsel %vm16031_vm9, %v1452_v33, %v1453_v34  ;;  %v1456_v41 = vsel %vm16031_vm9, %v1453_v34, %v1455_v8  ;;  %9469 = vrot.lane.b32.xlu1 %v9468_v26, %s10678_s21  ;;  %9464 = vrot.lane.b32.xlu0 %v9463_v31, %s10678_s21  ;;  %v1556_v44 = vsel %vm1549_vm12, %v1553_v36, %v1555_v37  ;;  %v16000_v46 = vrot.slane %v10829_v16, 3 }
  0x38   : > { %v1534_v12 = vsel %vm16028_vm15, %v1456_v41, 0.0  ;;  %v1558_v48 = vsel %vm1549_vm12, %v1555_v37, %v1557_v42  ;;  %vm875_vm2 = vcmp.lt.s32.totalorder %v10834_v18, 13  ;;  %v1551_v50 = vrot.slane %v10839_v20, 3 }
  0x39   : > { %v9473_v47 = vpack.i.bf16 %v1534_v12, %v1454_v40  ;;  %v1634_v52 = vsel %vm15974_vm6, %v1558_v48, 0.0  ;;  %vm15975_vm14 = vcmp.ge.s32.totalorder %v10957_v39, 3  ;;  %v1069_v54 = vrot.slane %v10894_v53, 5 }
  0x3a   : > { %v1071_v55 = vrot.slane %v10954_v38, 5  ;;  %v9488_v57 = vpack.i.bf16 %v1634_v52, %v1556_v44  ;;  %v1552_v58 = vsel %vm1549_vm12, %v16000_v46, %v1551_v50  ;;  %v1554_v59 = vsel %vm1549_vm12, %v1551_v50, %v1553_v36 }
  0x3b   : > { %vm16032_vm11 = vcmp.lt.s32.totalorder %v10834_v18, 12  ;;  %9479 = vrot.lane.b32.xlu1 %v9478_v43, %s10679_s22  ;;  %9474 = vrot.lane.b32.xlu0 %v9473_v47, %s10679_s22  ;;  %v1632_v61 = vsel %vm875_vm2, %v1554_v59, 0.0  ;;  %v1070_v62 = vsel %vm16027_vm1, %v1067_v45, %v1069_v54  ;;  %v15999_v1 = vrot.slane %v10829_v16, 4 }
  0x3c   : > { %v1072_v63 = vsel %vm16027_vm1, %v1069_v54, %v1071_v55  ;;  %v9483_v2 = vpack.i.bf16 %v1632_v61, %v1552_v58  ;;  %v1145_v4 = vsel %vm15975_vm14, %v1070_v62, 0.0  ;;  %v965_v5 = vrot.slane %v10839_v20, 4 }
  0x3d   : > { %v967_v8 = vrot.slane %v10823_v14, 4  ;;  %v11006_v9 = vand.u32 15, %v10820_v13  ;;  %v1073_v19 = vrot.slane %v10982_v56, 5  ;;  %v1075_v22 = vrot.slane %v10990_v60, 5 }
  0x3e   : > { %v11013_v45 = vsel %vm963_vm4, %v15999_v1, %v965_v5  ;;  %v9498_v14 = vpack.i.bf16 %v1072_v63, %v1145_v4  ;;  %v969_v31 = vrot.slane %v10826_v15, 4  ;;  %vm15978_vm14 = vcmp.lt.s32.totalorder %v10832_v17, 12  ;;  %v11079_v4 = vld [vmem:[%s10811_s30 + $0x40] sm:$0xff] }
  0x3f   : > { %16194 = vst [vmem:[#allocation7_spill] sm:$0xff] %v11006_v9  ;;  %v11016_v23 = vsel %vm963_vm4, %v965_v5, %v967_v8  ;;  %9489 = vrot.lane.b32.xlu1 %v9488_v57, %s10680_s27  ;;  %9484 = vrot.lane.b32.xlu0 %v9483_v2, %s10680_s27  ;;  %vm15977_vm6 = vcmp.ge.s32.totalorder %v11006_v9, 3  ;;  %v1074_v20 = vsel %vm16027_vm1, %v1071_v55, %v1073_v19  ;;  %v971_v32 = vrot.slane %v10894_v53, 4 }
  0x40   : > { %v1680_v13 = vsel %vm16032_vm11, %v11016_v23, 0.0  ;;  %v1076_v28 = vsel %vm16027_vm1, %v1073_v19, %v1075_v22  ;;  %v1147_v29 = vsel %vm15977_vm6, %v1074_v20, 0.0  ;;  %v1169_v34 = vrot.slane %v10954_v38, 6 }
  0x41   : > { %v9493_v26 = vpack.i.bf16 %v1680_v13, %v11013_v45  ;;  %v11036_v35 = vsel %vm963_vm4, %v967_v8, %v969_v31  ;;  %vm15979_vm10 = vcmp.ge.s32.totalorder %v11006_v9, 2  ;;  %v1171_v36 = vrot.slane %v10982_v56, 6 }
  0x42   : > { %v1173_v37 = vrot.slane %v10990_v60, 6  ;;  %v9508_v40 = vpack.i.bf16 %v1076_v28, %v1147_v29  ;;  %v11046_v41 = vsel %vm963_vm4, %v969_v31, %v971_v32  ;;  %vm15983_vm6 = vcmp.ge.s32.totalorder %v10957_v39, 2 }
  0x43   : > { %9499 = vrot.lane.b32.xlu1 %v9498_v14, %s10676_s17  ;;  %9494 = vrot.lane.b32.xlu0 %v9493_v26, %s10681_s28  ;;  %v1167_v43 = vrot.slane %v10894_v53, 6  ;;  %v1682_v12 = vsel %vm15978_vm14, %v11046_v41, 0.0  ;;  %v1172_v44 = vsel %vm16025_vm0, %v1169_v34, %v1171_v36  ;;  %v1267_v48 = vrot.slane %v10954_v38, 7 }
  0x44   : > { %v1174_v47 = vsel %vm16025_vm0, %v1171_v36, %v1173_v37  ;;  %v9503_v50 = vpack.i.bf16 %v1682_v12, %v11036_v35  ;;  %v1245_v52 = vsel %vm15979_vm10, %v1172_v44, 0.0  ;;  %vm15980_vm14 = vcmp.ge.s32.totalorder %v11006_v9, 1 }
  0x45   : > { %v1168_v54 = vsel %vm16025_vm0, %v1165_v30, %v1167_v43  ;;  %v1170_v55 = vsel %vm16025_vm0, %v1167_v43, %v1169_v34  ;;  %v1269_v58 = vrot.slane %v10982_v56, 7  ;;  %v1271_v59 = vrot.slane %v10990_v60, 7 }
  0x46   : > { %v1243_v57 = vsel %vm15983_vm6, %v1168_v54, 0.0  ;;  %v9518_v61 = vpack.i.bf16 %v1174_v47, %v1245_v52  ;;  %vm15981_vm10 = vcmp.ge.s32.totalorder %v10957_v39, 1  ;;  %v1265_v30 = vrot.slane %v10894_v53, 7 }
  0x47   : > { %9509 = vrot.lane.b32.xlu1 %v9508_v40, %s10676_s17  ;;  %9504 = vrot.lane.b32.xlu0 %v9503_v50, %s10681_s28  ;;  %v9513_v62 = vpack.i.bf16 %v1170_v55, %v1243_v57  ;;  %v1270_v63 = vsel %vm16024_vm3, %v1267_v48, %v1269_v58  ;;  %v1272_v2 = vsel %vm16024_vm3, %v1269_v58, %v1271_v59  ;;  %v545_v5 = vadd.s32 56, %v10795_v6 }
  0x48   : > { %v1343_v8 = vsel %vm15980_vm14, %v1270_v63, 0.0  ;;  %v1266_v19 = vsel %vm16024_vm3, %v1263_v49, %v1265_v30  ;;  %v1268_v14 = vsel %vm16024_vm3, %v1265_v30, %v1267_v48  ;;  %v1365_v13 = vrot.slane %v10982_v56, 1 }
  0x49   : > { %v9528_v20 = vpack.i.bf16 %v1272_v2, %v1343_v8  ;;  %v1341_v26 = vsel %vm15981_vm10, %v1266_v19, 0.0  ;;  %v11091_v28 = vand.u32 15, %v545_v5  ;;  %v1367_v29 = vrot.slane %v10990_v60, 1 }
  0x4a   : > { %v9523_v31 = vpack.i.bf16 %v1268_v14, %v1341_v26  ;;  %v1369_v15 = vrot.slane %v11079_v4, 1  ;;  %v543_v49 = vadd.s32 40, %v10795_v6  ;;  %v1363_v34 = vrot.slane %v10954_v38, 1  ;;  %v11140_v14 = vld [vmem:[%s10811_s30 + $0x48] sm:$0xff] }
  0x4b   : > { %16195 = vst [vmem:[#allocation8_spill] sm:$0xff] %v11091_v28  ;;  %9519 = vrot.lane.b32.xlu1 %v9518_v61, %s10675_s16  ;;  %9514 = vrot.lane.b32.xlu0 %v9513_v62, %s10675_s16  ;;  %v9538_v36 = vpack.i.bf16 %v10990_v60, %v10982_v56  ;;  %vm15982_vm14 = vcmp.lt.s32.totalorder %v11091_v28, 15  ;;  %v1368_v40 = vsel %vm1353_vm7, %v1365_v13, %v1367_v29  ;;  %v1463_v47 = vrot.slane %v10982_v56, 2 }
  0x4c   : > { %v1370_v43 = vsel %vm1353_vm7, %v1367_v29, %v1369_v15  ;;  %v11106_v12 = vand.u32 15, %v543_v49  ;;  %v1366_v44 = vsel %vm1353_vm7, %v1363_v34, %v1365_v13  ;;  %v1465_v50 = vrot.slane %v10990_v60, 2  ;;  %v11156_v49 = vld [vmem:[%s10811_s30 + $0x50] sm:$0xff] }
  0x4d   : > { %v1442_v48 = vsel %vm15982_vm14, %v1370_v43, 0.0  ;;  %v1467_v52 = vrot.slane %v11079_v4, 2  ;;  %v1461_v54 = vrot.slane %v10954_v38, 2  ;;  %v9533_v55 = vpack.i.bf16 %v10954_v38, %v10894_v53 }
  0x4e   : > { %16196 = vst [vmem:[#allocation9_spill] sm:$0xff] %v11106_v12  ;;  %vm15985_vm10 = vcmp.lt.s32.totalorder %v11106_v12, 15  ;;  %v1364_v57 = vsel %vm1353_vm7, %v1361_v0, %v1363_v34  ;;  %vm15986_vm14 = vcmp.lt.s32.totalorder %v11091_v28, 14  ;;  %v9548_v58 = vpack.i.bf16 %v1442_v48, %v1368_v40 }
  0x4f   : > { %9529 = vrot.lane.b32.xlu1 %v9528_v20, %s10677_s20  ;;  %9524 = vrot.lane.b32.xlu0 %v9523_v31, %s10677_s20  ;;  %v1440_v61 = vsel %vm15985_vm10, %v1366_v44, 0.0  ;;  %v1468_v62 = vsel %vm16031_vm9, %v1465_v50, %v1467_v52  ;;  %vm15990_vm6 = vcmp.lt.s32.totalorder %v11106_v12, 14  ;;  %v1466_v30 = vsel %vm16031_vm9, %v1463_v47, %v1465_v50  ;;  %v11166_v50 = vld [vmem:[%s10811_s30 + $0x58] sm:$0xff] }
  0x50   : > { %v1464_v63 = vsel %vm16031_vm9, %v1461_v54, %v1463_v47  ;;  %vm15987_vm5 = vcmp.lt.s32.totalorder %v11091_v28, 13  ;;  %v1561_v0 = vrot.slane %v10982_v56, 3  ;;  %v9543_v2 = vpack.i.bf16 %v1440_v61, %v1364_v57 }
  0x51   : > { %v1462_v5 = vsel %vm16031_vm9, %v1459_v24, %v1461_v54  ;;  %v1563_v8 = vrot.slane %v10990_v60, 3  ;;  %v1565_v19 = vrot.slane %v11079_v4, 3  ;;  %v1540_v13 = vsel %vm15986_vm14, %v1468_v62, 0.0 }
  0x52   : > { %v1538_v20 = vsel %vm15990_vm6, %v1464_v63, 0.0  ;;  %v1559_v26 = vrot.slane %v10954_v38, 3  ;;  %v546_v24 = vadd.s32 64, %v10795_v6  ;;  %vm15989_vm10 = vcmp.lt.s32.totalorder %v11106_v12, 13 }
  0x53   : > { %9539 = vrot.lane.b32.xlu1 %v9538_v36, %s10674_s14  ;;  %9534 = vrot.lane.b32.xlu0 %v9533_v55, %s10674_s14  ;;  %v1566_v29 = vsel %vm1549_vm12, %v1563_v8, %v1565_v19  ;;  %v1077_v31 = vrot.slane %v11079_v4, 5  ;;  %v1079_v40 = vrot.slane %v11140_v14, 5  ;;  %v9558_v43 = vpack.i.bf16 %v1540_v13, %v1466_v30 }
  0x54   : > { %v1562_v34 = vsel %vm1549_vm12, %v1559_v26, %v1561_v0  ;;  %v11159_v36 = vand.u32 15, %v546_v24  ;;  %v9553_v44 = vpack.i.bf16 %v1538_v20, %v1462_v5  ;;  %v1564_v47 = vsel %vm1549_vm12, %v1561_v0, %v1563_v8 }
  0x55   : > { %v1638_v48 = vsel %vm15987_vm5, %v1566_v29, 0.0  ;;  %v1560_v54 = vsel %vm1549_vm12, %v1557_v42, %v1559_v26  ;;  %v1636_v55 = vsel %vm15989_vm10, %v1562_v34, 0.0  ;;  %v1078_v57 = vsel %vm16027_vm1, %v1075_v22, %v1077_v31 }
  0x56   : > { %16197 = vst [vmem:[#allocation10_spill] sm:$0xff] %v11159_v36  ;;  %vm15988_vm14 = vcmp.ge.s32.totalorder %v11159_v36, 3  ;;  %vm15992_vm5 = vcmp.lt.s32.totalorder %v11106_v12, 12  ;;  %v973_v61 = vrot.slane %v10954_v38, 4  ;;  %v548_v62 = vadd.s32 80, %v10795_v6 }
  0x57   : > { %9549 = vrot.lane.b32.xlu1 %v9548_v58, %s10678_s21  ;;  %9544 = vrot.lane.b32.xlu0 %v9543_v2, %s10678_s21  ;;  %v975_v58 = vrot.slane %v10982_v56, 4  ;;  %v9568_v30 = vpack.i.bf16 %v1638_v48, %v1564_v47  ;;  %v1080_v42 = vsel %vm16027_vm1, %v1077_v31, %v1079_v40  ;;  %v1081_v63 = vrot.slane %v11156_v49, 5 }
  0x58   : > { %v1083_v0 = vrot.slane %v11166_v50, 5  ;;  %v9563_v2 = vpack.i.bf16 %v1636_v55, %v1560_v54  ;;  %v1149_v5 = vsel %vm15988_vm14, %v1078_v57, 0.0  ;;  %v11191_v8 = vand.u32 15, %v548_v62 }
  0x59   : > { %v11189_v22 = vsel %vm963_vm4, %v973_v61, %v975_v58  ;;  %v11198_v38 = vsel %vm963_vm4, %v971_v32, %v973_v61  ;;  %v1082_v13 = vsel %vm16027_vm1, %v1079_v40, %v1081_v63  ;;  %vm15993_vm14 = vcmp.lt.s32.totalorder %v11091_v28, 12 }
  0x5a   : > { %16198 = vst [vmem:[#allocation11_spill] sm:$0xff] %v11191_v8  ;;  %v1684_v56 = vsel %vm15992_vm5, %v11189_v22, 0.0  ;;  %vm15991_vm10 = vcmp.ge.s32.totalorder %v11191_v8, 3  ;;  %v1084_v20 = vsel %vm16027_vm1, %v1081_v63, %v1083_v0  ;;  %v977_v26 = vrot.slane %v10990_v60, 4 }
  0x5b   : > { %9559 = vrot.lane.b32.xlu1 %v9558_v43, %s10679_s22  ;;  %9554 = vrot.lane.b32.xlu0 %v9553_v44, %s10679_s22  ;;  %v979_v53 = vrot.slane %v11079_v4, 4  ;;  %v1151_v32 = vsel %vm15991_vm10, %v1082_v13, 0.0  ;;  %v1177_v24 = vrot.slane %v11140_v14, 6  ;;  %v1179_v29 = vrot.slane %v11156_v49, 6 }
  0x5c   : > { %v9578_v31 = vpack.i.bf16 %v1080_v42, %v1149_v5  ;;  %vm15995_vm6 = vcmp.ge.s32.totalorder %v11191_v8, 2  ;;  %v1181_v40 = vrot.slane %v11166_v50, 6  ;;  %v9573_v43 = vpack.i.bf16 %v1684_v56, %v11198_v38  ;;  %v11243_v42 = vld [vmem:[%s10811_s30 + $0x60] sm:$0xff] }
  0x5d   : > { %v11218_v34 = vsel %vm963_vm4, %v977_v26, %v979_v53  ;;  %v9588_v44 = vpack.i.bf16 %v1084_v20, %v1151_v32  ;;  %v1180_v48 = vsel %vm16025_vm0, %v1177_v24, %v1179_v29  ;;  %v11230_v54 = vsel %vm963_vm4, %v975_v58, %v977_v26 }
  0x5e   : > { %v1686_v47 = vsel %vm15993_vm14, %v11218_v34, 0.0  ;;  %v1182_v55 = vsel %vm16025_vm0, %v1179_v29, %v1181_v40  ;;  %vm16002_vm10 = vcmp.ge.s32.totalorder %v11159_v36, 2  ;;  %v1175_v57 = vrot.slane %v11079_v4, 6 }
  0x5f   : > { %9569 = vrot.lane.b32.xlu1 %v9568_v30, %s10680_s27  ;;  %9564 = vrot.lane.b32.xlu0 %v9563_v2, %s10680_s27  ;;  %v1249_v61 = vsel %vm15995_vm6, %v1180_v48, 0.0  ;;  %vm15994_vm5 = vcmp.ge.s32.totalorder %v11191_v8, 1  ;;  %v1275_v62 = vrot.slane %v11140_v14, 7  ;;  %v1277_v30 = vrot.slane %v11156_v49, 7 }
  0x60   : > { %v1176_v58 = vsel %vm16025_vm0, %v1173_v37, %v1175_v57  ;;  %v1178_v63 = vsel %vm16025_vm0, %v1175_v57, %v1177_v24  ;;  %v1279_v2 = vrot.slane %v11166_v50, 7  ;;  %vm15996_vm14 = vcmp.ge.s32.totalorder %v11159_v36, 1 }
  0x61   : > { %v9583_v5 = vpack.i.bf16 %v1686_v47, %v11230_v54  ;;  %v1247_v56 = vsel %vm16002_vm10, %v1176_v58, 0.0  ;;  %v1278_v13 = vsel %vm16024_vm3, %v1275_v62, %v1277_v30  ;;  %v1273_v20 = vrot.slane %v11079_v4, 7 }
  0x62   : > { %v9598_v37 = vpack.i.bf16 %v1182_v55, %v1249_v61  ;;  %v9593_v26 = vpack.i.bf16 %v1178_v63, %v1247_v56  ;;  %v1280_v32 = vsel %vm16024_vm3, %v1277_v30, %v1279_v2  ;;  %v1347_v24 = vsel %vm15994_vm5, %v1278_v13, 0.0 }
  0x63   : > { %9579 = vrot.lane.b32.xlu1 %v9578_v31, %s10676_s17  ;;  %9574 = vrot.lane.b32.xlu0 %v9573_v43, %s10681_s28  ;;  %v1274_v29 = vsel %vm16024_vm3, %v1271_v59, %v1273_v20  ;;  %v549_v31 = vadd.s32 88, %v10795_v6  ;;  %v1276_v43 = vsel %vm16024_vm3, %v1273_v20, %v1275_v62  ;;  %v1375_v48 = vrot.slane %v11166_v50, 1 }
  0x64   : > { %v1345_v47 = vsel %vm15996_vm14, %v1274_v29, 0.0  ;;  %v1377_v55 = vrot.slane %v11243_v42, 1  ;;  %v1373_v60 = vrot.slane %v11156_v49, 1  ;;  %v547_v59 = vadd.s32 72, %v10795_v6 }
  0x65   : > { %v11274_v57 = vand.u32 15, %v549_v31  ;;  %v1371_v61 = vrot.slane %v11140_v14, 1  ;;  %v9608_v30 = vpack.i.bf16 %v1280_v32, %v1347_v24  ;;  %v9603_v58 = vpack.i.bf16 %v1276_v43, %v1345_v47 }
  0x66   : > { %v11279_v62 = vand.u32 15, %v547_v59  ;;  %v16001_v56 = vrot.slane %v11243_v42, 2  ;;  %v9618_v13 = vpack.i.bf16 %v11166_v50, %v11156_v49  ;;  %v1471_v20 = vrot.slane %v11156_v49, 2 }
  0x67   : > { %9589 = vrot.lane.b32.xlu1 %v9588_v44, %s10676_s17  ;;  %9584 = vrot.lane.b32.xlu0 %v9583_v5, %s10681_s28  ;;  %16199 = vst [vmem:[#allocation12_spill] sm:$0xff] %v11274_v57  ;;  %vm15997_vm5 = vcmp.lt.s32.totalorder %v11274_v57, 15  ;;  %v1378_v44 = vsel %vm1353_vm7, %v1375_v48, %v1377_v55  ;;  %v1374_v63 = vsel %vm1353_vm7, %v1371_v61, %v1373_v60  ;;  %v1473_v5 = vrot.slane %v11166_v50, 2 }
  0x68   : > { %16200 = vst [vmem:[#allocation13_spill] sm:$0xff] %v11279_v62  ;;  %vm15998_vm6 = vcmp.lt.s32.totalorder %v11279_v62, 15  ;;  %v1469_v32 = vrot.slane %v11140_v14, 2  ;;  %v1446_v24 = vsel %vm15997_vm5, %v1378_v44, 0.0  ;;  %v1372_v29 = vsel %vm1353_vm7, %v1369_v15, %v1371_v61 }
  0x69   : > { %v1444_v31 = vsel %vm15998_vm6, %v1374_v63, 0.0  ;;  %vm16004_vm14 = vcmp.lt.s32.totalorder %v11274_v57, 14  ;;  %v1571_v43 = vrot.slane %v11166_v50, 3  ;;  %v16003_v47 = vrot.slane %v11243_v42, 3 }
  0x6a   : > { %v1569_v15 = vrot.slane %v11156_v49, 3  ;;  %v550_v59 = vadd.s32 96, %v10795_v6  ;;  %vm16007_vm5 = vcmp.lt.s32.totalorder %v11279_v62, 14  ;;  %v1472_v61 = vsel %vm16031_vm9, %v1469_v32, %v1471_v20 }
  0x6b   : > { %9599 = vrot.lane.b32.xlu1 %v9598_v37, %s10675_s16  ;;  %9594 = vrot.lane.b32.xlu0 %v9593_v26, %s10675_s16  ;;  %v9613_v37 = vpack.i.bf16 %v11140_v14, %v11079_v4  ;;  %v1376_v26 = vsel %vm1353_vm7, %v1373_v60, %v1375_v48  ;;  %v1476_v48 = vsel %vm16031_vm9, %v1473_v5, %v16001_v56  ;;  %v1567_v60 = vrot.slane %v11140_v14, 3 }
  0x6c   : > { %v9628_v44 = vpack.i.bf16 %v1446_v24, %v1376_v26  ;;  %v9623_v63 = vpack.i.bf16 %v1444_v31, %v1372_v29  ;;  %vm16005_vm6 = vcmp.lt.s32.totalorder %v11274_v57, 13  ;;  %v1544_v1 = vsel %vm16004_vm14, %v1476_v48, 0.0  ;;  %v11343_v29 = vld [vmem:[%s10811_s30 + $0x70] sm:$0xff] }
  0x6d   : > { %v1470_v46 = vsel %vm16031_vm9, %v1467_v52, %v1469_v32  ;;  %v1574_v56 = vsel %vm1549_vm12, %v1571_v43, %v16003_v47  ;;  %v11331_v26 = vand.u32 15, %v550_v59  ;;  %vm16006_vm10 = vcmp.lt.s32.totalorder %v11279_v62, 13 }
  0x6e   : > { %v1085_v24 = vrot.slane %v11243_v42, 5  ;;  %v981_v52 = vrot.slane %v11140_v14, 4  ;;  %v983_v32 = vrot.slane %v11156_v49, 4  ;;  %v552_v31 = vadd.s32 112, %v10795_v6 }
  0x6f   : > { %9609 = vrot.lane.b32.xlu1 %v9608_v30, %s10677_s20  ;;  %9604 = vrot.lane.b32.xlu0 %v9603_v58, %s10677_s20  ;;  %v1474_v30 = vsel %vm16031_vm9, %v1471_v20, %v1473_v5  ;;  %v11321_v58 = vld [vmem:[%s10811_s30 + $0x68] sm:$0xff]  ;;  %16201 = vst [vmem:[#allocation14_spill] sm:$0xff] %v11331_v26  ;;  %v1542_v5 = vsel %vm16007_vm5, %v1472_v61, 0.0  ;;  %v1570_v20 = vsel %vm1549_vm12, %v1567_v60, %v1569_v15  ;;  %vm16008_vm14 = vcmp.ge.s32.totalorder %v11331_v26, 3 }
  0x70   : > { %v1087_v48 = vrot.slane %v11321_v58, 5  ;;  %v9633_v59 = vpack.i.bf16 %v1542_v5, %v1470_v46  ;;  %v1572_v61 = vsel %vm1549_vm12, %v1569_v15, %v1571_v43  ;;  %v1640_v47 = vsel %vm16006_vm10, %v1570_v20, 0.0 }
  0x71   : > { %v1086_v14 = vsel %vm16027_vm1, %v1083_v0, %v1085_v24  ;;  %v11361_v46 = vand.u32 15, %v552_v31  ;;  %v1089_v49 = vrot.slane %v11343_v29, 5  ;;  %v985_v43 = vrot.slane %v11166_v50, 4 }
  0x72   : > { %v987_v15 = vrot.slane %v11243_v42, 4  ;;  %v1153_v0 = vsel %vm16008_vm14, %v1086_v14, 0.0  ;;  %vm16011_vm10 = vcmp.lt.s32.totalorder %v11274_v57, 12  ;;  %v1185_v20 = vrot.slane %v11321_v58, 6 }
  0x73   : > { %9619 = vrot.lane.b32.xlu1 %v9618_v13, %s10674_s14  ;;  %9614 = vrot.lane.b32.xlu0 %v9613_v37, %s10674_s14  ;;  %v9638_v13 = vpack.i.bf16 %v1544_v1, %v1474_v30  ;;  %v1642_v37 = vsel %vm16005_vm6, %v1574_v56, 0.0  ;;  %v1568_v1 = vsel %vm1549_vm12, %v1565_v19, %v1567_v60  ;;  %16202 = vst [vmem:[#allocation15_spill] sm:$0xff] %v11361_v46  ;;  %vm16009_vm6 = vcmp.lt.s32.totalorder %v11279_v62, 12 }
  0x74   : > { %v11366_v56 = vsel %vm963_vm4, %v981_v52, %v983_v32  ;;  %v1088_v19 = vsel %vm16027_vm1, %v1085_v24, %v1087_v48  ;;  %v11379_v60 = vsel %vm963_vm4, %v979_v53, %v981_v52  ;;  %vm16010_vm5 = vcmp.ge.s32.totalorder %v11361_v46, 3 }
  0x75   : > { %v1090_v30 = vsel %vm16027_vm1, %v1087_v48, %v1089_v49  ;;  %v11389_v5 = vsel %vm963_vm4, %v985_v43, %v987_v15  ;;  %v1187_v4 = vrot.slane %v11343_v29, 6  ;;  %v1183_v53 = vrot.slane %v11243_v42, 6 }
  0x76   : > { %v9658_v24 = vpack.i.bf16 %v1088_v19, %v1153_v0  ;;  %v1091_v31 = vsel %vm16027_vm1, %v1089_v49, %v1059_v27  ;;  %v1690_v48 = vsel %vm16011_vm10, %v11389_v5, 0.0  ;;  %vm16013_vm14 = vcmp.ge.s32.totalorder %v11361_v46, 2 }
  0x77   : > { %9629 = vrot.lane.b32.xlu1 %v9628_v44, %s10678_s21  ;;  %9624 = vrot.lane.b32.xlu0 %v9623_v63, %s10678_s21  ;;  %v9648_v44 = vpack.i.bf16 %v1642_v37, %v1572_v61  ;;  %v9643_v63 = vpack.i.bf16 %v1640_v47, %v1568_v1  ;;  %v1688_v47 = vsel %vm16009_vm6, %v11366_v56, 0.0  ;;  %v1155_v37 = vsel %vm16010_vm5, %v1090_v30, 0.0 }
  0x78   : > { %v9653_v52 = vpack.i.bf16 %v1688_v47, %v11379_v60  ;;  %vm16015_vm6 = vcmp.ge.s32.totalorder %v11331_v26, 2  ;;  %v1188_v27 = vsel %vm16025_vm0, %v1185_v20, %v1187_v4  ;;  %v1285_v61 = vrot.slane %v11343_v29, 7 }
  0x79   : > { %v1281_v1 = vrot.slane %v11243_v42, 7  ;;  %v9668_v14 = vpack.i.bf16 %v1091_v31, %v1155_v37  ;;  %v1189_v49 = vsel %vm16025_vm0, %v1187_v4, %v1157_v25  ;;  %vm16012_vm5 = vcmp.ge.s32.totalorder %v11361_v46, 1  ;;  %v11450_v31 = vld [vmem:[%s10811_s30 + $0x78] sm:$0xff] }
  0x7a   : > { %v553_v25 = vadd.s32 120, %v10795_v6  ;;  %vm16014_vm10 = vcmp.ge.s32.totalorder %v11331_v26, 1  ;;  %v551_v47 = vadd.s32 104, %v10795_v6  ;;  %v1287_v4 = vsel %vm16024_vm3, %v1285_v61, %v1255_v51 }
  0x7b   : > { %9639 = vrot.lane.b32.xlu1 %v9638_v13, %s10679_s22  ;;  %9634 = vrot.lane.b32.xlu0 %v9633_v59, %s10679_s22  ;;  %v11399_v13 = vsel %vm963_vm4, %v983_v32, %v985_v43  ;;  %v1184_v32 = vsel %vm16025_vm0, %v1181_v40, %v1183_v53  ;;  %v1283_v59 = vrot.slane %v11321_v58, 7  ;;  %v1253_v40 = vsel %vm16013_vm14, %v1188_v27, 0.0 }
  0x7c   : > { %v9663_v43 = vpack.i.bf16 %v1690_v48, %v11399_v13  ;;  %v1282_v0 = vsel %vm16024_vm3, %v1279_v2, %v1281_v1  ;;  %v9678_v30 = vpack.i.bf16 %v1189_v49, %v1253_v40  ;;  %v1381_v50 = vrot.slane %v11343_v29, 1 }
  0x7d   : > { %v1286_v19 = vsel %vm16024_vm3, %v1283_v59, %v1285_v61  ;;  %v1349_v2 = vsel %vm16014_vm10, %v1282_v0, 0.0  ;;  %v1383_v37 = vrot.slane %v11450_v31, 1  ;;  %v1379_v21 = vrot.slane %v11321_v58, 1 }
  0x7e   : > { %v11454_v48 = vand.u32 15, %v551_v47  ;;  %v1479_v61 = vrot.slane %v11343_v29, 2  ;;  %v9698_v49 = vpack.i.bf16 %v11450_v31, %v11343_v29  ;;  %v1577_v47 = vrot.slane %v11343_v29, 3 }
  0x7f   : > { %9649 = vrot.lane.b32.xlu1 %v9648_v44, %s10680_s27  ;;  %9644 = vrot.lane.b32.xlu0 %v9643_v63, %s10680_s27  ;;  %v1186_v44 = vsel %vm16025_vm0, %v1183_v53, %v1185_v20  ;;  %v1251_v63 = vsel %vm16015_vm6, %v1184_v32, 0.0  ;;  %v1351_v53 = vsel %vm16012_vm5, %v1286_v19, 0.0  ;;  %v1402_v32 = vsel %vm1353_vm7, %v1383_v37, %v1354_v3 }
  0x80   : > { %v9673_v20 = vpack.i.bf16 %v1186_v44, %v1251_v63  ;;  %16204 = vst [vmem:[#allocation17_spill] sm:$0xff] %v11454_v48  ;;  %v9688_v51 = vpack.i.bf16 %v1287_v4, %v1351_v53  ;;  %vm16016_vm14 = vcmp.lt.s32.totalorder %v11454_v48, 15  ;;  %v9693_v3 = vpack.i.bf16 %v11321_v58, %v11243_v42 }
  0x81   : > { %v1380_v44 = vsel %vm1353_vm7, %v1377_v55, %v1379_v21  ;;  %vm16019_vm6 = vcmp.lt.s32.totalorder %v11454_v48, 14  ;;  %v1579_v19 = vrot.slane %v11450_v31, 3  ;;  %v10424_v55 = vld [vmem:[%s15957_s2 + $0x8] sm:$0xff]   ;;  %v2382_v4 = vsel %vm16025_vm0, %v10927_v10, 0 }
  0x82   : > { %v16206_v10 = vrot.slane %v10829_v16, 3  ;;  %9226 = vmatpush3.bf16.msra.mxu0 %v2382_v4  ;;  %vm2242_vm0 = vcmask 130048   ;;  %vm2259_vm8 = vcmask 162816   ;;  %vm2276_vm1 = vcmask 195584  }
  0x83   : > { %9659 = vrot.lane.b32.xlu1 %v9658_v24, %s10676_s17  ;;  %9654 = vrot.lane.b32.xlu0 %v9653_v52, %s10681_s28  ;;  %v1284_v24 = vsel %vm16024_vm3, %v1281_v1, %v1283_v59  ;;  %v11447_v52 = vand.u32 15, %v553_v25  ;;  %v1382_v59 = vsel %vm1353_vm7, %v1379_v21, %v1381_v50  ;;  %v1481_v1 = vrot.slane %v11450_v31, 2 }
  0x84   : > { %v9683_v27 = vpack.i.bf16 %v1284_v24, %v1349_v2  ;;  %v1448_v63 = vsel %vm16016_vm14, %v1382_v59, 0.0  ;;  %v16205_v24 = vrot.slane %v11243_v42, 2  ;;  %v1598_v21 = vsel %vm1549_vm12, %v1579_v19, %v16206_v10  ;;  %9227 = vmatprep.subr.bf16.mxu0 %v10424_v55 }
  0x85   : > { %16203 = vst [vmem:[#allocation16_spill] sm:$0xff] %v11447_v52  ;;  %vm16017_vm5 = vcmp.lt.s32.totalorder %v11447_v52, 15  ;;  %vm16018_vm10 = vcmp.lt.s32.totalorder %v11447_v52, 14  ;;  %v1500_v25 = vsel %vm16031_vm9, %v1481_v1, %v1452_v33  ;;  %v9703_v53 = vpack.i.bf16 %v1448_v63, %v1380_v44 }
  0x86   : > { %v1450_v40 = vsel %vm16017_vm5, %v1402_v32, 0.0  ;;  %v1482_v33 = vsel %vm16031_vm9, %v1479_v61, %v1481_v1  ;;  %vm16020_vm14 = vcmp.lt.s32.totalorder %v11447_v52, 13  ;;  %v1548_v2 = vsel %vm16018_vm10, %v1500_v25, 0.0  ;;  %9228 = vmatpush3.bf16.msra.mxu0 %v10424_v55 }
  0x87   : > { %9669 = vrot.lane.b32.xlu1 %v9668_v14, %s10676_s17  ;;  %9664 = vrot.lane.b32.xlu0 %v9663_v43, %s10681_s28  ;;  %v1477_v14 = vrot.slane %v11321_v58, 2  ;;  %v1384_v43 = vsel %vm1353_vm7, %v1381_v50, %v1383_v37  ;;  %vm16021_vm5 = vcmp.lt.s32.totalorder %v11454_v48, 13  ;;  %v991_v32 = vrot.slane %v11343_v29, 4 }
  0x88   : > { %v989_v59 = vrot.slane %v11321_v58, 4  ;;  %v9718_v1 = vpack.i.bf16 %v1548_v2, %v1482_v33  ;;  %v1646_v29 = vsel %vm16020_vm14, %v1598_v21, 0.0  ;;  %vm16022_vm10 = vcmp.lt.s32.totalorder %v11447_v52, 12 }
  0x89   : > { %v1480_v0 = vsel %vm16031_vm9, %v1477_v14, %v1479_v61  ;;  %v1478_v50 = vsel %vm16031_vm9, %v16205_v24, %v1477_v14  ;;  %v10425_v61 = vld [vmem:[%s15957_s2] sm:$0xff]   ;;  %v16208_v44 = vrot.slane %v10829_v16, 4  ;;  %vm16030_vm14 = vcmp.ge.s32.totalorder %v10814_v11, 4 }
  0x8a   : > { %v1546_v37 = vsel %vm16019_vm6, %v1480_v0, 0.0  ;;  %vm16023_vm6 = vcmp.lt.s32.totalorder %v11454_v48, 12  ;;  %9229 = vmatprep.subr.bf16.mxu0 %v10425_v61  ;;  %vm2225_vm3 = vcmask 97280   ;;  %vm2293_vm15 = vcmask 228352  }
  0x8b   : > { %9679 = vrot.lane.b32.xlu1 %v9678_v30, %s10675_s16  ;;  %9674 = vrot.lane.b32.xlu0 %v9673_v20, %s10675_s16  ;;  %v1575_v30 = vrot.slane %v11321_v58, 3  ;;  %v9708_v20 = vpack.i.bf16 %v1450_v40, %v1384_v43  ;;  %v9713_v14 = vpack.i.bf16 %v1546_v37, %v1478_v50  ;;  %v16207_v58 = vrot.slane %v11243_v42, 3 }
  0x8c   : > { %9230 = vmatpush3.bf16.msra.mxu0 %v10425_v61  ;;  %vm16033_vm9 = vcmp.ge.s32.totalorder %v11006_v9, 4  ;;  %vm16034_vm11 = vcmp.ge.s32.totalorder %v10957_v39, 4 }
  0x8f   : > { %9689 = vrot.lane.b32.xlu1 %v9688_v51, %s10677_s20  ;;  %9684 = vrot.lane.b32.xlu0 %v9683_v27, %s10677_s20  ;;  %v1578_v51 = vsel %vm1549_vm12, %v1575_v30, %v1577_v47  ;;  %v946_v27 = vrot.slane %v11450_v31, 4  ;;  %v1576_v31 = vsel %vm1549_vm12, %v16207_v58, %v1575_v30  ;;  %v11549_v30 = vsel %vm963_vm4, %v987_v15, %v989_v59  ;;  %s11763_s20 = scalar_lea.vmem [#allocation2], %s9385_s19 }
  0x90   : > { %v1644_v43 = vsel %vm16021_vm5, %v1578_v51, 0.0  ;;  %vm16029_vm5 = vcmp.ge.s32.totalorder %v10800_v7, 4  ;;  %v1045_v51 = vsel %vm16030_vm14, %v11016_v23, 0.0  ;;  %vm2356_vm14 = vcmask 293888  }
  0x91   : > { %v1010_v63 = vsel %vm963_vm4, %v946_v27, %v16208_v44  ;;  %v9723_v0 = vpack.i.bf16 %v1644_v43, %v1576_v31 }
  0x92   : > { %v1694_v16 = vsel %vm16022_vm10, %v1010_v63, 0.0  ;;  %vm2191_vm10 = vcmask 31744  }
  0x93   : > { %9699 = vrot.lane.b32.xlu1 %v9698_v49, %s10674_s14  ;;  %9694 = vrot.lane.b32.xlu0 %v9693_v3, %s10674_s14  ;;  %v1580_v3 = vsel %vm1549_vm12, %v1577_v47, %v1579_v19  ;;  %v11537_v19 = vsel %vm963_vm4, %v989_v59, %v991_v32  ;;  %v11542_v47 = vsel %vm963_vm4, %v991_v32, %v946_v27  ;;  %v1043_v27 = vsel %vm16029_vm5, %v1010_v63, 0.0 }
  0x94   : > { %v9728_v25 = vpack.i.bf16 %v1646_v29, %v1580_v3  ;;  %v1692_v55 = vsel %vm16023_vm6, %v11537_v19, 0.0  ;;  %vm2208_vm6 = vcmask 64512   ;;  %vm2310_vm5 = vcmask 261120  }
  0x95   : > { %v9733_v33 = vpack.i.bf16 %v1692_v55, %v11549_v30 }
  0x97   : > { %9709 = vrot.lane.b32.xlu1 %v9708_v20, %s10678_s21  ;;  %9704 = vrot.lane.b32.xlu0 %v9703_v53, %s10678_s21  ;;  %v11519_v49 = vpop.permute.xlu1 %9429  ;;  %v9738_v53 = vpack.i.bf16 %v1694_v16, %v11542_v47  ;;  %s10684_s21 = smov 64  }
  0x98   : > { %v9432_v43 = vunpack.i.h.bf16 %v11519_v49  ;;  %v9431_v44 = vunpack.i.l.bf16 %v11519_v49 }
  0x99   : > { %v11529_v40 = vpop.permute.xlu0 %9424 }
  0x9b   : > { %9719 = vrot.lane.b32.xlu1 %v9718_v1, %s10679_s22  ;;  %9714 = vrot.lane.b32.xlu0 %v9713_v14, %s10679_s22 }
  0x9d   : > { %v9445_v20 = vpop.permute.xlu1 %9444  ;;  %v9435_v4 = vpop.permute.xlu0 %9434 }
  0x9e   : > { %v9437_v2 = vunpack.i.h.bf16 %v9435_v4  ;;  %v9436_v37 = vunpack.i.l.bf16 %v9435_v4  ;;  %v9447_v61 = vunpack.i.h.bf16 %v9445_v20  ;;  %v9446_v1 = vunpack.i.l.bf16 %v9445_v20 }
  0x9f   : > { %9729 = vrot.lane.b32.xlu1 %v9728_v25, %s10680_s27  ;;  %9724 = vrot.lane.b32.xlu0 %v9723_v0, %s10680_s27  ;;  %v9427_v20 = vunpack.i.h.bf16 %v11529_v40  ;;  %v9426_v4 = vunpack.i.l.bf16 %v11529_v40 }
  0xa0   : > { %v2193_v14 = vsel %vm2191_vm10, %v11013_v45, %v9437_v2  ;;  %v2192_v3 = vsel %vm2191_vm10, %v1043_v27, %v9436_v37 }
  0xa1   : > { %v9450_v24 = vpop.permute.xlu1 %9449  ;;  %v9440_v42 = vpop.permute.xlu0 %9439 }
  0xa2   : > { %v9442_v32 = vunpack.i.h.bf16 %v9440_v42  ;;  %v9441_v59 = vunpack.i.l.bf16 %v9440_v42  ;;  %v9452_v63 = vunpack.i.h.bf16 %v9450_v24  ;;  %v9451_v25 = vunpack.i.l.bf16 %v9450_v24 }
  0xa3   : > { %9739 = vrot.lane.b32.xlu1 %v9738_v53, %s10681_s28  ;;  %9734 = vrot.lane.b32.xlu0 %v9733_v33, %s10681_s28  ;;  %v2209_v53 = vsel %vm2208_vm6, %v2192_v3, %v9446_v1  ;;  %v2210_v33 = vsel %vm2208_vm6, %v2193_v14, %v9447_v61 }
  0xa4   : > { %v2195_v0 = vsel %vm2191_vm10, %v11036_v35, %v9442_v32  ;;  %v2194_v16 = vsel %vm2191_vm10, %v1045_v51, %v9441_v59 }
  0xa5   : > { %v9460_v15 = vpop.permute.xlu1 %9459  ;;  %v9455_v50 = vpop.permute.xlu0 %9454  ;;  %v2211_v37 = vsel %vm2208_vm6, %v2194_v16, %v9451_v25 }
  0xa6   : > { %v9457_v29 = vunpack.i.h.bf16 %v9455_v50  ;;  %v9456_v23 = vunpack.i.l.bf16 %v9455_v50  ;;  %v9462_v55 = vunpack.i.h.bf16 %v9460_v15  ;;  %v9461_v45 = vunpack.i.l.bf16 %v9460_v15 }
  0xa7   : > { %v2212_v15 = vsel %vm2208_vm6, %v2195_v0, %v9452_v63 }
  0xa8   : > { %v2226_v49 = vsel %vm2225_vm3, %v2209_v53, %v9456_v23  ;;  %v2227_v24 = vsel %vm2225_vm3, %v2210_v33, %v9457_v29  ;;  %v2228_v40 = vsel %vm2225_vm3, %v2211_v37, %v9461_v45  ;;  %v2229_v32 = vsel %vm2225_vm3, %v2212_v15, %v9462_v55 }
  0xa9   : > { %v11562_v10 = vpop.permute.xlu1 %9469  ;;  %v9465_v21 = vpop.permute.xlu0 %9464  ;;  %v2244_v3 = vsel %vm2242_vm0, %v2227_v24, %v9427_v20  ;;  %v2246_v24 = vsel %vm2242_vm0, %v2229_v32, %v9432_v43 }
  0xaa   : > { %v9467_v42 = vunpack.i.h.bf16 %v9465_v21  ;;  %v9466_v50 = vunpack.i.l.bf16 %v9465_v21  ;;  %v9472_v1 = vunpack.i.h.bf16 %v11562_v10  ;;  %v9471_v14 = vunpack.i.l.bf16 %v11562_v10 }
  0xab   : > { %v2243_v21 = vsel %vm2242_vm0, %v2226_v49, %v9426_v4  ;;  %v2245_v49 = vsel %vm2242_vm0, %v2228_v40, %v9431_v44 }
  0xac   : > { %v2260_v29 = vsel %vm2259_vm8, %v2243_v21, %v9466_v50  ;;  %v2261_v23 = vsel %vm2259_vm8, %v2244_v3, %v9467_v42  ;;  %v2262_v50 = vsel %vm2259_vm8, %v2245_v49, %v9471_v14 }
  0xad   : > { %v9480_v58 = vpop.permute.xlu1 %9479  ;;  %v9475_v31 = vpop.permute.xlu0 %9474 }
  0xae   : > { %v9477_v51 = vunpack.i.h.bf16 %v9475_v31  ;;  %v9476_v27 = vunpack.i.l.bf16 %v9475_v31  ;;  %v9482_v63 = vunpack.i.h.bf16 %v9480_v58  ;;  %v9481_v31 = vunpack.i.l.bf16 %v9480_v58 }
  0xb0   : > { %v2277_v45 = vsel %vm2276_vm1, %v2260_v29, %v9476_v27  ;;  %v2278_v53 = vsel %vm2276_vm1, %v2261_v23, %v9477_v51 }
  0xb1   : > { %v9490_v35 = vpop.permute.xlu1 %9489  ;;  %v9485_v2 = vpop.permute.xlu0 %9484 }
  0xb2   : > { %v9487_v59 = vunpack.i.h.bf16 %v9485_v2  ;;  %v9486_v61 = vunpack.i.l.bf16 %v9485_v2  ;;  %v9492_v33 = vunpack.i.h.bf16 %v9490_v35  ;;  %v9491_v10 = vunpack.i.l.bf16 %v9490_v35 }
  0xb3   : > { %v2263_v2 = vsel %vm2259_vm8, %v2246_v24, %v9472_v1  ;;  %v2279_v35 = vsel %vm2276_vm1, %v2262_v50, %v9481_v31 }
  0xb4   : > { %v2294_v4 = vsel %vm2293_vm15, %v2277_v45, %v9486_v61  ;;  %v2295_v20 = vsel %vm2293_vm15, %v2278_v53, %v9487_v59  ;;  %v2280_v27 = vsel %vm2276_vm1, %v2263_v2, %v9482_v63  ;;  %v2296_v44 = vsel %vm2293_vm15, %v2279_v35, %v9491_v10 }
  0xb5   : > { %v9500_v25 = vpop.permute.xlu1 %9499  ;;  %v9495_v0 = vpop.permute.xlu0 %9494  ;;  %v2297_v43 = vsel %vm2293_vm15, %v2280_v27, %v9492_v33 }
  0xb6   : > { %v9497_v16 = vunpack.i.h.bf16 %v9495_v0  ;;  %v9496_v55 = vunpack.i.l.bf16 %v9495_v0  ;;  %v9502_v53 = vunpack.i.h.bf16 %v9500_v25  ;;  %v9501_v33 = vunpack.i.l.bf16 %v9500_v25 }
  0xb8   : > { %v2311_v58 = vsel %vm2310_vm5, %v2294_v4, %v9496_v55  ;;  %v2312_v42 = vsel %vm2310_vm5, %v2295_v20, %v9497_v16  ;;  %v1049_v16 = vsel %vm16033_vm9, %v11189_v22, 0.0  ;;  %v1047_v20 = vsel %vm16034_vm11, %v11046_v41, 0.0 }
  0xb9   : > { %v9510_v37 = vpop.permute.xlu1 %9509  ;;  %v9505_v15 = vpop.permute.xlu0 %9504  ;;  %v2327_v51 = vpack.c.bf16 %v2312_v42, %v2311_v58  ;;  %v2197_v25 = vsel %vm2191_vm10, %v11198_v38, %v9502_v53  ;;  %v2196_v35 = vsel %vm2191_vm10, %v1047_v20, %v9501_v33  ;;  %vm16035_vm9 = vcmp.ge.s32.totalorder %v11191_v8, 4 }
  0xba   : > { %v9507_v59 = vunpack.i.h.bf16 %v9505_v15  ;;  %v9506_v61 = vunpack.i.l.bf16 %v9505_v15  ;;  %v9512_v55 = vunpack.i.h.bf16 %v9510_v37  ;;  %v9511_v45 = vunpack.i.l.bf16 %v9510_v37 }
  0xbb   : > { %9231 = vmatprep.mubr.msk.bf16.mxu0 %vm2356_vm14, %v2327_v51  ;;  %vm16036_vm11 = vcmp.ge.s32.totalorder %v11159_v36, 4 }
  0xbc   : > { %v2314_v40 = vsel %vm2310_vm5, %v2297_v43, %v9507_v59  ;;  %v2313_v32 = vsel %vm2310_vm5, %v2296_v44, %v9506_v61  ;;  %v2199_v15 = vsel %vm2191_vm10, %v11230_v54, %v9512_v55  ;;  %v2198_v22 = vsel %vm2191_vm10, %v1049_v16, %v9511_v45 }
  0xbd   : > { %v9520_v1 = vpop.permute.xlu1 %9519  ;;  %v9515_v14 = vpop.permute.xlu0 %9514  ;;  %v2328_v21 = vpack.c.bf16 %v2314_v40, %v2313_v32 }
  0xbe   : > { %v9522_v10 = vunpack.i.h.bf16 %v9520_v1  ;;  %v9521_v4 = vunpack.i.l.bf16 %v9520_v1  ;;  %v9517_v49 = vunpack.i.h.bf16 %v9515_v14  ;;  %v9516_v24 = vunpack.i.l.bf16 %v9515_v14 }
  0xbf   : > { %9232 = vmatmul.mubr.msk.bf16.vlgmr.msra.gmra.mxu0 %vm2356_vm14, %v2328_v21 }
  0xc0   : > { %v2215_v41 = vsel %vm2208_vm6, %v2198_v22, %v9521_v4  ;;  %v2216_v27 = vsel %vm2208_vm6, %v2199_v15, %v9522_v10  ;;  %v2214_v59 = vsel %vm2208_vm6, %v2197_v25, %v9517_v49  ;;  %v2213_v61 = vsel %vm2208_vm6, %v2196_v35, %v9516_v24 }
  0xc1   : > { %v9530_v3 = vpop.permute.xlu1 %9529  ;;  %v9525_v29 = vpop.permute.xlu0 %9524 }
  0xc2   : > { %v9532_v58 = vunpack.i.h.bf16 %v9530_v3  ;;  %v9531_v42 = vunpack.i.l.bf16 %v9530_v3  ;;  %v9527_v37 = vunpack.i.h.bf16 %v9525_v29  ;;  %v9526_v51 = vunpack.i.l.bf16 %v9525_v29 }
  0xc4   : > { %v2232_v54 = vsel %vm2225_vm3, %v2215_v41, %v9531_v42  ;;  %v2233_v40 = vsel %vm2225_vm3, %v2216_v27, %v9532_v58  ;;  %v2230_v21 = vsel %vm2225_vm3, %v2213_v61, %v9526_v51  ;;  %v2231_v3 = vsel %vm2225_vm3, %v2214_v59, %v9527_v37 }
  0xc5   : > { %v11611_v23 = vpop.permute.xlu1 %9539  ;;  %v9535_v63 = vpop.permute.xlu0 %9534 }
  0xc6   : > { %v9537_v44 = vunpack.i.h.bf16 %v9535_v63  ;;  %v9536_v43 = vunpack.i.l.bf16 %v9535_v63  ;;  %v9542_v55 = vunpack.i.h.bf16 %v11611_v23  ;;  %v9541_v45 = vunpack.i.l.bf16 %v11611_v23 }
  0xc8   : > { %v2247_v33 = vsel %vm2242_vm0, %v2230_v21, %v9536_v43  ;;  %v2248_v10 = vsel %vm2242_vm0, %v2231_v3, %v9537_v44  ;;  %v2249_v41 = vsel %vm2242_vm0, %v2232_v54, %v9541_v45  ;;  %v2250_v27 = vsel %vm2242_vm0, %v2233_v40, %v9542_v55 }
  0xc9   : > { %v11615_v31 = vpop.permute.xlu1 %9549  ;;  %v9545_v0 = vpop.permute.xlu0 %9544 }
  0xca   : > { %v9547_v32 = vunpack.i.h.bf16 %v9545_v0  ;;  %v9546_v1 = vunpack.i.l.bf16 %v9545_v0  ;;  %v9552_v0 = vunpack.i.h.bf16 %v11615_v31  ;;  %v9551_v4 = vunpack.i.l.bf16 %v11615_v31 }
  0xcc   : > { %v2264_v20 = vsel %vm2259_vm8, %v2247_v33, %v9546_v1  ;;  %v2265_v49 = vsel %vm2259_vm8, %v2248_v10, %v9547_v32  ;;  %v2266_v61 = vsel %vm2259_vm8, %v2249_v41, %v9551_v4  ;;  %v2267_v44 = vsel %vm2259_vm8, %v2250_v27, %v9552_v0 }
  0xcd   : > { %v9560_v50 = vpop.permute.xlu1 %9559  ;;  %v9555_v2 = vpop.permute.xlu0 %9554 }
  0xce   : > { %v9557_v29 = vunpack.i.h.bf16 %v9555_v2  ;;  %v9556_v16 = vunpack.i.l.bf16 %v9555_v2  ;;  %v9562_v24 = vunpack.i.h.bf16 %v9560_v50  ;;  %v9561_v58 = vunpack.i.l.bf16 %v9560_v50 }
  0xd0   : > { %v2281_v23 = vsel %vm2276_vm1, %v2264_v20, %v9556_v16  ;;  %v2282_v15 = vsel %vm2276_vm1, %v2265_v49, %v9557_v29  ;;  %v1053_v49 = vsel %vm16035_vm9, %v11366_v56, 0.0  ;;  %vm790_vm9 = vcmp.ge.s32.totalorder %v11331_v26, 4 }
  0xd1   : > { %v9570_v14 = vpop.permute.xlu1 %9569  ;;  %v9565_v38 = vpop.permute.xlu0 %9564 }
  0xd2   : > { %v9567_v53 = vunpack.i.h.bf16 %v9565_v38  ;;  %v9566_v63 = vunpack.i.l.bf16 %v9565_v38  ;;  %v9572_v51 = vunpack.i.h.bf16 %v9570_v14  ;;  %v9571_v25 = vunpack.i.l.bf16 %v9570_v14 }
  0xd3   : > { %v2283_v14 = vsel %vm2276_vm1, %v2266_v61, %v9561_v58  ;;  %v2284_v38 = vsel %vm2276_vm1, %v2267_v44, %v9562_v24 }
  0xd4   : > { %v2298_v35 = vsel %vm2293_vm15, %v2281_v23, %v9566_v63  ;;  %v2299_v31 = vsel %vm2293_vm15, %v2282_v15, %v9567_v53  ;;  %v2300_v54 = vsel %vm2293_vm15, %v2283_v14, %v9571_v25  ;;  %v2301_v40 = vsel %vm2293_vm15, %v2284_v38, %v9572_v51 }
  0xd5   : > { %v9580_v42 = vpop.permute.xlu1 %9579  ;;  %v9575_v2 = vpop.permute.xlu0 %9574 }
  0xd6   : > { %v9577_v22 = vunpack.i.h.bf16 %v9575_v2  ;;  %v9576_v37 = vunpack.i.l.bf16 %v9575_v2  ;;  %v9582_v2 = vunpack.i.h.bf16 %v9580_v42  ;;  %v9581_v23 = vunpack.i.l.bf16 %v9580_v42 }
  0xd8   : > { %v2315_v50 = vsel %vm2310_vm5, %v2298_v35, %v9576_v37  ;;  %v2316_v59 = vsel %vm2310_vm5, %v2299_v31, %v9577_v22  ;;  %v1051_v37 = vsel %vm16036_vm11, %v11218_v34, 0.0  ;;  %v2201_v42 = vsel %vm2191_vm10, %v11379_v60, %v9582_v2 }
  0xd9   : > { %v9590_v43 = vpop.permute.xlu1 %9589  ;;  %v9585_v32 = vpop.permute.xlu0 %9584  ;;  %v2329_v1 = vpack.c.bf16 %v2316_v59, %v2315_v50  ;;  %v2200_v44 = vsel %vm2191_vm10, %v1051_v37, %v9581_v23  ;;  %vm792_vm11 = vcmp.ge.s32.totalorder %v11361_v46, 4 }
  0xda   : > { %v9587_v21 = vunpack.i.h.bf16 %v9585_v32  ;;  %v9586_v3 = vunpack.i.l.bf16 %v9585_v32  ;;  %v9592_v24 = vunpack.i.h.bf16 %v9590_v43  ;;  %v9591_v58 = vunpack.i.l.bf16 %v9590_v43 }
  0xdb   : > { %9235 = vmatprep.mubr.msk.bf16.mxu0 %vm2356_vm14, %v2329_v1 }
  0xdc   : > { %v2318_v29 = vsel %vm2310_vm5, %v2301_v40, %v9587_v21  ;;  %v2317_v16 = vsel %vm2310_vm5, %v2300_v54, %v9586_v3  ;;  %v2203_v50 = vsel %vm2191_vm10, %v11399_v13, %v9592_v24  ;;  %v2202_v56 = vsel %vm2191_vm10, %v1053_v49, %v9591_v58 }
  0xdd   : > { %v9600_v55 = vpop.permute.xlu1 %9599  ;;  %v9595_v45 = vpop.permute.xlu0 %9594  ;;  %v2330_v53 = vpack.c.bf16 %v2318_v29, %v2317_v16 }
  0xde   : > { %v9602_v15 = vunpack.i.h.bf16 %v9600_v55  ;;  %v9601_v22 = vunpack.i.l.bf16 %v9600_v55  ;;  %v9597_v51 = vunpack.i.h.bf16 %v9595_v45  ;;  %v9596_v25 = vunpack.i.l.bf16 %v9595_v45 }
  0xdf   : > { %9236 = vmatmul.mubr.msk.bf16.gmra.mxu0 %vm2356_vm14, %v2330_v53 }
  0xe0   : > { %v2219_v34 = vsel %vm2208_vm6, %v2202_v56, %v9601_v22  ;;  %v2220_v43 = vsel %vm2208_vm6, %v2203_v50, %v9602_v15  ;;  %v2218_v32 = vsel %vm2208_vm6, %v2201_v42, %v9597_v51  ;;  %v2217_v1 = vsel %vm2208_vm6, %v2200_v44, %v9596_v25 }
  0xe1   : > { %v9610_v63 = vpop.permute.xlu1 %9609  ;;  %v9605_v33 = vpop.permute.xlu0 %9604 }
  0xe2   : > { %v9612_v35 = vunpack.i.h.bf16 %v9610_v63  ;;  %v9611_v31 = vunpack.i.l.bf16 %v9610_v63  ;;  %v9607_v59 = vunpack.i.h.bf16 %v9605_v33  ;;  %v9606_v61 = vunpack.i.l.bf16 %v9605_v33 }
  0xe4   : > { %v2236_v13 = vsel %vm2225_vm3, %v2219_v34, %v9611_v31  ;;  %v2237_v21 = vsel %vm2225_vm3, %v2220_v43, %v9612_v35  ;;  %v2234_v29 = vsel %vm2225_vm3, %v2217_v1, %v9606_v61  ;;  %v2235_v16 = vsel %vm2225_vm3, %v2218_v32, %v9607_v59 }
  0xe5   : > { %v11663_v10 = vpop.permute.xlu1 %9619  ;;  %v9615_v0 = vpop.permute.xlu0 %9614 }
  0xe6   : > { %v9617_v14 = vunpack.i.h.bf16 %v9615_v0  ;;  %v9616_v38 = vunpack.i.l.bf16 %v9615_v0  ;;  %v9622_v53 = vunpack.i.h.bf16 %v11663_v10  ;;  %v9621_v63 = vunpack.i.l.bf16 %v11663_v10 }
  0xe8   : > { %v2251_v49 = vsel %vm2242_vm0, %v2234_v29, %v9616_v38  ;;  %v2252_v24 = vsel %vm2242_vm0, %v2235_v16, %v9617_v14  ;;  %v2253_v59 = vsel %vm2242_vm0, %v2236_v13, %v9621_v63  ;;  %v2254_v61 = vsel %vm2242_vm0, %v2237_v21, %v9622_v53 }
  0xe9   : > { %v11667_v4 = vpop.permute.xlu1 %9629  ;;  %v9625_v20 = vpop.permute.xlu0 %9624 }
  0xea   : > { %v9627_v3 = vunpack.i.h.bf16 %v9625_v20  ;;  %v9626_v54 = vunpack.i.l.bf16 %v9625_v20  ;;  %v9632_v20 = vunpack.i.h.bf16 %v11667_v4  ;;  %v9631_v58 = vunpack.i.l.bf16 %v11667_v4 }
  0xec   : > { %v2268_v2 = vsel %vm2259_vm8, %v2251_v49, %v9626_v54  ;;  %v2269_v23 = vsel %vm2259_vm8, %v2252_v24, %v9627_v3  ;;  %v2270_v44 = vsel %vm2259_vm8, %v2253_v59, %v9631_v58  ;;  %v2271_v34 = vsel %vm2259_vm8, %v2254_v61, %v9632_v20 }
  0xed   : > { %v9640_v41 = vpop.permute.xlu1 %9639  ;;  %v9635_v27 = vpop.permute.xlu0 %9634  ;;  %v1057_v49 = vsel %vm792_vm11, %v11537_v19, 0.0 }
  0xee   : > { %v9637_v55 = vunpack.i.h.bf16 %v9635_v27  ;;  %v9636_v45 = vunpack.i.l.bf16 %v9635_v27  ;;  %v9642_v15 = vunpack.i.h.bf16 %v9640_v41  ;;  %v9641_v22 = vunpack.i.l.bf16 %v9640_v41 }
  0xf0   : > { %v2285_v10 = vsel %vm2276_vm1, %v2268_v2, %v9636_v45  ;;  %v2286_v25 = vsel %vm2276_vm1, %v2269_v23, %v9637_v55  ;;  %v2287_v14 = vsel %vm2276_vm1, %v2270_v44, %v9641_v22  ;;  %v2288_v38 = vsel %vm2276_vm1, %v2271_v34, %v9642_v15 }
  0xf1   : > { %v9650_v40 = vpop.permute.xlu1 %9649  ;;  %v9645_v60 = vpop.permute.xlu0 %9644 }
  0xf2   : > { %v9647_v33 = vunpack.i.h.bf16 %v9645_v60  ;;  %v9646_v0 = vunpack.i.l.bf16 %v9645_v60  ;;  %v9652_v27 = vunpack.i.h.bf16 %v9650_v40  ;;  %v9651_v50 = vunpack.i.l.bf16 %v9650_v40 }
  0xf4   : > { %v2302_v56 = vsel %vm2293_vm15, %v2285_v10, %v9646_v0  ;;  %v2303_v4 = vsel %vm2293_vm15, %v2286_v25, %v9647_v33  ;;  %v2304_v13 = vsel %vm2293_vm15, %v2287_v14, %v9651_v50  ;;  %v2305_v21 = vsel %vm2293_vm15, %v2288_v38, %v9652_v27 }
  0xf5   : > { %v9660_v37 = vpop.permute.xlu1 %9659  ;;  %v9655_v51 = vpop.permute.xlu0 %9654  ;;  %v1055_v0 = vsel %vm790_vm9, %v11389_v5, 0.0 }
  0xf6   : > { %v9657_v35 = vunpack.i.h.bf16 %v9655_v51  ;;  %v9656_v31 = vunpack.i.l.bf16 %v9655_v51  ;;  %v9662_v24 = vunpack.i.h.bf16 %v9660_v37  ;;  %v9661_v20 = vunpack.i.l.bf16 %v9660_v37 }
  0xf8   : > { %v2319_v41 = vsel %vm2310_vm5, %v2302_v56, %v9656_v31  ;;  %v2320_v42 = vsel %vm2310_vm5, %v2303_v4, %v9657_v35  ;;  %v2205_v5 = vsel %vm2191_vm10, %v11549_v30, %v9662_v24  ;;  %v2204_v56 = vsel %vm2191_vm10, %v1055_v0, %v9661_v20 }
  0xf9   : > { %v9670_v43 = vpop.permute.xlu1 %9669  ;;  %v9665_v32 = vpop.permute.xlu0 %9664  ;;  %v2331_v1 = vpack.c.bf16 %v2320_v42, %v2319_v41 }
  0xfa   : > { %v9667_v3 = vunpack.i.h.bf16 %v9665_v32  ;;  %v9666_v54 = vunpack.i.l.bf16 %v9665_v32  ;;  %v9672_v58 = vunpack.i.h.bf16 %v9670_v43  ;;  %v9671_v2 = vunpack.i.l.bf16 %v9670_v43 }
  0xfb   : > { %9239 = vmatprep.mubr.msk.bf16.mxu0 %vm2356_vm14, %v2331_v1 }
  0xfc   : > { %v2322_v40 = vsel %vm2310_vm5, %v2305_v21, %v9667_v3  ;;  %v2321_v60 = vsel %vm2310_vm5, %v2304_v13, %v9666_v54  ;;  %v2207_v19 = vsel %vm2191_vm10, %v11542_v47, %v9672_v58  ;;  %v2206_v37 = vsel %vm2191_vm10, %v1057_v49, %v9671_v2 }
  0xfd   : > { %v9680_v29 = vpop.permute.xlu1 %9679  ;;  %v9675_v16 = vpop.permute.xlu0 %9674  ;;  %v2332_v55 = vpack.c.bf16 %v2322_v40, %v2321_v60 }
  0xfe   : > { %v9682_v23 = vunpack.i.h.bf16 %v9680_v29  ;;  %v9681_v15 = vunpack.i.l.bf16 %v9680_v29  ;;  %v9677_v22 = vunpack.i.h.bf16 %v9675_v16  ;;  %v9676_v51 = vunpack.i.l.bf16 %v9675_v16 }
  0xff   : > { %9240 = vmatmul.mubr.msk.bf16.gmra.mxu0 %vm2356_vm14, %v2332_v55 }
 0x100   : > { %v2223_v4 = vsel %vm2208_vm6, %v2206_v37, %v9681_v15  ;;  %v2224_v59 = vsel %vm2208_vm6, %v2207_v19, %v9682_v23  ;;  %v2222_v61 = vsel %vm2208_vm6, %v2205_v5, %v9677_v22  ;;  %v2221_v41 = vsel %vm2208_vm6, %v2204_v56, %v9676_v51 }
 0x101   : > { %v9690_v45 = vpop.permute.xlu1 %9689  ;;  %v9685_v53 = vpop.permute.xlu0 %9684  ;;  %vm16234_vm6 = vcmp.lt.s32.totalorder %v10834_v18, 14 }
 0x102   : > { %v9692_v35 = vunpack.i.h.bf16 %v9690_v45  ;;  %v9691_v31 = vunpack.i.l.bf16 %v9690_v45  ;;  %v9687_v27 = vunpack.i.h.bf16 %v9685_v53  ;;  %v9686_v50 = vunpack.i.l.bf16 %v9685_v53 }
 0x104   : > { %v2240_v1 = vsel %vm2225_vm3, %v2223_v4, %v9691_v31  ;;  %v2241_v47 = vsel %vm2225_vm3, %v2224_v59, %v9692_v35  ;;  %v2238_v14 = vsel %vm2225_vm3, %v2221_v41, %v9686_v50  ;;  %v2239_v38 = vsel %vm2225_vm3, %v2222_v61, %v9687_v27 }
 0x105   : > { %v9700_v63 = vpop.permute.xlu1 %9699  ;;  %v9695_v33 = vpop.permute.xlu0 %9694 }
 0x106   : > { %v9702_v34 = vunpack.i.h.bf16 %v9700_v63  ;;  %v9701_v43 = vunpack.i.l.bf16 %v9700_v63  ;;  %v9697_v30 = vunpack.i.h.bf16 %v9695_v33  ;;  %v9696_v32 = vunpack.i.l.bf16 %v9695_v33 }
 0x108   : > { %v2257_v53 = vsel %vm2242_vm0, %v2240_v1, %v9701_v43  ;;  %v2258_v63 = vsel %vm2242_vm0, %v2241_v47, %v9702_v34  ;;  %v2255_v33 = vsel %vm2242_vm0, %v2238_v14, %v9696_v32  ;;  %v2256_v0 = vsel %vm2242_vm0, %v2239_v38, %v9697_v30  ;;  %v2497_v38 = vld [vmem:[%s11763_s20] sm:$0xff] }
 0x109   : > { %v9710_v10 = vpop.permute.xlu1 %9709  ;;  %v9705_v25 = vpop.permute.xlu0 %9704  ;;  %v10682_v32 = vmov 1966171168   ;;  %vm16227_vm0 = vcmp.lt.s32.totalorder %v10834_v18, 12 }
 0x10a   : > { %v9712_v3 = vunpack.i.h.bf16 %v9710_v10  ;;  %v9711_v54 = vunpack.i.l.bf16 %v9710_v10  ;;  %v9707_v13 = vunpack.i.h.bf16 %v9705_v25  ;;  %v9706_v21 = vunpack.i.l.bf16 %v9705_v25 }
 0x10b   : > { %v2501_v1 = vunpack.c.l.s4 %v10682_v32 }
 0x10c   : > { %v2274_v2 = vsel %vm2259_vm8, %v2257_v53, %v9711_v54  ;;  %v2275_v23 = vsel %vm2259_vm8, %v2258_v63, %v9712_v3  ;;  %v2272_v15 = vsel %vm2259_vm8, %v2255_v33, %v9706_v21  ;;  %v2273_v22 = vsel %vm2259_vm8, %v2256_v0, %v9707_v13 }
 0x10d   : > { %v9720_v42 = vpop.permute.xlu1 %9719  ;;  %v9715_v44 = vpop.permute.xlu0 %9714  ;;  %v2502_v47 = vunpack.c.0.s8 %v2501_v1  ;;  %v11768_v13 = vsub.s32 0, %v10795_v6  ;;  %v2499_v1 = vcombine.high %v2497_v38, %v2497_v38  ;;  %vm16236_vm8 = vcmask 1042432  }
 0x10e   : > { %v9722_v40 = vunpack.i.h.bf16 %v9720_v42  ;;  %v9721_v60 = vunpack.i.l.bf16 %v9720_v42  ;;  %v9717_v29 = vunpack.i.h.bf16 %v9715_v44  ;;  %v9716_v16 = vunpack.i.l.bf16 %v9715_v44 }
 0x10f   : > { %v11761_v14 = vsub.s32 %v2502_v47, %v10795_v6  ;;  %16210 = vst [vmem:[#allocation19_spill] sm:$0xff] %v11768_v13 }
 0x110   : > { %v2291_v51 = vsel %vm2276_vm1, %v2274_v2, %v9721_v60  ;;  %v2292_v10 = vsel %vm2276_vm1, %v2275_v23, %v9722_v40  ;;  %v2289_v25 = vsel %vm2276_vm1, %v2272_v15, %v9716_v16  ;;  %v2290_v35 = vsel %vm2276_vm1, %v2273_v22, %v9717_v29  ;;  %v11774_v40 = vld [vmem:[%s15964_s9 + $0x5] ss:$0 sm:$0xff] }
 0x111   : > { %v9730_v55 = vpop.permute.xlu1 %9729  ;;  %v9725_v45 = vpop.permute.xlu0 %9724  ;;  %16209 = vst [vmem:[#allocation18_spill] sm:$0xff] %v11761_v14  ;;  %v2506_v3 = vrot.slane %v2497_v38, %v11761_v14  ;;  %v2513_v47 = vrot.slane %v2499_v1, %v11761_v14  ;;  %vm16231_vm1 = vcmask 1045504  }
 0x112   : > { %v9732_v49 = vunpack.i.h.bf16 %v9730_v55  ;;  %v9731_v24 = vunpack.i.l.bf16 %v9730_v55  ;;  %v9727_v20 = vunpack.i.h.bf16 %v9725_v45  ;;  %v9726_v58 = vunpack.i.l.bf16 %v9725_v45  ;;  %vm16233_vm3 = vmmov %vm16231_vm1 }
 0x113   : > { %v2514_v54 = vcombine.high %v2506_v3, %v2506_v3  ;;  %v2522_v60 = vrot.slane %v2506_v3, %v11761_v14 }
 0x114   : > { %v2308_v37 = vsel %vm2293_vm15, %v2291_v51, %v9731_v24  ;;  %v2309_v4 = vsel %vm2293_vm15, %v2292_v10, %v9732_v49  ;;  %v2306_v59 = vsel %vm2293_vm15, %v2289_v25, %v9726_v58  ;;  %v2307_v61 = vsel %vm2293_vm15, %v2290_v35, %v9727_v20 }
 0x115   : > { %v9740_v31 = vpop.permute.xlu1 %9739  ;;  %v9735_v27 = vpop.permute.xlu0 %9734  ;;  %v2536_v21 = vrot.slane %v2514_v54, %v11761_v14  ;;  %v2551_v63 = vrot.slane %v2522_v60, %v11768_v13  ;;  %vm16238_vm15 = vcmp.ge.s32.totalorder %v10814_v11, 3 }
 0x116   : > { %v9742_v50 = vunpack.i.h.bf16 %v9740_v31  ;;  %v9741_v5 = vunpack.i.l.bf16 %v9740_v31  ;;  %v9737_v56 = vunpack.i.h.bf16 %v9735_v27  ;;  %v9736_v19 = vunpack.i.l.bf16 %v9735_v27 }
 0x117   : > { %v2555_v55 = vrot.slane %v2536_v21, %v11768_v13 }
 0x118   : > { %v2326_v41 = vsel %vm2310_vm5, %v2309_v4, %v9742_v50  ;;  %v2325_v42 = vsel %vm2310_vm5, %v2308_v37, %v9741_v5  ;;  %v2323_v44 = vsel %vm2310_vm5, %v2306_v59, %v9736_v19  ;;  %v2324_v34 = vsel %vm2310_vm5, %v2307_v61, %v9737_v56 }
 0x119   : > { %v2333_v43 = vpack.c.bf16 %v2324_v34, %v2323_v44  ;;  %v2334_v30 = vpack.c.bf16 %v2326_v41, %v2325_v42  ;;  %v2544_v19 = vcombine.high %v2522_v60, %v2522_v60  ;;  %v2546_v59 = vcombine.high %v2536_v21, %v2536_v21 }
 0x11a   : > { %v2515_v21 = vcombine.high %v2513_v47, %v2513_v47 }
 0x11b   : > { %9243 = vmatprep.mubr.msk.bf16.mxu0 %vm2356_vm14, %v2333_v43  ;;  %v2559_v42 = vrot.slane %v2544_v19, %v11768_v13  ;;  %v2563_v34 = vrot.slane %v2546_v59, %v11768_v13 }
 0x11c   : > { %9244 = vmatmul.mubr.msk.bf16.gmra.mxu0 %vm2356_vm14, %v2334_v30  ;;  %vm16237_vm14 = vmmov %vm16236_vm8 }
 0x17f   : > { %v9233_v29 = vpop.f32.mrf.mxu0 }
 0x180   : > { %v11778_v16 = vadd.f32 %v9233_v29, %v11774_v40 }
 0x181   : > { %v2418_v45 = vpop.f32.mrf.mxu0 }
 0x182   : > { %16211 = vst [vmem:[#allocation20_spill] sm:$0xff] %v11778_v16  ;;  %v16049_v53 = vmax.f32 %v11778_v16, 0.0  ;;  %v11783_v6 = vadd.f32 %v11774_v40, %v2418_v45 }
 0x183   : > { %v9234_v33 = vpop.f32.mrf.mxu0 }
 0x184   : > { %16212 = vst [vmem:[#allocation21_spill] sm:$0xff] %v11783_v6  ;;  %v16052_v0 = vmax.f32 %v11783_v6, 0.0  ;;  %v11788_v49 = vadd.f32 %v9234_v33, %v11774_v40  ;;  %v11792_v24 = vadd.f32 %v2555_v55, %v16049_v53  ;;  %v2543_v33 = vrot.slane %v2515_v21, %v11761_v14 }
 0x185   : > { %v2421_v20 = vpop.f32.mrf.mxu0 }
 0x186   : > { %16213 = vst [vmem:[#allocation22_spill] sm:$0xff] %v11788_v49  ;;  %v16041_v58 = vmax.f32 %v11788_v49, 0.0  ;;  %v11796_v2 = vadd.f32 %v11774_v40, %v2421_v20  ;;  %v2610_v23 = vsel %vm2310_vm5, %v11792_v24, 0.0  ;;  %v11802_v15 = vadd.f32 %v2551_v63, %v16052_v0 }
 0x187   : > { %2611 = vadd.xlane.f32.xlu1 %v2610_v23 }
 0x188   : > { %16214 = vst [vmem:[#allocation23_spill] sm:$0xff] %v11796_v2  ;;  %v16047_v22 = vmax.f32 %v11796_v2, 0.0  ;;  %v2604_v51 = vsel %vm2310_vm5, %v11802_v15, 0.0  ;;  %v11809_v10 = vadd.f32 %v2555_v55, %v16041_v58  ;;  %v2529_v55 = vrot.slane %v2513_v47, %v11761_v14 }
 0x189   : > { %2605 = vadd.xlane.f32.xlu0 %v2604_v51 }
 0x18a   : > { %v2613_v25 = vsel %vm2310_vm5, %v11809_v10, 0.0  ;;  %v11815_v35 = vadd.f32 %v2551_v63, %v16047_v22  ;;  %v2567_v23 = vrot.slane %v2529_v55, %v11768_v13  ;;  %v2545_v21 = vcombine.high %v2529_v55, %v2529_v55 }
 0x18b   : > { %2614 = vadd.xlane.f32.xlu1 %v2613_v25  ;;  %v2571_v25 = vrot.slane %v2543_v33, %v11768_v13 }
 0x18c   : > { %v2607_v31 = vsel %vm2310_vm5, %v11815_v35, 0.0  ;;  %v2575_v55 = vrot.slane %v2545_v21, %v11768_v13 }
 0x18d   : > { %2608 = vadd.xlane.f32.xlu0 %v2607_v31 }
 0x19f   : > { %v9237_v27 = vpop.f32.mrf.mxu0 }
 0x1a1   : > { %v2434_v50 = vpop.f32.mrf.mxu0 }
 0x1a3   : > { %v9238_v5 = vpop.f32.mrf.mxu0 }
 0x1a4   : > { %v11820_v56 = vadd.f32 %v9238_v5, %v11774_v40 }
 0x1a5   : > { %v2437_v37 = vpop.f32.mrf.mxu0 }
 0x1a6   : > { %16215 = vst [vmem:[#allocation24_spill] sm:$0xff] %v11820_v56  ;;  %v11823_v4 = vadd.f32 %v11774_v40, %v2437_v37  ;;  %v16039_v61 = vmax.f32 %v11820_v56, 0.0 }
 0x1a8   : > { %16216 = vst [vmem:[#allocation25_spill] sm:$0xff] %v11823_v4  ;;  %v16040_v41 = vmax.f32 %v11823_v4, 0.0  ;;  %v11837_v30 = vadd.f32 %v2563_v34, %v16039_v61 }
 0x1aa   : > { %v11830_v44 = vadd.f32 %v2559_v42, %v16040_v41  ;;  %v2625_v32 = vsel %vm2310_vm5, %v11837_v30, 0.0 }
 0x1ac   : > { %v2619_v43 = vsel %vm2310_vm5, %v11830_v44, 0.0 }
 0x1ad   : > { %2620 = vadd.xlane.f32.xlu1 %v2619_v43  ;;  %v11867_v43 = vadd.f32 %v11774_v40, %v2434_v50 }
 0x1af   : > { %16219 = vst [vmem:[#allocation28_spill] sm:$0xff] %v11867_v43 }
 0x1b1   : > { %2626 = vadd.xlane.f32.xlu1 %v2625_v32  ;;  %v2547_v32 = vcombine.high %v2543_v33, %v2543_v33 }
 0x1b3   : > { %v2579_v50 = vrot.slane %v2547_v32, %v11768_v13 }
 0x1bf   : > { %v9241_v3 = vpop.f32.mrf.mxu0 }
 0x1c0   : > { %v11904_v41 = vadd.f32 %v9241_v3, %v11774_v40 }
 0x1c1   : > { %v2450_v54 = vpop.f32.mrf.mxu0 }
 0x1c2   : > { %16224 = vst [vmem:[#allocation33_spill] sm:$0xff] %v11904_v41 }
 0x1c3   : > { %v9242_v60 = vpop.f32.mrf.mxu0 }
 0x1c4   : > { %v11843_v29 = vadd.f32 %v9242_v60, %v11774_v40  ;;  %v11873_v60 = vadd.f32 %v9237_v27, %v11774_v40 }
 0x1c5   : > { %v2453_v45 = vpop.f32.mrf.mxu0 }
 0x1c6   : > { %16217 = vst [vmem:[#allocation26_spill] sm:$0xff] %v11843_v29  ;;  %v11847_v63 = vadd.f32 %v11774_v40, %v2453_v45  ;;  %v16037_v20 = vmax.f32 %v11843_v29, 0.0  ;;  %16221 = vst [vmem:[#allocation30_spill] sm:$0xff] %v11873_v60  ;;  %v16044_v27 = vmax.f32 %v11873_v60, 0.0 }
 0x1c8   : > { %16218 = vst [vmem:[#allocation27_spill] sm:$0xff] %v11847_v63  ;;  %v16038_v38 = vmax.f32 %v11847_v63, 0.0  ;;  %v11862_v5 = vadd.f32 %v2571_v25, %v16037_v20 }
 0x1ca   : > { %v11855_v51 = vadd.f32 %v2567_v23, %v16038_v38  ;;  %v2637_v19 = vsel %vm2310_vm5, %v11862_v5, 0.0  ;;  %v11889_v38 = vadd.f32 %v11774_v40, %v2450_v54 }
 0x1cc   : > { %v2631_v31 = vsel %vm2310_vm5, %v11855_v51, 0.0  ;;  %16223 = vst [vmem:[#allocation32_spill] sm:$0xff] %v11889_v38  ;;  %v16046_v54 = vmax.f32 %v11889_v38, 0.0 }
 0x1cd   : > { %2632 = vadd.xlane.f32.xlu1 %v2631_v31  ;;  %v16043_v31 = vmax.f32 %v11867_v43, 0.0 }
 0x1ce   : > { %v11921_v3 = vadd.f32 %v2567_v23, %v16046_v54 }
 0x1cf   : > { %v11899_v32 = vadd.f32 %v2559_v42, %v16043_v31  ;;  %v16045_v42 = vmax.f32 %v11904_v41, 0.0 }
 0x1d1   : > { %2638 = vadd.xlane.f32.xlu1 %v2637_v19  ;;  %v2616_v58 = vsel %vm2310_vm5, %v11899_v32, 0.0 }
 0x1dc   : > { %v9245_v37 = vpop.f32.mrf.mxu0 }
 0x1dd   : > { %v11924_v31 = vadd.f32 %v9245_v37, %v11774_v40 }
 0x1de   : > { %v2466_v59 = vpop.f32.mrf.mxu0 }
 0x1df   : > { %16226 = vst [vmem:[#allocation35_spill] sm:$0xff] %v11924_v31 }
 0x1e0   : > { %v9246_v1 = vpop.f32.mrf.mxu0 }
 0x1e1   : > { %v11870_v47 = vadd.f32 %v9246_v1, %v11774_v40 }
 0x1e2   : > { %v2469_v45 = vpop.f32.mrf.mxu0 }
 0x1e3   : > { %16220 = vst [vmem:[#allocation29_spill] sm:$0xff] %v11870_v47  ;;  %v16042_v20 = vmax.f32 %v11870_v47, 0.0  ;;  %v11878_v19 = vadd.f32 %v11774_v40, %v2469_v45 }
 0x1e5   : > { %16222 = vst [vmem:[#allocation31_spill] sm:$0xff] %v11878_v19  ;;  %v16050_v33 = vmax.f32 %v11878_v19, 0.0  ;;  %v11884_v1 = vadd.f32 %v2579_v50, %v16042_v20  ;;  %v11911_v20 = vadd.f32 %v2563_v34, %v16044_v27  ;;  %v16051_v27 = vmax.f32 %v11924_v31, 0.0 }
 0x1e7   : > { %v2649_v61 = vsel %vm2310_vm5, %v11884_v1, 0.0  ;;  %v11895_v45 = vadd.f32 %v2575_v55, %v16050_v33  ;;  %v11944_v37 = vadd.f32 %v2579_v50, %v16051_v27 }
 0x1e8   : > { %2650 = vadd.xlane.f32.xlu0 %v2649_v61  ;;  %v11915_v61 = vadd.f32 %v11774_v40, %v2466_v59  ;;  %v11931_v59 = vadd.f32 %v2571_v25, %v16045_v42 }
 0x1e9   : > { %v2643_v21 = vsel %vm2310_vm5, %v11895_v45, 0.0  ;;  %v2646_v25 = vsel %vm2310_vm5, %v11944_v37, 0.0 }
 0x1ea   : > { %2644 = vadd.xlane.f32.xlu1 %v2643_v21  ;;  %16225 = vst [vmem:[#allocation34_spill] sm:$0xff] %v11915_v61  ;;  %v2622_v21 = vsel %vm2310_vm5, %v11911_v20, 0.0  ;;  %v16048_v34 = vmax.f32 %v11915_v61, 0.0  ;;  %v2634_v23 = vsel %vm2310_vm5, %v11931_v59, 0.0 }
 0x1ec   : > { %2617 = vadd.xlane.f32.xlu0 %v2616_v58  ;;  %v2628_v58 = vsel %vm2310_vm5, %v11921_v3, 0.0 }
 0x1f0   : > { %2623 = vadd.xlane.f32.xlu0 %v2622_v21  ;;  %v11938_v21 = vadd.f32 %v2575_v55, %v16048_v34 }
 0x1f2   : > { %v2640_v40 = vsel %vm2310_vm5, %v11938_v21, 0.0 }
 0x1f4   : > { %2629 = vadd.xlane.f32.xlu0 %v2628_v58 }
 0x1f8   : > { %2635 = vadd.xlane.f32.xlu0 %v2634_v23 }
 0x1fc   : > { %2641 = vadd.xlane.f32.xlu0 %v2640_v40 }
 0x200   : > { %2647 = vadd.xlane.f32.xlu0 %v2646_v25 }
 0x210   : > { %v2612_v58 = vpop.xlane.xlu1 %2611 }
 0x211   : > { %v2655_v42 = vmul.f32 0.03125, %v2612_v58 }
 0x212   : > { %v2606_v54 = vpop.xlane.xlu0 %2605 }
 0x213   : > { %v11949_v22 = vsub.f32 %v11792_v24, %v2655_v42  ;;  %v2653_v55 = vmul.f32 0.03125, %v2606_v54 }
 0x214   : > { %v2615_v34 = vpop.xlane.xlu1 %2614 }
 0x215   : > { %v2687_v23 = vmul.f32 %v11949_v22, %v11949_v22  ;;  %v11955_v40 = vsub.f32 %v11802_v15, %v2653_v55  ;;  %v2656_v25 = vmul.f32 0.03125, %v2615_v34 }
 0x216   : > { %v2609_v53 = vpop.xlane.xlu0 %2608 }
 0x217   : > { %v2654_v33 = vmul.f32 0.03125, %v2609_v53  ;;  %v2707_v50 = vsel %vm2310_vm5, %v2687_v23, 0.0  ;;  %v11963_v54 = vsub.f32 %v11809_v10, %v2656_v25  ;;  %v2685_v53 = vmul.f32 %v11955_v40, %v11955_v40 }
 0x218   : > { %2708 = vadd.xlane.f32.xlu0 %v2707_v50 }
 0x219   : > { %v11958_v58 = vsub.f32 %v11815_v35, %v2654_v33  ;;  %v2701_v23 = vsel %vm2310_vm5, %v2685_v53, 0.0  ;;  %v2688_v15 = vmul.f32 %v11963_v54, %v11963_v54 }
 0x21b   : > { %v2686_v24 = vmul.f32 %v11958_v58, %v11958_v58  ;;  %v2710_v35 = vsel %vm2310_vm5, %v2688_v15, 0.0 }
 0x21d   : > { %v2704_v42 = vsel %vm2310_vm5, %v2686_v24, 0.0 }
 0x21e   : > { %2705 = vadd.xlane.f32.xlu1 %v2704_v42 }
 0x222   : > { %2702 = vadd.xlane.f32.xlu1 %v2701_v23 }
 0x226   : > { %2711 = vadd.xlane.f32.xlu1 %v2710_v35 }
 0x236   : > { %v2621_v33 = vpop.xlane.xlu1 %2620 }
 0x237   : > { %v2658_v34 = vmul.f32 0.03125, %v2621_v33 }
 0x239   : > { %v11973_v10 = vsub.f32 %v11830_v44, %v2658_v34 }
 0x23a   : > { %v2627_v55 = vpop.xlane.xlu1 %2626 }
 0x23b   : > { %v2660_v50 = vmul.f32 0.03125, %v2627_v55  ;;  %v2690_v25 = vmul.f32 %v11973_v10, %v11973_v10 }
 0x23d   : > { %v11978_v24 = vsub.f32 %v11837_v30, %v2660_v50  ;;  %v2716_v42 = vsel %vm2310_vm5, %v2690_v25, 0.0 }
 0x23e   : > { %2717 = vadd.xlane.f32.xlu1 %v2716_v42 }
 0x23f   : > { %v2692_v53 = vmul.f32 %v11978_v24, %v11978_v24 }
 0x241   : > { %v2722_v23 = vsel %vm2310_vm5, %v2692_v53, 0.0 }
 0x242   : > { %2723 = vadd.xlane.f32.xlu1 %v2722_v23 }
 0x256   : > { %v2633_v15 = vpop.xlane.xlu1 %2632 }
 0x257   : > { %v2662_v44 = vmul.f32 0.03125, %v2633_v15 }
 0x259   : > { %v11985_v35 = vsub.f32 %v11855_v51, %v2662_v44 }
 0x25a   : > { %v2639_v33 = vpop.xlane.xlu1 %2638 }
 0x25b   : > { %v2664_v34 = vmul.f32 0.03125, %v2639_v33  ;;  %v2694_v30 = vmul.f32 %v11985_v35, %v11985_v35 }
 0x25d   : > { %v11990_v55 = vsub.f32 %v11862_v5, %v2664_v34  ;;  %v2728_v50 = vsel %vm2310_vm5, %v2694_v30, 0.0 }
 0x25e   : > { %2729 = vadd.xlane.f32.xlu1 %v2728_v50 }
 0x25f   : > { %v2696_v25 = vmul.f32 %v11990_v55, %v11990_v55 }
 0x261   : > { %v2734_v42 = vsel %vm2310_vm5, %v2696_v25, 0.0 }
 0x262   : > { %2735 = vadd.xlane.f32.xlu1 %v2734_v42 }
 0x271   : > { %v2651_v53 = vpop.xlane.xlu0 %2650 }
 0x272   : > { %v2668_v51 = vmul.f32 0.03125, %v2651_v53 }
 0x273   : > { %v2645_v23 = vpop.xlane.xlu1 %2644 }
 0x274   : > { %v11997_v15 = vsub.f32 %v11884_v1, %v2668_v51  ;;  %v2666_v44 = vmul.f32 0.03125, %v2645_v23 }
 0x275   : > { %v2618_v33 = vpop.xlane.xlu0 %2617 }
 0x276   : > { %v12000_v5 = vsub.f32 %v11895_v45, %v2666_v44  ;;  %v2657_v34 = vmul.f32 0.03125, %v2618_v33  ;;  %v2700_v30 = vmul.f32 %v11997_v15, %v11997_v15 }
 0x278   : > { %v12005_v50 = vsub.f32 %v11899_v32, %v2657_v34  ;;  %v2746_v25 = vsel %vm2310_vm5, %v2700_v30, 0.0  ;;  %v2698_v42 = vmul.f32 %v12000_v5, %v12000_v5 }
 0x279   : > { %v2624_v53 = vpop.xlane.xlu0 %2623  ;;  %2747 = vadd.xlane.f32.xlu0 %v2746_v25 }
 0x27a   : > { %v2659_v1 = vmul.f32 0.03125, %v2624_v53  ;;  %v2740_v51 = vsel %vm2310_vm5, %v2698_v42, 0.0  ;;  %v2689_v45 = vmul.f32 %v12005_v50, %v12005_v50 }
 0x27b   : > { %2741 = vadd.xlane.f32.xlu1 %v2740_v51 }
 0x27c   : > { %v12014_v23 = vsub.f32 %v11911_v20, %v2659_v1  ;;  %v2713_v32 = vsel %vm2310_vm5, %v2689_v45, 0.0 }
 0x27d   : > { %v2630_v44 = vpop.xlane.xlu0 %2629  ;;  %2714 = vadd.xlane.f32.xlu0 %v2713_v32 }
 0x27e   : > { %v2661_v33 = vmul.f32 0.03125, %v2630_v44  ;;  %v2691_v34 = vmul.f32 %v12014_v23, %v12014_v23 }
 0x280   : > { %v12020_v30 = vsub.f32 %v11921_v3, %v2661_v33  ;;  %v2719_v25 = vsel %vm2310_vm5, %v2691_v34, 0.0 }
 0x281   : > { %v2636_v42 = vpop.xlane.xlu0 %2635  ;;  %2720 = vadd.xlane.f32.xlu0 %v2719_v25 }
 0x282   : > { %v2663_v53 = vmul.f32 0.03125, %v2636_v42  ;;  %v2693_v20 = vmul.f32 %v12020_v30, %v12020_v30 }
 0x284   : > { %v12026_v1 = vsub.f32 %v11931_v59, %v2663_v53  ;;  %v2725_v51 = vsel %vm2310_vm5, %v2693_v20, 0.0 }
 0x285   : > { %v2642_v45 = vpop.xlane.xlu0 %2641  ;;  %2726 = vadd.xlane.f32.xlu0 %v2725_v51 }
 0x286   : > { %v2665_v32 = vmul.f32 0.03125, %v2642_v45  ;;  %v2695_v3 = vmul.f32 %v12026_v1, %v12026_v1 }
 0x288   : > { %v12032_v44 = vsub.f32 %v11938_v21, %v2665_v32  ;;  %v2731_v33 = vsel %vm2310_vm5, %v2695_v3, 0.0  ;;  %v10427_v32 = vld [vmem:[%s15958_s3 + $0x88] sm:$0xff]  }
 0x289   : > { %2732 = vadd.xlane.f32.xlu0 %v2731_v33  ;;  %v2648_v34 = vpop.xlane.xlu0 %2647  ;;  %9247 = vmatprep.subr.bf16.mxu0 %v10427_v32 }
 0x28a   : > { %v2667_v25 = vmul.f32 0.03125, %v2648_v34  ;;  %v2697_v59 = vmul.f32 %v12032_v44, %v12032_v44  ;;  %9248 = vmatpush3.bf16.msra.mxu0 %v10427_v32  ;;  %v12053_v32 = vld [vmem:[%s15963_s8] ss:$0 sm:$0xff] }
 0x28c   : > { %v12038_v42 = vsub.f32 %v11944_v37, %v2667_v25  ;;  %v2737_v53 = vsel %vm2310_vm5, %v2697_v59, 0.0  ;;  %v10428_v37 = vld [vmem:[%s15958_s3 + $0x80] sm:$0xff]  }
 0x28d   : > { %2738 = vadd.xlane.f32.xlu0 %v2737_v53  ;;  %9249 = vmatprep.subr.bf16.mxu0 %v10428_v37 }
 0x28e   : > { %v2699_v20 = vmul.f32 %v12038_v42, %v12038_v42  ;;  %9250 = vmatpush3.bf16.msra.mxu0 %v10428_v37 }
 0x290   : > { %v2743_v21 = vsel %vm2310_vm5, %v2699_v20, 0.0 }
 0x291   : > { %2744 = vadd.xlane.f32.xlu0 %v2743_v21 }
 0x2a1   : > { %v2709_v51 = vpop.xlane.xlu0 %2708 }
 0x2a2   : > { %v2751_v45 = vmul.f32 0.03125, %v2709_v51 }
 0x2a4   : > { %v2767_v3 = vadd.f32 1e-05, %v2751_v45 }
 0x2a6   : > { %10489 = vrsqrt.f32 %v2767_v3 }
 0x2a7   : > { %v2706_v33 = vpop.xlane.xlu1 %2705 }
 0x2a8   : > { %v2750_v34 = vmul.f32 0.03125, %v2706_v33  ;;  %v12060_v33 = vld [vmem:[%s15963_s8 + $0x5] ss:$0 sm:$0xff] }
 0x2aa   : > { %v2766_v25 = vadd.f32 1e-05, %v2750_v34 }
 0x2ab   : > { %v2703_v59 = vpop.xlane.xlu1 %2702 }
 0x2ac   : > { %10491 = vrsqrt.f32 %v2766_v25  ;;  %v2749_v53 = vmul.f32 0.03125, %v2703_v59 }
 0x2ae   : > { %v2765_v20 = vadd.f32 1e-05, %v2749_v53 }
 0x2af   : > { %v2712_v21 = vpop.xlane.xlu1 %2711 }
 0x2b0   : > { %10493 = vrsqrt.f32 %v2765_v20  ;;  %v2752_v51 = vmul.f32 0.03125, %v2712_v21 }
 0x2b2   : > { %v2768_v45 = vadd.f32 1e-05, %v2752_v51 }
 0x2b3   : > { %v10490_v27 = vpop.eup %10489 }
 0x2b4   : > { %v2799_v3 = vmul.f32 %v10490_v27, %v11949_v22  ;;  %10495 = vrsqrt.f32 %v2768_v45 }
 0x2b6   : > { %v2822_v37 = vmul.f32 %v12053_v32, %v2799_v3 }
 0x2b8   : > { %v12064_v59 = vadd.f32 %v12060_v33, %v2822_v37 }
 0x2b9   : > { %v10492_v34 = vpop.eup %10491 }
 0x2ba   : > { %v2798_v25 = vmul.f32 %v10492_v34, %v11958_v58  ;;  %v16055_v27 = vrot.slane %v12064_v59, 3  ;;  %v16057_v51 = vrot.slane %v12064_v59, 1 }
 0x2bc   : > { %v2821_v53 = vmul.f32 %v12053_v32, %v2798_v25  ;;  %v16058_v25 = vrot.slane %v12064_v59, 4 }
 0x2bd   : > { %v10494_v20 = vpop.eup %10493 }
 0x2be   : > { %v12068_v21 = vadd.f32 %v12060_v33, %v2821_v53  ;;  %v2797_v22 = vmul.f32 %v10494_v20, %v11955_v40 }
 0x2c0   : > { %v2820_v45 = vmul.f32 %v12053_v32, %v2797_v22  ;;  %v3304_v3 = vrot.slane %v12068_v21, 3  ;;  %v3174_v58 = vrot.slane %v12068_v21, 1  ;;  %v2916_v37 = vrot.slane %v12068_v21, 4 }
 0x2c1   : > { %v10496_v34 = vpop.eup %10495  ;;  %v3239_v29 = vrot.slane %v12068_v21, 2 }
 0x2c2   : > { %v12079_v53 = vadd.f32 %v12060_v33, %v2820_v45  ;;  %v2800_v40 = vmul.f32 %v10496_v34, %v11963_v54  ;;  %v3307_v20 = vsel %vm1549_vm12, %v3304_v3, %v16055_v27  ;;  %v3177_v22 = vsel %vm1353_vm7, %v3174_v58, %v16057_v51 }
 0x2c3   : > { %v12091_v0 = vsel %vm963_vm4, %v2916_v37, %v16058_v25  ;;  %v3353_v51 = vsel %vm875_vm2, %v3307_v20, 0.0  ;;  %v3223_v25 = vsel %vm843_vm13, %v3177_v22, 0.0 }
 0x2c4   : > { %v2823_v54 = vmul.f32 %v12053_v32, %v2800_v40  ;;  %v16064_v34 = vrot.slane %v12079_v53, 3  ;;  %v3369_v45 = vsel %vm16227_vm0, %v12091_v0, 0.0  ;;  %v16228_v63 = vrot.slane %v12079_v53, 1 }
 0x2c5   : > { %v16229_v41 = vrot.slane %v12079_v53, 4  ;;  %v16232_v60 = vrot.slane %v12079_v53, 2  ;;  %vm16239_vm0 = vcmask 1041408  }
 0x2c6   : > { %v12109_v40 = vadd.f32 %v12060_v33, %v2823_v54  ;;  %v3305_v27 = vsel %vm1549_vm12, %v16064_v34, %v3304_v3  ;;  %v3175_v20 = vsel %vm1353_vm7, %v16228_v63, %v3174_v58  ;;  %v16230_v54 = vrot.slane %v12064_v59, 2 }
 0x2c7   : > { %v12120_v22 = vsel %vm963_vm4, %v16229_v41, %v2916_v37  ;;  %v9753_v56 = vpack.i.bf16 %v3353_v51, %v3305_v27  ;;  %v9743_v38 = vpack.i.bf16 %v3223_v25, %v3175_v20  ;;  %v3240_v3 = vsel %vm16233_vm3, %v16232_v60, %v3239_v29 }
 0x2c8   : > { %v3868_v61 = vpack.c.bf16 %v3369_v45, %v12120_v22  ;;  %v3242_v4 = vsel %vm16231_vm1, %v3239_v29, %v16230_v54  ;;  %v16066_v34 = vrot.slane %v12109_v40, 5  ;;  %v2983_v41 = vrot.slane %v12064_v59, 5  ;;  %vm16240_vm1 = vmmov %vm16239_vm0 }
 0x2c9   : > { %9754 = vrot.lane.b32.xlu0 %v9753_v56, %s10683_s25  ;;  %9744 = vrot.lane.b32.xlu1 %v9743_v38, %s10681_s28  ;;  %v3288_v63 = vsel %vm16234_vm6, %v3242_v4, 0.0  ;;  %v16235_v51 = vrot.slane %v12068_v21, 5  ;;  %v3046_v29 = vrot.slane %v12068_v21, 6  ;;  %v16065_v38 = vrot.slane %v12109_v40, 6 }
 0x2ca   : > { %9251 = vmatprep.mubr.msk.bf16.mxu0 %vm2310_vm5, %v3868_v61  ;;  %v9748_v27 = vpack.i.bf16 %v3288_v63, %v3240_v3  ;;  %v2986_v56 = vsel %vm16237_vm14, %v2983_v41, %v16066_v34  ;;  %v3048_v60 = vrot.slane %v12064_v59, 6  ;;  %v16067_v25 = vrot.slane %v12068_v21, 7 }
 0x2cb   : > { %v2984_v58 = vsel %vm16236_vm8, %v16235_v51, %v2983_v41  ;;  %v16068_v20 = vrot.slane %v12109_v40, 7  ;;  %v3113_v54 = vrot.slane %v12064_v59, 7  ;;  %vm16241_vm3 = vcmp.ge.s32.totalorder %v10814_v11, 2 }
 0x2cc   : > { %v3029_v4 = vsel %vm16238_vm15, %v2984_v58, 0.0  ;;  %v3049_v37 = vsel %vm16239_vm0, %v3046_v29, %v3048_v60  ;;  %v3051_v45 = vsel %vm16240_vm1, %v3048_v60, %v16065_v38  ;;  %vm16242_vm6 = vcmask 1040384  }
 0x2cd   : > { %9749 = vrot.lane.b32.xlu1 %v9748_v27, %s10684_s21  ;;  %v9758_v61 = vpack.i.bf16 %v2986_v56, %v3029_v4  ;;  %v3094_v3 = vsel %vm16241_vm3, %v3049_v37, 0.0  ;;  %v3114_v63 = vsel %vm16242_vm6, %v16067_v25, %v3113_v54  ;;  %vm16243_vm8 = vmmov %vm16242_vm6  ;;  %vm16244_vm14 = vcmp.ge.s32.totalorder %v10814_v11, 1  ;;  %v2718_v56 = vpop.xlane.xlu1 %2717 }
 0x2ce   : > { %v9763_v41 = vpack.i.bf16 %v3051_v45, %v3094_v3  ;;  %v3116_v27 = vsel %vm16243_vm8, %v3113_v54, %v16068_v20  ;;  %v3159_v51 = vsel %vm16244_vm14, %v3114_v63, 0.0  ;;  %v10429_v54 = vld [vmem:[%s15958_s3 + $0x78] sm:$0xff]   ;;  %vm16248_vm15 = vcmask 1045504   ;;  %vm16251_vm1 = vmmov %vm16242_vm6 }
 0x2cf   : > { %v9768_v58 = vpack.i.bf16 %v3116_v27, %v3159_v51  ;;  %9037 = vmatprep.subr.bf16.mxu1 %v10429_v54  ;;  %vm16253_vm3 = vcmask 1042432   ;;  %v16255_v47 = vrot.slane %v12109_v40, 5  ;;  %vm16257_vm8 = vcmp.lt.s32.totalorder %v10832_v17, 15 }
 0x2d0   : > { %vm16256_vm6 = vmmov %vm16253_vm3  ;;  %v16266_v16 = vrot.slane %v12109_v40, 6 }
 0x2d1   : > { %9759 = vrot.lane.b32.xlu1 %v9758_v61, %s10681_s28  ;;  %v2724_v60 = vpop.xlane.xlu1 %2723  ;;  %v2754_v61 = vmul.f32 0.03125, %v2718_v56  ;;  %vm16259_vm14 = vmmov %vm16253_vm3 }
 0x2d2   : > { %v2756_v3 = vmul.f32 0.03125, %v2724_v60 }
 0x2d3   : > { %v2770_v37 = vadd.f32 1e-05, %v2754_v61 }
 0x2d4   : > { %v2772_v25 = vadd.f32 1e-05, %v2756_v3 }
 0x2d5   : > { %9764 = vrot.lane.b32.xlu1 %v9763_v41, %s10684_s21  ;;  %10497 = vrsqrt.f32 %v2770_v37 }
 0x2d6   : > { %10499 = vrsqrt.f32 %v2772_v25 }
 0x2d9   : > { %9769 = vrot.lane.b32.xlu1 %v9768_v58, %s10683_s25 }
 0x2e2   : > { %v10498_v60 = vpop.eup %10497 }
 0x2e3   : > { %v2802_v3 = vmul.f32 %v10498_v60, %v11973_v10  ;;  %v16070_v60 = vrot.slane %v12109_v40, 2 }
 0x2e7   : > { %v2730_v4 = vpop.xlane.xlu1 %2729 }
 0x2e8   : > { %v2758_v38 = vmul.f32 0.03125, %v2730_v4 }
 0x2ea   : > { %v2774_v41 = vadd.f32 1e-05, %v2758_v38 }
 0x2eb   : > { %v2736_v45 = vpop.xlane.xlu1 %2735 }
 0x2ec   : > { %v2760_v34 = vmul.f32 0.03125, %v2736_v45  ;;  %10501 = vrsqrt.f32 %v2774_v41 }
 0x2ee   : > { %v2776_v63 = vadd.f32 1e-05, %v2760_v34  ;;  %v10500_v34 = vpop.eup %10499 }
 0x2f0   : > { %10503 = vrsqrt.f32 %v2776_v63  ;;  %v2825_v63 = vmul.f32 %v12053_v32, %v2802_v3  ;;  %v16076_v3 = vrot.slane %v12079_v53, 7 }
 0x2f9   : > { %v10502_v54 = vpop.eup %10501 }
 0x2fd   : > { %v10504_v41 = vpop.eup %10503 }
 0x302   : > { %v2748_v27 = vpop.xlane.xlu0 %2747 }
 0x303   : > { %v2764_v51 = vmul.f32 0.03125, %v2748_v27 }
 0x304   : > { %v2742_v58 = vpop.xlane.xlu1 %2741 }
 0x305   : > { %v2780_v56 = vadd.f32 1e-05, %v2764_v51  ;;  %v2762_v61 = vmul.f32 0.03125, %v2742_v58  ;;  %v2804_v51 = vmul.f32 %v10500_v34, %v11978_v24  ;;  %v12185_v24 = vadd.f32 %v12060_v33, %v2825_v63 }
 0x306   : > { %v2715_v4 = vpop.xlane.xlu0 %2714  ;;  %v16078_v34 = vrot.slane %v12079_v53, 5  ;;  %v16247_v63 = vrot.slane %v12064_v59, 2 }
 0x307   : > { %10505 = vrsqrt.f32 %v2780_v56  ;;  %v2778_v37 = vadd.f32 1e-05, %v2762_v61  ;;  %v2753_v45 = vmul.f32 0.03125, %v2715_v4  ;;  %v16069_v56 = vrot.slane %v12109_v40, 1 }
 0x308   : > { %v16072_v61 = vrot.slane %v12109_v40, 4  ;;  %v16071_v4 = vrot.slane %v12109_v40, 3 }
 0x309   : > { %10507 = vrsqrt.f32 %v2778_v37  ;;  %v2769_v20 = vadd.f32 1e-05, %v2753_v45  ;;  %v2808_v37 = vmul.f32 %v10504_v41, %v11990_v55  ;;  %v16073_v45 = vrot.slane %v12079_v53, 6 }
 0x30a   : > { %v2721_v38 = vpop.xlane.xlu0 %2720  ;;  %v16246_v55 = vrot.slane %v12064_v59, 4 }
 0x30b   : > { %10509 = vrsqrt.f32 %v2769_v20  ;;  %v2755_v25 = vmul.f32 0.03125, %v2721_v38  ;;  %v2806_v20 = vmul.f32 %v10502_v54, %v11985_v35 }
 0x30c   : > { %v12201_v54 = vsel %vm963_vm4, %v16246_v55, %v16072_v61 }
 0x30d   : > { %v2771_v27 = vadd.f32 1e-05, %v2755_v25  ;;  %v2827_v25 = vmul.f32 %v12053_v32, %v2804_v51  ;;  %v12208_v51 = vsel %vm16248_vm15, %v16247_v63, %v16070_v60  ;;  %v2829_v55 = vmul.f32 %v12053_v32, %v2806_v20 }
 0x30e   : > { %v2727_v58 = vpop.xlane.xlu0 %2726  ;;  %v16250_v63 = vrot.slane %v12068_v21, 7  ;;  %vm16260_vm15 = vcmp.ge.s32.totalorder %v10957_v39, 3 }
 0x30f   : > { %10511 = vrsqrt.f32 %v2771_v27  ;;  %v2757_v10 = vmul.f32 0.03125, %v2727_v58  ;;  %v16245_v58 = vrot.slane %v12064_v59, 1 }
 0x310   : > { %v12231_v60 = vsel %vm16251_vm1, %v16076_v3, %v16250_v63  ;;  %v10430_v63 = vld [vmem:[%s15958_s3 + $0x38] sm:$0xff]   ;;  %vm16265_vm1 = vcmask 1045504  }
 0x311   : > { %v2773_v38 = vadd.f32 1e-05, %v2757_v10  ;;  %v12194_v35 = vsel %vm1353_vm7, %v16245_v58, %v16069_v56  ;;  %v16249_v10 = vrot.slane %v12064_v59, 3  ;;  %9038 = vmatpush3.bf16.msra.mxu1 %v10430_v63 }
 0x312   : > { %v2733_v27 = vpop.xlane.xlu0 %2732 }
 0x313   : > { %10513 = vrsqrt.f32 %v2773_v38  ;;  %v2759_v41 = vmul.f32 0.03125, %v2733_v27  ;;  %v12215_v58 = vsel %vm1549_vm12, %v16249_v10, %v16071_v4  ;;  %v2831_v38 = vmul.f32 %v12053_v32, %v2808_v37 }
 0x314   : > { %v10506_v56 = vpop.eup %10505  ;;  %v12224_v27 = vsel %vm16239_vm0, %v16073_v45, %v3046_v29  ;;  %v16252_v37 = vrot.slane %v12068_v21, 5  ;;  %v12243_v45 = vadd.f32 %v12060_v33, %v2827_v25  ;;  %vm16262_vm0 = vcmp.lt.s32.totalorder %v10832_v17, 12 }
 0x315   : > { %v2812_v10 = vmul.f32 %v10506_v56, %v11997_v15  ;;  %v2775_v4 = vadd.f32 1e-05, %v2759_v41  ;;  %v12254_v25 = vadd.f32 %v12060_v33, %v2831_v38 }
 0x316   : > { %v12240_v61 = vsel %vm16253_vm3, %v16078_v34, %v16252_v37  ;;  %v10508_v29 = vpop.eup %10507  ;;  %v2739_v18 = vpop.xlane.xlu0 %2738  ;;  %v12251_v37 = vadd.f32 %v12060_v33, %v2829_v55  ;;  %v10432_v55 = vld [vmem:[%s15958_s3 + $0x30] sm:$0xff]   ;;  %vm16267_vm3 = vcmask 1041408  }
 0x317   : > { %v2835_v56 = vmul.f32 %v12053_v32, %v2812_v10  ;;  %v2810_v41 = vmul.f32 %v10508_v29, %v12000_v5  ;;  %10515 = vrsqrt.f32 %v2775_v4  ;;  %v2761_v20 = vmul.f32 0.03125, %v2739_v18  ;;  %v10433_v29 = vld [vmem:[%s15958_s3 + $0x68] sm:$0xff]  }
 0x318   : > { %v10510_v49 = vpop.eup %10509 }
 0x319   : > { %v2833_v3 = vmul.f32 %v12053_v32, %v2810_v41  ;;  %v2801_v15 = vmul.f32 %v10510_v49, %v12005_v50  ;;  %v2777_v10 = vadd.f32 1e-05, %v2761_v20  ;;  %v12262_v18 = vadd.f32 %v12060_v33, %v2835_v56  ;;  %v10431_v49 = vld [vmem:[%s15958_s3 + $0x70] sm:$0xff]  }
 0x31a   : > { %v2745_v4 = vpop.xlane.xlu0 %2744  ;;  %9039 = vmatprep.subr.bf16.mxu1 %v10431_v49 }
 0x31b   : > { %v2824_v50 = vmul.f32 %v12053_v32, %v2801_v15  ;;  %10517 = vrsqrt.f32 %v2777_v10  ;;  %v2763_v20 = vmul.f32 0.03125, %v2745_v4  ;;  %v12283_v15 = vadd.f32 %v12060_v33, %v2833_v3  ;;  %9040 = vmatpush3.bf16.msra.mxu1 %v10432_v55  ;;  %v10434_v55 = vld [vmem:[%s15958_s3 + $0x28] sm:$0xff]  }
 0x31c   : > { %v10512_v41 = vpop.eup %10511  ;;  %9041 = vmatprep.subr.bf16.mxu1 %v10433_v29 }
 0x31d   : > { %v12286_v10 = vadd.f32 %v12060_v33, %v2824_v50  ;;  %v2803_v4 = vmul.f32 %v10512_v41, %v12014_v23  ;;  %v2779_v56 = vadd.f32 1e-05, %v2763_v20 }
 0x31f   : > { %v2826_v5 = vmul.f32 %v12053_v32, %v2803_v4  ;;  %10519 = vrsqrt.f32 %v2779_v56  ;;  %v16080_v50 = vrot.slane %v12286_v10, 1  ;;  %v2987_v23 = vrot.slane %v12286_v10, 5  ;;  %9042 = vmatpush3.bf16.msra.mxu1 %v10434_v55 }
 0x320   : > { %v10514_v49 = vpop.eup %10513  ;;  %v2922_v20 = vrot.slane %v12286_v10, 4  ;;  %v3052_v63 = vrot.slane %v12286_v10, 6  ;;  %v16254_v56 = vrot.slane %v12109_v40, 1  ;;  %v16263_v2 = vrot.slane %v12286_v10, 2 }
 0x321   : > { %v12304_v38 = vadd.f32 %v12060_v33, %v2826_v5  ;;  %v2805_v4 = vmul.f32 %v10514_v49, %v12020_v30  ;;  %v2988_v41 = vsel %vm16256_vm6, %v16255_v47, %v2987_v23  ;;  %v16258_v30 = vrot.slane %v12185_v24, 5  ;;  %v10435_v47 = vld [vmem:[%s15958_s3 + $0x60] sm:$0xff]   ;;  %vm16269_vm6 = vmmov %vm16267_vm3 }
 0x322   : > { %v3181_v3 = vsel %vm1353_vm7, %v16254_v56, %v16080_v50  ;;  %v3031_v34 = vsel %vm16260_vm15, %v2988_v41, 0.0  ;;  %v16261_v56 = vrot.slane %v12109_v40, 4  ;;  %vm16274_vm15 = vmmov %vm16267_vm3  ;;  %9043 = vmatprep.subr.bf16.mxu1 %v10435_v47  ;;  %v10437_v47 = vld [vmem:[%s15958_s3 + $0x58] sm:$0xff]  }
 0x323   : > { %v3225_v5 = vsel %vm16257_vm8, %v3181_v3, 0.0  ;;  %v2990_v49 = vsel %vm16259_vm14, %v2987_v23, %v16258_v30  ;;  %v2828_v29 = vmul.f32 %v12053_v32, %v2805_v4  ;;  %v3053_v4 = vsel %vm16267_vm3, %v16266_v16, %v3052_v63 }
 0x324   : > { %v12328_v50 = vsel %vm963_vm4, %v16261_v56, %v2922_v20  ;;  %v9773_v3 = vpack.i.bf16 %v3225_v5, %v12194_v35  ;;  %v9788_v43 = vpack.i.bf16 %v2990_v49, %v3031_v34  ;;  %v10516_v30 = vpop.eup %10515  ;;  %v16264_v56 = vrot.slane %v12109_v40, 2 }
 0x325   : > { %v3371_v23 = vsel %vm16262_vm0, %v12328_v50, 0.0  ;;  %v16268_v35 = vrot.slane %v12185_v24, 6  ;;  %v12351_v5 = vadd.f32 %v12060_v33, %v2828_v29  ;;  %v2807_v49 = vmul.f32 %v10516_v30, %v12026_v1 }
 0x326   : > { %v3871_v41 = vpack.c.bf16 %v3371_v23, %v12201_v54  ;;  %v3246_v31 = vsel %vm16265_vm1, %v16264_v56, %v16263_v2  ;;  %9774 = vrot.lane.b32.xlu0 %v9773_v3, %s10681_s28  ;;  %9789 = vrot.lane.b32.xlu1 %v9788_v43, %s10681_s28  ;;  %vm16270_vm8 = vcmp.lt.s32.totalorder %v10832_v17, 14  ;;  %vm16271_vm14 = vcmp.ge.s32.totalorder %v10957_v39, 2 }
 0x327   : > { %v3055_v34 = vsel %vm16269_vm6, %v3052_v63, %v16268_v35  ;;  %v3290_v2 = vsel %vm16270_vm8, %v3246_v31, 0.0  ;;  %v3096_v16 = vsel %vm16271_vm14, %v3053_v4, 0.0  ;;  %v2926_v29 = vrot.slane %v12304_v38, 4  ;;  %v10436_v4 = vld [vmem:[%s15958_s3 + $0x20] sm:$0xff]  }
 0x328   : > { %9252 = vmatmul.mubr.msk.bf16.vlgmr.msra.gmra.mxu0 %vm2310_vm5, %v3871_v41  ;;  %v9778_v63 = vpack.i.bf16 %v3290_v2, %v12208_v51  ;;  %v9793_v55 = vpack.i.bf16 %v3055_v34, %v3096_v16  ;;  %v16272_v23 = vrot.slane %v12079_v53, 6  ;;  %v16273_v1 = vrot.slane %v12262_v18, 6  ;;  %v10518_v35 = vpop.eup %10517  ;;  %9044 = vmatpush3.bf16.msra.mxu1 %v10436_v4 }
 0x329   : > { %v2830_v43 = vmul.f32 %v12053_v32, %v2807_v49  ;;  %v16275_v31 = vrot.slane %v12286_v10, 3  ;;  %v16276_v30 = vrot.slane %v12109_v40, 3  ;;  %v3117_v51 = vrot.slane %v12286_v10, 7  ;;  %9045 = vmatprep.subr.bf16.mxu1 %v10437_v47  ;;  %v10439_v47 = vld [vmem:[%s15958_s3 + $0x50] sm:$0xff]  }
 0x32a   : > { %v3091_v3 = vsel %vm16274_vm15, %v16273_v1, %v16272_v23  ;;  %v2930_v56 = vrot.slane %v12351_v5, 4  ;;  %v16277_v34 = vrot.slane %v12185_v24, 4  ;;  %vm16279_vm0 = vcmp.lt.s32.totalorder %v10832_v17, 13  ;;  %9779 = vrot.lane.b32.xlu0 %v9778_v63, %s10684_s21  ;;  %9794 = vrot.lane.b32.xlu1 %v9793_v55, %s10684_s21 }
 0x32b   : > { %v3311_v41 = vsel %vm1549_vm12, %v16276_v30, %v16275_v31  ;;  %v16280_v1 = vrot.slane %v12243_v45, 4  ;;  %v12400_v30 = vadd.f32 %v12060_v33, %v2830_v43  ;;  %v2809_v19 = vmul.f32 %v10518_v35, %v12032_v44 }
 0x32c   : > { %v12385_v49 = vsel %vm963_vm4, %v2922_v20, %v16277_v34  ;;  %v16278_v2 = vmov %v16277_v34  ;;  %v3355_v23 = vsel %vm16279_vm0, %v3311_v41, 0.0  ;;  %vm16281_vm1 = vcmp.lt.s32.totalorder %v11106_v12, 12 }
 0x32d   : > { %v12390_v16 = vsel %vm963_vm4, %v16278_v2, %v2926_v29  ;;  %v12397_v31 = vsel %vm963_vm4, %v2926_v29, %v16280_v1  ;;  %v9783_v41 = vpack.i.bf16 %v3355_v23, %v12215_v58  ;;  %v16282_v29 = vrot.slane %v12109_v40, 7 }
 0x32e   : > { %v3373_v20 = vsel %vm16281_vm1, %v12390_v16, 0.0  ;;  %vm16283_vm3 = vcmask 1040384   ;;  %v16284_v43 = vrot.slane %v12185_v24, 7  ;;  %v16286_v63 = vmov %v16280_v1 }
 0x32f   : > { %v3874_v34 = vpack.c.bf16 %v3373_v20, %v12385_v49  ;;  %v3118_v2 = vsel %vm16283_vm3, %v16282_v29, %v3117_v51  ;;  %vm16285_vm6 = vmmov %vm16283_vm3  ;;  %v12419_v55 = vsel %vm963_vm4, %v16286_v63, %v2930_v56  ;;  %v2832_v35 = vmul.f32 %v12053_v32, %v2809_v19  ;;  %v10520_v20 = vpop.eup %10519  ;;  %9784 = vrot.lane.b32.xlu0 %v9783_v41, %s10683_s25 }
 0x330   : > { %v3120_v44 = vsel %vm16285_vm6, %v3117_v51, %v16284_v43  ;;  %vm16287_vm8 = vcmp.ge.s32.totalorder %v10957_v39, 1  ;;  %vm16288_vm14 = vcmp.lt.s32.totalorder %v11091_v28, 12  ;;  %v10438_v51 = vld [vmem:[%s15958_s3 + $0x18] sm:$0xff]   ;;  %v16289_v29 = vrot.slane %v12185_v24, 1 }
 0x331   : > { %v3161_v58 = vsel %vm16287_vm8, %v3118_v2, 0.0  ;;  %v3375_v23 = vsel %vm16288_vm14, %v12419_v55, 0.0  ;;  %9255 = vmatprep.mubr.msk.bf16.mxu0 %vm2310_vm5, %v3874_v34  ;;  %v16290_v2 = vrot.slane %v12286_v10, 1  ;;  %v2991_v63 = vrot.slane %v12304_v38, 5  ;;  %9046 = vmatpush3.bf16.msra.mxu1 %v10438_v51 }
 0x332   : > { %v9798_v4 = vpack.i.bf16 %v3120_v44, %v3161_v58  ;;  %v3877_v19 = vpack.c.bf16 %v3375_v23, %v12397_v31  ;;  %v2811_v1 = vmul.f32 %v10520_v20, %v12038_v42  ;;  %v16291_v34 = vrot.slane %v12304_v38, 1  ;;  %9047 = vmatprep.subr.bf16.mxu1 %v10439_v47 }
 0x333   : > { %v3183_v43 = vsel %vm1353_vm7, %v16290_v2, %v16289_v29  ;;  %v16292_v44 = vmov %v16289_v29  ;;  %v16293_v23 = vrot.slane %v12251_v37, 4  ;;  %v2934_v2 = vrot.slane %v12400_v30, 4 }
 0x334   : > { %v3185_v58 = vsel %vm1353_vm7, %v16292_v44, %v16291_v34  ;;  %v12456_v17 = vadd.f32 %v12060_v33, %v2832_v35  ;;  %9799 = vrot.lane.b32.xlu1 %v9798_v4, %s10683_s25  ;;  %9256 = vmatmul.mubr.msk.bf16.gmra.mxu0 %vm2310_vm5, %v3877_v19  ;;  %vm16294_vm15 = vcmp.lt.s32.totalorder %v11106_v12, 15  ;;  %v16295_v41 = vrot.slane %v12185_v24, 5 }
 0x335   : > { %v12452_v29 = vsel %vm963_vm4, %v2930_v56, %v16293_v23  ;;  %v3227_v42 = vsel %vm16294_vm15, %v3185_v58, 0.0  ;;  %vm16296_vm0 = vcmask 1042432   ;;  %v16297_v34 = vrot.slane %v12243_v45, 5  ;;  %v10440_v58 = vld [vmem:[%s15958_s3 + $0x10] sm:$0xff]  }
 0x336   : > { %v2992_v20 = vsel %vm16296_vm0, %v16295_v41, %v2991_v63  ;;  %vm16298_vm1 = vmmov %vm16296_vm0  ;;  %v2834_v44 = vmul.f32 %v12053_v32, %v2811_v1  ;;  %v9803_v23 = vpack.i.bf16 %v3227_v42, %v3183_v43  ;;  %vm16299_vm3 = vcmp.ge.s32.totalorder %v11006_v9, 3  ;;  %v10441_v43 = vld [vmem:[%s15958_s3 + $0x48] sm:$0xff]   ;;  %9048 = vmatpush3.bf16.msra.mxu1 %v10440_v58 }
 0x337   : > { %v2994_v56 = vsel %vm16298_vm1, %v2991_v63, %v16297_v34  ;;  %v3033_v35 = vsel %vm16299_vm3, %v2992_v20, 0.0  ;;  %v16300_v4 = vrot.slane %v12251_v37, 4  ;;  %vm16301_vm6 = vcmp.lt.s32.totalorder %v11279_v62, 12  ;;  %9049 = vmatprep.subr.bf16.mxu1 %v10441_v43 }
 0x338   : > { %v9828_v41 = vpack.i.bf16 %v2994_v56, %v3033_v35  ;;  %v16088_v32 = vrot.slane %v12304_v38, 2  ;;  %vm16302_vm8 = vcmp.ge.s32.totalorder %v10800_v7, 2  ;;  %v12489_v51 = vadd.f32 %v12060_v33, %v2834_v44  ;;  %9804 = vrot.lane.b32.xlu0 %v9803_v23, %s10681_s28 }
 0x339   : > { %v12474_v19 = vsel %vm963_vm4, %v16300_v4, %v2934_v2  ;;  %v3092_v1 = vsel %vm16302_vm8, %v3091_v3, 0.0  ;;  %v16303_v20 = vrot.slane %v12079_v53, 7  ;;  %v16304_v34 = vrot.slane %v12262_v18, 7 }
 0x33a   : > { %v3377_v63 = vsel %vm16301_vm6, %v12474_v19, 0.0  ;;  %vm16305_vm14 = vcmask 1040384   ;;  %v2940_v3 = vrot.slane %v12283_v15, 4  ;;  %9829 = vrot.lane.b32.xlu1 %v9828_v41, %s10681_s28  ;;  %v16306_v47 = vrot.slane %v12185_v24, 2 }
 0x33b   : > { %v3880_v42 = vpack.c.bf16 %v3377_v63, %v12452_v29  ;;  %v3156_v56 = vsel %vm16305_vm14, %v16304_v34, %v16303_v20  ;;  %vm16307_vm15 = vcmask 1045504   ;;  %v2938_v44 = vrot.slane %v12456_v17, 4 }
 0x33c   : > { %v3250_v33 = vsel %vm16307_vm15, %v16306_v47, %v16088_v32  ;;  %v16308_v35 = vrot.slane %v12079_v53, 5  ;;  %v16309_v4 = vrot.slane %v12262_v18, 5  ;;  %v16310_v41 = vmov %v16306_v47  ;;  %vm16312_vm1 = vmmov %vm16307_vm15 }
 0x33d   : > { %9259 = vmatprep.mubr.msk.bf16.mxu0 %vm2310_vm5, %v3880_v42  ;;  %v16311_v20 = vrot.slane %v12286_v10, 2  ;;  %vm16313_vm3 = vcmp.lt.s32.totalorder %v11106_v12, 14  ;;  %v9838_v32 = vpack.i.bf16 %v12224_v27, %v3092_v1  ;;  %v2942_v23 = vrot.slane %v12489_v51, 4 }
 0x33e   : > { %v3026_v63 = vsel %vm16296_vm0, %v16309_v4, %v16308_v35  ;;  %v3292_v47 = vsel %vm16313_vm3, %v3250_v33, 0.0  ;;  %v10442_v35 = vld [vmem:[%s15958_s3 + $0x8] sm:$0xff]   ;;  %v16314_v42 = vrot.slane %v12254_v25, 4  ;;  %v16318_v27 = vrot.slane %v12304_v38, 3  ;;  %v10443_v33 = vld [vmem:[%s15958_s3 + $0x40] sm:$0xff]  }
 0x33f   : > { %v3248_v34 = vsel %vm16312_vm1, %v16311_v20, %v16310_v41  ;;  %v16319_v1 = vrot.slane %v12185_v24, 3  ;;  %vm16320_vm6 = vcmp.lt.s32.totalorder %v11274_v57, 12  ;;  %vm16321_vm8 = vcmp.lt.s32.totalorder %v11106_v12, 13  ;;  %9839 = vrot.lane.b32.xlu1 %v9838_v32, %s10684_s21  ;;  %9050 = vmatpush3.bf16.msra.mxu1 %v10442_v35 }
 0x340   : > { %v9808_v4 = vpack.i.bf16 %v3292_v47, %v3248_v34  ;;  %v12528_v6 = vsel %vm963_vm4, %v2934_v2, %v16314_v42  ;;  %v16316_v41 = vmov %v16314_v42  ;;  %vm16322_vm14 = vcmp.ge.s32.totalorder %v10800_v7, 1  ;;  %9051 = vmatprep.subr.bf16.mxu1 %v10443_v33 }
 0x341   : > { %16315 = vst [vmem:[#allocation36_spill] sm:$0xff] %v12528_v6  ;;  %v12533_v20 = vsel %vm963_vm4, %v16316_v41, %v2938_v44  ;;  %v3315_v58 = vsel %vm1549_vm12, %v16319_v1, %v16318_v27  ;;  %v3157_v47 = vsel %vm16322_vm14, %v3156_v56, 0.0  ;;  %v12551_v42 = vsel %vm963_vm4, %v2940_v3, %v2942_v23 }
 0x342   : > { %16317 = vst [vmem:[#allocation37_spill] sm:$0xff] %v12533_v20  ;;  %v3379_v2 = vsel %vm16320_vm6, %v12533_v20, 0.0  ;;  %v3357_v34 = vsel %vm16321_vm8, %v3315_v58, 0.0  ;;  %16323 = vst [vmem:[#allocation38_spill] sm:$0xff] %v12551_v42  ;;  %9809 = vrot.lane.b32.xlu0 %v9808_v4, %s10684_s21  ;;  %v12557_v41 = vsel %vm963_vm4, %v2938_v44, %v2940_v3  ;;  %vm16325_vm15 = vcmp.lt.s32.totalorder %v11454_v48, 12 }
 0x343   : > { %v3883_v43 = vpack.c.bf16 %v3379_v2, %v12528_v6  ;;  %16324 = vst [vmem:[#allocation39_spill] sm:$0xff] %v12557_v41  ;;  %v3381_v27 = vsel %vm16325_vm15, %v12551_v42, 0.0  ;;  %v16326_v1 = vrot.slane %v12079_v53, 4  ;;  %v16327_v56 = vrot.slane %v12262_v18, 4 }
 0x344   : > { %v16328_v4 = vrot.slane %v12185_v24, 3  ;;  %v16329_v32 = vrot.slane %v12286_v10, 3  ;;  %v3886_v3 = vpack.c.bf16 %v3381_v27, %v12557_v41  ;;  %vm16330_vm0 = vcmp.ge.s32.totalorder %v10800_v7, 3 }
 0x345   : > { %v12567_v58 = vsel %vm963_vm4, %v16327_v56, %v16326_v1  ;;  %v3027_v44 = vsel %vm16330_vm0, %v3026_v63, 0.0  ;;  %v3056_v12 = vrot.slane %v12304_v38, 6  ;;  %vm3784_vm1 = vcmask 523264   ;;  %v10444_v1 = vld [vmem:[%s15958_s3] sm:$0xff]   ;;  %9260 = vmatmul.mubr.msk.bf16.gmra.mxu0 %vm2310_vm5, %v3883_v43 }
 0x346   : > { %v3313_v2 = vsel %vm1549_vm12, %v16329_v32, %v16328_v4  ;;  %v9843_v13 = vpack.i.bf16 %v12231_v60, %v3157_v47  ;;  %v3121_v4 = vrot.slane %v12304_v38, 7  ;;  %v16096_v27 = vrot.slane %v12351_v5, 1  ;;  %9263 = vmatprep.mubr.msk.bf16.mxu0 %vm2310_vm5, %v3886_v3  ;;  %9052 = vmatpush3.bf16.msra.mxu1 %v10444_v1 }
 0x347   : > { %v9813_v56 = vpack.i.bf16 %v3357_v34, %v3313_v2  ;;  %vm3801_vm3 = vcmask 785408   ;;  %v16331_v63 = vrot.slane %v12185_v24, 6  ;;  %vm16332_vm6 = vcmask 1041408  }
 0x348   : > { %v16333_v32 = vrot.slane %v12243_v45, 6  ;;  %vm16334_vm8 = vmmov %vm16332_vm6  ;;  %9844 = vrot.lane.b32.xlu1 %v9843_v13, %s10683_s25  ;;  %vm16335_vm14 = vcmp.ge.s32.totalorder %v11006_v9, 2  ;;  %v16336_v47 = vrot.slane %v12262_v18, 4  ;;  %v16338_v2 = vrot.slane %v12185_v24, 7  ;;  %v9755_v13 = vpop.permute.xlu0 %9754 }
 0x349   : > { %v3057_v35 = vsel %vm16332_vm6, %v16331_v63, %v3056_v12  ;;  %9814 = vrot.lane.b32.xlu0 %v9813_v56, %s10683_s25  ;;  %vm16339_vm15 = vcmask 1040384   ;;  %v16340_v3 = vrot.slane %v12243_v45, 1  ;;  %v9745_v63 = vpop.permute.xlu1 %9744  ;;  %vm16341_vm0 = vcmp.lt.s32.totalorder %v11447_v52, 12 }
 0x34a   : > { %v3059_v14 = vsel %vm16334_vm8, %v3056_v12, %v16333_v32  ;;  %v3098_v33 = vsel %vm16335_vm14, %v3057_v35, 0.0  ;;  %v12601_v43 = vsel %vm963_vm4, %v2942_v23, %v16336_v47  ;;  %v3122_v12 = vsel %vm16339_vm15, %v16338_v2, %v3121_v4  ;;  %vm16343_vm6 = vmmov %vm16339_vm15 }
 0x34b   : > { %16337 = vst [vmem:[#allocation40_spill] sm:$0xff] %v12601_v43  ;;  %v3189_v56 = vsel %vm1353_vm7, %v16340_v3, %v16096_v27  ;;  %v9818_v32 = vpack.i.bf16 %v12240_v61, %v3027_v44  ;;  %v3383_v35 = vsel %vm16341_vm0, %v12567_v58, 0.0  ;;  %v16342_v23 = vrot.slane %v12243_v45, 7 }
 0x34c   : > { %v9746_v60 = vunpack.i.l.bf16 %v9745_v63  ;;  %v9848_v34 = vpack.i.bf16 %v3059_v14, %v3098_v33  ;;  %vm16344_vm8 = vcmp.ge.s32.totalorder %v11006_v9, 1  ;;  %vm16345_vm14 = vcmp.lt.s32.totalorder %v11091_v28, 15 }
 0x34d   : > { %v3124_v47 = vsel %vm16343_vm6, %v3121_v4, %v16342_v23  ;;  %v3163_v3 = vsel %vm16344_vm8, %v3122_v12, 0.0  ;;  %v3229_v27 = vsel %vm16345_vm14, %v3189_v56, 0.0  ;;  %v9747_v61 = vunpack.i.h.bf16 %v9745_v63  ;;  %9819 = vrot.lane.b32.xlu0 %v9818_v32, %s10681_s28  ;;  %v9750_v63 = vpop.permute.xlu1 %9749 }
 0x34e   : > { %v3889_v44 = vpack.c.bf16 %v3383_v35, %v12601_v43  ;;  %v16346_v42 = vrot.slane %v12351_v5, 2  ;;  %v16347_v41 = vrot.slane %v12243_v45, 2  ;;  %vm16348_vm15 = vcmask 1045504   ;;  %9849 = vrot.lane.b32.xlu1 %v9848_v34, %s10684_s21 }
 0x34f   : > { %v2995_v23 = vrot.slane %v12351_v5, 5  ;;  %v9757_v1 = vunpack.i.h.bf16 %v9755_v13  ;;  %v9756_v2 = vunpack.i.l.bf16 %v9755_v13  ;;  %v16349_v14 = vrot.slane %v12243_v45, 1 }
 0x350   : > { %v3254_v4 = vsel %vm16348_vm15, %v16347_v41, %v16346_v42  ;;  %v16350_v33 = vrot.slane %v12304_v38, 1  ;;  %v16101_v56 = vrot.slane %v12351_v5, 3  ;;  %v9858_v35 = vpack.i.bf16 %v3124_v47, %v3163_v3  ;;  %9264 = vmatmul.mubr.msk.bf16.gmra.mxu0 %vm2310_vm5, %v3889_v44 }
 0x351   : > { %v16351_v42 = vrot.slane %v12243_v45, 5  ;;  %vm16352_vm0 = vcmask 1042432   ;;  %v3060_v13 = vrot.slane %v12351_v5, 6  ;;  %v9752_v34 = vunpack.i.h.bf16 %v9750_v63 }
 0x352   : > { %v3187_v12 = vsel %vm1353_vm7, %v16350_v33, %v16349_v14  ;;  %v9751_v32 = vunpack.i.l.bf16 %v9750_v63  ;;  %vm16353_vm6 = vcmp.lt.s32.totalorder %v11091_v28, 14  ;;  %v3818_v14 = vsel %vm2310_vm5, %v12079_v53, %v9746_v60  ;;  %vm16355_vm8 = vmmov %vm16352_vm0  ;;  %9859 = vrot.lane.b32.xlu1 %v9858_v35, %s10683_s25 }
 0x353   : > { %v9823_v43 = vpack.i.bf16 %v3229_v27, %v3187_v12  ;;  %v2996_v41 = vsel %vm16352_vm0, %v16351_v42, %v2995_v23  ;;  %v3294_v20 = vsel %vm16353_vm6, %v3254_v4, 0.0  ;;  %v16354_v33 = vrot.slane %v12251_v37, 5 }
 0x354   : > { %vm16356_vm14 = vcmp.ge.s32.totalorder %v11159_v36, 3  ;;  %v3819_v3 = vsel %vm2310_vm5, %v12068_v21, %v9747_v61  ;;  %v16357_v44 = vrot.slane %v12243_v45, 3  ;;  %v3834_v60 = vsel %vm3784_vm1, %v3818_v14, %v9751_v32 }
 0x355   : > { %v2998_v27 = vsel %vm16355_vm8, %v2995_v23, %v16354_v33  ;;  %v3035_v47 = vsel %vm16356_vm14, %v2996_v41, 0.0  ;;  %9824 = vrot.lane.b32.xlu0 %v9823_v43, %s10681_s28  ;;  %v3835_v4 = vsel %vm3784_vm1, %v3819_v3, %v9752_v34  ;;  %v16358_v23 = vrot.slane %v12243_v45, 6 }
 0x356   : > { %v3319_v12 = vsel %vm1549_vm12, %v16357_v44, %v16101_v56  ;;  %vm16359_vm15 = vcmask 1041408   ;;  %v3062_v21 = vrot.slane %v12251_v37, 6  ;;  %v16360_v61 = vrot.slane %v12243_v45, 2 }
 0x357   : > { %v3061_v63 = vsel %vm16359_vm15, %v16358_v23, %v3060_v13  ;;  %v16361_v42 = vrot.slane %v12304_v38, 2  ;;  %vm16362_vm0 = vcmask 1045504   ;;  %v3850_v35 = vsel %vm3801_vm3, %v3834_v60, %v9756_v2  ;;  %vm16364_vm8 = vmmov %vm16359_vm15 }
 0x358   : > { %v3851_v43 = vsel %vm3801_vm3, %v3835_v4, %v9757_v1  ;;  %v3125_v32 = vrot.slane %v12351_v5, 7  ;;  %v9868_v34 = vpack.i.bf16 %v2998_v27, %v3035_v47  ;;  %v3190_v3 = vrot.slane %v12251_v37, 1 }
 0x359   : > { %v3252_v41 = vsel %vm16362_vm0, %v16361_v42, %v16360_v61  ;;  %v3867_v33 = vpack.c.bf16 %v3851_v43, %v3850_v35  ;;  %vm16363_vm6 = vcmp.lt.s32.totalorder %v11091_v28, 13  ;;  %v3063_v23 = vsel %vm16364_vm8, %v3060_v13, %v3062_v21 }
 0x35a   : > { %v9833_v14 = vpack.i.bf16 %v3294_v20, %v3252_v41  ;;  %v3359_v44 = vsel %vm16363_vm6, %v3319_v12, 0.0  ;;  %vm16365_vm14 = vcmp.ge.s32.totalorder %v11159_v36, 2  ;;  %v16105_v61 = vrot.slane %v12400_v30, 1  ;;  %9869 = vrot.lane.b32.xlu1 %v9868_v34, %s10681_s28 }
 0x35b   : > { %v3100_v56 = vsel %vm16365_vm14, %v3061_v63, 0.0  ;;  %v16366_v20 = vrot.slane %v12243_v45, 7  ;;  %vm16367_vm15 = vcmask 1040384   ;;  %v16103_v1 = vrot.slane %v12400_v30, 2  ;;  %4060 = vmatprep.mubr.bf16.mxu1 %v3867_v33 }
 0x35c   : > { %9834 = vrot.lane.b32.xlu0 %v9833_v14, %s10684_s21  ;;  %v16368_v27 = vrot.slane %v12243_v45, 3  ;;  %v16369_v13 = vrot.slane %v12304_v38, 3  ;;  %v3127_v12 = vrot.slane %v12251_v37, 7  ;;  %v3193_v60 = vsel %vm1353_vm7, %v3190_v3, %v16105_v61  ;;  %vm16370_vm0 = vmmov %vm16367_vm15 }
 0x35d   : > { %v3126_v2 = vsel %vm16367_vm15, %v16366_v20, %v3125_v32  ;;  %v2999_v4 = vrot.slane %v12400_v30, 5  ;;  %v9878_v42 = vpack.i.bf16 %v3063_v23, %v3100_v56  ;;  %v3255_v41 = vrot.slane %v12251_v37, 2 }
 0x35e   : > { %v3317_v47 = vsel %vm1549_vm12, %v16369_v13, %v16368_v27  ;;  %v3128_v35 = vsel %vm16370_vm0, %v3125_v32, %v3127_v12  ;;  %vm16371_vm6 = vcmp.ge.s32.totalorder %v11159_v36, 1  ;;  %vm16372_vm8 = vcmp.lt.s32.totalorder %v11279_v62, 15 }
 0x35f   : > { %v9853_v63 = vpack.i.bf16 %v3359_v44, %v3317_v47  ;;  %v3165_v43 = vsel %vm16371_vm6, %v3126_v2, 0.0  ;;  %v3231_v14 = vsel %vm16372_vm8, %v3193_v60, 0.0  ;;  %9879 = vrot.lane.b32.xlu1 %v9878_v42, %s10684_s21  ;;  %vm16373_vm14 = vcmask 1045504  }
 0x360   : > { %v3258_v34 = vsel %vm16373_vm14, %v3255_v41, %v16103_v1  ;;  %v16374_v56 = vrot.slane %v12251_v37, 5  ;;  %vm16375_vm15 = vcmask 1042432   ;;  %v16102_v32 = vrot.slane %v12400_v30, 3 }
 0x361   : > { %9854 = vrot.lane.b32.xlu0 %v9853_v63, %s10683_s25  ;;  %v3064_v44 = vrot.slane %v12400_v30, 6  ;;  %v16376_v23 = vrot.slane %v12351_v5, 1  ;;  %v3001_v2 = vrot.slane %v12254_v25, 5  ;;  %v9888_v27 = vpack.i.bf16 %v3128_v35, %v3165_v43  ;;  %vm16378_vm6 = vmmov %vm16375_vm15 }
 0x362   : > { %v3000_v33 = vsel %vm16375_vm15, %v16374_v56, %v2999_v4  ;;  %v3320_v47 = vrot.slane %v12251_v37, 3  ;;  %vm16377_vm0 = vcmp.lt.s32.totalorder %v11279_v62, 14  ;;  %vm16379_vm8 = vcmp.ge.s32.totalorder %v11191_v8, 3 }
 0x363   : > { %v3191_v20 = vsel %vm1353_vm7, %v16376_v23, %v3190_v3  ;;  %v3296_v60 = vsel %vm16377_vm0, %v3258_v34, 0.0  ;;  %v3002_v63 = vsel %vm16378_vm6, %v2999_v4, %v3001_v2  ;;  %v3037_v42 = vsel %vm16379_vm8, %v3000_v33, 0.0  ;;  %9889 = vrot.lane.b32.xlu1 %v9888_v27, %s10683_s25  ;;  %v12736_v33 = vpop.permute.xlu1 %9759 }
 0x364   : > { %v9863_v13 = vpack.i.bf16 %v3231_v14, %v3191_v20  ;;  %v3323_v3 = vsel %vm1549_vm12, %v3320_v47, %v16102_v32  ;;  %vm16380_vm14 = vcmask 1041408   ;;  %v3129_v43 = vrot.slane %v12400_v30, 7 }
 0x365   : > { %v3065_v35 = vsel %vm16380_vm14, %v3062_v21, %v3064_v44  ;;  %v16104_v14 = vrot.slane %v12456_v17, 1  ;;  %v16381_v34 = vrot.slane %v12351_v5, 2  ;;  %vm16382_vm15 = vcmask 1045504   ;;  %vm16384_vm6 = vmmov %vm16380_vm14 }
 0x366   : > { %9864 = vrot.lane.b32.xlu0 %v9863_v13, %s10681_s28  ;;  %v3066_v56 = vrot.slane %v12254_v25, 6  ;;  %v9898_v20 = vpack.i.bf16 %v3002_v63, %v3037_v42  ;;  %v3194_v27 = vrot.slane %v12254_v25, 1  ;;  %vm16383_vm0 = vcmp.lt.s32.totalorder %v11279_v62, 13 }
 0x367   : > { %v3256_v4 = vsel %vm16382_vm15, %v16381_v34, %v3255_v41  ;;  %v3361_v13 = vsel %vm16383_vm0, %v3323_v3, 0.0  ;;  %vm16385_vm8 = vcmp.ge.s32.totalorder %v11191_v8, 2  ;;  %v16109_v1 = vrot.slane %v12456_v17, 2  ;;  %v12766_v62 = vpop.permute.xlu1 %9764 }
 0x368   : > { %v9873_v23 = vpack.i.bf16 %v3296_v60, %v3256_v4  ;;  %v3067_v21 = vsel %vm16384_vm6, %v3064_v44, %v3066_v56  ;;  %v3102_v32 = vsel %vm16385_vm8, %v3065_v35, 0.0  ;;  %9899 = vrot.lane.b32.xlu1 %v9898_v20, %s10681_s28  ;;  %vm16386_vm14 = vcmask 1040384  }
 0x369   : > { %v3130_v41 = vsel %vm16386_vm14, %v3127_v12, %v3129_v43  ;;  %v3131_v60 = vrot.slane %v12254_v25, 7  ;;  %v3197_v63 = vsel %vm1353_vm7, %v3194_v27, %v16104_v14  ;;  %v3003_v42 = vrot.slane %v12456_v17, 5  ;;  %vm16388_vm15 = vmmov %vm16386_vm14 }
 0x36a   : > { %9874 = vrot.lane.b32.xlu0 %v9873_v23, %s10684_s21  ;;  %v16387_v44 = vrot.slane %v12351_v5, 3  ;;  %v3259_v35 = vrot.slane %v12254_v25, 2  ;;  %v9908_v4 = vpack.i.bf16 %v3067_v21, %v3102_v32  ;;  %vm16389_vm0 = vcmp.ge.s32.totalorder %v11191_v8, 1 }
 0x36b   : > { %v3132_v23 = vsel %vm16388_vm15, %v3129_v43, %v3131_v60  ;;  %v3167_v12 = vsel %vm16389_vm0, %v3130_v41, 0.0  ;;  %vm16390_vm6 = vcmp.lt.s32.totalorder %v11274_v57, 15  ;;  %vm16391_vm8 = vcmask 1045504  }
 0x36c   : > { %v3321_v3 = vsel %vm1549_vm12, %v16387_v44, %v3320_v47  ;;  %v3233_v20 = vsel %vm16390_vm6, %v3197_v63, 0.0  ;;  %v3262_v14 = vsel %vm16391_vm8, %v3259_v35, %v16109_v1  ;;  %v16108_v61 = vrot.slane %v12456_v17, 3  ;;  %9909 = vrot.lane.b32.xlu1 %v9908_v4, %s10684_s21 }
 0x36d   : > { %v9883_v34 = vpack.i.bf16 %v3361_v13, %v3321_v3  ;;  %vm16392_vm14 = vcmask 1042432   ;;  %v3068_v47 = vrot.slane %v12456_v17, 6  ;;  %v16393_v43 = vrot.slane %v12400_v30, 1 }
 0x36e   : > { %v3004_v32 = vsel %vm16392_vm14, %v3001_v2, %v3003_v42  ;;  %v3005_v21 = vrot.slane %v12283_v15, 5  ;;  %v3324_v41 = vrot.slane %v12254_v25, 3  ;;  %v9918_v63 = vpack.i.bf16 %v3132_v23, %v3167_v12  ;;  %vm16395_vm0 = vmmov %vm16392_vm14 }
 0x36f   : > { %9884 = vrot.lane.b32.xlu0 %v9883_v34, %s10683_s25  ;;  %v3195_v13 = vsel %vm1353_vm7, %v16393_v43, %v3194_v27  ;;  %vm16394_vm15 = vcmp.lt.s32.totalorder %v11274_v57, 14  ;;  %vm16396_vm6 = vcmp.ge.s32.totalorder %v11331_v26, 3  ;;  %v3133_v27 = vrot.slane %v12456_v17, 7 }
 0x370   : > { %v9893_v44 = vpack.i.bf16 %v3233_v20, %v3195_v13  ;;  %v3298_v3 = vsel %vm16394_vm15, %v3262_v14, 0.0  ;;  %v3006_v34 = vsel %vm16395_vm0, %v3003_v42, %v3005_v21  ;;  %v3039_v2 = vsel %vm16396_vm6, %v3004_v32, 0.0  ;;  %9919 = vrot.lane.b32.xlu1 %v9918_v63, %s10683_s25  ;;  %v9770_v13 = vpop.permute.xlu1 %9769 }
 0x371   : > { %v3327_v4 = vsel %vm1549_vm12, %v3324_v41, %v16108_v61  ;;  %vm16397_vm8 = vcmp.ge.s32.totalorder %v10814_v11, 4  ;;  %vm16398_vm14 = vcmask 1041408   ;;  %v9762_v42 = vunpack.i.h.bf16 %v12736_v33 }
 0x372   : > { %v2964_v43 = vsel %vm16397_vm8, %v12091_v0, 0.0  ;;  %v3069_v14 = vsel %vm16398_vm14, %v3066_v56, %v3068_v47  ;;  %v9761_v23 = vunpack.i.l.bf16 %v12736_v33  ;;  %v16399_v12 = vrot.slane %v12400_v30, 2  ;;  %vm16402_vm6 = vmmov %vm16398_vm14 }
 0x373   : > { %9894 = vrot.lane.b32.xlu0 %v9893_v44, %s10681_s28  ;;  %vm16400_vm15 = vcmask 1045504   ;;  %v3070_v32 = vrot.slane %v12283_v15, 6  ;;  %v9928_v1 = vpack.i.bf16 %v3006_v34, %v3039_v2  ;;  %vm16401_vm0 = vcmp.lt.s32.totalorder %v11274_v57, 13 }
 0x374   : > { %v3260_v20 = vsel %vm16400_vm15, %v16399_v12, %v3259_v35  ;;  %v3363_v0 = vsel %vm16401_vm0, %v3327_v4, 0.0  ;;  %v3202_v63 = vrot.slane %v12262_v18, 1  ;;  %vm16403_vm8 = vcmp.ge.s32.totalorder %v11331_v26, 2 }
 0x375   : > { %v9903_v61 = vpack.i.bf16 %v3298_v3, %v3260_v20  ;;  %v3071_v56 = vsel %vm16402_vm6, %v3068_v47, %v3070_v32  ;;  %v3104_v44 = vsel %vm16403_vm8, %v3069_v14, 0.0  ;;  %vm16404_vm14 = vcmask 1040384   ;;  %9929 = vrot.lane.b32.xlu1 %v9928_v1, %s10681_s28 }
 0x376   : > { %v3134_v33 = vsel %vm16404_vm14, %v3131_v60, %v3133_v27  ;;  %v3200_v28 = vrot.slane %v12489_v51, 1  ;;  %v9767_v35 = vunpack.i.h.bf16 %v12766_v62  ;;  %v16405_v3 = vrot.slane %v12400_v30, 3  ;;  %vm16406_vm15 = vmmov %vm16404_vm14 }
 0x377   : > { %9904 = vrot.lane.b32.xlu0 %v9903_v61, %s10684_s21  ;;  %v3135_v2 = vrot.slane %v12283_v15, 7  ;;  %v3007_v47 = vrot.slane %v12489_v51, 5  ;;  %v9766_v4 = vunpack.i.l.bf16 %v12766_v62  ;;  %v9771_v14 = vunpack.i.l.bf16 %v9770_v13 }
 0x378   : > { %v3325_v34 = vsel %vm1549_vm12, %v16405_v3, %v3324_v41  ;;  %v3198_v12 = vrot.slane %v12283_v15, 1  ;;  %v9933_v20 = vpack.i.bf16 %v3071_v56, %v3104_v44  ;;  %vm16407_vm0 = vcmp.ge.s32.totalorder %v11331_v26, 1 }
 0x379   : > { %v9913_v60 = vpack.i.bf16 %v3363_v0, %v3325_v34  ;;  %v3136_v57 = vsel %vm16406_vm15, %v3133_v27, %v3135_v2  ;;  %v3169_v61 = vsel %vm16407_vm0, %v3134_v33, 0.0  ;;  %v16408_v1 = vrot.slane %v12079_v53, 1 }
 0x37a   : > { %v9772_v3 = vunpack.i.h.bf16 %v9770_v13  ;;  %v3203_v11 = vsel %vm1353_vm7, %v3200_v28, %v3202_v63  ;;  %v3201_v6 = vsel %vm1353_vm7, %v3198_v12, %v3200_v28  ;;  %v3265_v62 = vrot.slane %v12489_v51, 2  ;;  %9934 = vrot.lane.b32.xlu1 %v9933_v20, %s10684_s21 }
 0x37b   : > { %v3221_v41 = vsel %vm1353_vm7, %v3202_v63, %v16408_v1  ;;  %v3770_v0 = vsel %vm2310_vm5, %v2964_v43, %v9761_v23  ;;  %v3771_v56 = vsel %vm2310_vm5, %v12201_v54, %v9762_v42  ;;  %9914 = vrot.lane.b32.xlu0 %v9913_v60, %s10683_s25  ;;  %vm16409_vm6 = vcmask 1042432  }
 0x37c   : > { %v3008_v27 = vsel %vm16409_vm6, %v3005_v21, %v3007_v47  ;;  %v3072_v44 = vrot.slane %v12489_v51, 6  ;;  %v9938_v13 = vpack.i.bf16 %v3136_v57, %v3169_v61  ;;  %vm16410_vm8 = vcmp.lt.s32.totalorder %v11447_v52, 15  ;;  %vm16413_vm15 = vmmov %vm16409_vm6 }
 0x37d   : > { %v3237_v63 = vsel %vm16410_vm8, %v3221_v41, 0.0  ;;  %v3263_v28 = vrot.slane %v12283_v15, 2  ;;  %v3787_v33 = vsel %vm3784_vm1, %v3770_v0, %v9766_v4  ;;  %vm16411_vm14 = vcmp.lt.s32.totalorder %v11454_v48, 15 }
 0x37e   : > { %v9923_v43 = vpack.i.bf16 %v3237_v63, %v3203_v11  ;;  %v3235_v54 = vsel %vm16411_vm14, %v3201_v6, 0.0  ;;  %v3788_v42 = vsel %vm3784_vm1, %v3771_v56, %v9767_v35  ;;  %v12840_v23 = vsel %vm3801_vm3, %v3787_v33, %v9771_v14  ;;  %9939 = vrot.lane.b32.xlu1 %v9938_v13, %s10683_s25 }
 0x37f   : > { %v16412_v21 = vrot.slane %v12262_v18, 5  ;;  %vm16414_vm0 = vcmp.ge.s32.totalorder %v11361_v46, 3  ;;  %vm16415_vm6 = vcmask 1045504   ;;  %v12849_v4 = vsel %vm3801_vm3, %v3788_v42, %v9772_v3 }
 0x380   : > { %v3041_v34 = vsel %vm16414_vm0, %v3008_v27, 0.0  ;;  %v3266_v60 = vsel %vm16415_vm6, %v3263_v28, %v3265_v62  ;;  %9924 = vrot.lane.b32.xlu0 %v9923_v43, %s10681_s28  ;;  %vm16416_vm8 = vcmask 1041408   ;;  %v3330_v6 = vrot.slane %v12489_v51, 3 }
 0x381   : > { %v3009_v57 = vsel %vm16413_vm15, %v3007_v47, %v16412_v21  ;;  %v3073_v11 = vsel %vm16416_vm8, %v3070_v32, %v3072_v44  ;;  %v3137_v35 = vrot.slane %v12489_v51, 7  ;;  %v16417_v14 = vrot.slane %v12456_v17, 1  ;;  %vm16420_vm15 = vmmov %vm16416_vm8 }
 0x382   : > { %v9968_v1 = vpack.i.bf16 %v3009_v57, %v3041_v34  ;;  %v3328_v41 = vrot.slane %v12283_v15, 3  ;;  %vm16418_vm14 = vcmp.lt.s32.totalorder %v11454_v48, 14  ;;  %v16419_v32 = vrot.slane %v12262_v18, 6 }
 0x383   : > { %v3199_v20 = vsel %vm1353_vm7, %v16417_v14, %v3198_v12  ;;  %v3300_v3 = vsel %vm16418_vm14, %v3266_v60, 0.0  ;;  %vm16421_vm0 = vcmp.ge.s32.totalorder %v11361_v46, 2  ;;  %vm16422_vm6 = vcmask 1040384  }
 0x384   : > { %v9943_v61 = vpack.i.bf16 %v3235_v54, %v3199_v20  ;;  %v3074_v0 = vsel %vm16420_vm15, %v3072_v44, %v16419_v32  ;;  %v3106_v56 = vsel %vm16421_vm0, %v3073_v11, 0.0  ;;  %9969 = vrot.lane.b32.xlu1 %v9968_v1, %s10681_s28  ;;  %v3331_v12 = vsel %vm1549_vm12, %v3328_v41, %v3330_v6  ;;  %vm16427_vm15 = vmmov %vm16422_vm6 }
 0x385   : > { %v3138_v27 = vsel %vm16422_vm6, %v3135_v2, %v3137_v35  ;;  %v16423_v13 = vrot.slane %v12456_v17, 2  ;;  %vm16424_vm8 = vcmask 1045504   ;;  %v9973_v43 = vpack.i.bf16 %v3074_v0, %v3106_v56 }
 0x386   : > { %9944 = vrot.lane.b32.xlu0 %v9943_v61, %s10681_s28  ;;  %v3267_v54 = vrot.slane %v12262_v18, 2  ;;  %vm16425_vm14 = vcmp.lt.s32.totalorder %v11454_v48, 13  ;;  %v16426_v42 = vrot.slane %v12262_v18, 7  ;;  %vm16428_vm0 = vcmp.ge.s32.totalorder %v11361_v46, 1  ;;  %vm16431_vm6 = vmmov %vm16424_vm8 }
 0x387   : > { %v3264_v63 = vsel %vm16424_vm8, %v16423_v13, %v3263_v28  ;;  %v3365_v44 = vsel %vm16425_vm14, %v3331_v12, 0.0  ;;  %v3171_v57 = vsel %vm16428_vm0, %v3138_v27, 0.0  ;;  %v16429_v2 = vrot.slane %v12456_v17, 3  ;;  %vm16432_vm8 = vmmov %vm16431_vm6 }
 0x388   : > { %v9948_v33 = vpack.i.bf16 %v3300_v3, %v3264_v63  ;;  %v3139_v21 = vsel %vm16427_vm15, %v3137_v35, %v16426_v42  ;;  %9974 = vrot.lane.b32.xlu1 %v9973_v43, %s10684_s21  ;;  %v16430_v11 = vrot.slane %v12079_v53, 2  ;;  %v3332_v20 = vrot.slane %v12262_v18, 3 }
 0x389   : > { %v3329_v28 = vsel %vm1549_vm12, %v16429_v2, %v3328_v41  ;;  %v9978_v60 = vpack.i.bf16 %v3139_v21, %v3171_v57  ;;  %v3268_v35 = vsel %vm16432_vm8, %v3265_v62, %v3267_v54  ;;  %vm16433_vm14 = vcmp.lt.s32.totalorder %v11447_v52, 14 }
 0x38a   : > { %9949 = vrot.lane.b32.xlu0 %v9948_v33, %s10684_s21  ;;  %v9953_v34 = vpack.i.bf16 %v3365_v44, %v3329_v28  ;;  %v3286_v14 = vsel %vm16431_vm6, %v3267_v54, %v16430_v11  ;;  %v16434_v41 = vrot.slane %v12079_v53, 3  ;;  %v3333_v32 = vsel %vm1549_vm12, %v3330_v6, %v3332_v20 }
 0x38b   : > { %v3302_v61 = vsel %vm16433_vm14, %v3286_v14, 0.0  ;;  %vm16435_vm15 = vcmp.lt.s32.totalorder %v11447_v52, 13  ;;  %vm16436_vm0 = vcmp.ge.s32.totalorder %v10800_v7, 4  ;;  %vm16437_vm6 = vcmp.ge.s32.totalorder %v10957_v39, 4 }
 0x38c   : > { %9979 = vrot.lane.b32.xlu1 %v9978_v60, %s10683_s25  ;;  %v9958_v1 = vpack.i.bf16 %v3302_v61, %v3268_v35  ;;  %v3351_v3 = vsel %vm1549_vm12, %v3332_v20, %v16434_v41  ;;  %v2962_v60 = vsel %vm16436_vm0, %v12567_v58, 0.0  ;;  %vm16439_vm8 = vcmp.ge.s32.totalorder %v11006_v9, 4 }
 0x38d   : > { %v3367_v0 = vsel %vm16435_vm15, %v3351_v3, 0.0  ;;  %vm16440_vm14 = vcmp.ge.s32.totalorder %v11159_v36, 4  ;;  %vm16441_vm15 = vcmp.ge.s32.totalorder %v11191_v8, 4  ;;  %vm16497_vm0 = vcmask 1041408  }
 0x38e   : > { %9954 = vrot.lane.b32.xlu0 %v9953_v34, %s10683_s25  ;;  %v9963_v62 = vpack.i.bf16 %v3367_v0, %v3333_v32 }
 0x392   : > { %9959 = vrot.lane.b32.xlu0 %v9958_v1, %s10684_s21 }
 0x396   : > { %9964 = vrot.lane.b32.xlu0 %v9963_v62, %s10683_s25 }
 0x398   : > { %v12906_v56 = vpop.permute.xlu1 %9789  ;;  %v9775_v12 = vpop.permute.xlu0 %9774 }
 0x399   : > { %v9777_v21 = vunpack.i.h.bf16 %v9775_v12  ;;  %v9776_v57 = vunpack.i.l.bf16 %v9775_v12 }
 0x39b   : > { %v3821_v1 = vsel %vm2310_vm5, %v12109_v40, %v9777_v21  ;;  %v3820_v41 = vsel %vm2310_vm5, %v12064_v59, %v9776_v57 }
 0x39c   : > { %v12908_v27 = vpop.permute.xlu1 %9794  ;;  %v9780_v13 = vpop.permute.xlu0 %9779 }
 0x39d   : > { %v9782_v2 = vunpack.i.h.bf16 %v9780_v13  ;;  %v9781_v28 = vunpack.i.l.bf16 %v9780_v13 }
 0x39f   : > { %v3836_v58 = vsel %vm3784_vm1, %v3820_v41, %v9781_v28  ;;  %v3837_v12 = vsel %vm3784_vm1, %v3821_v1, %v9782_v2 }
 0x3a1   : > { %v9785_v63 = vpop.permute.xlu0 %9784 }
 0x3a2   : > { %v9787_v14 = vunpack.i.h.bf16 %v9785_v63  ;;  %v9786_v20 = vunpack.i.l.bf16 %v9785_v63 }
 0x3a4   : > { %v3853_v21 = vsel %vm3801_vm3, %v3837_v12, %v9787_v14  ;;  %v9791_v12 = vunpack.i.l.bf16 %v12906_v56 }
 0x3a6   : > { %v12910_v53 = vpop.permute.xlu1 %9799 }
 0x3aa   : > { %v9805_v33 = vpop.permute.xlu0 %9804 }
 0x3ab   : > { %v9807_v28 = vunpack.i.h.bf16 %v9805_v33 }
 0x3ac   : > { %v12912_v43 = vpop.permute.xlu1 %9829 }
 0x3ad   : > { %v3823_v14 = vsel %vm2310_vm5, %v12185_v24, %v9807_v28  ;;  %v9797_v24 = vunpack.i.h.bf16 %v12908_v27 }
 0x3b1   : > { %v9840_v6 = vpop.permute.xlu1 %9839 }
 0x3b2   : > { %v9842_v3 = vunpack.i.h.bf16 %v9840_v6  ;;  %v9841_v32 = vunpack.i.l.bf16 %v9840_v6  ;;  %v3852_v6 = vsel %vm3801_vm3, %v3836_v58, %v9786_v20  ;;  %v9792_v58 = vunpack.i.h.bf16 %v12906_v56 }
 0x3b3   : > { %v3870_v41 = vpack.c.bf16 %v3853_v21, %v3852_v6  ;;  %v9802_v21 = vunpack.i.h.bf16 %v12910_v53 }
 0x3b4   : > { %v9810_v54 = vpop.permute.xlu0 %9809 }
 0x3ba   : > { %v9845_v44 = vpop.permute.xlu1 %9844 }
 0x3bb   : > { %v9815_v42 = vpop.permute.xlu0 %9814  ;;  %v9847_v13 = vunpack.i.h.bf16 %v9845_v44  ;;  %v9846_v63 = vunpack.i.l.bf16 %v9845_v44  ;;  %v9811_v44 = vunpack.i.l.bf16 %v9810_v54 }
 0x3bf   : > { %v9820_v11 = vpop.permute.xlu0 %9819 }
 0x3c0   : > { %v12914_v34 = vpop.permute.xlu1 %9849  ;;  %v9822_v35 = vunpack.i.h.bf16 %v9820_v11  ;;  %v9821_v61 = vunpack.i.l.bf16 %v9820_v11 }
 0x3c2   : > { %v3769_v0 = vsel %vm2310_vm5, %v12120_v22, %v9822_v35  ;;  %v3768_v62 = vsel %vm2310_vm5, %v2962_v60, %v9821_v61  ;;  %v9806_v60 = vunpack.i.l.bf16 %v9805_v33  ;;  %v9812_v35 = vunpack.i.h.bf16 %v9810_v54 }
 0x3c3   : > { %v3785_v40 = vsel %vm3784_vm1, %v3768_v62, %v9841_v32  ;;  %v3786_v59 = vsel %vm3784_vm1, %v3769_v0, %v9842_v3  ;;  %v9817_v32 = vunpack.i.h.bf16 %v9815_v42  ;;  %v9816_v62 = vunpack.i.l.bf16 %v9815_v42 }
 0x3c4   : > { %v12928_v11 = vpop.permute.xlu1 %9859  ;;  %v3802_v22 = vsel %vm3801_vm3, %v3785_v40, %v9846_v63  ;;  %v3803_v57 = vsel %vm3801_vm3, %v3786_v59, %v9847_v13  ;;  %v3822_v20 = vsel %vm2310_vm5, %v12286_v10, %v9806_v60  ;;  %v3839_v54 = vsel %vm3784_vm1, %v3823_v14, %v9812_v35 }
 0x3c5   : > { %v3866_v2 = vpack.c.bf16 %v3803_v57, %v3802_v22  ;;  %v3838_v0 = vsel %vm3784_vm1, %v3822_v20, %v9811_v44  ;;  %v3855_v13 = vsel %vm3801_vm3, %v3839_v54, %v9817_v32  ;;  %v9796_v63 = vunpack.i.l.bf16 %v12908_v27 }
 0x3c6   : > { %v3854_v42 = vsel %vm3801_vm3, %v3838_v0, %v9816_v62  ;;  %v2966_v10 = vsel %vm16437_vm6, %v12328_v50, 0.0  ;;  %v9801_v40 = vunpack.i.l.bf16 %v12910_v53  ;;  %v3773_v27 = vsel %vm2310_vm5, %v12385_v49, %v9792_v58  ;;  %vm16498_vm6 = vmmov %vm16497_vm0 }
 0x3c7   : > { %v9825_v47 = vpop.permute.xlu0 %9824  ;;  %4061 = vmatmul.mubr.bf16.vlgmr.msra.gmra.mxu1 %v3866_v2  ;;  %v3873_v60 = vpack.c.bf16 %v3855_v13, %v3854_v42  ;;  %v3772_v2 = vsel %vm2310_vm5, %v2966_v10, %v9791_v12  ;;  %v16438_v50 = vpack.c.bf16 %v12849_v4, %v12840_v23  ;;  %v3790_v53 = vsel %vm3784_vm1, %v3773_v27, %v9797_v24 }
 0x3c8   : > { %4068 = vmatprep.mubr.bf16.mxu1 %v3870_v41  ;;  %v9827_v59 = vunpack.i.h.bf16 %v9825_v47  ;;  %v9826_v6 = vunpack.i.l.bf16 %v9825_v47  ;;  %v3789_v47 = vsel %vm3784_vm1, %v3772_v2, %v9796_v63  ;;  %v9832_v62 = vunpack.i.h.bf16 %v12912_v43 }
 0x3c9   : > { %v3806_v49 = vsel %vm3801_vm3, %v3789_v47, %v9801_v40  ;;  %v3807_v4 = vsel %vm3801_vm3, %v3790_v53, %v9802_v21  ;;  %v9852_v0 = vunpack.i.h.bf16 %v12914_v34  ;;  %v9862_v58 = vunpack.i.h.bf16 %v12928_v11 }
 0x3ca   : > { %v3825_v41 = vsel %vm2310_vm5, %v12243_v45, %v9827_v59  ;;  %v3824_v32 = vsel %vm2310_vm5, %v12304_v38, %v9826_v6  ;;  %v9851_v45 = vunpack.i.l.bf16 %v12914_v34  ;;  %v9861_v12 = vunpack.i.l.bf16 %v12928_v11 }
 0x3cb   : > { %v3872_v63 = vpack.c.bf16 %v3807_v4, %v3806_v49  ;;  %v3775_v34 = vsel %vm2310_vm5, %v12397_v31, %v9832_v62 }
 0x3cc   : > { %v12936_v61 = vpop.permute.xlu1 %9869  ;;  %v3792_v11 = vsel %vm3784_vm1, %v3775_v34, %v9852_v0 }
 0x3cd   : > { %v9872_v31 = vunpack.i.h.bf16 %v12936_v61  ;;  %v9871_v2 = vunpack.i.l.bf16 %v12936_v61 }
 0x3ce   : > { %v9835_v1 = vpop.permute.xlu0 %9834 }
 0x3cf   : > { %v9837_v22 = vunpack.i.h.bf16 %v9835_v1  ;;  %v9836_v56 = vunpack.i.l.bf16 %v9835_v1  ;;  %4069 = vmatmul.mubr.bf16.gmra.mxu1 %v16438_v50  ;;  %v9831_v1 = vunpack.i.l.bf16 %v12912_v43  ;;  %v2968_v43 = vsel %vm16439_vm8, %v12390_v16, 0.0 }
 0x3d0   : > { %4076 = vmatprep.mubr.bf16.mxu1 %v3873_v60  ;;  %v3809_v60 = vsel %vm3801_vm3, %v3792_v11, %v9862_v58  ;;  %v3777_v62 = vsel %vm2310_vm5, %v12452_v29, %v9872_v31  ;;  %vm16499_vm8 = vcmp.ge.s32.totalorder %v11361_v46, 2 }
 0x3d1   : > { %v12942_v3 = vpop.permute.xlu1 %9879  ;;  %v3840_v20 = vsel %vm3784_vm1, %v3824_v32, %v9836_v56  ;;  %v3774_v42 = vsel %vm2310_vm5, %v2968_v43, %v9831_v1 }
 0x3d2   : > { %v3791_v56 = vsel %vm3784_vm1, %v3774_v42, %v9851_v45  ;;  %v9881_v50 = vunpack.i.l.bf16 %v12942_v3 }
 0x3d3   : > { %v9855_v33 = vpop.permute.xlu0 %9854 }
 0x3d4   : > { %v9857_v35 = vunpack.i.h.bf16 %v9855_v33  ;;  %v9856_v44 = vunpack.i.l.bf16 %v9855_v33  ;;  %v3841_v33 = vsel %vm3784_vm1, %v3825_v41, %v9837_v22 }
 0x3d5   : > { %v12957_v57 = vpop.permute.xlu1 %9889 }
 0x3d6   : > { %v3856_v54 = vsel %vm3801_vm3, %v3840_v20, %v9856_v44  ;;  %v3857_v38 = vsel %vm3801_vm3, %v3841_v33, %v9857_v35  ;;  %v9882_v44 = vunpack.i.h.bf16 %v12942_v3  ;;  %v9892_v32 = vunpack.i.h.bf16 %v12957_v57 }
 0x3d7   : > { %v3876_v21 = vpack.c.bf16 %v3857_v38, %v3856_v54  ;;  %4077 = vmatmul.mubr.bf16.gmra.mxu1 %v3872_v63  ;;  %v9891_v61 = vunpack.i.l.bf16 %v12957_v57 }
 0x3d8   : > { %v9865_v28 = vpop.permute.xlu0 %9864  ;;  %v3794_v57 = vsel %vm3784_vm1, %v3777_v62, %v9882_v44 }
 0x3d9   : > { %v9867_v13 = vunpack.i.h.bf16 %v9865_v28  ;;  %v9866_v24 = vunpack.i.l.bf16 %v9865_v28  ;;  %4084 = vmatprep.mubr.bf16.mxu1 %v3876_v21  ;;  %v3808_v28 = vsel %vm3801_vm3, %v3791_v56, %v9861_v12 }
 0x3da   : > { %v12974_v14 = vpop.permute.xlu1 %9899 }
 0x3db   : > { %v3827_v27 = vsel %vm2310_vm5, %v12251_v37, %v9867_v13  ;;  %v3826_v35 = vsel %vm2310_vm5, %v12351_v5, %v9866_v24  ;;  %v2970_v5 = vsel %vm16440_vm14, %v12419_v55, 0.0  ;;  %v3811_v55 = vsel %vm3801_vm3, %v3794_v57, %v9892_v32 }
 0x3dc   : > { %v9875_v23 = vpop.permute.xlu0 %9874  ;;  %v3776_v3 = vsel %vm2310_vm5, %v2970_v5, %v9871_v2  ;;  %v16443_v5 = vld [vmem:[#allocation37_spill] sm:$0xff]  ;;  %vm16500_vm14 = vcmask 1040384  }
 0x3dd   : > { %v9877_v10 = vunpack.i.h.bf16 %v9875_v23  ;;  %v9876_v40 = vunpack.i.l.bf16 %v9875_v23  ;;  %v3875_v23 = vpack.c.bf16 %v3809_v60, %v3808_v28  ;;  %v3793_v0 = vsel %vm3784_vm1, %v3776_v3, %v9881_v50 }
 0x3de   : > { %v12991_v59 = vpop.permute.xlu1 %9909  ;;  %v3810_v38 = vsel %vm3801_vm3, %v3793_v0, %v9891_v61  ;;  %v2974_v3 = vsel %vm790_vm9, %v16443_v5, 0.0 }
 0x3df   : > { %v3842_v1 = vsel %vm3784_vm1, %v3826_v35, %v9876_v40  ;;  %v3843_v41 = vsel %vm3784_vm1, %v3827_v27, %v9877_v10  ;;  %4085 = vmatmul.mubr.bf16.gmra.mxu1 %v3875_v23  ;;  %v3878_v42 = vpack.c.bf16 %v3811_v55, %v3810_v38  ;;  %v9902_v10 = vunpack.i.h.bf16 %v12974_v14  ;;  %v16442_v27 = vld [vmem:[#allocation36_spill] sm:$0xff]  ;;  %v16444_v38 = vld [vmem:[#allocation39_spill] sm:$0xff] }
 0x3e0   : > { %v9901_v40 = vunpack.i.l.bf16 %v12974_v14  ;;  %v2972_v14 = vsel %vm16441_vm15, %v12474_v19, 0.0  ;;  %vm16501_vm15 = vmmov %vm16500_vm14 }
 0x3e1   : > { %v9885_v6 = vpop.permute.xlu0 %9884 }
 0x3e2   : > { %v9887_v22 = vunpack.i.h.bf16 %v9885_v6  ;;  %v9886_v16 = vunpack.i.l.bf16 %v9885_v6  ;;  %v9920_v47 = vpop.permute.xlu1 %9919  ;;  %v3778_v2 = vsel %vm2310_vm5, %v2972_v14, %v9901_v40 }
 0x3e3   : > { %v9922_v11 = vunpack.i.h.bf16 %v9920_v47 }
 0x3e4   : > { %v3858_v49 = vsel %vm3801_vm3, %v3842_v1, %v9886_v16  ;;  %v3859_v37 = vsel %vm3801_vm3, %v3843_v41, %v9887_v22  ;;  %v9912_v22 = vunpack.i.h.bf16 %v12991_v59  ;;  %v9911_v16 = vunpack.i.l.bf16 %v12991_v59 }
 0x3e5   : > { %v9895_v53 = vpop.permute.xlu0 %9894  ;;  %v3879_v33 = vpack.c.bf16 %v3859_v37, %v3858_v49  ;;  %v3779_v59 = vsel %vm2310_vm5, %v16442_v27, %v9902_v10 }
 0x3e6   : > { %v9897_v45 = vunpack.i.h.bf16 %v9895_v53  ;;  %v9896_v54 = vunpack.i.l.bf16 %v9895_v53  ;;  %v3795_v35 = vsel %vm3784_vm1, %v3778_v2, %v9911_v16  ;;  %v3796_v44 = vsel %vm3784_vm1, %v3779_v59, %v9912_v22  ;;  %v16445_v59 = vld [vmem:[#allocation38_spill] sm:$0xff] }
 0x3e7   : > { %v9930_v4 = vpop.permute.xlu1 %9929  ;;  %4092 = vmatprep.mubr.bf16.mxu1 %v3879_v33  ;;  %v3813_v1 = vsel %vm3801_vm3, %v3796_v44, %v9922_v11 }
 0x3e8   : > { %v3829_v13 = vsel %vm2310_vm5, %v12254_v25, %v9897_v45  ;;  %v3828_v24 = vsel %vm2310_vm5, %v12400_v30, %v9896_v54  ;;  %v9921_v30 = vunpack.i.l.bf16 %v9920_v47  ;;  %4093 = vmatmul.mubr.bf16.gmra.mxu1 %v3878_v42  ;;  %v9932_v41 = vunpack.i.h.bf16 %v9930_v4 }
 0x3e9   : > { %v9905_v20 = vpop.permute.xlu0 %9904  ;;  %v9931_v32 = vunpack.i.l.bf16 %v9930_v4 }
 0x3ea   : > { %v9907_v43 = vunpack.i.h.bf16 %v9905_v20  ;;  %v9906_v58 = vunpack.i.l.bf16 %v9905_v20  ;;  %v3812_v53 = vsel %vm3801_vm3, %v3795_v35, %v9921_v30  ;;  %v3781_v4 = vsel %vm2310_vm5, %v16444_v38, %v9932_v41 }
 0x3eb   : > { %v3881_v19 = vpack.c.bf16 %v3813_v1, %v3812_v53  ;;  %v3780_v54 = vsel %vm2310_vm5, %v2974_v3, %v9931_v32  ;;  %v2976_v35 = vsel %vm792_vm11, %v16445_v59, 0.0 }
 0x3ec   : > { %v9935_v12 = vpop.permute.xlu1 %9934  ;;  %v3844_v6 = vsel %vm3784_vm1, %v3828_v24, %v9906_v58  ;;  %v3845_v21 = vsel %vm3784_vm1, %v3829_v13, %v9907_v43 }
 0x3ed   : > { %v9915_v29 = vpop.permute.xlu0 %9914  ;;  %v9937_v61 = vunpack.i.h.bf16 %v9935_v12  ;;  %v9936_v49 = vunpack.i.l.bf16 %v9935_v12 }
 0x3ee   : > { %v9917_v63 = vunpack.i.h.bf16 %v9915_v29  ;;  %v9916_v34 = vunpack.i.l.bf16 %v9915_v29 }
 0x3ef   : > { %v3797_v43 = vsel %vm3784_vm1, %v3780_v54, %v9936_v49  ;;  %v3798_v58 = vsel %vm3784_vm1, %v3781_v4, %v9937_v61  ;;  %v13092_v54 = vld [vmem:[%s15964_s9] ss:$0 sm:$0xff] }
 0x3f0   : > { %v3860_v56 = vsel %vm3801_vm3, %v3844_v6, %v9916_v34  ;;  %v3861_v25 = vsel %vm3801_vm3, %v3845_v21, %v9917_v63  ;;  %v9940_v28 = vpop.permute.xlu1 %9939 }
 0x3f1   : > { %v3882_v31 = vpack.c.bf16 %v3861_v25, %v3860_v56  ;;  %v9942_v33 = vunpack.i.h.bf16 %v9940_v28  ;;  %v9941_v0 = vunpack.i.l.bf16 %v9940_v28 }
 0x3f2   : > { %v13033_v60 = vpop.permute.xlu0 %9924 }
 0x3f3   : > { %4100 = vmatprep.mubr.bf16.mxu1 %v3882_v31  ;;  %v3814_v34 = vsel %vm3801_vm3, %v3797_v43, %v9941_v0  ;;  %v3815_v10 = vsel %vm3801_vm3, %v3798_v58, %v9942_v33  ;;  %v9927_v40 = vunpack.i.h.bf16 %v13033_v60  ;;  %v9926_v22 = vunpack.i.l.bf16 %v13033_v60  ;;  %v13084_v33 = vpop.f32.mrf.mxu0 }
 0x3f4   : > { %4101 = vmatmul.mubr.bf16.gmra.mxu1 %v3881_v19  ;;  %v3884_v28 = vpack.c.bf16 %v3815_v10, %v3814_v34  ;;  %v16448_v34 = vld [vmem:[#allocation19_spill] sm:$0xff] }
 0x3f5   : > { %v3833_v60 = vsel %vm2310_vm5, %v12262_v18, %v9927_v40  ;;  %v3832_v44 = vsel %vm2310_vm5, %v12489_v51, %v9926_v22 }
 0x3f6   : > { %v9970_v50 = vpop.permute.xlu1 %9969 }
 0x3f7   : > { %v9971_v16 = vunpack.i.l.bf16 %v9970_v50 }
 0x3f8   : > { %v9945_v47 = vpop.permute.xlu0 %9944 }
 0x3f9   : > { %v9947_v62 = vunpack.i.h.bf16 %v9945_v47  ;;  %v9946_v23 = vunpack.i.l.bf16 %v9945_v47  ;;  %v16446_v47 = vld [vmem:[#allocation40_spill] sm:$0xff] }
 0x3fa   : > { %v9975_v20 = vpop.permute.xlu1 %9974 }
 0x3fb   : > { %v3831_v12 = vsel %vm2310_vm5, %v12283_v15, %v9947_v62  ;;  %v3830_v29 = vsel %vm2310_vm5, %v12456_v17, %v9946_v23  ;;  %v9972_v17 = vunpack.i.h.bf16 %v9970_v50  ;;  %v9977_v11 = vunpack.i.h.bf16 %v9975_v20 }
 0x3fc   : > { %v9950_v37 = vpop.permute.xlu0 %9949  ;;  %v9976_v30 = vunpack.i.l.bf16 %v9975_v20  ;;  %v3782_v50 = vsel %vm2310_vm5, %v2976_v35, %v9971_v16  ;;  %v8903_v20 = vld [vmem:[%s11763_s20 + $0x8] sm:$0xff] }
 0x3fd   : > { %v9952_v57 = vunpack.i.h.bf16 %v9950_v37  ;;  %v9951_v45 = vunpack.i.l.bf16 %v9950_v37  ;;  %v3783_v53 = vsel %vm2310_vm5, %v16446_v47, %v9972_v17 }
 0x3fe   : > { %v9980_v6 = vpop.permute.xlu1 %9979  ;;  %v3799_v19 = vsel %vm3784_vm1, %v3782_v50, %v9976_v30  ;;  %v3800_v61 = vsel %vm3784_vm1, %v3783_v53, %v9977_v11 }
 0x3ff   : > { %v3846_v24 = vsel %vm3784_vm1, %v3830_v29, %v9951_v45  ;;  %v3847_v63 = vsel %vm3784_vm1, %v3831_v12, %v9952_v57  ;;  %v9982_v31 = vunpack.i.h.bf16 %v9980_v6  ;;  %v9981_v14 = vunpack.i.l.bf16 %v9980_v6  ;;  %v16447_v57 = vld [vmem:[#allocation18_spill] sm:$0xff]  ;;  %v16449_v6 = vld [vmem:[#allocation21_spill] sm:$0xff] }
 0x400   : > { %v9955_v55 = vpop.permute.xlu0 %9954  ;;  %v13087_v45 = vrot.slane %v8903_v20, %v16447_v57 }
 0x401   : > { %v9957_v42 = vunpack.i.h.bf16 %v9955_v55  ;;  %v9956_v13 = vunpack.i.l.bf16 %v9955_v55  ;;  %v3816_v37 = vsel %vm3801_vm3, %v3799_v19, %v9981_v14  ;;  %v3817_v51 = vsel %vm3801_vm3, %v3800_v61, %v9982_v31  ;;  %v4159_v55 = vpop.f32.mrf.mxu0 }
 0x402   : > { %v3887_v23 = vpack.c.bf16 %v3817_v51, %v3816_v37  ;;  %v13097_v12 = vrot.slane %v13087_v45, %v16447_v57 }
 0x403   : > { %v3862_v21 = vsel %vm3801_vm3, %v3846_v24, %v9956_v13  ;;  %v3863_v15 = vsel %vm3801_vm3, %v3847_v63, %v9957_v42  ;;  %v13099_v13 = vpop.f32.mrf.mxu0 }
 0x404   : > { %v9960_v56 = vpop.permute.xlu0 %9959  ;;  %v3885_v25 = vpack.c.bf16 %v3863_v15, %v3862_v21  ;;  %v13103_v10 = vrot.slane %v13097_v12, %v16448_v34  ;;  %v16450_v21 = vmax.f32 %v16449_v6, 0.0 }
 0x405   : > { %v9962_v2 = vunpack.i.h.bf16 %v9960_v56  ;;  %v9961_v27 = vunpack.i.l.bf16 %v9960_v56  ;;  %v4162_v22 = vpop.f32.mrf.mxu0 }
 0x406   : > { %4108 = vmatprep.mubr.bf16.mxu1 %v3885_v25 }
 0x407   : > { %4109 = vmatmul.mubr.bf16.gmra.mxu1 %v3884_v28  ;;  %v3848_v49 = vsel %vm3784_vm1, %v3832_v44, %v9961_v27  ;;  %v3849_v18 = vsel %vm3784_vm1, %v3833_v60, %v9962_v2  ;;  %v13115_v11 = vpop.f32.mrf.mxu0 }
 0x408   : > { %v9965_v1 = vpop.permute.xlu0 %9964 }
 0x409   : > { %v9967_v41 = vunpack.i.h.bf16 %v9965_v1  ;;  %v9966_v32 = vunpack.i.l.bf16 %v9965_v1  ;;  %v4175_v31 = vpop.f32.mrf.mxu0 }
 0x40b   : > { %v3864_v5 = vsel %vm3801_vm3, %v3848_v49, %v9966_v32  ;;  %v3865_v3 = vsel %vm3801_vm3, %v3849_v18, %v9967_v41  ;;  %v13117_v27 = vpop.f32.mrf.mxu0 }
 0x40c   : > { %v3888_v62 = vpack.c.bf16 %v3865_v3, %v3864_v5  ;;  %v4257_v5 = vcombine.high %v8903_v20, %v8903_v20 }
 0x40d   : > { %v13119_v60 = vpop.f32.mrf.mxu0 }
 0x40e   : > { %4116 = vmatprep.mubr.bf16.mxu1 %v3888_v62 }
 0x40f   : > { %4117 = vmatmul.mubr.bf16.gmra.mxu1 %v3887_v23  ;;  %v13125_v47 = vpop.f32.mrf.mxu0 }
 0x411   : > { %v13127_v41 = vpop.f32.mrf.mxu0 }
 0x413   : > { %v13133_v61 = vpop.f32.mrf.mxu0 }
 0x415   : > { %v13139_v37 = vpop.f32.mrf.mxu0 }
 0x417   : > { %v9265_v3 = vpop.f32.mrf.mxu0 }
 0x487   : > { %v9053_v0 = vpop.f32.mrf.mxu1 }
 0x489   : > { %v9054_v38 = vpop.f32.mrf.mxu1 }
 0x48a   : > { %v9055_v4 = vadd.f32 %v9054_v38, %v9053_v0  ;;  %v4271_v38 = vrot.slane %v4257_v5, %v16447_v57 }
 0x48b   : > { %v9056_v43 = vpop.f32.mrf.mxu1 }
 0x48c   : > { %v4063_v58 = vadd.f32 %v9055_v4, %v13092_v54  ;;  %v13148_v4 = vpop.f32.mrf.mxu0  ;;  %v13154_v26 = vrot.slane %v4271_v38, %v16447_v57 }
 0x48d   : > { %v9057_v29 = vpop.f32.mrf.mxu1 }
 0x48e   : > { %v4160_v42 = vadd.f32 %v4159_v55, %v4063_v58  ;;  %v4273_v58 = vcombine.high %v4271_v38, %v4271_v38  ;;  %v4303_v38 = vcombine.high %v13154_v26, %v13154_v26 }
 0x48f   : > { %v9059_v24 = vpop.f32.mrf.mxu1 }
 0x490   : > { %v4222_v63 = vmax.f32 %v4160_v42, 0.0  ;;  %v9058_v42 = vadd.f32 %v9057_v29, %v9056_v43 }
 0x491   : > { %v9060_v40 = vpop.f32.mrf.mxu1 }
 0x492   : > { %v13107_v15 = vadd.f32 %v4222_v63, %v16450_v21  ;;  %v9061_v23 = vadd.f32 %v9060_v40, %v9059_v24  ;;  %v13157_v24 = vrot.slane %v4273_v58, %v16447_v57  ;;  %v4272_v40 = vcombine.high %v13087_v45, %v13087_v45 }
 0x493   : > { %v9062_v17 = vpop.f32.mrf.mxu1  ;;  %v4066_v5 = vadd.f32 %v9058_v42, %v13092_v54 }
 0x494   : > { %16451 = vst [vmem:[#allocation36_spill] sm:$0xff] %v13107_v15  ;;  %v13111_v16 = vadd.f32 %v13103_v10, %v13107_v15  ;;  %v4071_v63 = vadd.f32 %v9061_v23, %v13092_v54  ;;  %v4305_v48 = vcombine.high %v13157_v24, %v13157_v24  ;;  %v4294_v42 = vrot.slane %v4272_v40, %v16447_v57 }
 0x495   : > { %v9063_v56 = vpop.f32.mrf.mxu1 }
 0x496   : > { %v4362_v25 = vsel %vm2310_vm5, %v13111_v16, 0.0  ;;  %v4168_v43 = vadd.f32 %v13084_v33, %v4071_v63  ;;  %v9064_v29 = vadd.f32 %v9063_v56, %v9062_v17  ;;  %v4163_v33 = vadd.f32 %v4162_v22, %v4066_v5 }
 0x497   : > { %v9065_v30 = vpop.f32.mrf.mxu1  ;;  %4363 = vadd.xlane.f32.xlu0 %v4362_v25  ;;  %v9266_v25 = vpop.f32.mrf.mxu0  ;;  %v4302_v22 = vcombine.high %v13097_v12, %v13097_v12 }
 0x498   : > { %v4224_v17 = vmax.f32 %v4168_v43, 0.0  ;;  %v4074_v56 = vadd.f32 %v9064_v29, %v13092_v54 }
 0x499   : > { %v9066_v28 = vpop.f32.mrf.mxu1 }
 0x49a   : > { %v9067_v6 = vadd.f32 %v9066_v28, %v9065_v30  ;;  %v4171_v29 = vadd.f32 %v13099_v13, %v4074_v56 }
 0x49b   : > { %v9068_v14 = vpop.f32.mrf.mxu1 }
 0x49c   : > { %v4079_v30 = vadd.f32 %v9067_v6, %v13092_v54 }
 0x49d   : > { %v9069_v2 = vpop.f32.mrf.mxu1 }
 0x49e   : > { %v4176_v63 = vadd.f32 %v4175_v31, %v4079_v30  ;;  %v16452_v31 = vld [vmem:[#allocation31_spill] sm:$0xff] }
 0x49f   : > { %v9071_v59 = vpop.f32.mrf.mxu1  ;;  %v16453_v43 = vmax.f32 %v16452_v31, 0.0 }
 0x4a0   : > { %v4226_v30 = vmax.f32 %v4176_v63, 0.0 }
 0x4a1   : > { %v9072_v35 = vpop.f32.mrf.mxu1 }
 0x4a3   : > { %v13121_v44 = vpop.f32.mrf.mxu1 }
 0x4a5   : > { %v13123_v50 = vpop.f32.mrf.mxu1 }
 0x4a8   : > { %v9077_v53 = vpop.f32.mrf.mxu1 }
 0x4aa   : > { %v9078_v1 = vpop.f32.mrf.mxu1 }
 0x4ab   : > { %v9079_v7 = vadd.f32 %v9078_v1, %v9077_v53 }
 0x4ac   : > { %v13129_v32 = vpop.f32.mrf.mxu1 }
 0x4ad   : > { %v4095_v13 = vadd.f32 %v9079_v7, %v13092_v54 }
 0x4ae   : > { %v13131_v19 = vpop.f32.mrf.mxu1 }
 0x4af   : > { %v4192_v31 = vadd.f32 %v13127_v41, %v4095_v13 }
 0x4b4   : > { %v13135_v49 = vpop.f32.mrf.mxu1 }
 0x4b6   : > { %v13137_v18 = vpop.f32.mrf.mxu1 }
 0x4b8   : > { %v13141_v51 = vpop.f32.mrf.mxu1 }
 0x4ba   : > { %v13143_v62 = vpop.f32.mrf.mxu1 }
 0x4c7   : > { %v13145_v0 = vpop.f32.mrf.mxu1 }
 0x4c9   : > { %v13150_v55 = vpop.f32.mrf.mxu1 }
 0x4cb   : > { %v9092_v21 = vpop.f32.mrf.mxu1 }
 0x4cd   : > { %v9093_v20 = vpop.f32.mrf.mxu1 }
 0x4ce   : > { %v9094_v15 = vadd.f32 %v9093_v20, %v9092_v21  ;;  %v4210_v21 = vpop.f32.mrf.mxu0  ;;  %v9073_v20 = vadd.f32 %v9072_v35, %v9071_v59  ;;  %v13173_v59 = vrot.slane %v4303_v38, %v16448_v34  ;;  %v16455_v38 = vld [vmem:[#allocation20_spill] sm:$0xff] }
 0x4cf   : > { %v9095_v28 = vpop.f32.mrf.mxu1  ;;  %v16456_v53 = vmax.f32 %v16455_v38, 0.0 }
 0x4d0   : > { %v4114_v23 = vadd.f32 %v9094_v15, %v13092_v54  ;;  %v9070_v15 = vadd.f32 %v9069_v2, %v9068_v14  ;;  %v4087_v35 = vadd.f32 %v9073_v20, %v13092_v54  ;;  %v4223_v2 = vmax.f32 %v4163_v33, 0.0 }
 0x4d1   : > { %v9096_v58 = vpop.f32.mrf.mxu1  ;;  %v13187_v1 = vadd.f32 %v4224_v17, %v16456_v53  ;;  %v4317_v20 = vrot.slane %v4302_v22, %v16448_v34  ;;  %v16458_v17 = vld [vmem:[#allocation35_spill] sm:$0xff] }
 0x4d2   : > { %v4211_v45 = vadd.f32 %v4210_v21, %v4114_v23  ;;  %v9097_v8 = vadd.f32 %v9096_v58, %v9095_v28  ;;  %v4337_v28 = vrot.slane %v4305_v48, %v16448_v34  ;;  %v4082_v48 = vadd.f32 %v9070_v15, %v13092_v54 }
 0x4d3   : > { %v9098_v6 = vpop.f32.mrf.mxu1  ;;  %16457 = vst [vmem:[#allocation39_spill] sm:$0xff] %v13187_v1  ;;  %v9085_v58 = vadd.f32 %v13137_v18, %v13135_v49  ;;  %v16459_v56 = vmax.f32 %v16458_v17, 0.0  ;;  %v4304_v15 = vcombine.high %v4294_v42, %v4294_v42 }
 0x4d4   : > { %v4235_v36 = vmax.f32 %v4211_v45, 0.0  ;;  %v4119_v9 = vadd.f32 %v9097_v8, %v13092_v54  ;;  %v4313_v8 = vrot.slane %v4294_v42, %v16448_v34  ;;  %v4179_v49 = vadd.f32 %v13119_v60, %v4082_v48  ;;  %v16470_v48 = vld [vmem:[#allocation22_spill] sm:$0xff] }
 0x4d5   : > { %v9099_v23 = vpop.f32.mrf.mxu1  ;;  %v4103_v42 = vadd.f32 %v9085_v58, %v13092_v54  ;;  %v9091_v60 = vadd.f32 %v13150_v55, %v13145_v0 }
 0x4d6   : > { %v4216_v40 = vadd.f32 %v9265_v3, %v4119_v9  ;;  %v9100_v5 = vadd.f32 %v9099_v23, %v9098_v6  ;;  %v13181_v14 = vadd.f32 %v4235_v36, %v16453_v43  ;;  %v4184_v36 = vadd.f32 %v13115_v11, %v4087_v35  ;;  %v16464_v35 = vld [vmem:[#allocation28_spill] sm:$0xff] }
 0x4d7   : > { %v9076_v3 = vadd.f32 %v13123_v50, %v13121_v44  ;;  %v4225_v6 = vmax.f32 %v4171_v29, 0.0  ;;  %v13209_v11 = vadd.f32 %v4313_v8, %v13187_v1  ;;  %v16461_v44 = vld [vmem:[#allocation23_spill] sm:$0xff]  ;;  %v16465_v23 = vmax.f32 %v16464_v35, 0.0  ;;  %v16467_v29 = vld [vmem:[#allocation29_spill] sm:$0xff] }
 0x4d8   : > { %16454 = vst [vmem:[#allocation37_spill] sm:$0xff] %v13181_v14  ;;  %v4236_v21 = vmax.f32 %v4216_v40, 0.0  ;;  %v4122_v9 = vadd.f32 %v9100_v5, %v13092_v54  ;;  %v13193_v12 = vadd.f32 %v13173_v59, %v13181_v14  ;;  %v16462_v7 = vmax.f32 %v16461_v44, 0.0 }
 0x4d9   : > { %v13221_v22 = vadd.f32 %v4226_v30, %v16465_v23  ;;  %v4228_v40 = vmax.f32 %v4184_v36, 0.0  ;;  %v4090_v5 = vadd.f32 %v9076_v3, %v13092_v54  ;;  %v9082_v43 = vadd.f32 %v13131_v19, %v13129_v32 }
 0x4da   : > { %v4219_v45 = vadd.f32 %v9266_v25, %v4122_v9  ;;  %v4401_v33 = vsel %vm2310_vm5, %v13193_v12, 0.0  ;;  %v13206_v63 = vadd.f32 %v4236_v21, %v16459_v56  ;;  %v13213_v50 = vadd.f32 %v4223_v2, %v16462_v7  ;;  %v16476_v7 = vld [vmem:[#allocation25_spill] sm:$0xff] }
 0x4db   : > { %4402 = vadd.xlane.f32.xlu0 %v4401_v33  ;;  %16466 = vst [vmem:[#allocation21_spill] sm:$0xff] %v13221_v22  ;;  %v16468_v38 = vmax.f32 %v16467_v29, 0.0  ;;  %v4368_v53 = vsel %vm2310_vm5, %v13209_v11, 0.0  ;;  %v4321_v32 = vrot.slane %v4304_v15, %v16448_v34  ;;  %v4227_v19 = vmax.f32 %v4179_v49, 0.0 }
 0x4dc   : > { %16460 = vst [vmem:[#allocation38_spill] sm:$0xff] %v13206_v63  ;;  %16463 = vst [vmem:[#allocation40_spill] sm:$0xff] %v13213_v50  ;;  %v4237_v18 = vmax.f32 %v4219_v45, 0.0  ;;  %v13217_v25 = vadd.f32 %v4337_v28, %v13206_v63  ;;  %v13240_v41 = vadd.f32 %v13103_v10, %v13213_v50  ;;  %v13247_v55 = vadd.f32 %v4317_v20, %v13221_v22  ;;  %v16473_v10 = vld [vmem:[#allocation30_spill] sm:$0xff] }
 0x4dd   : > { %v16471_v21 = vmax.f32 %v16470_v48, 0.0  ;;  %v4187_v36 = vadd.f32 %v13117_v27, %v4090_v5  ;;  %v4230_v3 = vmax.f32 %v4192_v31, 0.0  ;;  %v4098_v13 = vadd.f32 %v9082_v43, %v13092_v54 }
 0x4de   : > { %v4404_v2 = vsel %vm2310_vm5, %v13217_v25, 0.0  ;;  %v13234_v30 = vadd.f32 %v4237_v18, %v16468_v38  ;;  %v16474_v58 = vmax.f32 %v16473_v10, 0.0  ;;  %v4200_v33 = vadd.f32 %v13125_v47, %v4103_v42  ;;  %v16479_v18 = vld [vmem:[#allocation32_spill] sm:$0xff] }
 0x4df   : > { %4405 = vadd.xlane.f32.xlu0 %v4404_v2  ;;  %v13251_v9 = vadd.f32 %v4225_v6, %v16471_v21  ;;  %v4111_v17 = vadd.f32 %v9091_v60, %v13092_v54  ;;  %v4365_v27 = vsel %vm2310_vm5, %v13240_v41, 0.0  ;;  %v4374_v6 = vsel %vm2310_vm5, %v13247_v55, 0.0 }
 0x4e0   : > { %16469 = vst [vmem:[#allocation31_spill] sm:$0xff] %v13234_v30  ;;  %v13244_v0 = vadd.f32 %v4337_v28, %v13234_v30  ;;  %v13257_v45 = vadd.f32 %v4228_v40, %v16474_v58  ;;  %v9088_v28 = vadd.f32 %v13143_v62, %v13141_v51  ;;  %v4325_v47 = vrot.slane %v13154_v26, %v16448_v34 }
 0x4e1   : > { %16472 = vst [vmem:[#allocation20_spill] sm:$0xff] %v13251_v9  ;;  %v13270_v44 = vadd.f32 %v4313_v8, %v13251_v9  ;;  %v4229_v51 = vmax.f32 %v4187_v36, 0.0  ;;  %v16477_v15 = vmax.f32 %v16476_v7, 0.0  ;;  %v16480_v35 = vmax.f32 %v16479_v18, 0.0 }
 0x4e2   : > { %16475 = vst [vmem:[#allocation35_spill] sm:$0xff] %v13257_v45  ;;  %v4407_v56 = vsel %vm2310_vm5, %v13244_v0, 0.0  ;;  %v13275_v62 = vadd.f32 %v4321_v32, %v13257_v45  ;;  %v4195_v40 = vadd.f32 %v13139_v37, %v4098_v13  ;;  %v4232_v5 = vmax.f32 %v4200_v33, 0.0  ;;  %v16491_v33 = vld [vmem:[#allocation34_spill] sm:$0xff] }
 0x4e3   : > { %4408 = vadd.xlane.f32.xlu1 %v4407_v56  ;;  %4369 = vadd.xlane.f32.xlu0 %v4368_v53  ;;  %v13279_v49 = vadd.f32 %v4227_v19, %v16477_v15  ;;  %v13283_v23 = vadd.f32 %v4230_v3, %v16480_v35  ;;  %v4106_v8 = vadd.f32 %v9088_v28, %v13092_v54  ;;  %v4371_v26 = vsel %vm2310_vm5, %v13270_v44, 0.0  ;;  %v16482_v54 = vld [vmem:[#allocation24_spill] sm:$0xff]  ;;  %v16485_v19 = vld [vmem:[#allocation33_spill] sm:$0xff] }
 0x4e4   : > { %v4208_v31 = vadd.f32 %v13148_v4, %v4111_v17  ;;  %v4329_v43 = vrot.slane %v13157_v24, %v16448_v34  ;;  %v4380_v42 = vsel %vm2310_vm5, %v13275_v62, 0.0  ;;  %v16483_v2 = vmax.f32 %v16482_v54, 0.0 }
 0x4e5   : > { %16478 = vst [vmem:[#allocation23_spill] sm:$0xff] %v13279_v49  ;;  %16481 = vst [vmem:[#allocation28_spill] sm:$0xff] %v13283_v23  ;;  %v13295_v60 = vadd.f32 %v4317_v20, %v13279_v49  ;;  %v13298_v37 = vadd.f32 %v4325_v47, %v13283_v23  ;;  %v4231_v29 = vmax.f32 %v4195_v40, 0.0  ;;  %v4203_v38 = vadd.f32 %v13133_v61, %v4106_v8  ;;  %v16488_v61 = vld [vmem:[#allocation27_spill] sm:$0xff] }
 0x4e6   : > { %v13302_v4 = vadd.f32 %v4229_v51, %v16483_v2  ;;  %v4234_v53 = vmax.f32 %v4208_v31, 0.0  ;;  %v16486_v48 = vmax.f32 %v16485_v19, 0.0  ;;  %v16489_v10 = vmax.f32 %v16488_v61, 0.0  ;;  %v16494_v51 = vld [vmem:[#allocation26_spill] sm:$0xff] }
 0x4e7   : > { %4366 = vadd.xlane.f32.xlu1 %v4365_v27  ;;  %4375 = vadd.xlane.f32.xlu0 %v4374_v6  ;;  %v4377_v20 = vsel %vm2310_vm5, %v13295_v60, 0.0  ;;  %v4386_v21 = vsel %vm2310_vm5, %v13298_v37, 0.0  ;;  %v4233_v3 = vmax.f32 %v4203_v38, 0.0  ;;  %v16492_v28 = vmax.f32 %v16491_v33, 0.0 }
 0x4e8   : > { %16484 = vst [vmem:[#allocation29_spill] sm:$0xff] %v13302_v4  ;;  %v13307_v24 = vadd.f32 %v4232_v5, %v16486_v48  ;;  %v13314_v36 = vadd.f32 %v4321_v32, %v13302_v4  ;;  %v13321_v58 = vadd.f32 %v4231_v29, %v16489_v10  ;;  %v16495_v7 = vmax.f32 %v16494_v51, 0.0 }
 0x4e9   : > { %v13325_v17 = vadd.f32 %v4234_v53, %v16492_v28 }
 0x4ea   : > { %16487 = vst [vmem:[#allocation22_spill] sm:$0xff] %v13307_v24  ;;  %v13317_v13 = vadd.f32 %v4329_v43, %v13307_v24  ;;  %16490 = vst [vmem:[#allocation30_spill] sm:$0xff] %v13321_v58  ;;  %v4383_v56 = vsel %vm2310_vm5, %v13314_v36, 0.0  ;;  %v13332_v27 = vadd.f32 %v4325_v47, %v13321_v58  ;;  %v13340_v15 = vadd.f32 %v4233_v3, %v16495_v7 }
 0x4eb   : > { %4372 = vadd.xlane.f32.xlu1 %v4371_v26  ;;  %4381 = vadd.xlane.f32.xlu0 %v4380_v42  ;;  %16493 = vst [vmem:[#allocation25_spill] sm:$0xff] %v13325_v17  ;;  %v13336_v6 = vadd.f32 %v13173_v59, %v13325_v17 }
 0x4ec   : > { %v4392_v32 = vsel %vm2310_vm5, %v13317_v13, 0.0  ;;  %16496 = vst [vmem:[#allocation32_spill] sm:$0xff] %v13340_v15  ;;  %v4389_v18 = vsel %vm2310_vm5, %v13332_v27, 0.0  ;;  %v13347_v40 = vadd.f32 %v4329_v43, %v13340_v15 }
 0x4ed   : > { %v4398_v35 = vsel %vm2310_vm5, %v13336_v6, 0.0 }
 0x4ee   : > { %v4395_v59 = vsel %vm2310_vm5, %v13347_v40, 0.0 }
 0x4ef   : > { %4378 = vadd.xlane.f32.xlu1 %v4377_v20  ;;  %4387 = vadd.xlane.f32.xlu0 %v4386_v21 }
 0x4f3   : > { %4384 = vadd.xlane.f32.xlu1 %v4383_v56  ;;  %4393 = vadd.xlane.f32.xlu0 %v4392_v32 }
 0x4f7   : > { %4390 = vadd.xlane.f32.xlu1 %v4389_v18  ;;  %4399 = vadd.xlane.f32.xlu0 %v4398_v35 }
 0x4fb   : > { %4396 = vadd.xlane.f32.xlu1 %v4395_v59 }
 0x520   : > { %v4364_v47 = vpop.xlane.xlu0 %4363 }
 0x521   : > { %v4410_v5 = vmul.f32 0.03125, %v4364_v47 }
 0x523   : > { %v13352_v8 = vsub.f32 %v13111_v16, %v4410_v5 }
 0x525   : > { %v4442_v31 = vmul.f32 %v13352_v8, %v13352_v8 }
 0x527   : > { %v4458_v26 = vsel %vm2310_vm5, %v4442_v31, 0.0 }
 0x528   : > { %4459 = vadd.xlane.f32.xlu1 %v4458_v26 }
 0x564   : > { %v4403_v42 = vpop.xlane.xlu0 %4402 }
 0x565   : > { %v4423_v43 = vmul.f32 0.03125, %v4403_v42 }
 0x567   : > { %v13358_v54 = vsub.f32 %v13193_v12, %v4423_v43 }
 0x568   : > { %v4406_v2 = vpop.xlane.xlu0 %4405 }
 0x569   : > { %v4455_v29 = vmul.f32 %v13358_v54, %v13358_v54  ;;  %v4424_v38 = vmul.f32 0.03125, %v4406_v2 }
 0x56b   : > { %v4497_v53 = vsel %vm2310_vm5, %v4455_v29, 0.0  ;;  %v13364_v20 = vsub.f32 %v13217_v25, %v4424_v38 }
 0x56c   : > { %v4409_v16 = vpop.xlane.xlu1 %4408  ;;  %4498 = vadd.xlane.f32.xlu1 %v4497_v53  ;;  %v4370_v19 = vpop.xlane.xlu0 %4369 }
 0x56d   : > { %v4425_v48 = vmul.f32 0.03125, %v4409_v16  ;;  %v4412_v3 = vmul.f32 0.03125, %v4370_v19  ;;  %v4456_v28 = vmul.f32 %v13364_v20, %v13364_v20 }
 0x56f   : > { %v13367_v21 = vsub.f32 %v13244_v0, %v4425_v48  ;;  %v13374_v56 = vsub.f32 %v13209_v11, %v4412_v3  ;;  %v4500_v47 = vsel %vm2310_vm5, %v4456_v28, 0.0 }
 0x570   : > { %v4367_v12 = vpop.xlane.xlu1 %4366  ;;  %v4376_v61 = vpop.xlane.xlu0 %4375 }
 0x571   : > { %v4411_v10 = vmul.f32 0.03125, %v4367_v12  ;;  %v4457_v33 = vmul.f32 %v13367_v21, %v13367_v21  ;;  %v4414_v25 = vmul.f32 0.03125, %v4376_v61  ;;  %v4444_v31 = vmul.f32 %v13374_v56, %v13374_v56 }
 0x573   : > { %v13377_v32 = vsub.f32 %v13240_v41, %v4411_v10  ;;  %v4503_v0 = vsel %vm2310_vm5, %v4457_v33, 0.0  ;;  %v13384_v5 = vsub.f32 %v13247_v55, %v4414_v25  ;;  %v4464_v53 = vsel %vm2310_vm5, %v4444_v31, 0.0 }
 0x574   : > { %v4373_v51 = vpop.xlane.xlu1 %4372  ;;  %4504 = vadd.xlane.f32.xlu0 %v4503_v0  ;;  %v4382_v7 = vpop.xlane.xlu0 %4381 }
 0x575   : > { %v4413_v18 = vmul.f32 0.03125, %v4373_v51  ;;  %v4443_v35 = vmul.f32 %v13377_v32, %v13377_v32  ;;  %v4416_v59 = vmul.f32 0.03125, %v4382_v7  ;;  %v4446_v16 = vmul.f32 %v13384_v5, %v13384_v5 }
 0x577   : > { %v13387_v11 = vsub.f32 %v13270_v44, %v4413_v18  ;;  %v4461_v41 = vsel %vm2310_vm5, %v4443_v35, 0.0  ;;  %v13395_v29 = vsub.f32 %v13275_v62, %v4416_v59  ;;  %v4470_v28 = vsel %vm2310_vm5, %v4446_v16, 0.0 }
 0x578   : > { %v4379_v26 = vpop.xlane.xlu1 %4378  ;;  %4462 = vadd.xlane.f32.xlu1 %v4461_v41  ;;  %4501 = vadd.xlane.f32.xlu0 %v4500_v47  ;;  %v4388_v42 = vpop.xlane.xlu0 %4387 }
 0x579   : > { %v4415_v43 = vmul.f32 0.03125, %v4379_v26  ;;  %v4445_v2 = vmul.f32 %v13387_v11, %v13387_v11  ;;  %v4418_v55 = vmul.f32 0.03125, %v4388_v42 }
 0x57b   : > { %v13398_v44 = vsub.f32 %v13295_v60, %v4415_v43  ;;  %v4467_v38 = vsel %vm2310_vm5, %v4445_v2, 0.0  ;;  %v13407_v12 = vsub.f32 %v13298_v37, %v4418_v55  ;;  %v4448_v60 = vmul.f32 %v13395_v29, %v13395_v29 }
 0x57c   : > { %v4385_v19 = vpop.xlane.xlu1 %4384  ;;  %4468 = vadd.xlane.f32.xlu1 %v4467_v38  ;;  %4465 = vadd.xlane.f32.xlu0 %v4464_v53  ;;  %v4394_v48 = vpop.xlane.xlu0 %4393 }
 0x57d   : > { %v4417_v3 = vmul.f32 0.03125, %v4385_v19  ;;  %v4447_v62 = vmul.f32 %v13398_v44, %v13398_v44  ;;  %v4420_v10 = vmul.f32 0.03125, %v4394_v48  ;;  %v4476_v7 = vsel %vm2310_vm5, %v4448_v60, 0.0 }
 0x57e   : > { %v4450_v18 = vmul.f32 %v13407_v12, %v13407_v12 }
 0x57f   : > { %v13412_v61 = vsub.f32 %v13314_v36, %v4417_v3  ;;  %v4473_v33 = vsel %vm2310_vm5, %v4447_v62, 0.0  ;;  %v13422_v36 = vsub.f32 %v13317_v13, %v4420_v10  ;;  %v10446_v10 = vld [vmem:[%s15959_s4 + $0x78] sm:$0xff]  }
 0x580   : > { %v4391_v25 = vpop.xlane.xlu1 %4390  ;;  %4474 = vadd.xlane.f32.xlu1 %v4473_v33  ;;  %4471 = vadd.xlane.f32.xlu0 %v4470_v28  ;;  %v4400_v0 = vpop.xlane.xlu0 %4399  ;;  %v4482_v42 = vsel %vm2310_vm5, %v4450_v18, 0.0 }
 0x581   : > { %v4419_v51 = vmul.f32 0.03125, %v4391_v25  ;;  %v4449_v37 = vmul.f32 %v13412_v61, %v13412_v61  ;;  %v4422_v59 = vmul.f32 0.03125, %v4400_v0  ;;  %v4452_v2 = vmul.f32 %v13422_v36, %v13422_v36  ;;  %9367 = vmatprep.subr.bf16.mxu1 %v10446_v10  ;;  %9111 = vmatprep.subr.bf16.mxu0 %v10446_v10  ;;  %v10447_v25 = vld [vmem:[%s15959_s4 + $0x38] sm:$0xff]  }
 0x582   : > { %9375 = vmatpush3.bf16.msra.mxu1 %v10447_v25  ;;  %9112 = vmatpush3.bf16.msra.mxu0 %v10447_v25 }
 0x583   : > { %v13425_v35 = vsub.f32 %v13332_v27, %v4419_v51  ;;  %v4479_v47 = vsel %vm2310_vm5, %v4449_v37, 0.0  ;;  %v13432_v43 = vsub.f32 %v13336_v6, %v4422_v59  ;;  %v4488_v53 = vsel %vm2310_vm5, %v4452_v2, 0.0  ;;  %v10448_v59 = vld [vmem:[%s15959_s4 + $0x70] sm:$0xff]  }
 0x584   : > { %v4397_v41 = vpop.xlane.xlu1 %4396  ;;  %4480 = vadd.xlane.f32.xlu1 %v4479_v47  ;;  %4477 = vadd.xlane.f32.xlu0 %v4476_v7  ;;  %v10449_v47 = vld [vmem:[%s15959_s4 + $0x30] sm:$0xff]  }
 0x585   : > { %v4421_v31 = vmul.f32 0.03125, %v4397_v41  ;;  %v4451_v26 = vmul.f32 %v13425_v35, %v13425_v35  ;;  %v4454_v6 = vmul.f32 %v13432_v43, %v13432_v43  ;;  %v10450_v41 = vld [vmem:[%s15959_s4 + $0x68] sm:$0xff]   ;;  %9368 = vmatprep.subr.bf16.mxu1 %v10448_v59  ;;  %9113 = vmatprep.subr.bf16.mxu0 %v10448_v59 }
 0x586   : > { %9376 = vmatpush3.bf16.msra.mxu1 %v10449_v47  ;;  %9114 = vmatpush3.bf16.msra.mxu0 %v10449_v47 }
 0x587   : > { %v13435_v13 = vsub.f32 %v13347_v40, %v4421_v31  ;;  %v4485_v27 = vsel %vm2310_vm5, %v4451_v26, 0.0  ;;  %v4494_v40 = vsel %vm2310_vm5, %v4454_v6, 0.0  ;;  %9369 = vmatprep.subr.bf16.mxu1 %v10450_v41  ;;  %9115 = vmatprep.subr.bf16.mxu0 %v10450_v41  ;;  %v10452_v41 = vld [vmem:[%s15959_s4 + $0x60] sm:$0xff]  }
 0x588   : > { %4486 = vadd.xlane.f32.xlu1 %v4485_v27  ;;  %4483 = vadd.xlane.f32.xlu0 %v4482_v42 }
 0x589   : > { %v4453_v55 = vmul.f32 %v13435_v13, %v13435_v13 }
 0x58b   : > { %v4491_v38 = vsel %vm2310_vm5, %v4453_v55, 0.0  ;;  %v10451_v55 = vld [vmem:[%s15959_s4 + $0x28] sm:$0xff]  }
 0x58c   : > { %4492 = vadd.xlane.f32.xlu1 %v4491_v38  ;;  %4489 = vadd.xlane.f32.xlu0 %v4488_v53 }
 0x58d   : > { %9377 = vmatpush3.bf16.msra.mxu1 %v10451_v55  ;;  %9116 = vmatpush3.bf16.msra.mxu0 %v10451_v55 }
 0x58e   : > { %9370 = vmatprep.subr.bf16.mxu1 %v10452_v41  ;;  %9117 = vmatprep.subr.bf16.mxu0 %v10452_v41 }
 0x590   : > { %4495 = vadd.xlane.f32.xlu0 %v4494_v40 }
 0x5b1   : > { %v4460_v16 = vpop.xlane.xlu1 %4459 }
 0x5b2   : > { %v4506_v19 = vmul.f32 0.03125, %v4460_v16 }
 0x5b4   : > { %v4522_v62 = vadd.f32 1e-05, %v4506_v19 }
 0x5b6   : > { %10521 = vrsqrt.f32 %v4522_v62 }
 0x5c3   : > { %v10522_v6 = vpop.eup %10521 }
 0x5c4   : > { %v4554_v62 = vmul.f32 %v10522_v6, %v13352_v8  ;;  %v13478_v8 = vld [vmem:[%s15963_s8 + $0x6] ss:$0 sm:$0xff] }
 0x5f5   : > { %v4499_v48 = vpop.xlane.xlu1 %4498 }
 0x5f6   : > { %v4519_v3 = vmul.f32 0.03125, %v4499_v48 }
 0x5f8   : > { %v4535_v60 = vadd.f32 1e-05, %v4519_v3 }
 0x5fa   : > { %10523 = vrsqrt.f32 %v4535_v60 }
 0x5fd   : > { %v4505_v33 = vpop.xlane.xlu0 %4504 }
 0x5fe   : > { %v4521_v28 = vmul.f32 0.03125, %v4505_v33  ;;  %v13470_v33 = vld [vmem:[%s15963_s8 + $0x1] ss:$0 sm:$0xff] }
 0x600   : > { %v4537_v0 = vadd.f32 1e-05, %v4521_v28 }
 0x601   : > { %v4463_v51 = vpop.xlane.xlu1 %4462  ;;  %v4502_v37 = vpop.xlane.xlu0 %4501 }
 0x602   : > { %10525 = vrsqrt.f32 %v4537_v0  ;;  %v4507_v7 = vmul.f32 0.03125, %v4463_v51  ;;  %v4520_v18 = vmul.f32 0.03125, %v4502_v37  ;;  %v4578_v51 = vmul.f32 %v13470_v33, %v4554_v62 }
 0x604   : > { %v4523_v31 = vadd.f32 1e-05, %v4507_v7  ;;  %v4536_v26 = vadd.f32 1e-05, %v4520_v18 }
 0x605   : > { %v4466_v42 = vpop.xlane.xlu0 %4465  ;;  %v4469_v27 = vpop.xlane.xlu1 %4468 }
 0x606   : > { %10527 = vrsqrt.f32 %v4523_v31  ;;  %v4508_v2 = vmul.f32 0.03125, %v4466_v42  ;;  %v4509_v53 = vmul.f32 0.03125, %v4469_v27  ;;  %v10453_v31 = vld [vmem:[%s15959_s4 + $0x20] sm:$0xff]   ;;  %v13490_v27 = vadd.f32 %v13478_v8, %v4578_v51 }
 0x607   : > { %10529 = vrsqrt.f32 %v4536_v26  ;;  %v10524_v16 = vpop.eup %10523  ;;  %9378 = vmatpush3.bf16.msra.mxu1 %v10453_v31  ;;  %9118 = vmatpush3.bf16.msra.mxu0 %v10453_v31 }
 0x608   : > { %v4524_v38 = vadd.f32 1e-05, %v4508_v2  ;;  %v4525_v19 = vadd.f32 1e-05, %v4509_v53  ;;  %v4567_v60 = vmul.f32 %v10524_v16, %v13358_v54  ;;  %v4932_v62 = vrot.slane %v13490_v27, 1 }
 0x609   : > { %v4472_v40 = vpop.xlane.xlu0 %4471  ;;  %v4475_v48 = vpop.xlane.xlu1 %4474 }
 0x60a   : > { %10531 = vrsqrt.f32 %v4524_v38  ;;  %v4510_v3 = vmul.f32 0.03125, %v4472_v40  ;;  %v4511_v25 = vmul.f32 0.03125, %v4475_v48  ;;  %v4591_v37 = vmul.f32 %v13470_v33, %v4567_v60 }
 0x60b   : > { %10533 = vrsqrt.f32 %v4525_v19 }
 0x60c   : > { %v4526_v0 = vadd.f32 1e-05, %v4510_v3  ;;  %v4527_v42 = vadd.f32 1e-05, %v4511_v25  ;;  %v13493_v2 = vadd.f32 %v13478_v8, %v4591_v37  ;;  %v4997_v37 = vrot.slane %v13490_v27, 2 }
 0x60d   : > { %v4481_v18 = vpop.xlane.xlu1 %4480  ;;  %v4478_v59 = vpop.xlane.xlu0 %4477 }
 0x60e   : > { %10535 = vrsqrt.f32 %v4526_v0  ;;  %v4512_v55 = vmul.f32 0.03125, %v4478_v59  ;;  %v16131_v3 = vrot.slane %v13493_v2, 6  ;;  %v4513_v0 = vmul.f32 0.03125, %v4481_v18 }
 0x60f   : > { %v10526_v10 = vpop.eup %10525  ;;  %10537 = vrsqrt.f32 %v4527_v42  ;;  %v16130_v51 = vrot.slane %v13493_v2, 7  ;;  %v10454_v42 = vld [vmem:[%s15959_s4 + $0x58] sm:$0xff]  }
 0x610   : > { %v4569_v28 = vmul.f32 %v10526_v10, %v13367_v21  ;;  %v4528_v48 = vadd.f32 1e-05, %v4512_v55  ;;  %9371 = vmatprep.subr.bf16.mxu1 %v10454_v42  ;;  %9119 = vmatprep.subr.bf16.mxu0 %v10454_v42  ;;  %v16503_v42 = vld [vmem:[#allocation6_spill] sm:$0xff] }
 0x611   : > { %v4487_v16 = vpop.xlane.xlu1 %4486 }
 0x612   : > { %v4593_v54 = vmul.f32 %v13470_v33, %v4569_v28  ;;  %10539 = vrsqrt.f32 %v4528_v48 }
 0x613   : > { %v10528_v7 = vpop.eup %10527 }
 0x614   : > { %v10530_v47 = vpop.eup %10529  ;;  %v4555_v21 = vmul.f32 %v10528_v7, %v13377_v32  ;;  %v13497_v38 = vadd.f32 %v13478_v8, %v4593_v54  ;;  %v4484_v54 = vpop.xlane.xlu0 %4483 }
 0x615   : > { %v4568_v26 = vmul.f32 %v10530_v47, %v13364_v20  ;;  %v4514_v48 = vmul.f32 0.03125, %v4484_v54 }
 0x616   : > { %v4579_v32 = vmul.f32 %v13470_v33, %v4555_v21  ;;  %v16133_v10 = vrot.slane %v13497_v38, 6  ;;  %v16132_v21 = vrot.slane %v13497_v38, 7  ;;  %v16654_v9 = vrot.slane %v13497_v38, 4 }
 0x617   : > { %v4592_v53 = vmul.f32 %v13470_v33, %v4568_v26  ;;  %v10532_v20 = vpop.eup %10531 }
 0x618   : > { %v4556_v40 = vmul.f32 %v10532_v20, %v13374_v56  ;;  %v13505_v19 = vadd.f32 %v13478_v8, %v4579_v32  ;;  %v4515_v56 = vmul.f32 0.03125, %v4487_v16  ;;  %v10534_v18 = vpop.eup %10533  ;;  %v10455_v32 = vld [vmem:[%s15959_s4 + $0x18] sm:$0xff]   ;;  %v4529_v16 = vadd.f32 1e-05, %v4513_v0  ;;  %v10456_v0 = vld [vmem:[%s15959_s4 + $0x50] sm:$0xff]  }
 0x619   : > { %v13501_v6 = vadd.f32 %v13478_v8, %v4592_v53  ;;  %9379 = vmatpush3.bf16.msra.mxu1 %v10455_v32  ;;  %9120 = vmatpush3.bf16.msra.mxu0 %v10455_v32 }
 0x61a   : > { %v4580_v60 = vmul.f32 %v13470_v33, %v4556_v40  ;;  %v4933_v26 = vrot.slane %v13505_v19, 1  ;;  %v4961_v40 = vrot.slane %v13497_v38, 1  ;;  %9372 = vmatprep.subr.bf16.mxu1 %v10456_v0  ;;  %9121 = vmatprep.subr.bf16.mxu0 %v10456_v0  ;;  %10541 = vrsqrt.f32 %v4529_v16 }
 0x61b   : > { %v4831_v28 = vrot.slane %v13501_v6, 6  ;;  %v4896_v25 = vrot.slane %v13501_v6, 7  ;;  %v10536_v54 = vpop.eup %10535  ;;  %v16136_v16 = vrot.slane %v13501_v6, 2 }
 0x61c   : > { %v13516_v7 = vadd.f32 %v13478_v8, %v4580_v60  ;;  %v10538_v0 = vpop.eup %10537 }
 0x61d   : > { %v4832_v59 = vsel %vm16497_vm0, %v16131_v3, %v4831_v28  ;;  %v4833_v47 = vsel %vm16498_vm6, %v4831_v28, %v16133_v10  ;;  %v4897_v31 = vsel %vm16500_vm14, %v16130_v51, %v4896_v25  ;;  %v4898_v53 = vsel %vm16501_vm15, %v4896_v25, %v16132_v21  ;;  %v4490_v21 = vpop.xlane.xlu0 %4489 }
 0x61e   : > { %v4865_v41 = vsel %vm16499_vm8, %v4832_v59, 0.0  ;;  %vm16502_vm0 = vcmp.ge.s32.totalorder %v11361_v46, 1  ;;  %v16134_v60 = vrot.slane %v13516_v7, 1  ;;  %v5062_v28 = vrot.slane %v13490_v27, 3 }
 0x61f   : > { %v10003_v55 = vpack.i.bf16 %v4833_v47, %v4865_v41  ;;  %v4930_v20 = vsel %vm16502_vm0, %v4897_v31, 0.0  ;;  %v4557_v59 = vmul.f32 %v10534_v18, %v13387_v11  ;;  %v4531_v47 = vadd.f32 1e-05, %v4515_v56  ;;  %v10457_v18 = vld [vmem:[%s15959_s4 + $0x10] sm:$0xff]  }
 0x620   : > { %v16137_v25 = vrot.slane %v13501_v6, 1  ;;  %v16135_v41 = vrot.slane %v13493_v2, 5  ;;  %v10008_v31 = vpack.i.bf16 %v4898_v53, %v4930_v20  ;;  %v4934_v51 = vsel %vm1353_vm7, %v4932_v62, %v4933_v26  ;;  %9380 = vmatpush3.bf16.msra.mxu1 %v10457_v18  ;;  %9122 = vmatpush3.bf16.msra.mxu0 %v10457_v18  ;;  %v10458_v18 = vld [vmem:[%s15959_s4 + $0x48] sm:$0xff]  }
 0x621   : > { %10004 = vrot.lane.b32.xlu1 %v10003_v55, %s10684_s21  ;;  %v4936_v11 = vsel %vm1353_vm7, %v4933_v26, %v16134_v60  ;;  %v5026_v56 = vrot.slane %v13497_v38, 2  ;;  %v4980_v3 = vsel %vm1353_vm7, %v4961_v40, %v4932_v62  ;;  %v4998_v53 = vrot.slane %v13505_v19, 2  ;;  %9373 = vmatprep.subr.bf16.mxu1 %v10458_v18 }
 0x622   : > { %v4982_v55 = vsel %vm843_vm13, %v4936_v11, 0.0  ;;  %v16143_v20 = vrot.slane %v13516_v7, 2  ;;  %v4530_v26 = vadd.f32 1e-05, %v4514_v48  ;;  %v4962_v60 = vsel %vm1353_vm7, %v16137_v25, %v4961_v40  ;;  %9123 = vmatprep.subr.bf16.mxu0 %v10458_v18 }
 0x623   : > { %v9983_v10 = vpack.i.bf16 %v4982_v55, %v4934_v51  ;;  %v4581_v32 = vmul.f32 %v13470_v33, %v4557_v59  ;;  %v4558_v11 = vmul.f32 %v10536_v54, %v13384_v5  ;;  %10543 = vrsqrt.f32 %v4531_v47 }
 0x624   : > { %vm16504_vm13 = vcmask 1045504   ;;  %vm16505_vm6 = vcmp.lt.s32.totalorder %v11447_v52, 15  ;;  %vm16506_vm8 = vcmp.lt.s32.totalorder %v16503_v42, 14  ;;  %v4516_v48 = vmul.f32 0.03125, %v4490_v21 }
 0x625   : > { %10009 = vrot.lane.b32.xlu1 %v10008_v31, %s10683_s25  ;;  %v5001_v62 = vsel %vm16504_vm13, %v4998_v53, %v16143_v20  ;;  %9984 = vrot.lane.b32.xlu0 %v9983_v10, %s10681_s28  ;;  %v4996_v51 = vsel %vm16505_vm6, %v4980_v3, 0.0  ;;  %vm16507_vm14 = vmmov %vm16504_vm13  ;;  %v5063_v10 = vrot.slane %v13505_v19, 3  ;;  %10545 = vrsqrt.f32 %v4530_v26 }
 0x626   : > { %v5047_v40 = vsel %vm16506_vm8, %v5001_v62, 0.0  ;;  %v5045_v5 = vsel %vm16507_vm14, %v5026_v56, %v4997_v37  ;;  %v10013_v59 = vpack.i.bf16 %v4996_v51, %v4962_v60  ;;  %vm16508_vm15 = vmmov %vm16504_vm13  ;;  %v16140_v31 = vrot.slane %v13516_v7, 3  ;;  %v4493_v62 = vpop.xlane.xlu1 %4492 }
 0x627   : > { %v4999_v47 = vsel %vm16508_vm15, %v4997_v37, %v4998_v53  ;;  %vm16509_vm0 = vmmov %vm16504_vm13  ;;  %v13592_v55 = vadd.f32 %v13478_v8, %v4581_v32  ;;  %v4559_v21 = vmul.f32 %v10538_v0, %v13398_v44  ;;  %v4582_v60 = vmul.f32 %v13470_v33, %v4558_v11  ;;  %v10460_v11 = vld [vmem:[%s15959_s4 + $0x40] sm:$0xff]   ;;  %v10540_v0 = vpop.eup %10539 }
 0x628   : > { %v9988_v3 = vpack.i.bf16 %v5047_v40, %v4999_v47  ;;  %v5027_v54 = vsel %vm16509_vm0, %v16136_v16, %v5026_v56  ;;  %vm16510_vm13 = vcmp.lt.s32.totalorder %v11447_v52, 14  ;;  %v10459_v56 = vld [vmem:[%s15959_s4 + $0x8] sm:$0xff]   ;;  %v5064_v44 = vsel %vm1549_vm12, %v5062_v28, %v5063_v10 }
 0x629   : > { %10014 = vrot.lane.b32.xlu1 %v10013_v59, %s10681_s28  ;;  %v5061_v37 = vsel %vm16510_vm13, %v5045_v5, 0.0  ;;  %v5066_v26 = vsel %vm1549_vm12, %v5063_v10, %v16140_v31  ;;  %v4766_v32 = vrot.slane %v13501_v6, 5  ;;  %v16139_v40 = vrot.slane %v13497_v38, 5  ;;  %9381 = vmatpush3.bf16.msra.mxu1 %v10459_v56 }
 0x62a   : > { %9989 = vrot.lane.b32.xlu0 %v9988_v3, %s10684_s21  ;;  %v10018_v53 = vpack.i.bf16 %v5061_v37, %v5027_v54  ;;  %v5112_v51 = vsel %vm875_vm2, %v5066_v26, 0.0  ;;  %v16138_v5 = vrot.slane %v13505_v19, 5  ;;  %v4742_v59 = vrot.slane %v13516_v7, 5  ;;  %v10461_v37 = vld [vmem:[%s15959_s4] sm:$0xff]   ;;  %9374 = vmatprep.subr.bf16.mxu1 %v10460_v11 }
 0x62b   : > { %v13621_v47 = vmul.f32 0.03125, %v4493_v62  ;;  %v4532_v10 = vadd.f32 1e-05, %v4516_v48  ;;  %v9993_v3 = vpack.i.bf16 %v5112_v51, %v5064_v44  ;;  %vm16511_vm6 = vcmask 1042432   ;;  %9124 = vmatpush3.bf16.msra.mxu0 %v10459_v56 }
 0x62c   : > { %v4767_v54 = vsel %vm16511_vm6, %v16135_v41, %v4766_v32  ;;  %v4583_v26 = vmul.f32 %v13470_v33, %v4559_v21  ;;  %vm16512_vm2 = vmmov %vm16511_vm6  ;;  %vm16513_vm8 = vcmp.ge.s32.totalorder %v11361_v46, 3  ;;  %v13640_v44 = vadd.f32 %v13478_v8, %v4582_v60  ;;  %9125 = vmatprep.subr.bf16.mxu0 %v10460_v11 }
 0x62d   : > { %10019 = vrot.lane.b32.xlu1 %v10018_v53, %s10684_s21  ;;  %v4768_v62 = vsel %vm16512_vm2, %v4766_v32, %v16139_v40  ;;  %v4800_v48 = vsel %vm16513_vm8, %v4767_v54, 0.0  ;;  %vm16514_vm14 = vmmov %vm16512_vm2  ;;  %v4560_v51 = vmul.f32 %v10540_v0, %v13395_v29  ;;  %v4744_v21 = vrot.slane %v13592_v55, 5  ;;  %v16515_v53 = vld [vmem:[#allocation4_spill] sm:$0xff]  ;;  %v13654_v29 = vld [vmem:[%s15959_s4 + $0x88] sm:$0xff]   ;;  %9382 = vmatpush3.bf16.msra.mxu1 %v10461_v37 }
 0x62e   : > { %v4743_v18 = vsel %vm16514_vm14, %v16138_v5, %v4742_v59  ;;  %9994 = vrot.lane.b32.xlu0 %v9993_v3, %s10683_s25  ;;  %vm16516_vm15 = vcmp.ge.s32.totalorder %v16515_v53, 3  ;;  %v16141_v54 = vrot.slane %v13501_v6, 3  ;;  %v5091_v41 = vrot.slane %v13497_v38, 3  ;;  %vm16517_vm0 = vmmov %vm16512_vm2  ;;  %9267 = vmatprep.subr.bf16.mxu1 %v13654_v29 }
 0x62f   : > { %v4788_v32 = vsel %vm16516_vm15, %v4743_v18, 0.0  ;;  %v16142_v16 = vrot.slane %v13505_v19, 6  ;;  %v4807_v25 = vrot.slane %v13516_v7, 6  ;;  %v9998_v60 = vpack.i.bf16 %v4768_v62, %v4800_v48  ;;  %v10542_v18 = vpop.eup %10541  ;;  %9126 = vmatpush3.bf16.msra.mxu0 %v10461_v37 }
 0x630   : > { %v4745_v0 = vsel %vm16517_vm0, %v4742_v59, %v4744_v21  ;;  %v4809_v3 = vrot.slane %v13592_v55, 6  ;;  %v16145_v56 = vrot.slane %v13505_v19, 7  ;;  %v5092_v40 = vsel %vm1549_vm12, %v16141_v54, %v5091_v41  ;;  %v13669_v59 = vpop.eup %10543 }
 0x631   : > { %v10033_v5 = vpack.i.bf16 %v4745_v0, %v4788_v32  ;;  %v5110_v31 = vsel %vm1549_vm12, %v5091_v41, %v5062_v28  ;;  %vm16518_vm13 = vcmask 1041408   ;;  %vm16519_vm6 = vcmp.lt.s32.totalorder %v11447_v52, 13 }
 0x632   : > { %v4808_v11 = vsel %vm16518_vm13, %v16142_v16, %v4807_v25  ;;  %9999 = vrot.lane.b32.xlu0 %v9998_v60, %s10681_s28  ;;  %v5126_v62 = vsel %vm16519_vm6, %v5110_v31, 0.0  ;;  %vm16520_vm2 = vmmov %vm16518_vm13  ;;  %vm16521_vm8 = vcmp.ge.s32.totalorder %v16515_v53, 2  ;;  %v4872_v28 = vrot.slane %v13516_v7, 7  ;;  %v10546_v16 = vpop.eup %10545 }
 0x633   : > { %v4810_v48 = vsel %vm16520_vm2, %v4807_v25, %v4809_v3  ;;  %v4853_v32 = vsel %vm16521_vm8, %v4808_v11, 0.0  ;;  %v13679_v41 = vadd.f32 %v13478_v8, %v4583_v26  ;;  %10034 = vrot.lane.b32.xlu1 %v10033_v5, %s10681_s28  ;;  %v10023_v0 = vpack.i.bf16 %v5126_v62, %v5092_v40  ;;  %v4496_v26 = vpop.xlane.xlu0 %4495 }
 0x634   : > { %v4874_v54 = vrot.slane %v13592_v55, 7  ;;  %v4937_v60 = vrot.slane %v13592_v55, 1  ;;  %vm16522_vm14 = vcmask 1040384   ;;  %v16147_v31 = vrot.slane %v13640_v44, 1 }
 0x635   : > { %v4873_v25 = vsel %vm16522_vm14, %v16145_v56, %v4872_v28  ;;  %v5002_v11 = vrot.slane %v13592_v55, 2  ;;  %v16150_v37 = vrot.slane %v13640_v44, 2  ;;  %v10043_v20 = vpack.i.bf16 %v4810_v48, %v4853_v32  ;;  %vm16523_vm15 = vmmov %vm16522_vm14 }
 0x636   : > { %v4875_v5 = vsel %vm16523_vm15, %v4872_v28, %v4874_v54  ;;  %vm16524_vm0 = vcmp.ge.s32.totalorder %v16515_v53, 1  ;;  %v4746_v62 = vrot.slane %v13640_v44, 5  ;;  %v4584_v14 = vmul.f32 %v13470_v33, %v4560_v51  ;;  %10024 = vrot.lane.b32.xlu0 %v10023_v0, %s10683_s25 }
 0x637   : > { %v4918_v40 = vsel %vm16524_vm0, %v4873_v25, 0.0  ;;  %10547 = vrsqrt.f32 %v4532_v10  ;;  %v4940_v56 = vsel %vm1353_vm7, %v4937_v60, %v16147_v31  ;;  %vm16525_vm13 = vcmask 1045504   ;;  %10044 = vrot.lane.b32.xlu1 %v10043_v20, %s10684_s21  ;;  %v16527_v25 = vld [vmem:[#allocation5_spill] sm:$0xff] }
 0x638   : > { %v5005_v48 = vsel %vm16525_vm13, %v5002_v11, %v16150_v37  ;;  %v16526_v32 = vrot.slane %v13516_v7, 1  ;;  %vm16528_vm6 = vcmp.lt.s32.totalorder %v16527_v25, 15  ;;  %vm16529_vm2 = vcmask 1042432   ;;  %vm16534_vm0 = vmmov %vm16525_vm13 }
 0x639   : > { %v4984_v51 = vsel %vm16528_vm6, %v4940_v56, 0.0  ;;  %v4747_v10 = vsel %vm16529_vm2, %v4744_v21, %v4746_v62  ;;  %v4748_v0 = vrot.slane %v13679_v41, 5  ;;  %v4562_v17 = vmul.f32 %v10546_v16, %v13407_v12  ;;  %vm16531_vm14 = vmmov %vm16529_vm2 }
 0x63a   : > { %v4938_v28 = vsel %vm1353_vm7, %v16526_v32, %v4937_v60  ;;  %v4518_v31 = vmul.f32 0.03125, %v4496_v26  ;;  %v10053_v63 = vpack.i.bf16 %v4875_v5, %v4918_v40  ;;  %vm16530_vm8 = vcmp.lt.s32.totalorder %v16527_v25, 14 }
 0x63b   : > { %v10028_v15 = vpack.i.bf16 %v4984_v51, %v4938_v28  ;;  %v5049_v37 = vsel %vm16530_vm8, %v5005_v48, 0.0  ;;  %v5067_v20 = vrot.slane %v13592_v55, 3  ;;  %v5069_v24 = vrot.slane %v13640_v44, 3 }
 0x63c   : > { %v4811_v60 = vrot.slane %v13640_v44, 6  ;;  %v13717_v56 = vadd.f32 %v13478_v8, %v4584_v14  ;;  %v4749_v12 = vsel %vm16531_vm14, %v4746_v62, %v4748_v0  ;;  %vm16532_vm15 = vcmp.ge.s32.totalorder %v10957_v39, 3  ;;  %10054 = vrot.lane.b32.xlu1 %v10053_v63, %s10683_s25 }
 0x63d   : > { %10029 = vrot.lane.b32.xlu0 %v10028_v15, %s10681_s28  ;;  %v4790_v16 = vsel %vm16532_vm15, %v4747_v10, 0.0  ;;  %v16156_v21 = vrot.slane %v13679_v41, 6  ;;  %v16533_v26 = vrot.slane %v13516_v7, 2  ;;  %v5070_v14 = vsel %vm1549_vm12, %v5067_v20, %v5069_v24 }
 0x63e   : > { %vm16535_vm13 = vcmask 1041408   ;;  %v4876_v40 = vrot.slane %v13640_v44, 7  ;;  %v4561_v62 = vmul.f32 %v10542_v18, %v13412_v61  ;;  %v4534_v48 = vadd.f32 1e-05, %v4518_v31 }
 0x63f   : > { %v5003_v5 = vsel %vm16534_vm0, %v16533_v26, %v5002_v11  ;;  %v4812_v15 = vsel %vm16535_vm13, %v4809_v3, %v4811_v60  ;;  %v4586_v28 = vmul.f32 %v13470_v33, %v4562_v17  ;;  %v10063_v51 = vpack.i.bf16 %v4749_v12, %v4790_v16  ;;  %vm16537_vm2 = vmmov %vm16535_vm13 }
 0x640   : > { %v10038_v32 = vpack.i.bf16 %v5049_v37, %v5003_v5  ;;  %vm16536_vm6 = vcmp.lt.s32.totalorder %v16527_v25, 13  ;;  %v16152_v11 = vrot.slane %v13679_v41, 7  ;;  %v4814_v3 = vsel %vm16537_vm2, %v4811_v60, %v16156_v21 }
 0x641   : > { %v5114_v63 = vsel %vm16536_vm6, %v5070_v14, 0.0  ;;  %vm16538_vm8 = vcmp.ge.s32.totalorder %v10957_v39, 2  ;;  %v4941_v61 = vrot.slane %v13679_v41, 1  ;;  %v4943_v18 = vrot.slane %v13717_v56, 1  ;;  %10064 = vrot.lane.b32.xlu1 %v10063_v51, %s10681_s28 }
 0x642   : > { %10039 = vrot.lane.b32.xlu0 %v10038_v32, %s10684_s21  ;;  %v4855_v10 = vsel %vm16538_vm8, %v4812_v15, 0.0  ;;  %v4533_v17 = vadd.f32 1e-05, %v13621_v47  ;;  %v16539_v31 = vrot.slane %v13516_v7, 3  ;;  %vm16540_vm14 = vcmask 1040384   ;;  %v16541_v15 = vld [vmem:[#allocation9_spill] sm:$0xff] }
 0x643   : > { %v4877_v12 = vsel %vm16540_vm14, %v4874_v54, %v4876_v40  ;;  %v5008_v16 = vrot.slane %v13717_v56, 2  ;;  %v4585_v60 = vmul.f32 %v13470_v33, %v4561_v62  ;;  %v4944_v5 = vsel %vm1353_vm7, %v4941_v61, %v4943_v18  ;;  %vm16543_vm0 = vmmov %vm16540_vm14 }
 0x644   : > { %v5068_v37 = vsel %vm1549_vm12, %v16539_v31, %v5067_v20  ;;  %v5006_v14 = vrot.slane %v13679_v41, 2  ;;  %10549 = vrsqrt.f32 %v4534_v48  ;;  %v10073_v47 = vpack.i.bf16 %v4814_v3, %v4855_v10  ;;  %v10548_v51 = vpop.eup %10547 }
 0x645   : > { %v10048_v26 = vpack.i.bf16 %v5114_v63, %v5068_v37  ;;  %vm16542_vm15 = vcmp.lt.s32.totalorder %v16541_v15, 15  ;;  %v13763_v20 = vadd.f32 %v13478_v8, %v4586_v28  ;;  %v4879_v54 = vsel %vm16543_vm0, %v4876_v40, %v16152_v11 }
 0x646   : > { %v4986_v32 = vsel %vm16542_vm15, %v4944_v5, 0.0  ;;  %vm16544_vm13 = vcmp.ge.s32.totalorder %v10957_v39, 1  ;;  %vm16545_vm6 = vcmask 1045504   ;;  %10074 = vrot.lane.b32.xlu1 %v10073_v47, %s10684_s21  ;;  %v16546_v63 = vrot.slane %v13640_v44, 1 }
 0x647   : > { %10049 = vrot.lane.b32.xlu0 %v10048_v26, %s10683_s25  ;;  %v4920_v62 = vsel %vm16544_vm13, %v4877_v12, 0.0  ;;  %v5009_v48 = vsel %vm16545_vm6, %v5006_v14, %v5008_v16  ;;  %v4739_v3 = vrot.slane %v13490_v27, 5  ;;  %v16154_v10 = vrot.slane %v13717_v56, 3  ;;  %vm16553_vm15 = vmmov %vm16545_vm6 }
 0x648   : > { %v4942_v28 = vsel %vm1353_vm7, %v16546_v63, %v4941_v61  ;;  %v13781_v40 = vadd.f32 %v13478_v8, %v4585_v60  ;;  %10551 = vrsqrt.f32 %v4533_v17  ;;  %v5071_v37 = vrot.slane %v13679_v41, 3 }
 0x649   : > { %v10058_v31 = vpack.i.bf16 %v4986_v32, %v4942_v28  ;;  %v10083_v12 = vpack.i.bf16 %v4879_v54, %v4920_v62  ;;  %v16547_v26 = vrot.slane %v13497_v38, 5  ;;  %vm16548_vm2 = vcmask 1042432  }
 0x64a   : > { %vm16549_vm8 = vcmp.lt.s32.totalorder %v16541_v15, 14  ;;  %v4564_v61 = vmul.f32 %v10548_v51, %v13422_v36  ;;  %v16550_v63 = vrot.slane %v13505_v19, 5  ;;  %vm16551_vm14 = vmmov %vm16548_vm2  ;;  %v5074_v17 = vsel %vm1549_vm12, %v5071_v37, %v16154_v10  ;;  %v16554_v51 = vld [vmem:[#allocation3_spill] sm:$0xff] }
 0x64b   : > { %v4785_v5 = vsel %vm16548_vm2, %v16547_v26, %v4739_v3  ;;  %v5051_v47 = vsel %vm16549_vm8, %v5009_v48, 0.0  ;;  %10059 = vrot.lane.b32.xlu0 %v10058_v31, %s10681_s28  ;;  %v16153_v32 = vrot.slane %v13763_v20, 1  ;;  %10084 = vrot.lane.b32.xlu1 %v10083_v12, %s10683_s25  ;;  %v16552_v54 = vrot.slane %v13640_v44, 2 }
 0x64c   : > { %v4741_v60 = vsel %vm16551_vm14, %v4739_v3, %v16550_v63  ;;  %v4804_v36 = vrot.slane %v13490_v27, 6  ;;  %v4563_v48 = vmul.f32 %v13669_v59, %v13425_v35  ;;  %vm16555_vm0 = vcmp.ge.s32.totalorder %v16554_v51, 3 }
 0x64d   : > { %v5007_v62 = vsel %vm16553_vm15, %v16552_v54, %v5006_v14  ;;  %v4786_v28 = vsel %vm16555_vm0, %v4785_v5, 0.0  ;;  %v4945_v31 = vrot.slane %v13781_v40, 1  ;;  %v16556_v63 = vrot.slane %v13497_v38, 6 }
 0x64e   : > { %v10068_v3 = vpack.i.bf16 %v5051_v47, %v5007_v62  ;;  %v10093_v26 = vpack.i.bf16 %v4741_v60, %v4786_v28  ;;  %vm16557_vm13 = vcmask 1041408   ;;  %vm16558_vm6 = vcmp.lt.s32.totalorder %v16541_v15, 13 }
 0x64f   : > { %v4850_v12 = vsel %vm16557_vm13, %v16556_v63, %v4804_v36  ;;  %v5116_v11 = vsel %vm16558_vm6, %v5074_v17, 0.0  ;;  %v4588_v14 = vmul.f32 %v13470_v33, %v4564_v61  ;;  %v16559_v35 = vrot.slane %v13505_v19, 6  ;;  %vm16560_vm2 = vmmov %vm16557_vm13 }
 0x650   : > { %10069 = vrot.lane.b32.xlu0 %v10068_v3, %s10684_s21  ;;  %v4948_v5 = vsel %vm1353_vm7, %v4945_v31, %v16153_v32  ;;  %v16155_v47 = vrot.slane %v13763_v20, 2  ;;  %10094 = vrot.lane.b32.xlu1 %v10093_v26, %s10681_s28  ;;  %v5072_v60 = vsel %vm1549_vm12, %v5069_v24, %v5071_v37  ;;  %v4869_v61 = vrot.slane %v13490_v27, 7 }
 0x651   : > { %v4806_v59 = vsel %vm16560_vm2, %v4804_v36, %v16559_v35  ;;  %v4750_v17 = vrot.slane %v13717_v56, 5  ;;  %v4587_v54 = vmul.f32 %v13470_v33, %v4563_v48  ;;  %vm16561_vm8 = vcmp.ge.s32.totalorder %v16554_v51, 2  ;;  %v16564_v35 = vld [vmem:[#allocation8_spill] sm:$0xff]  ;;  %v10550_v32 = vpop.eup %10549 }
 0x652   : > { %v4851_v62 = vsel %vm16561_vm8, %v4850_v12, 0.0  ;;  %v10078_v36 = vpack.i.bf16 %v5116_v11, %v5072_v60  ;;  %v5010_v28 = vrot.slane %v13781_v40, 2  ;;  %v16562_v63 = vrot.slane %v13497_v38, 7 }
 0x653   : > { %v10098_v3 = vpack.i.bf16 %v4806_v59, %v4851_v62  ;;  %vm16563_vm14 = vcmask 1040384   ;;  %vm16565_vm15 = vcmp.lt.s32.totalorder %v16564_v35, 15  ;;  %v4752_v37 = vrot.slane %v13781_v40, 5 }
 0x654   : > { %v4915_v26 = vsel %vm16563_vm14, %v16562_v63, %v4869_v61  ;;  %v4988_v24 = vsel %vm16565_vm15, %v4948_v5, 0.0  ;;  %v13839_v10 = vadd.f32 %v13478_v8, %v4588_v14  ;;  %10079 = vrot.lane.b32.xlu0 %v10078_v36, %s10683_s25  ;;  %v16566_v11 = vrot.slane %v13505_v19, 7  ;;  %vm16567_vm0 = vmmov %vm16563_vm14 }
 0x655   : > { %vm16568_vm13 = vcmask 1045504   ;;  %v16157_v59 = vrot.slane %v13763_v20, 3  ;;  %10099 = vrot.lane.b32.xlu1 %v10098_v3, %s10684_s21  ;;  %v4946_v5 = vsel %vm1353_vm7, %v4943_v18, %v4945_v31  ;;  %vm16569_vm6 = vcmask 1042432   ;;  %v10552_v3 = vpop.eup %10551  ;;  %v16573_v31 = vld [vmem:[#allocation7_spill] sm:$0xff] }
 0x656   : > { %v4871_v48 = vsel %vm16567_vm0, %v4869_v61, %v16566_v11  ;;  %v5013_v12 = vsel %vm16568_vm13, %v5010_v28, %v16155_v47  ;;  %v4751_v14 = vsel %vm16569_vm6, %v4748_v0, %v4750_v17  ;;  %v4815_v60 = vrot.slane %v13717_v56, 6  ;;  %vm16571_vm8 = vmmov %vm16569_vm6 }
 0x657   : > { %v13858_v61 = vadd.f32 %v13478_v8, %v4587_v54  ;;  %vm16570_vm2 = vcmp.ge.s32.totalorder %v16554_v51, 1  ;;  %v10088_v36 = vpack.i.bf16 %v4988_v24, %v4946_v5  ;;  %v5075_v63 = vrot.slane %v13781_v40, 3  ;;  %vm16575_vm0 = vmmov %vm16568_vm13 }
 0x658   : > { %v4916_v62 = vsel %vm16570_vm2, %v4915_v26, 0.0  ;;  %v4566_v11 = vmul.f32 %v10550_v32, %v13432_v43  ;;  %v4753_v18 = vsel %vm16571_vm8, %v4750_v17, %v4752_v37  ;;  %vm16572_vm14 = vcmp.lt.s32.totalorder %v16564_v35, 14 }
 0x659   : > { %v10103_v47 = vpack.i.bf16 %v4871_v48, %v4916_v62  ;;  %v5053_v0 = vsel %vm16572_vm14, %v5013_v12, 0.0  ;;  %10089 = vrot.lane.b32.xlu0 %v10088_v36, %s10681_s28  ;;  %vm16574_vm15 = vcmp.ge.s32.totalorder %v16573_v31, 3  ;;  %v4817_v21 = vrot.slane %v13781_v40, 6 }
 0x65a   : > { %v4792_v54 = vsel %vm16574_vm15, %v4751_v14, 0.0  ;;  %v5078_v26 = vsel %vm1549_vm12, %v5075_v63, %v16157_v59  ;;  %v16158_v24 = vrot.slane %v13839_v10, 1  ;;  %v5011_v43 = vsel %vm16575_vm0, %v5008_v16, %v5010_v28 }
 0x65b   : > { %10104 = vrot.lane.b32.xlu1 %v10103_v47, %s10683_s25  ;;  %v16576_v32 = vrot.slane %v13679_v41, 6  ;;  %vm16577_vm13 = vcmask 1041408   ;;  %v4880_v48 = vrot.slane %v13717_v56, 7  ;;  %v4565_v12 = vmul.f32 %v10552_v3, %v13435_v13 }
 0x65c   : > { %v10113_v5 = vpack.i.bf16 %v5053_v0, %v5011_v43  ;;  %v4949_v14 = vrot.slane %v13858_v61, 1  ;;  %v4590_v62 = vmul.f32 %v13470_v33, %v4566_v11  ;;  %v10108_v36 = vpack.i.bf16 %v4753_v18, %v4792_v54  ;;  %vm16579_vm2 = vmmov %vm16577_vm13 }
 0x65d   : > { %v4816_v17 = vsel %vm16577_vm13, %v16576_v32, %v4815_v60  ;;  %vm16578_vm6 = vcmp.lt.s32.totalorder %v16564_v35, 13  ;;  %v4882_v59 = vrot.slane %v13781_v40, 7  ;;  %v4818_v16 = vsel %vm16579_vm2, %v4815_v60, %v4817_v21 }
 0x65e   : > { %v5118_v47 = vsel %vm16578_vm6, %v5078_v26, 0.0  ;;  %10114 = vrot.lane.b32.xlu0 %v10113_v5, %s10684_s21  ;;  %vm16580_vm8 = vcmp.ge.s32.totalorder %v16573_v31, 2  ;;  %v4952_v13 = vsel %vm1353_vm7, %v4949_v14, %v16158_v24  ;;  %v16160_v3 = vrot.slane %v13839_v10, 2  ;;  %v16585_v24 = vld [vmem:[#allocation13_spill] sm:$0xff] }
 0x65f   : > { %v4857_v28 = vsel %vm16580_vm8, %v4816_v17, 0.0  ;;  %10109 = vrot.lane.b32.xlu1 %v10108_v36, %s10681_s28  ;;  %v16581_v11 = vrot.slane %v13717_v56, 3  ;;  %v16582_v0 = vrot.slane %v13679_v41, 7  ;;  %vm16583_vm14 = vcmask 1040384  }
 0x660   : > { %v4754_v60 = vrot.slane %v13763_v20, 5  ;;  %v4589_v26 = vmul.f32 %v13470_v33, %v4565_v12  ;;  %v5014_v32 = vrot.slane %v13858_v61, 2  ;;  %v13908_v17 = vadd.f32 %v13478_v8, %v4590_v62  ;;  %vm16584_vm15 = vmmov %vm16583_vm14 }
 0x661   : > { %v5076_v18 = vsel %vm1549_vm12, %v16581_v11, %v5075_v63  ;;  %v4881_v54 = vsel %vm16583_vm14, %v16582_v0, %v4880_v48  ;;  %v10118_v5 = vpack.i.bf16 %v4818_v16, %v4857_v28  ;;  %v4883_v36 = vsel %vm16584_vm15, %v4880_v48, %v4882_v59 }
 0x662   : > { %v10123_v43 = vpack.i.bf16 %v5118_v47, %v5076_v18  ;;  %vm16586_vm0 = vcmp.lt.s32.totalorder %v16585_v24, 15  ;;  %vm16587_vm13 = vcmp.ge.s32.totalorder %v16573_v31, 1  ;;  %v4756_v0 = vrot.slane %v13858_v61, 5 }
 0x663   : > { %v4990_v63 = vsel %vm16586_vm0, %v4952_v13, 0.0  ;;  %v4922_v11 = vsel %vm16587_vm13, %v4881_v54, 0.0  ;;  %vm16588_vm6 = vcmask 1045504   ;;  %v16159_v12 = vrot.slane %v13839_v10, 3  ;;  %10119 = vrot.lane.b32.xlu1 %v10118_v5, %s10684_s21 }
 0x664   : > { %10124 = vrot.lane.b32.xlu0 %v10123_v43, %s10683_s25  ;;  %v5017_v33 = vsel %vm16588_vm6, %v5014_v32, %v16160_v3  ;;  %v16589_v48 = vrot.slane %v13763_v20, 1  ;;  %vm16590_vm2 = vcmask 1042432   ;;  %v4819_v16 = vrot.slane %v13763_v20, 6  ;;  %vm16596_vm0 = vmmov %vm16588_vm6 }
 0x665   : > { %v4755_v47 = vsel %vm16590_vm2, %v4752_v37, %v4754_v60  ;;  %v13928_v28 = vadd.f32 %v13478_v8, %v4589_v26  ;;  %v5079_v18 = vrot.slane %v13858_v61, 3  ;;  %v10128_v54 = vpack.i.bf16 %v4883_v36, %v4922_v11  ;;  %vm16592_vm14 = vmmov %vm16590_vm2 }
 0x666   : > { %v4950_v62 = vsel %vm1353_vm7, %v16589_v48, %v4949_v14  ;;  %vm16591_vm8 = vcmp.lt.s32.totalorder %v16585_v24, 14  ;;  %v4821_v5 = vrot.slane %v13858_v61, 6  ;;  %v4757_v14 = vsel %vm16592_vm14, %v4754_v60, %v4756_v0  ;;  %v16593_v48 = vld [vmem:[#allocation10_spill] sm:$0xff] }
 0x667   : > { %v10133_v13 = vpack.i.bf16 %v4990_v63, %v4950_v62  ;;  %v5055_v43 = vsel %vm16591_vm8, %v5017_v33, 0.0  ;;  %vm16594_vm15 = vcmp.ge.s32.totalorder %v16593_v48, 3  ;;  %v5082_v8 = vsel %vm1549_vm12, %v5079_v18, %v16159_v12  ;;  %10129 = vrot.lane.b32.xlu1 %v10128_v54, %s10683_s25 }
 0x668   : > { %v4794_v37 = vsel %vm16594_vm15, %v4755_v47, 0.0  ;;  %v4955_v26 = vrot.slane %v13908_v17, 1  ;;  %v16595_v36 = vrot.slane %v13763_v20, 2  ;;  %vm16597_vm13 = vcmask 1041408  }
 0x669   : > { %10134 = vrot.lane.b32.xlu0 %v10133_v13, %s10681_s28  ;;  %v4820_v11 = vsel %vm16597_vm13, %v4817_v21, %v4819_v16  ;;  %v4884_v33 = vrot.slane %v13763_v20, 7  ;;  %v4953_v62 = vrot.slane %v13928_v28, 1  ;;  %v10138_v47 = vpack.i.bf16 %v4757_v14, %v4794_v37  ;;  %vm16598_vm6 = vmmov %vm16597_vm13 }
 0x66a   : > { %v5015_v63 = vsel %vm16596_vm0, %v16595_v36, %v5014_v32  ;;  %v4822_v13 = vsel %vm16598_vm6, %v4819_v16, %v4821_v5  ;;  %vm16599_vm2 = vcmp.lt.s32.totalorder %v16585_v24, 13  ;;  %vm16600_vm8 = vcmp.ge.s32.totalorder %v16593_v48, 2 }
 0x66b   : > { %v10143_v60 = vpack.i.bf16 %v5055_v43, %v5015_v63  ;;  %v5120_v12 = vsel %vm16599_vm2, %v5082_v8, 0.0  ;;  %v4859_v54 = vsel %vm16600_vm8, %v4820_v11, 0.0  ;;  %v4886_v32 = vrot.slane %v13858_v61, 7  ;;  %10139 = vrot.lane.b32.xlu1 %v10138_v47, %s10681_s28 }
 0x66c   : > { %v4956_v21 = vsel %vm1353_vm7, %v4953_v62, %v4955_v26  ;;  %v5020_v36 = vrot.slane %v13908_v17, 2  ;;  %v16601_v43 = vrot.slane %v13763_v20, 3  ;;  %vm16602_vm14 = vcmask 1040384  }
 0x66d   : > { %10144 = vrot.lane.b32.xlu0 %v10143_v60, %s10684_s21  ;;  %v4885_v14 = vsel %vm16602_vm14, %v4882_v59, %v4884_v33  ;;  %v4758_v37 = vrot.slane %v13839_v10, 5  ;;  %v5018_v63 = vrot.slane %v13928_v28, 2  ;;  %v10148_v11 = vpack.i.bf16 %v4822_v13, %v4859_v54  ;;  %v16603_v60 = vld [vmem:[#allocation12_spill] sm:$0xff]  ;;  %vm16605_vm0 = vmmov %vm16602_vm14 }
 0x66e   : > { %v5080_v16 = vsel %vm1549_vm12, %v16601_v43, %v5079_v18  ;;  %vm16604_vm15 = vcmp.lt.s32.totalorder %v16603_v60, 15  ;;  %v4760_v58 = vrot.slane %v13928_v28, 5  ;;  %v4887_v47 = vsel %vm16605_vm0, %v4884_v33, %v4886_v32 }
 0x66f   : > { %v10153_v8 = vpack.i.bf16 %v5120_v12, %v5080_v16  ;;  %v4992_v3 = vsel %vm16604_vm15, %v4956_v21, 0.0  ;;  %vm16606_vm13 = vcmp.ge.s32.totalorder %v16593_v48, 1  ;;  %vm16607_vm6 = vcmask 1045504   ;;  %10149 = vrot.lane.b32.xlu1 %v10148_v11, %s10684_s21  ;;  %v16612_v11 = vld [vmem:[#allocation11_spill] sm:$0xff] }
 0x670   : > { %v4924_v18 = vsel %vm16606_vm13, %v4885_v14, 0.0  ;;  %v5021_v59 = vsel %vm16607_vm6, %v5018_v63, %v5020_v36  ;;  %v5085_v43 = vrot.slane %v13908_v17, 3  ;;  %v16608_v12 = vrot.slane %v13839_v10, 1  ;;  %vm16615_vm0 = vmmov %vm16607_vm6 }
 0x671   : > { %10154 = vrot.lane.b32.xlu0 %v10153_v8, %s10683_s25  ;;  %vm16609_vm2 = vcmask 1042432   ;;  %v4823_v21 = vrot.slane %v13839_v10, 6  ;;  %v5083_v33 = vrot.slane %v13928_v28, 3  ;;  %v10158_v8 = vpack.i.bf16 %v4887_v47, %v4924_v18 }
 0x672   : > { %v4954_v13 = vsel %vm1353_vm7, %v16608_v12, %v4953_v62  ;;  %v4759_v54 = vsel %vm16609_vm2, %v4756_v0, %v4758_v37  ;;  %vm16610_vm8 = vcmp.lt.s32.totalorder %v16603_v60, 14  ;;  %vm16611_vm14 = vmmov %vm16609_vm2  ;;  %vm16613_vm15 = vcmp.ge.s32.totalorder %v16612_v11, 3 }
 0x673   : > { %v10163_v16 = vpack.i.bf16 %v4992_v3, %v4954_v13  ;;  %v5057_v14 = vsel %vm16610_vm8, %v5021_v59, 0.0  ;;  %v4761_v23 = vsel %vm16611_vm14, %v4758_v37, %v4760_v58  ;;  %v4796_v4 = vsel %vm16613_vm15, %v4759_v54, 0.0  ;;  %10159 = vrot.lane.b32.xlu1 %v10158_v8, %s10683_s25 }
 0x674   : > { %v4825_v62 = vrot.slane %v13928_v28, 6  ;;  %v5086_v0 = vsel %vm1549_vm12, %v5083_v33, %v5085_v43  ;;  %v16614_v3 = vrot.slane %v13839_v10, 2  ;;  %vm16616_vm13 = vcmask 1041408  }
 0x675   : > { %10164 = vrot.lane.b32.xlu0 %v10163_v16, %s10681_s28  ;;  %v4824_v18 = vsel %vm16616_vm13, %v4821_v5, %v4823_v21  ;;  %v4888_v59 = vrot.slane %v13839_v10, 7  ;;  %v10168_v13 = vpack.i.bf16 %v4761_v23, %v4796_v4  ;;  %vm16617_vm6 = vcmp.lt.s32.totalorder %v16603_v60, 13  ;;  %vm16618_vm2 = vmmov %vm16616_vm13 }
 0x676   : > { %v5019_v47 = vsel %vm16615_vm0, %v16614_v3, %v5018_v63  ;;  %v5122_v37 = vsel %vm16617_vm6, %v5086_v0, 0.0  ;;  %v4826_v54 = vsel %vm16618_vm2, %v4823_v21, %v4825_v62  ;;  %vm16619_vm8 = vcmp.ge.s32.totalorder %v16612_v11, 2 }
 0x677   : > { %v10173_v12 = vpack.i.bf16 %v5057_v14, %v5019_v47  ;;  %v4861_v16 = vsel %vm16619_vm8, %v4824_v18, 0.0  ;;  %v4890_v8 = vrot.slane %v13928_v28, 7  ;;  %v4957_v63 = vrot.slane %v13493_v2, 1  ;;  %10169 = vrot.lane.b32.xlu1 %v10168_v13, %s10681_s28 }
 0x678   : > { %v16620_v5 = vrot.slane %v13839_v10, 3  ;;  %vm16621_vm14 = vcmask 1040384   ;;  %v4762_v14 = vrot.slane %v13908_v17, 5  ;;  %v16622_v21 = vrot.slane %v13501_v6, 1 }
 0x679   : > { %10174 = vrot.lane.b32.xlu0 %v10173_v12, %s10684_s21  ;;  %v4889_v4 = vsel %vm16621_vm14, %v4886_v32, %v4888_v59  ;;  %v10178_v47 = vpack.i.bf16 %v4826_v54, %v4861_v16  ;;  %v4958_v18 = vsel %vm1353_vm7, %v4955_v26, %v4957_v63  ;;  %vm16623_vm15 = vmmov %vm16621_vm14  ;;  %vm16624_vm0 = vcmp.ge.s32.totalorder %v16612_v11, 1  ;;  %v16625_v32 = vld [vmem:[#allocation17_spill] sm:$0xff] }
 0x67a   : > { %v5084_v23 = vsel %vm1549_vm12, %v16620_v5, %v5083_v33  ;;  %v4960_v3 = vsel %vm1353_vm7, %v4957_v63, %v16622_v21  ;;  %v4891_v12 = vsel %vm16623_vm15, %v4888_v59, %v4890_v8  ;;  %v4926_v13 = vsel %vm16624_vm0, %v4889_v4, 0.0  ;;  %v16633_v21 = vld [vmem:[#allocation14_spill] sm:$0xff] }
 0x67b   : > { %v10183_v0 = vpack.i.bf16 %v5122_v37, %v5084_v23  ;;  %v5022_v33 = vrot.slane %v13493_v2, 2  ;;  %10179 = vrot.lane.b32.xlu1 %v10178_v47, %s10684_s21  ;;  %vm16626_vm13 = vcmp.lt.s32.totalorder %v16625_v32, 15  ;;  %vm16627_vm6 = vcmask 1042432  }
 0x67c   : > { %v4994_v37 = vsel %vm16626_vm13, %v4960_v3, 0.0  ;;  %v4763_v5 = vsel %vm16627_vm6, %v4760_v58, %v4762_v14  ;;  %v4827_v54 = vrot.slane %v13908_v17, 6  ;;  %v16628_v26 = vrot.slane %v13501_v6, 2  ;;  %vm16632_vm8 = vmmov %vm16627_vm6 }
 0x67d   : > { %10184 = vrot.lane.b32.xlu0 %v10183_v0, %s10683_s25  ;;  %v10193_v16 = vpack.i.bf16 %v4994_v37, %v4958_v18  ;;  %vm16629_vm7 = vcmask 1045504   ;;  %v10188_v59 = vpack.i.bf16 %v4891_v12, %v4926_v13  ;;  %v16631_v4 = vrot.slane %v13493_v2, 5 }
 0x67e   : > { %v5025_v63 = vsel %vm16629_vm7, %v5022_v33, %v16628_v26  ;;  %vm16630_vm2 = vmmov %vm16629_vm7  ;;  %vm16634_vm14 = vcmp.ge.s32.totalorder %v16633_v21, 3  ;;  %v5087_v58 = vrot.slane %v13493_v2, 3  ;;  %vm16635_vm15 = vcmp.lt.s32.totalorder %v16625_v32, 14 }
 0x67f   : > { %v5023_v23 = vsel %vm16630_vm2, %v5020_v36, %v5022_v33  ;;  %v4765_v0 = vsel %vm16632_vm8, %v4762_v14, %v16631_v4  ;;  %v4798_v3 = vsel %vm16634_vm14, %v4763_v5, 0.0  ;;  %10189 = vrot.lane.b32.xlu1 %v10188_v59, %s10683_s25  ;;  %v5059_v47 = vsel %vm16635_vm15, %v5025_v63, 0.0 }
 0x680   : > { %vm16636_vm0 = vcmask 1041408   ;;  %v4892_v36 = vrot.slane %v13908_v17, 7  ;;  %v10203_v12 = vpack.i.bf16 %v5059_v47, %v5023_v23  ;;  %v16637_v13 = vrot.slane %v13501_v6, 3 }
 0x681   : > { %10194 = vrot.lane.b32.xlu0 %v10193_v16, %s10681_s28  ;;  %v4828_v18 = vsel %vm16636_vm0, %v4825_v62, %v4827_v54  ;;  %v10198_v14 = vpack.i.bf16 %v4765_v0, %v4798_v3  ;;  %v5088_v37 = vsel %vm1549_vm12, %v5085_v43, %v5087_v58  ;;  %v16638_v5 = vrot.slane %v13493_v2, 6  ;;  %vm16639_vm13 = vmmov %vm16636_vm0 }
 0x682   : > { %v5090_v33 = vsel %vm1549_vm12, %v5087_v58, %v16637_v13  ;;  %vm16640_vm6 = vcmp.ge.s32.totalorder %v16633_v21, 2  ;;  %vm16641_vm7 = vcmp.lt.s32.totalorder %v16625_v32, 13  ;;  %vm16642_vm2 = vcmask 1040384  }
 0x683   : > { %v4830_v16 = vsel %vm16639_vm13, %v4827_v54, %v16638_v5  ;;  %v4863_v26 = vsel %vm16640_vm6, %v4828_v18, 0.0  ;;  %10199 = vrot.lane.b32.xlu1 %v10198_v14, %s10681_s28  ;;  %v5124_v62 = vsel %vm16641_vm7, %v5090_v33, 0.0  ;;  %v4893_v63 = vsel %vm16642_vm2, %v4890_v8, %v4892_v36  ;;  %vm16644_vm12 = vmmov %vm16642_vm2 }
 0x684   : > { %v10213_v59 = vpack.i.bf16 %v5124_v62, %v5088_v37  ;;  %v10208_v23 = vpack.i.bf16 %v4830_v16, %v4863_v26  ;;  %v16643_v43 = vrot.slane %v13493_v2, 7  ;;  %vm16645_vm8 = vcmp.ge.s32.totalorder %v16633_v21, 1 }
 0x685   : > { %10204 = vrot.lane.b32.xlu0 %v10203_v12, %s10684_s21  ;;  %v4928_v54 = vsel %vm16645_vm8, %v4893_v63, 0.0  ;;  %v4701_v12 = vrot.slane %v13501_v6, 4  ;;  %vm16647_vm14 = vcmp.lt.s32.totalorder %v16503_v42, 12  ;;  %vm16648_vm15 = vcmp.lt.s32.totalorder %v16527_v25, 12 }
 0x686   : > { %v4895_v4 = vsel %vm16644_vm12, %v4892_v36, %v16643_v43  ;;  %v16164_v36 = vrot.slane %v13493_v2, 4  ;;  %v16165_v43 = vrot.slane %v13497_v38, 4  ;;  %vm16649_vm0 = vcmp.lt.s32.totalorder %v16541_v15, 12 }
 0x687   : > { %10209 = vrot.lane.b32.xlu1 %v10208_v23, %s10684_s21  ;;  %v10218_v0 = vpack.i.bf16 %v4895_v4, %v4928_v54  ;;  %v4691_v15 = vrot.slane %v13858_v61, 4  ;;  %vm16651_vm13 = vcmp.lt.s32.totalorder %v16564_v35, 12  ;;  %vm16652_vm6 = vcmp.lt.s32.totalorder %v16585_v24, 12 }
 0x688   : > { %v14066_v26 = vsel %vm963_vm4, %v16164_v36, %v4701_v12  ;;  %v4675_v36 = vrot.slane %v13505_v19, 4  ;;  %v16653_v42 = vrot.slane %v13490_v27, 4  ;;  %vm16655_vm7 = vcmp.ge.s32.totalorder %v16515_v53, 4 }
 0x689   : > { %10214 = vrot.lane.b32.xlu0 %v10213_v59, %s10683_s25  ;;  %vm16656_vm2 = vcmp.ge.s32.totalorder %v16554_v51, 4  ;;  %vm16657_vm12 = vcmp.lt.s32.totalorder %v16603_v60, 12  ;;  %vm16660_vm8 = vcmp.lt.s32.totalorder %v16625_v32, 12 }
 0x68a   : > { %v4720_v35 = vsel %vm963_vm4, %v16654_v9, %v16653_v42 }
 0x68b   : > { %10219 = vrot.lane.b32.xlu1 %v10218_v0, %s10683_s25 }
 0x693   : > { %v10005_v3 = vpop.permute.xlu1 %10004 }
 0x697   : > { %v10010_v58 = vpop.permute.xlu1 %10009  ;;  %v9985_v47 = vpop.permute.xlu0 %9984 }
 0x698   : > { %v9987_v13 = vunpack.i.h.bf16 %v9985_v47  ;;  %v9986_v33 = vunpack.i.l.bf16 %v9985_v47  ;;  %v10011_v45 = vunpack.i.l.bf16 %v10010_v58 }
 0x69a   : > { %v5576_v62 = vsel %vm2310_vm5, %v13505_v19, %v9987_v13  ;;  %v5575_v63 = vsel %vm2310_vm5, %v13490_v27, %v9986_v33  ;;  %v14082_v13 = vsel %vm963_vm4, %v4701_v12, %v16165_v43  ;;  %v4735_v33 = vsel %vm792_vm11, %v14066_v26, 0.0 }
 0x69b   : > { %v10015_v8 = vpop.permute.xlu1 %10014  ;;  %v16646_v12 = vrot.slane %v13516_v7, 4 }
 0x69c   : > { %v9990_v18 = vpop.permute.xlu0 %9989 }
 0x69d   : > { %v9992_v14 = vunpack.i.h.bf16 %v9990_v18  ;;  %v9991_v37 = vunpack.i.l.bf16 %v9990_v18  ;;  %v14092_v43 = vsel %vm963_vm4, %v4675_v36, %v16646_v12 }
 0x69f   : > { %v10020_v5 = vpop.permute.xlu1 %10019  ;;  %v5591_v4 = vsel %vm3784_vm1, %v5575_v63, %v9991_v37  ;;  %v5592_v54 = vsel %vm3784_vm1, %v5576_v62, %v9992_v14  ;;  %v10017_v14 = vunpack.i.h.bf16 %v10015_v8  ;;  %v10016_v62 = vunpack.i.l.bf16 %v10015_v8 }
 0x6a0   : > { %v9995_v16 = vpop.permute.xlu0 %9994  ;;  %v10022_v19 = vunpack.i.h.bf16 %v10020_v5  ;;  %v10021_v0 = vunpack.i.l.bf16 %v10020_v5  ;;  %v16171_v8 = vrot.slane %v13490_v27, 4 }
 0x6a1   : > { %v9997_v59 = vunpack.i.h.bf16 %v9995_v16  ;;  %v9996_v23 = vunpack.i.l.bf16 %v9995_v16  ;;  %v5589_v12 = vsel %vm2310_vm5, %v13501_v6, %v10016_v62  ;;  %v5128_v6 = vsel %vm16647_vm14, %v14092_v43, 0.0 }
 0x6a2   : > { %vm16661_vm14 = vcmp.lt.s32.totalorder %v11447_v52, 12 }
 0x6a3   : > { %v5607_v47 = vsel %vm3801_vm3, %v5591_v4, %v9996_v23  ;;  %v5608_v18 = vsel %vm3801_vm3, %v5592_v54, %v9997_v59  ;;  %v10007_v59 = vunpack.i.h.bf16 %v10005_v3  ;;  %v10006_v54 = vunpack.i.l.bf16 %v10005_v3 }
 0x6a4   : > { %v10000_v37 = vpop.permute.xlu0 %9999  ;;  %v5624_v16 = vpack.c.bf16 %v5608_v18, %v5607_v47  ;;  %v10012_v18 = vunpack.i.h.bf16 %v10010_v58  ;;  %v5605_v58 = vsel %vm3784_vm1, %v5589_v12, %v10021_v0 }
 0x6a5   : > { %v14087_v63 = vpop.permute.xlu1 %10034  ;;  %v10002_v23 = vunpack.i.h.bf16 %v10000_v37  ;;  %v10001_v4 = vunpack.i.l.bf16 %v10000_v37 }
 0x6a6   : > { %5817 = vmatprep.mubr.bf16.mxu0 %v5624_v16  ;;  %v5590_v16 = vsel %vm2310_vm5, %v13497_v38, %v10017_v14  ;;  %v4721_v38 = vsel %vm16656_vm2, %v4720_v35, 0.0  ;;  %v10036_v52 = vunpack.i.l.bf16 %v14087_v63 }
 0x6a7   : > { %v5542_v46 = vsel %vm2310_vm5, %v14082_v13, %v10002_v23  ;;  %v5541_v47 = vsel %vm2310_vm5, %v4735_v33, %v10001_v4 }
 0x6a8   : > { %v5558_v37 = vsel %vm3784_vm1, %v5542_v46, %v10007_v59  ;;  %v5557_v3 = vsel %vm3784_vm1, %v5541_v47, %v10006_v54  ;;  %v10025_v5 = vpop.permute.xlu0 %10024  ;;  %v5606_v46 = vsel %vm3784_vm1, %v5590_v16, %v10022_v19  ;;  %v4681_v59 = vrot.slane %v13640_v44, 4 }
 0x6a9   : > { %v14104_v49 = vpop.permute.xlu1 %10044  ;;  %v10027_v23 = vunpack.i.h.bf16 %v10025_v5  ;;  %v10026_v22 = vunpack.i.l.bf16 %v10025_v5  ;;  %v5574_v33 = vsel %vm3801_vm3, %v5558_v37, %v10012_v18  ;;  %v5573_v4 = vsel %vm3801_vm3, %v5557_v3, %v10011_v45  ;;  %v10463_v37 = vld [vmem:[%s15959_s4 + $0x80] sm:$0xff]  }
 0x6aa   : > { %v4685_v18 = vrot.slane %v13717_v56, 4  ;;  %v4679_v45 = vrot.slane %v13592_v55, 4  ;;  %v5644_v19 = vpack.c.bf16 %v5574_v33, %v5573_v4  ;;  %v4683_v3 = vrot.slane %v13679_v41, 4 }
 0x6ab   : > { %v5621_v54 = vsel %vm3801_vm3, %v5605_v58, %v10026_v22  ;;  %v5622_v14 = vsel %vm3801_vm3, %v5606_v46, %v10027_v23  ;;  %v14125_v22 = vsel %vm963_vm4, %v16171_v8, %v4675_v36  ;;  %v4689_v58 = vrot.slane %v13763_v20, 4 }
 0x6ac   : > { %v5645_v47 = vpack.c.bf16 %v5622_v14, %v5621_v54  ;;  %v5625_v5 = vpack.c.bf16 %v5128_v6, %v14125_v22  ;;  %v14133_v16 = vsel %vm963_vm4, %v4679_v45, %v4681_v59  ;;  %v14140_v36 = vsel %vm963_vm4, %v4683_v3, %v4685_v18 }
 0x6ad   : > { %v5130_v33 = vsel %vm16648_vm15, %v14133_v16, 0.0  ;;  %v5132_v4 = vsel %vm16649_vm0, %v14140_v36, 0.0  ;;  %v4693_v14 = vrot.slane %v13839_v10, 4  ;;  %v14200_v50 = vsel %vm963_vm4, %v4689_v58, %v4691_v15 }
 0x6ae   : > { %v14120_v0 = vpop.permute.xlu1 %10054  ;;  %5873 = vmatprep.mubr.bf16.mxu1 %v5645_v47  ;;  %v14161_v47 = vsel %vm963_vm4, %v4681_v59, %v4683_v3  ;;  %vm16662_vm15 = vcmp.ge.s32.totalorder %v10957_v39, 4  ;;  %vm16663_vm0 = vcmp.ge.s32.totalorder %v16573_v31, 4 }
 0x6af   : > { %v14116_v62 = vpop.permute.xlu0 %10029  ;;  %5874 = vmatmul.mubr.bf16.vlgmr.msra.gmra.mxu1 %v5644_v19  ;;  %v5631_v8 = vpack.c.bf16 %v5132_v4, %v14161_v47  ;;  %v14176_v59 = vsel %vm963_vm4, %v4691_v15, %v4693_v14  ;;  %v4697_v4 = vrot.slane %v13908_v17, 4 }
 0x6b0   : > { %9268 = vmatpush3.bf16.msra.mxu1 %v13654_v29  ;;  %9271 = vmatprep.mubr.msk.bf16.mxu1 %vm2310_vm5, %v5625_v5  ;;  %v16650_v29 = vrot.slane %v13516_v7, 4  ;;  %v4687_v5 = vrot.slane %v13781_v40, 4  ;;  %v10032_v27 = vunpack.i.h.bf16 %v14116_v62  ;;  %v10031_v9 = vunpack.i.l.bf16 %v14116_v62 }
 0x6b1   : > { %9269 = vmatprep.subr.bf16.mxu1 %v10463_v37  ;;  %v16658_v62 = vrot.slane %v13493_v2, 4 }
 0x6b2   : > { %v14154_v46 = vsel %vm963_vm4, %v16650_v29, %v4679_v45  ;;  %v14170_v45 = vsel %vm963_vm4, %v4687_v5, %v4689_v58  ;;  %v5136_v29 = vsel %vm16652_vm6, %v14176_v59, 0.0  ;;  %v14190_v25 = vsel %vm963_vm4, %v4685_v18, %v4687_v5 }
 0x6b3   : > { %v14142_v23 = vpop.permute.xlu1 %10064  ;;  %v5628_v6 = vpack.c.bf16 %v5130_v33, %v14154_v46  ;;  %v5134_v33 = vsel %vm16651_vm13, %v14170_v45, 0.0  ;;  %v5637_v24 = vpack.c.bf16 %v5136_v29, %v14200_v50  ;;  %v4723_v18 = vsel %vm16655_vm7, %v14092_v43, 0.0 }
 0x6b4   : > { %v14135_v12 = vpop.permute.xlu0 %10039  ;;  %9270 = vmatpush3.bf16.msra.mxu1 %v10463_v37  ;;  %v5634_v30 = vpack.c.bf16 %v5134_v33, %v14190_v25  ;;  %v14228_v33 = vsel %vm963_vm4, %v4697_v4, %v16658_v62  ;;  %v5578_v57 = vsel %vm2310_vm5, %v13592_v55, %v10032_v27  ;;  %vm16664_vm13 = vcmp.ge.s32.totalorder %v16593_v48, 4 }
 0x6b5   : > { %v10042_v58 = vunpack.i.h.bf16 %v14135_v12  ;;  %v10041_v43 = vunpack.i.l.bf16 %v14135_v12  ;;  %16659 = vst [vmem:[#allocation24_spill] sm:$0xff] %v14228_v33  ;;  %vm16665_vm6 = vcmp.ge.s32.totalorder %v16612_v11, 4 }
 0x6b7   : > { %9272 = vmatmul.mubr.msk.bf16.vlgmr.msra.gmra.mxu1 %vm2310_vm5, %v5628_v6 }
 0x6b8   : > { %v14163_v19 = vpop.permute.xlu1 %10074  ;;  %9275 = vmatprep.mubr.msk.bf16.mxu1 %vm2310_vm5, %v5631_v8  ;;  %v4695_v8 = vrot.slane %v13928_v28, 4 }
 0x6b9   : > { %v14156_v54 = vpop.permute.xlu0 %10049 }
 0x6ba   : > { %v14204_v34 = vsel %vm963_vm4, %v4695_v8, %v4697_v4  ;;  %v14218_v15 = vsel %vm963_vm4, %v4693_v14, %v4695_v8  ;;  %v5142_v14 = vsel %vm16661_vm14, %v4720_v35, 0.0  ;;  %v10052_v12 = vunpack.i.h.bf16 %v14156_v54  ;;  %vm16689_vm14 = vmmov %vm16662_vm15 }
 0x6bb   : > { %v10051_v8 = vunpack.i.l.bf16 %v14156_v54  ;;  %v5577_v4 = vsel %vm2310_vm5, %v13516_v7, %v10031_v9  ;;  %v10037_v35 = vunpack.i.h.bf16 %v14087_v63 }
 0x6bc   : > { %v5593_v54 = vsel %vm3784_vm1, %v5577_v4, %v10041_v43  ;;  %v10047_v43 = vunpack.i.h.bf16 %v14104_v49 }
 0x6bd   : > { %v14172_v37 = vpop.permute.xlu0 %10059  ;;  %v14178_v3 = vpop.permute.xlu1 %10084  ;;  %v5609_v63 = vsel %vm3801_vm3, %v5593_v54, %v10051_v8 }
 0x6bf   : > { %9276 = vmatmul.mubr.msk.bf16.gmra.mxu1 %vm2310_vm5, %v5634_v30  ;;  %v5138_v30 = vsel %vm16657_vm12, %v14204_v34, 0.0 }
 0x6c0   : > { %9279 = vmatprep.mubr.msk.bf16.mxu1 %vm2310_vm5, %v5637_v24  ;;  %v5140_v24 = vsel %vm16660_vm8, %v14066_v26, 0.0  ;;  %v5640_v62 = vpack.c.bf16 %v5138_v30, %v14218_v15 }
 0x6c1   : > { %v5643_v26 = vpack.c.bf16 %v5140_v24, %v14228_v33 }
 0x6c2   : > { %v14187_v6 = vpop.permute.xlu0 %10069  ;;  %v10095_v1 = vpop.permute.xlu1 %10094 }
 0x6c3   : > { %v10097_v29 = vunpack.i.h.bf16 %v10095_v1  ;;  %v10096_v53 = vunpack.i.l.bf16 %v10095_v1  ;;  %v10071_v8 = vunpack.i.l.bf16 %v14187_v6 }
 0x6c5   : > { %v5528_v55 = vsel %vm2310_vm5, %v14125_v22, %v10097_v29  ;;  %v5527_v7 = vsel %vm2310_vm5, %v4721_v38, %v10096_v53 }
 0x6c6   : > { %v14214_v42 = vpop.permute.xlu0 %10079 }
 0x6c7   : > { %v10100_v5 = vpop.permute.xlu1 %10099  ;;  %9280 = vmatmul.mubr.msk.bf16.gmra.mxu1 %vm2310_vm5, %v5640_v62  ;;  %v5529_v62 = vsel %vm2310_vm5, %v4723_v18, %v10036_v52  ;;  %v10082_v54 = vunpack.i.h.bf16 %v14214_v42  ;;  %v10066_v18 = vunpack.i.l.bf16 %v14142_v23 }
 0x6c8   : > { %v10102_v60 = vunpack.i.h.bf16 %v10100_v5  ;;  %v10101_v51 = vunpack.i.l.bf16 %v10100_v5  ;;  %v5594_v5 = vsel %vm3784_vm1, %v5578_v57, %v10042_v58  ;;  %v10046_v57 = vunpack.i.l.bf16 %v14104_v49  ;;  %9283 = vmatprep.mubr.msk.bf16.mxu1 %vm2310_vm5, %v5643_v26 }
 0x6c9   : > { %v5610_v33 = vsel %vm3801_vm3, %v5594_v5, %v10052_v12  ;;  %v10057_v12 = vunpack.i.h.bf16 %v14120_v0  ;;  %v10072_v49 = vunpack.i.h.bf16 %v14187_v6  ;;  %v5530_v26 = vsel %vm2310_vm5, %v14154_v46, %v10037_v35 }
 0x6ca   : > { %v5543_v30 = vsel %vm3784_vm1, %v5527_v7, %v10101_v51  ;;  %v5544_v24 = vsel %vm3784_vm1, %v5528_v55, %v10102_v60  ;;  %v10056_v51 = vunpack.i.l.bf16 %v14120_v0  ;;  %v10062_v60 = vunpack.i.h.bf16 %v14172_v37 }
 0x6cb   : > { %v14241_v1 = vpop.permute.xlu0 %10089  ;;  %v5627_v4 = vpack.c.bf16 %v5610_v33, %v5609_v63  ;;  %v10081_v5 = vunpack.i.l.bf16 %v14214_v42  ;;  %v5646_v55 = vpack.c.bf16 %v5142_v14, %v14082_v13  ;;  %v5545_v6 = vsel %vm3784_vm1, %v5529_v62, %v10046_v57 }
 0x6cc   : > { %v5546_v52 = vsel %vm3784_vm1, %v5530_v26, %v10047_v43  ;;  %v5580_v46 = vsel %vm2310_vm5, %v13679_v41, %v10062_v60  ;;  %v10067_v35 = vunpack.i.h.bf16 %v14142_v23  ;;  %v10086_v23 = vunpack.i.l.bf16 %v14178_v3 }
 0x6cd   : > { %v10105_v32 = vpop.permute.xlu1 %10104  ;;  %v5562_v13 = vsel %vm3801_vm3, %v5546_v52, %v10057_v12  ;;  %v5596_v7 = vsel %vm3784_vm1, %v5580_v46, %v10072_v49  ;;  %v10091_v63 = vunpack.i.l.bf16 %v14241_v1 }
 0x6ce   : > { %v10107_v27 = vunpack.i.h.bf16 %v10105_v32  ;;  %v10106_v9 = vunpack.i.l.bf16 %v10105_v32  ;;  %v10061_v32 = vunpack.i.l.bf16 %v14172_v37  ;;  %v4725_v37 = vsel %vm16662_vm15, %v14133_v16, 0.0 }
 0x6cf   : > { %v5561_v16 = vsel %vm3801_vm3, %v5545_v6, %v10056_v51  ;;  %9284 = vmatmul.mubr.msk.bf16.gmra.mxu1 %vm2310_vm5, %v5646_v55  ;;  %v5612_v41 = vsel %vm3801_vm3, %v5596_v7, %v10082_v54  ;;  %v5531_v57 = vsel %vm2310_vm5, %v4725_v37, %v10066_v18  ;;  %v5532_v60 = vsel %vm2310_vm5, %v14161_v47, %v10067_v35 }
 0x6d0   : > { %v5559_v22 = vsel %vm3801_vm3, %v5543_v30, %v10106_v9  ;;  %v5560_v53 = vsel %vm3801_vm3, %v5544_v24, %v10107_v27  ;;  %v14261_v38 = vpop.permute.xlu0 %10114  ;;  %v5579_v42 = vsel %vm2310_vm5, %v13640_v44, %v10061_v32  ;;  %v10077_v27 = vunpack.i.h.bf16 %v14163_v19 }
 0x6d1   : > { %v5623_v58 = vpack.c.bf16 %v5560_v53, %v5559_v22  ;;  %v14267_v29 = vpop.permute.xlu1 %10109  ;;  %v5595_v14 = vsel %vm3784_vm1, %v5579_v42, %v10071_v8  ;;  %v10076_v9 = vunpack.i.l.bf16 %v14163_v19  ;;  %v10087_v30 = vunpack.i.h.bf16 %v14178_v3 }
 0x6d2   : > { %v5611_v44 = vsel %vm3801_vm3, %v5595_v14, %v10081_v5  ;;  %v10092_v24 = vunpack.i.h.bf16 %v14241_v1  ;;  %v10117_v22 = vunpack.i.h.bf16 %v14261_v38  ;;  %v10116_v19 = vunpack.i.l.bf16 %v14261_v38 }
 0x6d3   : > { %5818 = vmatmul.mubr.bf16.vlgmr.msra.gmra.mxu0 %v5623_v58  ;;  %v5626_v51 = vpack.c.bf16 %v5562_v13, %v5561_v16  ;;  %v5630_v12 = vpack.c.bf16 %v5612_v41, %v5611_v44  ;;  %v5547_v3 = vsel %vm3784_vm1, %v5531_v57, %v10076_v9  ;;  %v5548_v1 = vsel %vm3784_vm1, %v5532_v60, %v10077_v27 }
 0x6d4   : > { %5825 = vmatprep.mubr.bf16.mxu0 %v5627_v4  ;;  %v5582_v49 = vsel %vm2310_vm5, %v13781_v40, %v10092_v24  ;;  %v5581_v8 = vsel %vm2310_vm5, %v13717_v56, %v10091_v63  ;;  %v5563_v4 = vsel %vm3801_vm3, %v5547_v3, %v10086_v23  ;;  %v5564_v47 = vsel %vm3801_vm3, %v5548_v1, %v10087_v30 }
 0x6d5   : > { %v14288_v33 = vpop.permute.xlu1 %10119  ;;  %v5597_v26 = vsel %vm3784_vm1, %v5581_v8, %v10116_v19  ;;  %v5598_v54 = vsel %vm3784_vm1, %v5582_v49, %v10117_v22  ;;  %v10112_v40 = vunpack.i.h.bf16 %v14267_v29  ;;  %v10111_v56 = vunpack.i.l.bf16 %v14267_v29 }
 0x6d6   : > { %v10125_v0 = vpop.permute.xlu0 %10124  ;;  %v10122_v55 = vunpack.i.h.bf16 %v14288_v33  ;;  %v10121_v46 = vunpack.i.l.bf16 %v14288_v33  ;;  %v4727_v44 = vsel %vm16663_vm0, %v14140_v36, 0.0  ;;  %vm926_vm15 = vcmp.lt.s32.totalorder %v10957_v39, 4 }
 0x6d7   : > { %v10127_v32 = vunpack.i.h.bf16 %v10125_v0  ;;  %v10126_v58 = vunpack.i.l.bf16 %v10125_v0  ;;  %v5629_v0 = vpack.c.bf16 %v5564_v47, %v5563_v4  ;;  %v5533_v29 = vsel %vm2310_vm5, %v4727_v44, %v10111_v56 }
 0x6d8   : > { %v5534_v41 = vsel %vm2310_vm5, %v14190_v25, %v10112_v40  ;;  %v5549_v63 = vsel %vm3784_vm1, %v5533_v29, %v10121_v46  ;;  %vm928_vm0 = vcmp.lt.s32.totalorder %v16573_v31, 4 }
 0x6d9   : > { %v10130_v53 = vpop.permute.xlu1 %10129  ;;  %v5613_v5 = vsel %vm3801_vm3, %v5597_v26, %v10126_v58  ;;  %v5614_v37 = vsel %vm3801_vm3, %v5598_v54, %v10127_v32 }
 0x6da   : > { %v5633_v13 = vpack.c.bf16 %v5614_v37, %v5613_v5  ;;  %v10132_v14 = vunpack.i.h.bf16 %v10130_v53  ;;  %v10131_v7 = vunpack.i.l.bf16 %v10130_v53 }
 0x6db   : > { %v10135_v43 = vpop.permute.xlu0 %10134  ;;  %5826 = vmatmul.mubr.bf16.gmra.mxu0 %v5626_v51  ;;  %v4729_v51 = vsel %vm16664_vm13, %v14170_v45, 0.0  ;;  %vm16690_vm13 = vcmp.ge.s32.totalorder %v16573_v31, 4 }
 0x6dc   : > { %5833 = vmatprep.mubr.bf16.mxu0 %v5630_v12  ;;  %v10137_v6 = vunpack.i.h.bf16 %v10135_v43  ;;  %v10136_v52 = vunpack.i.l.bf16 %v10135_v43  ;;  %v5550_v43 = vsel %vm3784_vm1, %v5534_v41, %v10122_v55  ;;  %v5565_v22 = vsel %vm3801_vm3, %v5549_v63, %v10131_v7 }
 0x6dd   : > { %v10140_v62 = vpop.permute.xlu1 %10139  ;;  %v5566_v25 = vsel %vm3801_vm3, %v5550_v43, %v10132_v14  ;;  %v4731_v41 = vsel %vm16665_vm6, %v14176_v59, 0.0  ;;  %vm16691_vm6 = vcmp.ge.s32.totalorder %v16593_v48, 4 }
 0x6de   : > { %v5584_v33 = vsel %vm2310_vm5, %v13858_v61, %v10137_v6  ;;  %v5583_v30 = vsel %vm2310_vm5, %v13763_v20, %v10136_v52  ;;  %v10142_v20 = vunpack.i.h.bf16 %v10140_v62  ;;  %v10141_v53 = vunpack.i.l.bf16 %v10140_v62 }
 0x6df   : > { %v10145_v38 = vpop.permute.xlu0 %10144  ;;  %v5632_v49 = vpack.c.bf16 %v5566_v25, %v5565_v22 }
 0x6e0   : > { %v10147_v42 = vunpack.i.h.bf16 %v10145_v38  ;;  %v10146_v16 = vunpack.i.l.bf16 %v10145_v38  ;;  %v5535_v54 = vsel %vm2310_vm5, %v4729_v51, %v10141_v53  ;;  %v5536_v62 = vsel %vm2310_vm5, %v14200_v50, %v10142_v20 }
 0x6e1   : > { %v10150_v35 = vpop.permute.xlu1 %10149 }
 0x6e2   : > { %v5599_v36 = vsel %vm3784_vm1, %v5583_v30, %v10146_v16  ;;  %v5600_v57 = vsel %vm3784_vm1, %v5584_v33, %v10147_v42  ;;  %v10152_v60 = vunpack.i.h.bf16 %v10150_v35  ;;  %v10151_v32 = vunpack.i.l.bf16 %v10150_v35 }
 0x6e3   : > { %v10155_v18 = vpop.permute.xlu0 %10154  ;;  %5834 = vmatmul.mubr.bf16.gmra.mxu0 %v5629_v0 }
 0x6e4   : > { %v10157_v27 = vunpack.i.h.bf16 %v10155_v18  ;;  %v10156_v9 = vunpack.i.l.bf16 %v10155_v18  ;;  %5841 = vmatprep.mubr.bf16.mxu0 %v5633_v13  ;;  %v5551_v5 = vsel %vm3784_vm1, %v5535_v54, %v10151_v32  ;;  %v5552_v37 = vsel %vm3784_vm1, %v5536_v62, %v10152_v60  ;;  %v16666_v54 = vld [vmem:[#allocation24_spill] sm:$0xff] }
 0x6e5   : > { %v10160_v24 = vpop.permute.xlu1 %10159 }
 0x6e6   : > { %v5615_v61 = vsel %vm3801_vm3, %v5599_v36, %v10156_v9  ;;  %v5616_v19 = vsel %vm3801_vm3, %v5600_v57, %v10157_v27  ;;  %v10162_v38 = vunpack.i.h.bf16 %v10160_v24  ;;  %v10161_v4 = vunpack.i.l.bf16 %v10160_v24 }
 0x6e7   : > { %v10165_v23 = vpop.permute.xlu0 %10164  ;;  %v5636_v8 = vpack.c.bf16 %v5616_v19, %v5615_v61 }
 0x6e8   : > { %v10167_v12 = vunpack.i.h.bf16 %v10165_v23  ;;  %v10166_v3 = vunpack.i.l.bf16 %v10165_v23  ;;  %v5567_v52 = vsel %vm3801_vm3, %v5551_v5, %v10161_v4  ;;  %v5568_v50 = vsel %vm3801_vm3, %v5552_v37, %v10162_v38 }
 0x6e9   : > { %v10170_v1 = vpop.permute.xlu1 %10169  ;;  %v5635_v9 = vpack.c.bf16 %v5568_v50, %v5567_v52 }
 0x6ea   : > { %v5586_v40 = vsel %vm2310_vm5, %v13928_v28, %v10167_v12  ;;  %v5585_v0 = vsel %vm2310_vm5, %v13839_v10, %v10166_v3  ;;  %v10172_v35 = vunpack.i.h.bf16 %v10170_v1  ;;  %v10171_v28 = vunpack.i.l.bf16 %v10170_v1 }
 0x6eb   : > { %v10175_v58 = vpop.permute.xlu0 %10174  ;;  %5842 = vmatmul.mubr.bf16.gmra.mxu0 %v5632_v49 }
 0x6ec   : > { %v10177_v47 = vunpack.i.h.bf16 %v10175_v58  ;;  %v10176_v26 = vunpack.i.l.bf16 %v10175_v58  ;;  %5849 = vmatprep.mubr.bf16.mxu0 %v5636_v8  ;;  %v5537_v33 = vsel %vm2310_vm5, %v4731_v41, %v10171_v28  ;;  %v5538_v30 = vsel %vm2310_vm5, %v14218_v15, %v10172_v35 }
 0x6ed   : > { %v10180_v56 = vpop.permute.xlu1 %10179 }
 0x6ee   : > { %v5601_v18 = vsel %vm3784_vm1, %v5585_v0, %v10176_v26  ;;  %v5602_v46 = vsel %vm3784_vm1, %v5586_v40, %v10177_v47  ;;  %v10182_v10 = vunpack.i.h.bf16 %v10180_v56  ;;  %v10181_v7 = vunpack.i.l.bf16 %v10180_v56 }
 0x6ef   : > { %v10185_v45 = vpop.permute.xlu0 %10184 }
 0x6f0   : > { %v10187_v55 = vunpack.i.h.bf16 %v10185_v45  ;;  %v10186_v6 = vunpack.i.l.bf16 %v10185_v45  ;;  %v5553_v36 = vsel %vm3784_vm1, %v5537_v33, %v10181_v7  ;;  %v5554_v57 = vsel %vm3784_vm1, %v5538_v30, %v10182_v10  ;;  %v16667_v33 = vld [vmem:[#allocation18_spill] sm:$0xff] }
 0x6f1   : > { %v10190_v27 = vpop.permute.xlu1 %10189 }
 0x6f2   : > { %v5617_v42 = vsel %vm3801_vm3, %v5601_v18, %v10186_v6  ;;  %v5618_v16 = vsel %vm3801_vm3, %v5602_v46, %v10187_v55  ;;  %v10192_v44 = vunpack.i.h.bf16 %v10190_v27  ;;  %v10191_v29 = vunpack.i.l.bf16 %v10190_v27  ;;  %v8936_v27 = vld [vmem:[%s11763_s20 + $0x10] sm:$0xff] }
 0x6f3   : > { %v10195_v13 = vpop.permute.xlu0 %10194  ;;  %v5639_v14 = vpack.c.bf16 %v5618_v16, %v5617_v42  ;;  %5850 = vmatmul.mubr.bf16.gmra.mxu0 %v5635_v9  ;;  %v6014_v41 = vcombine.high %v8936_v27, %v8936_v27  ;;  %v6021_v30 = vrot.slane %v8936_v27, %v16667_v33 }
 0x6f4   : > { %v10197_v23 = vunpack.i.h.bf16 %v10195_v13  ;;  %v10196_v63 = vunpack.i.l.bf16 %v10195_v13  ;;  %v5569_v61 = vsel %vm3801_vm3, %v5553_v36, %v10191_v29  ;;  %v5570_v59 = vsel %vm3801_vm3, %v5554_v57, %v10192_v44  ;;  %v14412_v36 = vld [vmem:[%s15964_s9 + $0x1] ss:$0 sm:$0xff] }
 0x6f5   : > { %5857 = vmatprep.mubr.bf16.mxu0 %v5639_v14  ;;  %v10200_v43 = vpop.permute.xlu1 %10199  ;;  %v5638_v32 = vpack.c.bf16 %v5570_v59, %v5569_v61  ;;  %v6037_v59 = vrot.slane %v6021_v30, %v16667_v33 }
 0x6f6   : > { %v5588_v19 = vsel %vm2310_vm5, %v13493_v2, %v10197_v23  ;;  %v5587_v15 = vsel %vm2310_vm5, %v13908_v17, %v10196_v63  ;;  %v10202_v58 = vunpack.i.h.bf16 %v10200_v43  ;;  %v10201_v12 = vunpack.i.l.bf16 %v10200_v43 }
 0x6f7   : > { %v10205_v24 = vpop.permute.xlu0 %10204  ;;  %v4733_v17 = vsel %vm790_vm9, %v14204_v34, 0.0 }
 0x6f8   : > { %v10207_v22 = vunpack.i.h.bf16 %v10205_v24  ;;  %v10206_v25 = vunpack.i.l.bf16 %v10205_v24  ;;  %v5539_v26 = vsel %vm2310_vm5, %v4733_v17, %v10201_v12  ;;  %v5540_v62 = vsel %vm2310_vm5, %v16666_v54, %v10202_v58 }
 0x6f9   : > { %v10210_v53 = vpop.permute.xlu1 %10209 }
 0x6fa   : > { %v5603_v3 = vsel %vm3784_vm1, %v5587_v15, %v10206_v25  ;;  %v5604_v1 = vsel %vm3784_vm1, %v5588_v19, %v10207_v22  ;;  %v10212_v49 = vunpack.i.h.bf16 %v10210_v53  ;;  %v10211_v8 = vunpack.i.l.bf16 %v10210_v53 }
 0x6fb   : > { %v10215_v20 = vpop.permute.xlu0 %10214  ;;  %5858 = vmatmul.mubr.bf16.gmra.mxu0 %v5638_v32  ;;  %v14417_v25 = vrot.slane %v6014_v41, %v16667_v33 }
 0x6fc   : > { %v10217_v51 = vunpack.i.h.bf16 %v10215_v20  ;;  %v10216_v60 = vunpack.i.l.bf16 %v10215_v20  ;;  %v5555_v37 = vsel %vm3784_vm1, %v5539_v26, %v10211_v8  ;;  %v5556_v40 = vsel %vm3784_vm1, %v5540_v62, %v10212_v49 }
 0x6fd   : > { %v10220_v47 = vpop.permute.xlu1 %10219  ;;  %v6030_v58 = vcombine.high %v14417_v25, %v14417_v25  ;;  %v6029_v8 = vcombine.high %v6021_v30, %v6021_v30  ;;  %v16671_v30 = vld [vmem:[#allocation31_spill] sm:$0xff] }
 0x6fe   : > { %v5619_v38 = vsel %vm3801_vm3, %v5603_v3, %v10216_v60  ;;  %v5620_v2 = vsel %vm3801_vm3, %v5604_v1, %v10217_v51  ;;  %v10222_v45 = vunpack.i.h.bf16 %v10220_v47  ;;  %v10221_v5 = vunpack.i.l.bf16 %v10220_v47  ;;  %v16668_v1 = vld [vmem:[#allocation19_spill] sm:$0xff]  ;;  %v16669_v47 = vld [vmem:[#allocation36_spill] sm:$0xff] }
 0x6ff   : > { %v5642_v4 = vpack.c.bf16 %v5620_v2, %v5619_v38  ;;  %v6066_v49 = vrot.slane %v6037_v59, %v16668_v1  ;;  %v14432_v62 = vrot.slane %v6030_v58, %v16667_v33 }
 0x700   : > { %v5571_v0 = vsel %vm3801_vm3, %v5555_v37, %v10221_v5  ;;  %v5572_v56 = vsel %vm3801_vm3, %v5556_v40, %v10222_v45  ;;  %v14439_v40 = vrot.slane %v6029_v8, %v16667_v33 }
 0x701   : > { %5865 = vmatprep.mubr.bf16.mxu0 %v5642_v4  ;;  %v5641_v55 = vpack.c.bf16 %v5572_v56, %v5571_v0 }
 0x703   : > { %5866 = vmatmul.mubr.bf16.gmra.mxu0 %v5641_v55 }
 0x76f   : > { %v9169_v34 = vpop.f32.mrf.mxu1 }
 0x771   : > { %v9170_v6 = vpop.f32.mrf.mxu1 }
 0x772   : > { %v14389_v52 = vadd.f32 %v9170_v6, %v9169_v34 }
 0x773   : > { %v9172_v50 = vpop.f32.mrf.mxu1 }
 0x775   : > { %v9173_v18 = vpop.f32.mrf.mxu1 }
 0x776   : > { %v9174_v43 = vadd.f32 %v9173_v18, %v9172_v50  ;;  %v16670_v50 = vld [vmem:[#allocation40_spill] sm:$0xff] }
 0x777   : > { %v9273_v46 = vpop.f32.mrf.mxu1 }
 0x778   : > { %v5879_v60 = vadd.f32 %v9174_v43, %v14412_v36 }
 0x779   : > { %v5916_v42 = vpop.f32.mrf.mxu1 }
 0x77b   : > { %v9274_v16 = vpop.f32.mrf.mxu1 }
 0x77d   : > { %v5919_v35 = vpop.f32.mrf.mxu1 }
 0x77f   : > { %v14391_v28 = vpop.f32.mrf.mxu1 }
 0x781   : > { %v14393_v13 = vpop.f32.mrf.mxu1 }
 0x783   : > { %v14395_v14 = vpop.f32.mrf.mxu1 }
 0x785   : > { %v14397_v10 = vpop.f32.mrf.mxu1 }
 0x787   : > { %v14399_v7 = vpop.f32.mrf.mxu1 }
 0x789   : > { %v14402_v9 = vpop.f32.mrf.mxu1 }
 0x78b   : > { %v14404_v29 = vpop.f32.mrf.mxu1 }
 0x78d   : > { %v14407_v24 = vpop.f32.mrf.mxu1 }
 0x78f   : > { %v14414_v22 = vpop.f32.mrf.mxu1 }
 0x791   : > { %v14421_v20 = vpop.f32.mrf.mxu1 }
 0x793   : > { %v9127_v44 = vpop.f32.mrf.mxu0  ;;  %v9286_v32 = vpop.f32.mrf.mxu1 }
 0x794   : > { %v5976_v38 = vadd.f32 %v9286_v32, %v5879_v60 }
 0x795   : > { %v9128_v23 = vpop.f32.mrf.mxu0 }
 0x796   : > { %v9129_v63 = vadd.f32 %v9128_v23, %v9127_v44  ;;  %v5994_v0 = vmax.f32 %v5976_v38, 0.0 }
 0x797   : > { %v9130_v57 = vpop.f32.mrf.mxu0 }
 0x798   : > { %v5820_v61 = vadd.f32 %v9129_v63, %v14412_v36  ;;  %v14455_v23 = vadd.f32 %v5994_v0, %v16671_v30 }
 0x799   : > { %v9131_v19 = vpop.f32.mrf.mxu0 }
 0x79a   : > { %v5917_v15 = vadd.f32 %v5916_v42, %v5820_v61  ;;  %v9132_v53 = vadd.f32 %v9131_v19, %v9130_v57  ;;  %v16672_v19 = vld [vmem:[#allocation39_spill] sm:$0xff] }
 0x79b   : > { %v9133_v51 = vpop.f32.mrf.mxu0 }
 0x79c   : > { %v5979_v12 = vmax.f32 %v5917_v15, 0.0  ;;  %v5823_v3 = vadd.f32 %v9132_v53, %v14412_v36 }
 0x79d   : > { %v9134_v2 = vpop.f32.mrf.mxu0 }
 0x79e   : > { %v5920_v4 = vadd.f32 %v5919_v35, %v5823_v3  ;;  %v9135_v17 = vadd.f32 %v9134_v2, %v9133_v51  ;;  %v14429_v26 = vadd.f32 %v5979_v12, %v16669_v47  ;;  %v6062_v35 = vcombine.high %v14432_v62, %v14432_v62  ;;  %v16673_v2 = vld [vmem:[#allocation20_spill] sm:$0xff] }
 0x79f   : > { %v9136_v54 = vpop.f32.mrf.mxu0  ;;  %v6059_v12 = vcombine.high %v6037_v59, %v6037_v59 }
 0x7a0   : > { %v5980_v45 = vmax.f32 %v5920_v4, 0.0  ;;  %v5828_v5 = vadd.f32 %v9135_v17, %v14412_v36  ;;  %v14436_v37 = vadd.f32 %v6066_v49, %v14429_v26  ;;  %v14463_v51 = vrot.slane %v6062_v35, %v16668_v1 }
 0x7a1   : > { %v9137_v56 = vpop.f32.mrf.mxu0 }
 0x7a2   : > { %v5925_v55 = vadd.f32 %v9273_v46, %v5828_v5  ;;  %v9138_v34 = vadd.f32 %v9137_v56, %v9136_v54  ;;  %v6119_v6 = vsel %vm2310_vm5, %v14436_v37, 0.0  ;;  %v14444_v18 = vadd.f32 %v5980_v45, %v16670_v50 }
 0x7a3   : > { %v9139_v42 = vpop.f32.mrf.mxu0  ;;  %6120 = vadd.xlane.f32.xlu0 %v6119_v6  ;;  %v6070_v46 = vrot.slane %v14439_v40, %v16668_v1  ;;  %v14471_v3 = vadd.f32 %v14463_v51, %v14455_v23  ;;  %v6074_v45 = vrot.slane %v6059_v12, %v16668_v1 }
 0x7a4   : > { %v5981_v27 = vmax.f32 %v5925_v55, 0.0  ;;  %v5831_v44 = vadd.f32 %v9138_v34, %v14412_v36  ;;  %v14450_v41 = vadd.f32 %v6066_v49, %v14444_v18  ;;  %v16674_v34 = vld [vmem:[#allocation21_spill] sm:$0xff] }
 0x7a5   : > { %v9140_v63 = vpop.f32.mrf.mxu0 }
 0x7a6   : > { %v5928_v43 = vadd.f32 %v9274_v16, %v5831_v44  ;;  %v9141_v57 = vadd.f32 %v9140_v63, %v9139_v42  ;;  %v6122_v61 = vsel %vm2310_vm5, %v14450_v41, 0.0  ;;  %v14460_v15 = vadd.f32 %v5981_v27, %v16672_v19 }
 0x7a7   : > { %v9142_v53 = vpop.f32.mrf.mxu0  ;;  %6123 = vadd.xlane.f32.xlu1 %v6122_v61  ;;  %v6061_v44 = vcombine.high %v14439_v40, %v14439_v40 }
 0x7a8   : > { %v5982_v60 = vmax.f32 %v5928_v43, 0.0  ;;  %v5836_v32 = vadd.f32 %v9141_v57, %v14412_v36  ;;  %v14467_v58 = vadd.f32 %v6070_v46, %v14460_v15  ;;  %v16675_v43 = vld [vmem:[#allocation23_spill] sm:$0xff] }
 0x7a9   : > { %v9143_v16 = vpop.f32.mrf.mxu0  ;;  %v6078_v40 = vrot.slane %v6061_v44, %v16668_v1 }
 0x7aa   : > { %v5933_v49 = vadd.f32 %v14393_v13, %v5836_v32  ;;  %v9144_v8 = vadd.f32 %v9143_v16, %v9142_v53  ;;  %v6125_v38 = vsel %vm2310_vm5, %v14467_v58, 0.0  ;;  %v14477_v4 = vadd.f32 %v5982_v60, %v16673_v2 }
 0x7ab   : > { %v9145_v17 = vpop.f32.mrf.mxu0  ;;  %6126 = vadd.xlane.f32.xlu0 %v6125_v38  ;;  %v6164_v13 = vsel %vm2310_vm5, %v14471_v3, 0.0 }
 0x7ac   : > { %v5983_v47 = vmax.f32 %v5933_v49, 0.0  ;;  %v5839_v54 = vadd.f32 %v9144_v8, %v14412_v36  ;;  %v14481_v59 = vadd.f32 %v6070_v46, %v14477_v4  ;;  %v16676_v49 = vld [vmem:[#allocation35_spill] sm:$0xff] }
 0x7ad   : > { %v9146_v5 = vpop.f32.mrf.mxu0 }
 0x7ae   : > { %v5936_v0 = vadd.f32 %v14397_v10, %v5839_v54  ;;  %v9147_v56 = vadd.f32 %v9146_v5, %v9145_v17  ;;  %v6128_v55 = vsel %vm2310_vm5, %v14481_v59, 0.0  ;;  %v14490_v6 = vadd.f32 %v5983_v47, %v16674_v34 }
 0x7af   : > { %v9148_v50 = vpop.f32.mrf.mxu0  ;;  %6129 = vadd.xlane.f32.xlu1 %v6128_v55  ;;  %6165 = vadd.xlane.f32.xlu0 %v6164_v13  ;;  %v6044_v54 = vrot.slane %v14417_v25, %v16667_v33 }
 0x7b0   : > { %v5984_v42 = vmax.f32 %v5936_v0, 0.0  ;;  %v5844_v35 = vadd.f32 %v9147_v56, %v14412_v36  ;;  %v14494_v27 = vadd.f32 %v6074_v45, %v14490_v6  ;;  %v16677_v0 = vld [vmem:[#allocation29_spill] sm:$0xff] }
 0x7b1   : > { %v9149_v10 = vpop.f32.mrf.mxu0  ;;  %v6082_v25 = vrot.slane %v6044_v54, %v16668_v1 }
 0x7b2   : > { %v5941_v46 = vadd.f32 %v14391_v28, %v5844_v35  ;;  %v9150_v30 = vadd.f32 %v9149_v10, %v9148_v50  ;;  %v6131_v63 = vsel %vm2310_vm5, %v14494_v27, 0.0  ;;  %v14502_v57 = vadd.f32 %v5984_v42, %v16675_v43 }
 0x7b3   : > { %v9151_v61 = vpop.f32.mrf.mxu0  ;;  %6132 = vadd.xlane.f32.xlu0 %v6131_v63 }
 0x7b4   : > { %v5985_v19 = vmax.f32 %v5941_v46, 0.0  ;;  %v5847_v53 = vadd.f32 %v9150_v30, %v14412_v36  ;;  %v14506_v60 = vadd.f32 %v6074_v45, %v14502_v57  ;;  %v16678_v46 = vld [vmem:[#allocation28_spill] sm:$0xff] }
 0x7b5   : > { %v9152_v32 = vpop.f32.mrf.mxu0 }
 0x7b6   : > { %v5944_v28 = vadd.f32 %v14395_v14, %v5847_v53  ;;  %v9153_v12 = vadd.f32 %v9152_v32, %v9151_v61  ;;  %v6134_v16 = vsel %vm2310_vm5, %v14506_v60, 0.0  ;;  %v14513_v8 = vadd.f32 %v5985_v19, %v16676_v49 }
 0x7b7   : > { %v9154_v38 = vpop.f32.mrf.mxu0  ;;  %6135 = vadd.xlane.f32.xlu1 %v6134_v16  ;;  %v5876_v16 = vadd.f32 %v14389_v52, %v14412_v36 }
 0x7b8   : > { %v5986_v2 = vmax.f32 %v5944_v28, 0.0  ;;  %v5852_v17 = vadd.f32 %v9153_v12, %v14412_v36  ;;  %v14517_v47 = vadd.f32 %v6078_v40, %v14513_v8  ;;  %v16679_v28 = vld [vmem:[#allocation30_spill] sm:$0xff] }
 0x7b9   : > { %v9155_v45 = vpop.f32.mrf.mxu0 }
 0x7ba   : > { %v5949_v14 = vadd.f32 %v14402_v9, %v5852_v17  ;;  %v9156_v5 = vadd.f32 %v9155_v45, %v9154_v38  ;;  %v6137_v13 = vsel %vm2310_vm5, %v14517_v47, 0.0  ;;  %v14525_v56 = vadd.f32 %v5986_v2, %v16677_v0  ;;  %v16680_v0 = vld [vmem:[#allocation22_spill] sm:$0xff] }
 0x7bb   : > { %v9157_v55 = vpop.f32.mrf.mxu0  ;;  %6138 = vadd.xlane.f32.xlu0 %v6137_v13  ;;  %v5973_v45 = vadd.f32 %v14414_v22, %v5876_v16  ;;  %v16683_v16 = vld [vmem:[#allocation25_spill] sm:$0xff] }
 0x7bc   : > { %v5987_v34 = vmax.f32 %v5949_v14, 0.0  ;;  %v5855_v50 = vadd.f32 %v9156_v5, %v14412_v36  ;;  %v14529_v42 = vadd.f32 %v6078_v40, %v14525_v56 }
 0x7bd   : > { %v9158_v35 = vpop.f32.mrf.mxu0  ;;  %v5993_v22 = vmax.f32 %v5973_v45, 0.0 }
 0x7be   : > { %v5952_v9 = vadd.f32 %v14407_v24, %v5855_v50  ;;  %v9159_v44 = vadd.f32 %v9158_v35, %v9157_v55  ;;  %v6140_v10 = vsel %vm2310_vm5, %v14529_v42, 0.0  ;;  %v14536_v30 = vadd.f32 %v5987_v34, %v16678_v46  ;;  %v16681_v46 = vld [vmem:[#allocation32_spill] sm:$0xff] }
 0x7bf   : > { %v9160_v63 = vpop.f32.mrf.mxu0  ;;  %6141 = vadd.xlane.f32.xlu1 %v6140_v10 }
 0x7c0   : > { %v5988_v43 = vmax.f32 %v5952_v9, 0.0  ;;  %v5860_v61 = vadd.f32 %v9159_v44, %v14412_v36  ;;  %v14540_v19 = vadd.f32 %v6082_v25, %v14536_v30 }
 0x7c1   : > { %v9161_v53 = vpop.f32.mrf.mxu0 }
 0x7c2   : > { %v5957_v40 = vadd.f32 %v14399_v7, %v5860_v61  ;;  %v9162_v32 = vadd.f32 %v9161_v53, %v9160_v63  ;;  %v6143_v24 = vsel %vm2310_vm5, %v14540_v19, 0.0  ;;  %v14546_v12 = vadd.f32 %v5988_v43, %v16679_v28 }
 0x7c3   : > { %v9163_v49 = vpop.f32.mrf.mxu0  ;;  %6144 = vadd.xlane.f32.xlu0 %v6143_v24  ;;  %v6086_v7 = vrot.slane %v14432_v62, %v16668_v1  ;;  %v6060_v62 = vcombine.high %v6044_v54, %v6044_v54 }
 0x7c4   : > { %v5989_v38 = vmax.f32 %v5957_v40, 0.0  ;;  %v5863_v2 = vadd.f32 %v9162_v32, %v14412_v36  ;;  %v14552_v17 = vadd.f32 %v6082_v25, %v14546_v12  ;;  %v5967_v40 = vpop.f32.mrf.mxu1  ;;  %v16682_v32 = vld [vmem:[#allocation38_spill] sm:$0xff] }
 0x7c5   : > { %v9164_v14 = vpop.f32.mrf.mxu0  ;;  %v6090_v54 = vrot.slane %v6060_v62, %v16668_v1  ;;  %v14579_v24 = vadd.f32 %v5993_v22, %v16682_v32 }
 0x7c6   : > { %v5960_v5 = vadd.f32 %v14404_v29, %v5863_v2  ;;  %v9165_v13 = vadd.f32 %v9164_v14, %v9163_v49  ;;  %v6146_v52 = vsel %vm2310_vm5, %v14552_v17, 0.0  ;;  %v14561_v55 = vadd.f32 %v5989_v38, %v16680_v0 }
 0x7c7   : > { %v9166_v34 = vpop.f32.mrf.mxu0  ;;  %6147 = vadd.xlane.f32.xlu1 %v6146_v52  ;;  %v14596_v14 = vadd.f32 %v14463_v51, %v14579_v24 }
 0x7c8   : > { %v5990_v50 = vmax.f32 %v5960_v5, 0.0  ;;  %v5868_v25 = vadd.f32 %v9165_v13, %v14412_v36  ;;  %v14565_v35 = vadd.f32 %v6086_v7, %v14561_v55 }
 0x7c9   : > { %v9167_v9 = vpop.f32.mrf.mxu0  ;;  %v6161_v52 = vsel %vm2310_vm5, %v14596_v14, 0.0 }
 0x7ca   : > { %v5965_v29 = vadd.f32 %v14421_v20, %v5868_v25  ;;  %v9168_v44 = vadd.f32 %v9167_v9, %v9166_v34  ;;  %v6149_v10 = vsel %vm2310_vm5, %v14565_v35, 0.0  ;;  %v14571_v63 = vadd.f32 %v5990_v50, %v16681_v46 }
 0x7cb   : > { %6150 = vadd.xlane.f32.xlu0 %v6149_v10 }
 0x7cc   : > { %v5991_v43 = vmax.f32 %v5965_v29, 0.0  ;;  %v5871_v61 = vadd.f32 %v9168_v44, %v14412_v36  ;;  %v14575_v53 = vadd.f32 %v6086_v7, %v14571_v63  ;;  %v16684_v7 = vld [vmem:[#allocation37_spill] sm:$0xff] }
 0x7ce   : > { %v5968_v20 = vadd.f32 %v5967_v40, %v5871_v61  ;;  %v6152_v28 = vsel %vm2310_vm5, %v14575_v53, 0.0  ;;  %v14584_v49 = vadd.f32 %v5991_v43, %v16683_v16 }
 0x7cf   : > { %6153 = vadd.xlane.f32.xlu1 %v6152_v28 }
 0x7d0   : > { %v5992_v38 = vmax.f32 %v5968_v20, 0.0  ;;  %v14587_v36 = vadd.f32 %v6090_v54, %v14584_v49 }
 0x7d2   : > { %v6155_v2 = vsel %vm2310_vm5, %v14587_v36, 0.0  ;;  %v14592_v45 = vadd.f32 %v5992_v38, %v16684_v7 }
 0x7d3   : > { %6156 = vadd.xlane.f32.xlu0 %v6155_v2 }
 0x7d4   : > { %v14599_v5 = vadd.f32 %v6090_v54, %v14592_v45 }
 0x7d6   : > { %v6158_v13 = vsel %vm2310_vm5, %v14599_v5, 0.0 }
 0x7d7   : > { %6159 = vadd.xlane.f32.xlu1 %v6158_v13  ;;  %6162 = vadd.xlane.f32.xlu0 %v6161_v52 }
 0x82c   : > { %v6121_v0 = vpop.xlane.xlu0 %6120 }
 0x82d   : > { %v6167_v34 = vmul.f32 0.03125, %v6121_v0 }
 0x82f   : > { %v14606_v50 = vsub.f32 %v14436_v37, %v6167_v34 }
 0x830   : > { %v6124_v25 = vpop.xlane.xlu1 %6123 }
 0x831   : > { %v6168_v51 = vmul.f32 0.03125, %v6124_v25  ;;  %v6199_v62 = vmul.f32 %v14606_v50, %v14606_v50 }
 0x833   : > { %v14611_v22 = vsub.f32 %v14450_v41, %v6168_v51  ;;  %v6215_v9 = vsel %vm2310_vm5, %v6199_v62, 0.0 }
 0x834   : > { %6216 = vadd.xlane.f32.xlu1 %v6215_v9  ;;  %v6127_v29 = vpop.xlane.xlu0 %6126 }
 0x835   : > { %v6169_v44 = vmul.f32 0.03125, %v6127_v29  ;;  %v6200_v10 = vmul.f32 %v14611_v22, %v14611_v22 }
 0x837   : > { %v14617_v46 = vsub.f32 %v14467_v58, %v6169_v44  ;;  %v6218_v37 = vsel %vm2310_vm5, %v6200_v10, 0.0 }
 0x838   : > { %v6130_v43 = vpop.xlane.xlu1 %6129  ;;  %6219 = vadd.xlane.f32.xlu0 %v6218_v37  ;;  %v6166_v61 = vpop.xlane.xlu0 %6165 }
 0x839   : > { %v6170_v54 = vmul.f32 0.03125, %v6130_v43  ;;  %v6182_v40 = vmul.f32 0.03125, %v6166_v61  ;;  %v6201_v41 = vmul.f32 %v14617_v46, %v14617_v46 }
 0x83b   : > { %v14623_v32 = vsub.f32 %v14481_v59, %v6170_v54  ;;  %v14626_v20 = vsub.f32 %v14471_v3, %v6182_v40  ;;  %v6221_v28 = vsel %vm2310_vm5, %v6201_v41, 0.0 }
 0x83c   : > { %6222 = vadd.xlane.f32.xlu1 %v6221_v28  ;;  %v6133_v58 = vpop.xlane.xlu0 %6132 }
 0x83d   : > { %v6171_v16 = vmul.f32 0.03125, %v6133_v58  ;;  %v6202_v38 = vmul.f32 %v14623_v32, %v14623_v32  ;;  %v6214_v2 = vmul.f32 %v14626_v20, %v14626_v20 }
 0x83f   : > { %v14634_v7 = vsub.f32 %v14494_v27, %v6171_v16  ;;  %v6224_v59 = vsel %vm2310_vm5, %v6202_v38, 0.0  ;;  %v6260_v13 = vsel %vm2310_vm5, %v6214_v2, 0.0 }
 0x840   : > { %v6136_v3 = vpop.xlane.xlu1 %6135  ;;  %6225 = vadd.xlane.f32.xlu1 %v6224_v59  ;;  %6261 = vadd.xlane.f32.xlu0 %v6260_v13 }
 0x841   : > { %v6172_v52 = vmul.f32 0.03125, %v6136_v3  ;;  %v6203_v0 = vmul.f32 %v14634_v7, %v14634_v7 }
 0x843   : > { %v14641_v34 = vsub.f32 %v14506_v60, %v6172_v52  ;;  %v6227_v25 = vsel %vm2310_vm5, %v6203_v0, 0.0 }
 0x844   : > { %6228 = vadd.xlane.f32.xlu0 %v6227_v25  ;;  %v6139_v51 = vpop.xlane.xlu0 %6138 }
 0x845   : > { %v6173_v27 = vmul.f32 0.03125, %v6139_v51  ;;  %v6204_v62 = vmul.f32 %v14641_v34, %v14641_v34 }
 0x847   : > { %v14647_v9 = vsub.f32 %v14517_v47, %v6173_v27  ;;  %v6230_v29 = vsel %vm2310_vm5, %v6204_v62, 0.0 }
 0x848   : > { %v6142_v44 = vpop.xlane.xlu1 %6141  ;;  %6231 = vadd.xlane.f32.xlu1 %v6230_v29 }
 0x849   : > { %v6174_v10 = vmul.f32 0.03125, %v6142_v44  ;;  %v6205_v60 = vmul.f32 %v14647_v9, %v14647_v9 }
 0x84b   : > { %v14653_v37 = vsub.f32 %v14529_v42, %v6174_v10  ;;  %v6233_v43 = vsel %vm2310_vm5, %v6205_v60, 0.0 }
 0x84c   : > { %6234 = vadd.xlane.f32.xlu0 %v6233_v43  ;;  %v6145_v61 = vpop.xlane.xlu0 %6144 }
 0x84d   : > { %v6175_v54 = vmul.f32 0.03125, %v6145_v61  ;;  %v6206_v47 = vmul.f32 %v14653_v37, %v14653_v37 }
 0x84f   : > { %v14659_v40 = vsub.f32 %v14540_v19, %v6175_v54  ;;  %v6236_v41 = vsel %vm2310_vm5, %v6206_v47, 0.0 }
 0x850   : > { %v6148_v28 = vpop.xlane.xlu1 %6147  ;;  %6237 = vadd.xlane.f32.xlu1 %v6236_v41 }
 0x851   : > { %v6176_v58 = vmul.f32 0.03125, %v6148_v28  ;;  %v6207_v42 = vmul.f32 %v14659_v40, %v14659_v40 }
 0x853   : > { %v14665_v16 = vsub.f32 %v14552_v17, %v6176_v58  ;;  %v6239_v38 = vsel %vm2310_vm5, %v6207_v42, 0.0 }
 0x854   : > { %6240 = vadd.xlane.f32.xlu0 %v6239_v38  ;;  %v6151_v2 = vpop.xlane.xlu0 %6150  ;;  %v10466_v38 = vld [vmem:[%s15960_s5 + $0x30] sm:$0xff]  }
 0x855   : > { %v6177_v59 = vmul.f32 0.03125, %v6151_v2  ;;  %v6208_v19 = vmul.f32 %v14665_v16, %v14665_v16  ;;  %v10467_v2 = vld [vmem:[%s15960_s5 + $0x28] sm:$0xff]  }
 0x857   : > { %v14671_v13 = vsub.f32 %v14565_v35, %v6177_v59  ;;  %v6242_v3 = vsel %vm2310_vm5, %v6208_v19, 0.0  ;;  %v10468_v59 = vld [vmem:[%s15960_s5 + $0x20] sm:$0xff]   ;;  %v10469_v19 = vld [vmem:[%s15960_s5 + $0x18] sm:$0xff]  }
 0x858   : > { %v6154_v52 = vpop.xlane.xlu1 %6153  ;;  %6243 = vadd.xlane.f32.xlu1 %v6242_v3 }
 0x859   : > { %v6178_v0 = vmul.f32 0.03125, %v6154_v52  ;;  %v6209_v17 = vmul.f32 %v14671_v13, %v14671_v13 }
 0x85b   : > { %v14677_v25 = vsub.f32 %v14575_v53, %v6178_v0  ;;  %v6245_v51 = vsel %vm2310_vm5, %v6209_v17, 0.0  ;;  %v10470_v0 = vld [vmem:[%s15960_s5 + $0x10] sm:$0xff]  }
 0x85c   : > { %6246 = vadd.xlane.f32.xlu0 %v6245_v51  ;;  %v6157_v27 = vpop.xlane.xlu0 %6156 }
 0x85d   : > { %v6179_v62 = vmul.f32 0.03125, %v6157_v27  ;;  %v6210_v35 = vmul.f32 %v14677_v25, %v14677_v25 }
 0x85f   : > { %v14683_v29 = vsub.f32 %v14587_v36, %v6179_v62  ;;  %v6248_v44 = vsel %vm2310_vm5, %v6210_v35, 0.0  ;;  %v10471_v62 = vld [vmem:[%s15960_s5 + $0x8] sm:$0xff]  }
 0x860   : > { %v6160_v10 = vpop.xlane.xlu1 %6159  ;;  %6249 = vadd.xlane.f32.xlu1 %v6248_v44  ;;  %v6163_v60 = vpop.xlane.xlu0 %6162 }
 0x861   : > { %v6180_v43 = vmul.f32 0.03125, %v6160_v10  ;;  %v6181_v61 = vmul.f32 0.03125, %v6163_v60  ;;  %v6211_v53 = vmul.f32 %v14683_v29, %v14683_v29 }
 0x863   : > { %v14689_v54 = vsub.f32 %v14599_v5, %v6180_v43  ;;  %v14692_v47 = vsub.f32 %v14596_v14, %v6181_v61  ;;  %v6251_v41 = vsel %vm2310_vm5, %v6211_v53, 0.0  ;;  %v10465_v14 = vld [vmem:[%s15960_s5 + $0x38] sm:$0xff]   ;;  %v10685_v5 = vmov 0  }
 0x864   : > { %6252 = vadd.xlane.f32.xlu0 %v6251_v41  ;;  %7208 = vmatprep.subr.bf16.mxu0 %v10685_v5 }
 0x865   : > { %v6212_v36 = vmul.f32 %v14689_v54, %v14689_v54  ;;  %v6213_v28 = vmul.f32 %v14692_v47, %v14692_v47  ;;  %7209 = vmatpush1.bf16.msra.mxu0 %v10465_v14 }
 0x866   : > { %7210 = vmatprep.subr.bf16.mxu0 %v10685_v5 }
 0x867   : > { %v6254_v58 = vsel %vm2310_vm5, %v6212_v36, 0.0  ;;  %v6257_v42 = vsel %vm2310_vm5, %v6213_v28, 0.0 }
 0x868   : > { %6255 = vadd.xlane.f32.xlu1 %v6254_v58  ;;  %6258 = vadd.xlane.f32.xlu0 %v6257_v42  ;;  %v10472_v42 = vld [vmem:[%s15960_s5] sm:$0xff]  }
 0x869   : > { %7211 = vmatpush1.bf16.msra.mxu0 %v10466_v38 }
 0x86a   : > { %7212 = vmatprep.subr.bf16.mxu0 %v10685_v5 }
 0x86d   : > { %7213 = vmatpush1.bf16.msra.mxu0 %v10467_v2  ;;  %v14736_v2 = vld [vmem:[%s15963_s8 + $0x2] ss:$0 sm:$0xff] }
 0x86e   : > { %7214 = vmatprep.subr.bf16.mxu0 %v10685_v5 }
 0x871   : > { %7215 = vmatpush1.bf16.msra.mxu0 %v10468_v59 }
 0x872   : > { %7216 = vmatprep.subr.bf16.mxu0 %v10685_v5 }
 0x875   : > { %7217 = vmatpush1.bf16.msra.mxu0 %v10469_v19 }
 0x876   : > { %7218 = vmatprep.subr.bf16.mxu0 %v10685_v5 }
 0x879   : > { %7219 = vmatpush1.bf16.msra.mxu0 %v10470_v0  ;;  %v10473_v0 = vld [vmem:[%s15960_s5 + $0x68] sm:$0xff]  }
 0x87a   : > { %7220 = vmatprep.subr.bf16.mxu0 %v10685_v5 }
 0x87d   : > { %7221 = vmatpush1.bf16.msra.mxu0 %v10471_v62 }
 0x87e   : > { %7222 = vmatprep.subr.bf16.mxu0 %v10685_v5 }
 0x881   : > { %7223 = vmatpush1.bf16.msra.mxu0 %v10472_v42  ;;  %v10475_v42 = vld [vmem:[%s15960_s5 + $0x58] sm:$0xff]  }
 0x882   : > { %7228 = vmatprep.subr.bf16.mxu0 %v10685_v5 }
 0x885   : > { %7229 = vmatpush2.bf16.msra.mxu0 %v10473_v0 }
 0x886   : > { %7230 = vmatprep.subr.bf16.mxu0 %v10685_v5 }
 0x8bd   : > { %v6217_v3 = vpop.xlane.xlu1 %6216 }
 0x8be   : > { %v6263_v52 = vmul.f32 0.03125, %v6217_v3  ;;  %v14743_v3 = vld [vmem:[%s15963_s8 + $0x7] ss:$0 sm:$0xff] }
 0x8c0   : > { %v6279_v17 = vadd.f32 1e-05, %v6263_v52 }
 0x8c1   : > { %v6220_v51 = vpop.xlane.xlu0 %6219 }
 0x8c2   : > { %10553 = vrsqrt.f32 %v6279_v17  ;;  %v6264_v27 = vmul.f32 0.03125, %v6220_v51 }
 0x8c4   : > { %v6280_v35 = vadd.f32 1e-05, %v6264_v27 }
 0x8c5   : > { %v6223_v44 = vpop.xlane.xlu1 %6222 }
 0x8c6   : > { %10555 = vrsqrt.f32 %v6280_v35  ;;  %v6265_v10 = vmul.f32 0.03125, %v6223_v44 }
 0x8c8   : > { %v6281_v60 = vadd.f32 1e-05, %v6265_v10 }
 0x8c9   : > { %v6226_v43 = vpop.xlane.xlu1 %6225  ;;  %v6262_v61 = vpop.xlane.xlu0 %6261 }
 0x8ca   : > { %10557 = vrsqrt.f32 %v6281_v60  ;;  %v6266_v53 = vmul.f32 0.03125, %v6226_v43  ;;  %v6278_v41 = vmul.f32 0.03125, %v6262_v61  ;;  %v10686_v60 = vmov 0.0  }
 0x8cc   : > { %v6282_v36 = vadd.f32 1e-05, %v6266_v53  ;;  %v6294_v28 = vadd.f32 1e-05, %v6278_v41  ;;  %v10474_v53 = vld [vmem:[%s15960_s5 + $0x60] sm:$0xff]  }
 0x8cd   : > { %v6229_v58 = vpop.xlane.xlu0 %6228  ;;  %7231 = vmatpush2.bf16.msra.mxu0 %v10474_v53  ;;  %v10476_v53 = vld [vmem:[%s15960_s5 + $0x50] sm:$0xff]  }
 0x8ce   : > { %10559 = vrsqrt.f32 %v6282_v36  ;;  %v6267_v14 = vmul.f32 0.03125, %v6229_v58  ;;  %7232 = vmatprep.subr.bf16.mxu0 %v10685_v5 }
 0x8cf   : > { %v10554_v38 = vpop.eup %10553  ;;  %10561 = vrsqrt.f32 %v6294_v28 }
 0x8d0   : > { %v6283_v59 = vadd.f32 1e-05, %v6267_v14  ;;  %v6311_v19 = vmul.f32 %v10554_v38, %v14606_v50 }
 0x8d1   : > { %v6232_v52 = vpop.xlane.xlu1 %6231  ;;  %7233 = vmatpush2.bf16.msra.mxu0 %v10475_v42 }
 0x8d2   : > { %10563 = vrsqrt.f32 %v6283_v59  ;;  %v6268_v17 = vmul.f32 0.03125, %v6232_v52  ;;  %v6335_v51 = vmul.f32 %v14736_v2, %v6311_v19  ;;  %7234 = vmatprep.subr.bf16.mxu0 %v10685_v5 }
 0x8d3   : > { %v10556_v27 = vpop.eup %10555 }
 0x8d4   : > { %v6284_v62 = vadd.f32 1e-05, %v6268_v17  ;;  %v14750_v50 = vadd.f32 %v14743_v3, %v6335_v51  ;;  %v6312_v35 = vmul.f32 %v10556_v27, %v14611_v22 }
 0x8d5   : > { %v6235_v44 = vpop.xlane.xlu0 %6234  ;;  %7235 = vmatpush2.bf16.msra.mxu0 %v10476_v53 }
 0x8d6   : > { %10565 = vrsqrt.f32 %v6284_v62  ;;  %v6269_v10 = vmul.f32 0.03125, %v6235_v44  ;;  %v10223_v43 = vpack.i.bf16 %v14750_v50, %v10686_v60  ;;  %v6336_v61 = vmul.f32 %v14736_v2, %v6312_v35  ;;  %7236 = vmatprep.subr.bf16.mxu0 %v10685_v5 }
 0x8d7   : > { %v10558_v41 = vpop.eup %10557 }
 0x8d8   : > { %v6285_v36 = vadd.f32 1e-05, %v6269_v10  ;;  %10224 = vrot.lane.b32.xlu1 %v10223_v43, %s10681_s28  ;;  %v14762_v22 = vadd.f32 %v14743_v3, %v6336_v61  ;;  %v6313_v28 = vmul.f32 %v10558_v41, %v14617_v46 }
 0x8d9   : > { %v6238_v58 = vpop.xlane.xlu1 %6237 }
 0x8da   : > { %10567 = vrsqrt.f32 %v6285_v36  ;;  %v6270_v14 = vmul.f32 0.03125, %v6238_v58  ;;  %v10233_v38 = vpack.i.bf16 %v10686_v60, %v14762_v22  ;;  %v6337_v19 = vmul.f32 %v14736_v2, %v6313_v28 }
 0x8db   : > { %v10560_v59 = vpop.eup %10559  ;;  %v10238_v35 = vpack.i.bf16 %v14762_v22, %v14750_v50 }
 0x8dc   : > { %v10562_v52 = vpop.eup %10561  ;;  %v6286_v0 = vadd.f32 1e-05, %v6270_v14  ;;  %10234 = vrot.lane.b32.xlu0 %v10233_v38, %s10681_s28  ;;  %v6314_v46 = vmul.f32 %v10560_v59, %v14623_v32  ;;  %v6361_v27 = vadd.f32 %v14743_v3, %v6337_v19  ;;  %v6427_v32 = vrot.slane %v14762_v22, 4  ;;  %v16685_v14 = vld [vmem:[#allocation3_spill] sm:$0xff] }
 0x8dd   : > { %v6326_v17 = vmul.f32 %v10562_v52, %v14626_v20  ;;  %v6241_v51 = vpop.xlane.xlu0 %6240  ;;  %vm922_vm7 = vcmp.lt.s32.totalorder %v16685_v14, 4  ;;  %vm16688_vm8 = vcmp.ge.s32.totalorder %v16685_v14, 4 }
 0x8de   : > { %10569 = vrsqrt.f32 %v6286_v0  ;;  %v6271_v62 = vmul.f32 0.03125, %v6241_v51  ;;  %v6338_v44 = vmul.f32 %v14736_v2, %v6314_v46  ;;  %v10228_v61 = vpack.i.bf16 %v6361_v27, %v10686_v60  ;;  %v10477_v46 = vld [vmem:[%s15960_s5 + $0x48] sm:$0xff]  }
 0x8df   : > { %v10564_v10 = vpop.eup %10563  ;;  %v6350_v43 = vmul.f32 %v14736_v2, %v6326_v17  ;;  %v6429_v20 = vrot.slane %v6361_v27, 4  ;;  %7237 = vmatpush2.bf16.msra.mxu0 %v10477_v46 }
 0x8e0   : > { %v6287_v41 = vadd.f32 1e-05, %v6271_v62  ;;  %10239 = vrot.lane.b32.xlu0 %v10238_v35, %s10683_s25  ;;  %v6362_v36 = vadd.f32 %v14743_v3, %v6338_v44  ;;  %v6315_v28 = vmul.f32 %v10564_v10, %v14634_v7  ;;  %10229 = vrot.lane.b32.xlu1 %v10228_v61, %s10681_s28 }
 0x8e1   : > { %v14790_v58 = vadd.f32 %v14743_v3, %v6350_v43  ;;  %v6244_v42 = vpop.xlane.xlu1 %6243  ;;  %v14797_v38 = vsel %vm963_vm4, %v6427_v32, %v6429_v20  ;;  %7238 = vmatprep.subr.bf16.mxu0 %v10685_v5  ;;  %v10478_v5 = vld [vmem:[%s15960_s5 + $0x40] sm:$0xff]  }
 0x8e2   : > { %10571 = vrsqrt.f32 %v6287_v41  ;;  %v6272_v59 = vmul.f32 0.03125, %v6244_v42  ;;  %v10248_v19 = vpack.i.bf16 %v6362_v36, %v6361_v27  ;;  %v10243_v52 = vpack.i.bf16 %v10686_v60, %v6362_v36 }
 0x8e3   : > { %v10566_v7 = vpop.eup %10565  ;;  %v6339_v0 = vmul.f32 %v14736_v2, %v6315_v28  ;;  %v6678_v62 = vsel %vm922_vm7, %v14797_v38, 0.0  ;;  %v6431_v35 = vrot.slane %v6362_v36, 4  ;;  %v6408_v10 = vrot.slane %v14790_v58, 4  ;;  %7239 = vmatpush2.bf16.msra.mxu0 %v10478_v5 }
 0x8e4   : > { %v6316_v17 = vmul.f32 %v10566_v7, %v14641_v34  ;;  %v6288_v51 = vadd.f32 1e-05, %v6272_v59  ;;  %10244 = vrot.lane.b32.xlu0 %v10243_v52, %s10681_s28  ;;  %10249 = vrot.lane.b32.xlu1 %v10248_v19, %s10683_s25  ;;  %v16686_v34 = vld [vmem:[#allocation4_spill] sm:$0xff]  ;;  %v10253_v41 = vpack.i.bf16 %v10686_v60, %v6678_v62  ;;  %v6426_v42 = vrot.slane %v14750_v50, 4 }
 0x8e5   : > { %v6247_v27 = vpop.xlane.xlu0 %6246  ;;  %v14810_v44 = vadd.f32 %v14743_v3, %v6339_v0  ;;  %vm924_vm2 = vcmp.lt.s32.totalorder %v16686_v34, 4  ;;  %v14823_v52 = vsel %vm963_vm4, %v6429_v20, %v6431_v35  ;;  %vm16687_vm12 = vcmp.ge.s32.totalorder %v16686_v34, 4 }
 0x8e6   : > { %v6340_v43 = vmul.f32 %v14736_v2, %v6316_v17  ;;  %10573 = vrsqrt.f32 %v6288_v51  ;;  %v6273_v61 = vmul.f32 0.03125, %v6247_v27  ;;  %v6568_v50 = vsel %vm16687_vm12, %v14797_v38, 0.0 }
 0x8e7   : > { %v10568_v53 = vpop.eup %10567  ;;  %v10263_v36 = vpack.i.bf16 %v14810_v44, %v10686_v60  ;;  %v6433_v28 = vrot.slane %v14810_v44, 4  ;;  %v14840_v20 = vsel %vm963_vm4, %v6408_v10, %v6426_v42  ;;  %v10258_v27 = vpack.i.bf16 %v14823_v52, %v6568_v50 }
 0x8e8   : > { %v6317_v59 = vmul.f32 %v10568_v53, %v14647_v9  ;;  %v6289_v19 = vadd.f32 1e-05, %v6273_v61  ;;  %v6364_v7 = vadd.f32 %v14743_v3, %v6340_v43  ;;  %10254 = vrot.lane.b32.xlu1 %v10253_v41, %s10684_s21  ;;  %v6566_v41 = vsel %vm16688_vm8, %v14840_v20, 0.0 }
 0x8e9   : > { %10264 = vrot.lane.b32.xlu0 %v10263_v36, %s10681_s28  ;;  %v6250_v0 = vpop.xlane.xlu1 %6249  ;;  %v14835_v9 = vsel %vm963_vm4, %v6431_v35, %v6433_v28  ;;  %vm930_vm7 = vcmp.lt.s32.totalorder %v16593_v48, 4  ;;  %vm932_vm12 = vcmp.lt.s32.totalorder %v16612_v11, 4  ;;  %vm16692_vm8 = vcmp.ge.s32.totalorder %v16612_v11, 4  ;;  %v16693_v11 = vld [vmem:[#allocation15_spill] sm:$0xff] }
 0x8ea   : > { %v6341_v46 = vmul.f32 %v14736_v2, %v6317_v59  ;;  %10575 = vrsqrt.f32 %v6289_v19  ;;  %v6274_v17 = vmul.f32 0.03125, %v6250_v0  ;;  %v6680_v51 = vsel %vm924_vm2, %v14835_v9, 0.0 }
 0x8eb   : > { %v10570_v62 = vpop.eup %10569  ;;  %v10268_v35 = vpack.i.bf16 %v10686_v60, %v6680_v51  ;;  %v6435_v43 = vrot.slane %v6364_v7, 4  ;;  %v14860_v59 = vsel %vm963_vm4, %v6426_v42, %v6427_v32  ;;  %v6570_v14 = vsel %vm16689_vm14, %v14835_v9, 0.0 }
 0x8ec   : > { %v14849_v61 = vadd.f32 %v14743_v3, %v6341_v46  ;;  %v6290_v53 = vadd.f32 1e-05, %v6274_v17  ;;  %v6318_v36 = vmul.f32 %v10570_v62, %v14653_v37  ;;  %10259 = vrot.lane.b32.xlu1 %v10258_v27, %s10684_s21  ;;  %v10273_v46 = vpack.i.bf16 %v14860_v59, %v6566_v41 }
 0x8ed   : > { %10269 = vrot.lane.b32.xlu0 %v10268_v35, %s10684_s21  ;;  %v6253_v34 = vpop.xlane.xlu0 %6252  ;;  %v14863_v19 = vsel %vm963_vm4, %v6433_v28, %v6435_v43  ;;  %v10278_v41 = vpack.i.bf16 %v10686_v60, %v6364_v7  ;;  %vm934_vm2 = vcmp.lt.s32.totalorder %v16633_v21, 4  ;;  %vm936_vm14 = vcmp.lt.s32.totalorder %v16693_v11, 4 }
 0x8ee   : > { %10577 = vrsqrt.f32 %v6290_v53  ;;  %v6275_v5 = vmul.f32 0.03125, %v6253_v34  ;;  %v10283_v37 = vpack.i.bf16 %v14863_v19, %v6570_v14  ;;  %v6342_v0 = vmul.f32 %v14736_v2, %v6318_v36 }
 0x8ef   : > { %v10572_v50 = vpop.eup %10571  ;;  %v6437_v22 = vrot.slane %v14849_v61, 4 }
 0x8f0   : > { %v6291_v32 = vadd.f32 1e-05, %v6275_v5  ;;  %v6319_v42 = vmul.f32 %v10572_v50, %v14659_v40  ;;  %10274 = vrot.lane.b32.xlu1 %v10273_v46, %s10684_s21  ;;  %v6366_v35 = vadd.f32 %v14743_v3, %v6342_v0  ;;  %v10293_v40 = vpack.i.bf16 %v6364_v7, %v14810_v44 }
 0x8f1   : > { %10284 = vrot.lane.b32.xlu0 %v10283_v37, %s10684_s21  ;;  %v6256_v28 = vpop.xlane.xlu1 %6255  ;;  %v6259_v17 = vpop.xlane.xlu0 %6258  ;;  %v14877_v51 = vsel %vm963_vm4, %v6435_v43, %v6437_v22 }
 0x8f2   : > { %10579 = vrsqrt.f32 %v6291_v32  ;;  %v6276_v62 = vmul.f32 0.03125, %v6256_v28  ;;  %v6277_v27 = vmul.f32 0.03125, %v6259_v17  ;;  %v6343_v36 = vmul.f32 %v14736_v2, %v6319_v42 }
 0x8f3   : > { %v10574_v53 = vpop.eup %10573  ;;  %v6682_v5 = vsel %vm926_vm15, %v14877_v51, 0.0  ;;  %v10303_v37 = vpack.i.bf16 %v10686_v60, %v6366_v35  ;;  %v6439_v50 = vrot.slane %v6366_v35, 4  ;;  %v10298_v28 = vpack.i.bf16 %v14849_v61, %v10686_v60 }
 0x8f4   : > { %v6292_v34 = vadd.f32 1e-05, %v6276_v62  ;;  %v6293_v14 = vadd.f32 1e-05, %v6277_v27  ;;  %10279 = vrot.lane.b32.xlu1 %v10278_v41, %s10681_s28  ;;  %v6367_v39 = vadd.f32 %v14743_v3, %v6343_v36  ;;  %v6320_v43 = vmul.f32 %v10574_v53, %v14665_v16 }
 0x8f5   : > { %10294 = vrot.lane.b32.xlu0 %v10293_v40, %s10683_s25  ;;  %v10288_v44 = vpack.i.bf16 %v10686_v60, %v6682_v5  ;;  %v14902_v62 = vsel %vm963_vm4, %v6437_v22, %v6439_v50 }
 0x8f6   : > { %10581 = vrsqrt.f32 %v6292_v34  ;;  %v6441_v7 = vrot.slane %v6367_v39, 4  ;;  %v6344_v46 = vmul.f32 %v14736_v2, %v6320_v43  ;;  %v10318_v17 = vpack.i.bf16 %v6367_v39, %v10686_v60 }
 0x8f7   : > { %v10576_v0 = vpop.eup %10575  ;;  %10583 = vrsqrt.f32 %v6293_v14 }
 0x8f8   : > { %10289 = vrot.lane.b32.xlu1 %v10288_v44, %s10684_s21  ;;  %v14895_v32 = vsel %vm963_vm4, %v6439_v50, %v6441_v7  ;;  %v6321_v16 = vmul.f32 %v10576_v0, %v14671_v13  ;;  %v6368_v53 = vadd.f32 %v14743_v3, %v6344_v46  ;;  %v6572_v13 = vsel %vm16690_vm13, %v14877_v51, 0.0 }
 0x8f9   : > { %10304 = vrot.lane.b32.xlu0 %v10303_v37, %s10681_s28  ;;  %v6684_v27 = vsel %vm928_vm0, %v14895_v32, 0.0  ;;  %v10308_v22 = vpack.i.bf16 %v14902_v62, %v6572_v13 }
 0x8fa   : > { %v6345_v41 = vmul.f32 %v14736_v2, %v6321_v16  ;;  %v10323_v34 = vpack.i.bf16 %v10686_v60, %v6684_v27  ;;  %v6443_v14 = vrot.slane %v6368_v53, 4  ;;  %v10333_v44 = vpack.i.bf16 %v6368_v53, %v6367_v39 }
 0x8fb   : > { %v10578_v42 = vpop.eup %10577 }
 0x8fc   : > { %10299 = vrot.lane.b32.xlu1 %v10298_v28, %s10681_s28  ;;  %v6322_v40 = vmul.f32 %v10578_v42, %v14677_v25  ;;  %v6369_v43 = vadd.f32 %v14743_v3, %v6345_v41  ;;  %v10313_v25 = vpack.i.bf16 %v6366_v35, %v14849_v61  ;;  %v14923_v46 = vsel %vm963_vm4, %v6441_v7, %v6443_v14 }
 0x8fd   : > { %10319 = vrot.lane.b32.xlu0 %v10318_v17, %s10681_s28  ;;  %v6574_v61 = vsel %vm16691_vm6, %v14895_v32, 0.0 }
 0x8fe   : > { %v6346_v37 = vmul.f32 %v14736_v2, %v6322_v40  ;;  %v6445_v42 = vrot.slane %v6369_v43, 4 }
 0x8ff   : > { %v10580_v36 = vpop.eup %10579 }
 0x900   : > { %v6323_v5 = vmul.f32 %v10580_v36, %v14683_v29  ;;  %10309 = vrot.lane.b32.xlu1 %v10308_v22, %s10684_s21  ;;  %v6370_v35 = vadd.f32 %v14743_v3, %v6346_v37  ;;  %v14944_v41 = vsel %vm963_vm4, %v6443_v14, %v6445_v42 }
 0x901   : > { %10324 = vrot.lane.b32.xlu0 %v10323_v34, %s10684_s21  ;;  %v6686_v14 = vsel %vm930_vm7, %v14944_v41, 0.0 }
 0x902   : > { %v6347_v31 = vmul.f32 %v14736_v2, %v6323_v5  ;;  %v6447_v22 = vrot.slane %v6370_v35, 4 }
 0x903   : > { %v10582_v0 = vpop.eup %10581 }
 0x904   : > { %v10584_v50 = vpop.eup %10583  ;;  %v6324_v29 = vmul.f32 %v10582_v0, %v14689_v54  ;;  %10314 = vrot.lane.b32.xlu1 %v10313_v25, %s10683_s25  ;;  %v6371_v28 = vadd.f32 %v14743_v3, %v6347_v31  ;;  %v10328_v54 = vpack.i.bf16 %v10686_v60, %v6368_v53  ;;  %v10343_v53 = vpack.i.bf16 %v6369_v43, %v10686_v60 }
 0x905   : > { %v6325_v16 = vmul.f32 %v10584_v50, %v14692_v47  ;;  %10334 = vrot.lane.b32.xlu0 %v10333_v44, %s10683_s25  ;;  %v10338_v47 = vpack.i.bf16 %v14923_v46, %v6574_v61  ;;  %v10348_v25 = vpack.i.bf16 %v10686_v60, %v6686_v14  ;;  %v14973_v61 = vsel %vm963_vm4, %v6445_v42, %v6447_v22 }
 0x906   : > { %v6348_v39 = vmul.f32 %v14736_v2, %v6324_v29  ;;  %v6449_v13 = vrot.slane %v6371_v28, 4  ;;  %v10368_v44 = vpack.i.bf16 %v6371_v28, %v10686_v60  ;;  %v10358_v29 = vpack.i.bf16 %v6370_v35, %v6369_v43 }
 0x907   : > { %v6349_v7 = vmul.f32 %v14736_v2, %v6325_v16  ;;  %v10353_v2 = vpack.i.bf16 %v10686_v60, %v6370_v35  ;;  %v6692_v35 = vsel %vm936_vm14, %v14840_v20, 0.0 }
 0x908   : > { %v6372_v17 = vadd.f32 %v14743_v3, %v6348_v39  ;;  %10329 = vrot.lane.b32.xlu1 %v10328_v54, %s10681_s28  ;;  %v14959_v37 = vsel %vm963_vm4, %v6447_v22, %v6449_v13  ;;  %v6576_v39 = vsel %vm16692_vm8, %v14944_v41, 0.0  ;;  %v10408_v21 = vpack.i.bf16 %v10686_v60, %v6692_v35 }
 0x909   : > { %v6373_v27 = vadd.f32 %v14743_v3, %v6349_v7  ;;  %10339 = vrot.lane.b32.xlu0 %v10338_v47, %s10684_s21  ;;  %v6688_v50 = vsel %vm932_vm12, %v14959_v37, 0.0  ;;  %v10363_v7 = vpack.i.bf16 %v14973_v61, %v6576_v39  ;;  %v6578_v43 = vsel %vm790_vm9, %v14959_v37, 0.0 }
 0x90a   : > { %v10378_v40 = vpack.i.bf16 %v10686_v60, %v6372_v17  ;;  %v6451_v36 = vrot.slane %v6372_v17, 4  ;;  %v10373_v16 = vpack.i.bf16 %v10686_v60, %v6688_v50  ;;  %v10383_v54 = vpack.i.bf16 %v6372_v17, %v6371_v28 }
 0x90b   : > { %v6407_v34 = vrot.slane %v6373_v27, 4  ;;  %v10398_v3 = vpack.i.bf16 %v6373_v27, %v10686_v60  ;;  %v10418_v5 = vpack.i.bf16 %v14790_v58, %v6373_v27  ;;  %v10403_v28 = vpack.i.bf16 %v10686_v60, %v14790_v58 }
 0x90c   : > { %10344 = vrot.lane.b32.xlu1 %v10343_v53, %s10681_s28  ;;  %v14982_v47 = vsel %vm963_vm4, %v6449_v13, %v6451_v36 }
 0x90d   : > { %10354 = vrot.lane.b32.xlu0 %v10353_v2, %s10681_s28  ;;  %v14962_v31 = vsel %vm963_vm4, %v6451_v36, %v6407_v34  ;;  %v10388_v42 = vpack.i.bf16 %v14982_v47, %v6578_v43  ;;  %v15002_v17 = vsel %vm963_vm4, %v6407_v34, %v6408_v10 }
 0x90e   : > { %v6690_v0 = vsel %vm934_vm2, %v14962_v31, 0.0  ;;  %v6580_v27 = vsel %vm792_vm11, %v14962_v31, 0.0 }
 0x90f   : > { %v10393_v48 = vpack.i.bf16 %v10686_v60, %v6690_v0  ;;  %v10413_v13 = vpack.i.bf16 %v15002_v17, %v6580_v27 }
 0x910   : > { %10349 = vrot.lane.b32.xlu1 %v10348_v25, %s10684_s21 }
 0x911   : > { %10369 = vrot.lane.b32.xlu0 %v10368_v44, %s10681_s28 }
 0x914   : > { %10359 = vrot.lane.b32.xlu1 %v10358_v29, %s10683_s25 }
 0x915   : > { %10374 = vrot.lane.b32.xlu0 %v10373_v16, %s10684_s21 }
 0x918   : > { %10364 = vrot.lane.b32.xlu1 %v10363_v7, %s10684_s21 }
 0x919   : > { %10384 = vrot.lane.b32.xlu0 %v10383_v54, %s10683_s25 }
 0x91c   : > { %10379 = vrot.lane.b32.xlu1 %v10378_v40, %s10681_s28 }
 0x91d   : > { %10389 = vrot.lane.b32.xlu0 %v10388_v42, %s10684_s21  ;;  %v16696_v42 = vld [vmem:[#allocation5_spill] sm:$0xff] }
 0x91e   : > { %vm749_vm11 = vcmp.ge.s32.totalorder %v16696_v42, 12  ;;  %vm16697_vm15 = vcmp.lt.s32.totalorder %v16696_v42, 12 }
 0x920   : > { %10394 = vrot.lane.b32.xlu1 %v10393_v48, %s10684_s21 }
 0x921   : > { %10404 = vrot.lane.b32.xlu0 %v10403_v28, %s10681_s28 }
 0x924   : > { %10399 = vrot.lane.b32.xlu1 %v10398_v3, %s10681_s28  ;;  %v16694_v3 = vld [vmem:[#allocation6_spill] sm:$0xff] }
 0x925   : > { %10409 = vrot.lane.b32.xlu0 %v10408_v21, %s10684_s21  ;;  %vm16695_vm4 = vcmp.lt.s32.totalorder %v16694_v3, 12  ;;  %vm747_vm9 = vcmp.ge.s32.totalorder %v16694_v3, 12 }
 0x926   : > { %v6583_v0 = vsel %vm16695_vm4, %v14797_v38, 0.0  ;;  %v6503_v35 = vsel %vm747_vm9, %v14840_v20, 0.0 }
 0x928   : > { %10414 = vrot.lane.b32.xlu1 %v10413_v13, %s10684_s21 }
 0x92c   : > { %10419 = vrot.lane.b32.xlu1 %v10418_v5, %s10683_s25 }
 0x94a   : > { %v10225_v2 = vpop.permute.xlu1 %10224 }
 0x94b   : > { %v10227_v16 = vunpack.i.h.bf16 %v10225_v2  ;;  %v10226_v39 = vunpack.i.l.bf16 %v10225_v2 }
 0x94d   : > { %v6998_v13 = vsel %vm2310_vm5, 0.0, %v10226_v39 }
 0x94e   : > { %v10235_v60 = vpop.permute.xlu0 %10234 }
 0x94f   : > { %v10237_v36 = vunpack.i.h.bf16 %v10235_v60  ;;  %v10236_v22 = vunpack.i.l.bf16 %v10235_v60  ;;  %v6999_v60 = vsel %vm2310_vm5, %v6503_v35, %v10227_v16 }
 0x951   : > { %v7047_v5 = vsel %vm2310_vm5, %v6583_v0, %v10237_v36  ;;  %v7046_v48 = vsel %vm2310_vm5, %v14860_v59, %v10236_v22  ;;  %v6585_v59 = vsel %vm16697_vm15, %v14835_v9, 0.0 }
 0x952   : > { %v10240_v58 = vpop.permute.xlu0 %10239  ;;  %v10230_v53 = vpop.permute.xlu1 %10229 }
 0x953   : > { %v10242_v2 = vunpack.i.h.bf16 %v10240_v58  ;;  %v10241_v36 = vunpack.i.l.bf16 %v10240_v58  ;;  %v10231_v3 = vunpack.i.l.bf16 %v10230_v53 }
 0x956   : > { %v10245_v10 = vpop.permute.xlu0 %10244  ;;  %v15012_v40 = vpop.permute.xlu1 %10249 }
 0x957   : > { %v10247_v11 = vunpack.i.h.bf16 %v10245_v10  ;;  %v10246_v28 = vunpack.i.l.bf16 %v10245_v10  ;;  %v10232_v10 = vunpack.i.h.bf16 %v10230_v53 }
 0x95a   : > { %v10255_v34 = vpop.permute.xlu1 %10254 }
 0x95b   : > { %v15014_v14 = vpop.permute.xlu0 %10264  ;;  %v10257_v25 = vunpack.i.h.bf16 %v10255_v34  ;;  %v10256_v44 = vunpack.i.l.bf16 %v10255_v34 }
 0x95d   : > { %v7062_v50 = vsel %vm3784_vm1, %v7046_v48, %v10256_v44  ;;  %v7063_v29 = vsel %vm3784_vm1, %v7047_v5, %v10257_v25  ;;  %v7049_v44 = vsel %vm2310_vm5, %v6585_v59, %v10247_v11  ;;  %v7048_v5 = vsel %vm2310_vm5, %v14823_v52, %v10246_v28 }
 0x95e   : > { %v7079_v7 = vpack.c.bf16 %v7063_v29, %v7062_v50  ;;  %v10260_v54 = vpop.permute.xlu1 %10259  ;;  %v6505_v52 = vsel %vm749_vm11, %v14797_v38, 0.0  ;;  %v16698_v38 = vld [vmem:[#allocation9_spill] sm:$0xff] }
 0x95f   : > { %v10270_v43 = vpop.permute.xlu0 %10269  ;;  %v10262_v48 = vunpack.i.h.bf16 %v10260_v54  ;;  %v10261_v50 = vunpack.i.l.bf16 %v10260_v54  ;;  %v7000_v54 = vsel %vm2310_vm5, 0.0, %v10231_v3  ;;  %v7001_v28 = vsel %vm2310_vm5, %v6505_v52, %v10232_v10 }
 0x960   : > { %8957 = vmatprep.mubr.msk.bf16.mxu0 %vm3801_vm3, %v7079_v7  ;;  %v10272_v21 = vunpack.i.h.bf16 %v10270_v43  ;;  %v10271_v27 = vunpack.i.l.bf16 %v10270_v43  ;;  %vm16699_vm0 = vcmp.lt.s32.totalorder %v16698_v38, 12  ;;  %vm751_vm13 = vcmp.ge.s32.totalorder %v16698_v38, 12 }
 0x961   : > { %v6587_v10 = vsel %vm16699_vm0, %v14877_v51, 0.0 }
 0x962   : > { %v10275_v22 = vpop.permute.xlu1 %10274  ;;  %v7064_v29 = vsel %vm3784_vm1, %v7048_v5, %v10271_v27  ;;  %v7065_v16 = vsel %vm3784_vm1, %v7049_v44, %v10272_v21 }
 0x963   : > { %v15033_v34 = vpop.permute.xlu0 %10284  ;;  %v10277_v0 = vunpack.i.h.bf16 %v10275_v22  ;;  %v10276_v25 = vunpack.i.l.bf16 %v10275_v22  ;;  %v7081_v59 = vpack.c.bf16 %v7065_v16, %v7064_v29  ;;  %v10267_v29 = vunpack.i.h.bf16 %v15014_v14 }
 0x964   : > { %v10266_v16 = vunpack.i.l.bf16 %v15014_v14  ;;  %v16700_v14 = vld [vmem:[#allocation8_spill] sm:$0xff] }
 0x965   : > { %v7014_v58 = vsel %vm3784_vm1, %v6998_v13, %v10276_v25  ;;  %v7015_v39 = vsel %vm3784_vm1, %v6999_v60, %v10277_v0  ;;  %v7016_v13 = vsel %vm3784_vm1, %v7000_v54, %v10261_v50  ;;  %v7017_v60 = vsel %vm3784_vm1, %v7001_v28, %v10262_v48 }
 0x966   : > { %v7030_v7 = vsel %vm3801_vm3, %v7014_v58, %v10241_v36  ;;  %v7031_v53 = vsel %vm3801_vm3, %v7015_v39, %v10242_v2  ;;  %v10280_v43 = vpop.permute.xlu1 %10279  ;;  %v10252_v2 = vunpack.i.h.bf16 %v15012_v40  ;;  %v10251_v36 = vunpack.i.l.bf16 %v15012_v40 }
 0x967   : > { %v10295_v35 = vpop.permute.xlu0 %10294  ;;  %v7078_v11 = vpack.c.bf16 %v7031_v53, %v7030_v7  ;;  %v10282_v21 = vunpack.i.h.bf16 %v10280_v43  ;;  %v10281_v27 = vunpack.i.l.bf16 %v10280_v43  ;;  %v10286_v7 = vunpack.i.l.bf16 %v15033_v34 }
 0x968   : > { %v7032_v5 = vsel %vm3801_vm3, %v7016_v13, %v10251_v36  ;;  %v7033_v48 = vsel %vm3801_vm3, %v7017_v60, %v10252_v2  ;;  %v10297_v53 = vunpack.i.h.bf16 %v10295_v35  ;;  %v10296_v52 = vunpack.i.l.bf16 %v10295_v35 }
 0x969   : > { %7241 = vmatmul.mubr.bf16.vlgmr.msra.gmra.mxu0 %v7078_v11  ;;  %v7050_v25 = vsel %vm2310_vm5, %v14863_v19, %v10281_v27  ;;  %v7051_v44 = vsel %vm2310_vm5, %v6587_v10, %v10282_v21  ;;  %v10287_v19 = vunpack.i.h.bf16 %v15033_v34  ;;  %v7080_v43 = vpack.c.bf16 %v7033_v48, %v7032_v5 }
 0x96a   : > { %v10290_v22 = vpop.permute.xlu1 %10289  ;;  %8958 = vmatprep.mubr.msk.bf16.mxu0 %vm3801_vm3, %v7081_v59  ;;  %v6507_v59 = vsel %vm751_vm13, %v14835_v9, 0.0  ;;  %v7002_v27 = vsel %vm2310_vm5, 0.0, %v10266_v16  ;;  %vm16701_vm6 = vcmp.lt.s32.totalorder %v16700_v14, 12  ;;  %vm753_vm7 = vcmp.ge.s32.totalorder %v16700_v14, 12 }
 0x96b   : > { %v10305_v42 = vpop.permute.xlu0 %10304  ;;  %v10292_v3 = vunpack.i.h.bf16 %v10290_v22  ;;  %v10291_v0 = vunpack.i.l.bf16 %v10290_v22  ;;  %v7003_v21 = vsel %vm2310_vm5, %v6507_v59, %v10267_v29  ;;  %v6589_v13 = vsel %vm16701_vm6, %v14895_v32, 0.0 }
 0x96c   : > { %v10307_v11 = vunpack.i.h.bf16 %v10305_v42  ;;  %v10306_v28 = vunpack.i.l.bf16 %v10305_v42  ;;  %v7018_v34 = vsel %vm3784_vm1, %v7002_v27, %v10286_v7  ;;  %v7019_v35 = vsel %vm3784_vm1, %v7003_v21, %v10287_v19 }
 0x96d   : > { %v7066_v40 = vsel %vm3784_vm1, %v7050_v25, %v10291_v0  ;;  %v7067_v50 = vsel %vm3784_vm1, %v7051_v44, %v10292_v3  ;;  %v7034_v38 = vsel %vm3801_vm3, %v7018_v34, %v10296_v52  ;;  %v7035_v10 = vsel %vm3801_vm3, %v7019_v35, %v10297_v53 }
 0x96e   : > { %v10300_v58 = vpop.permute.xlu1 %10299  ;;  %v7083_v54 = vpack.c.bf16 %v7067_v50, %v7066_v40  ;;  %v7053_v9 = vsel %vm2310_vm5, %v6589_v13, %v10307_v11  ;;  %v7052_v42 = vsel %vm2310_vm5, %v14902_v62, %v10306_v28  ;;  %v7082_v29 = vpack.c.bf16 %v7035_v10, %v7034_v38 }
 0x96f   : > { %v10320_v39 = vpop.permute.xlu0 %10319  ;;  %v10302_v25 = vunpack.i.h.bf16 %v10300_v58  ;;  %v10301_v44 = vunpack.i.l.bf16 %v10300_v58  ;;  %v6509_v7 = vsel %vm753_vm7, %v14877_v51, 0.0  ;;  %v16702_v58 = vld [vmem:[#allocation13_spill] sm:$0xff] }
 0x970   : > { %vm755_vm2 = vcmp.ge.s32.totalorder %v16702_v58, 12  ;;  %v10322_v59 = vunpack.i.h.bf16 %v10320_v39  ;;  %v10321_v21 = vunpack.i.l.bf16 %v10320_v39  ;;  %vm16703_vm12 = vcmp.lt.s32.totalorder %v16702_v58, 12 }
 0x971   : > { %7249 = vmatmul.mubr.bf16.gmra.mxu0 %v7080_v43  ;;  %v7004_v53 = vsel %vm2310_vm5, 0.0, %v10301_v44  ;;  %v7005_v43 = vsel %vm2310_vm5, %v6509_v7, %v10302_v25  ;;  %v6511_v34 = vsel %vm755_vm2, %v14895_v32, 0.0 }
 0x972   : > { %v10310_v60 = vpop.permute.xlu1 %10309  ;;  %8959 = vmatprep.mubr.msk.bf16.mxu0 %vm3801_vm3, %v7083_v54 }
 0x973   : > { %v10325_v2 = vpop.permute.xlu0 %10324  ;;  %v10312_v40 = vunpack.i.h.bf16 %v10310_v60  ;;  %v10311_v50 = vunpack.i.l.bf16 %v10310_v60 }
 0x974   : > { %v10327_v36 = vunpack.i.h.bf16 %v10325_v2  ;;  %v10326_v22 = vunpack.i.l.bf16 %v10325_v2 }
 0x975   : > { %v7020_v11 = vsel %vm3784_vm1, %v7004_v53, %v10311_v50  ;;  %v7021_v28 = vsel %vm3784_vm1, %v7005_v43, %v10312_v40  ;;  %v16704_v53 = vld [vmem:[#allocation12_spill] sm:$0xff] }
 0x976   : > { %v7068_v3 = vsel %vm3784_vm1, %v7052_v42, %v10326_v22  ;;  %v7069_v0 = vsel %vm3784_vm1, %v7053_v9, %v10327_v36  ;;  %v10315_v5 = vpop.permute.xlu1 %10314  ;;  %v7007_v9 = vsel %vm2310_vm5, %v6511_v34, %v10322_v59  ;;  %v7006_v42 = vsel %vm2310_vm5, 0.0, %v10321_v21 }
 0x977   : > { %v10335_v48 = vpop.permute.xlu0 %10334  ;;  %v7085_v16 = vpack.c.bf16 %v7069_v0, %v7068_v3  ;;  %v10317_v19 = vunpack.i.h.bf16 %v10315_v5  ;;  %v10316_v62 = vunpack.i.l.bf16 %v10315_v5  ;;  %v6591_v0 = vsel %vm16703_vm12, %v14944_v41, 0.0 }
 0x978   : > { %v10337_v10 = vunpack.i.h.bf16 %v10335_v48  ;;  %v10336_v3 = vunpack.i.l.bf16 %v10335_v48  ;;  %vm757_vm8 = vcmp.ge.s32.totalorder %v16704_v53, 12  ;;  %vm16705_vm14 = vcmp.lt.s32.totalorder %v16704_v53, 12 }
 0x979   : > { %7257 = vmatmul.mubr.bf16.gmra.mxu0 %v7082_v29  ;;  %v7036_v27 = vsel %vm3801_vm3, %v7020_v11, %v10316_v62  ;;  %v7037_v51 = vsel %vm3801_vm3, %v7021_v28, %v10317_v19 }
 0x97a   : > { %v10330_v52 = vpop.permute.xlu1 %10329  ;;  %8960 = vmatprep.mubr.msk.bf16.mxu0 %vm3801_vm3, %v7085_v16  ;;  %v7084_v22 = vpack.c.bf16 %v7037_v51, %v7036_v27 }
 0x97b   : > { %v10340_v54 = vpop.permute.xlu0 %10339  ;;  %v10332_v35 = vunpack.i.h.bf16 %v10330_v52  ;;  %v10331_v36 = vunpack.i.l.bf16 %v10330_v52 }
 0x97c   : > { %v10342_v14 = vunpack.i.h.bf16 %v10340_v54  ;;  %v10341_v13 = vunpack.i.l.bf16 %v10340_v54 }
 0x97d   : > { %v7054_v44 = vsel %vm2310_vm5, %v14923_v46, %v10331_v36  ;;  %v7055_v5 = vsel %vm2310_vm5, %v6591_v0, %v10332_v35  ;;  %v6593_v46 = vsel %vm16705_vm14, %v14959_v37, 0.0  ;;  %v6513_v36 = vsel %vm757_vm8, %v14944_v41, 0.0 }
 0x97e   : > { %v10345_v60 = vpop.permute.xlu1 %10344  ;;  %v7022_v38 = vsel %vm3784_vm1, %v7006_v42, %v10341_v13  ;;  %v7023_v39 = vsel %vm3784_vm1, %v7007_v9, %v10342_v14 }
 0x97f   : > { %v10355_v2 = vpop.permute.xlu0 %10354  ;;  %v7038_v19 = vsel %vm3801_vm3, %v7022_v38, %v10336_v3  ;;  %v7039_v62 = vsel %vm3801_vm3, %v7023_v39, %v10337_v10  ;;  %v10347_v59 = vunpack.i.h.bf16 %v10345_v60  ;;  %v10346_v21 = vunpack.i.l.bf16 %v10345_v60  ;;  %v16706_v60 = vld [vmem:[#allocation17_spill] sm:$0xff] }
 0x980   : > { %v10357_v29 = vunpack.i.h.bf16 %v10355_v2  ;;  %v10356_v16 = vunpack.i.l.bf16 %v10355_v2  ;;  %v7086_v28 = vpack.c.bf16 %v7039_v62, %v7038_v19  ;;  %vm759_vm4 = vcmp.ge.s32.totalorder %v16706_v60, 12 }
 0x981   : > { %7265 = vmatmul.mubr.bf16.gmra.mxu0 %v7084_v22  ;;  %v7009_v42 = vsel %vm2310_vm5, %v6513_v36, %v10347_v59  ;;  %vm16707_vm9 = vcmp.lt.s32.totalorder %v16706_v60, 12 }
 0x982   : > { %v10350_v25 = vpop.permute.xlu1 %10349  ;;  %v7057_v27 = vsel %vm2310_vm5, %v6593_v46, %v10357_v29  ;;  %v7056_v51 = vsel %vm2310_vm5, %v14973_v61, %v10356_v16  ;;  %v7008_v61 = vsel %vm2310_vm5, 0.0, %v10346_v21  ;;  %v6515_v16 = vsel %vm759_vm4, %v14959_v37, 0.0 }
 0x983   : > { %v10370_v32 = vpop.permute.xlu0 %10369  ;;  %v10352_v40 = vunpack.i.h.bf16 %v10350_v25  ;;  %v10351_v50 = vunpack.i.l.bf16 %v10350_v25  ;;  %v6595_v53 = vsel %vm16707_vm9, %v14962_v31, 0.0 }
 0x984   : > { %v10372_v10 = vunpack.i.h.bf16 %v10370_v32  ;;  %v10371_v3 = vunpack.i.l.bf16 %v10370_v32 }
 0x985   : > { %v7070_v48 = vsel %vm3784_vm1, %v7054_v44, %v10351_v50  ;;  %v7071_v7 = vsel %vm3784_vm1, %v7055_v5, %v10352_v40 }
 0x986   : > { %v7087_v43 = vpack.c.bf16 %v7071_v7, %v7070_v48  ;;  %v10360_v52 = vpop.permute.xlu1 %10359  ;;  %v7011_v32 = vsel %vm2310_vm5, %v6515_v16, %v10372_v10  ;;  %v7010_v7 = vsel %vm2310_vm5, 0.0, %v10371_v3 }
 0x987   : > { %v10375_v54 = vpop.permute.xlu0 %10374  ;;  %v10362_v38 = vunpack.i.h.bf16 %v10360_v52  ;;  %v10361_v39 = vunpack.i.l.bf16 %v10360_v52 }
 0x988   : > { %v10377_v58 = vunpack.i.h.bf16 %v10375_v54  ;;  %v10376_v11 = vunpack.i.l.bf16 %v10375_v54  ;;  %8961 = vmatprep.mubr.msk.bf16.mxu0 %vm3801_vm3, %v7087_v43 }
 0x989   : > { %7273 = vmatmul.mubr.bf16.gmra.mxu0 %v7086_v28 }
 0x98a   : > { %v7072_v14 = vsel %vm3784_vm1, %v7056_v51, %v10376_v11  ;;  %v7073_v13 = vsel %vm3784_vm1, %v7057_v27, %v10377_v58  ;;  %v10365_v34 = vpop.permute.xlu1 %10364 }
 0x98b   : > { %v7089_v2 = vpack.c.bf16 %v7073_v13, %v7072_v14  ;;  %v10385_v35 = vpop.permute.xlu0 %10384  ;;  %v10367_v22 = vunpack.i.h.bf16 %v10365_v34  ;;  %v10366_v9 = vunpack.i.l.bf16 %v10365_v34 }
 0x98c   : > { %v10387_v58 = vunpack.i.h.bf16 %v10385_v35  ;;  %v10386_v37 = vunpack.i.l.bf16 %v10385_v35 }
 0x98d   : > { %8962 = vmatprep.mubr.msk.bf16.mxu0 %vm3801_vm3, %v7089_v2  ;;  %v7024_v0 = vsel %vm3784_vm1, %v7008_v61, %v10366_v9  ;;  %v7025_v25 = vsel %vm3784_vm1, %v7009_v42, %v10367_v22  ;;  %v16708_v22 = vld [vmem:[#allocation16_spill] sm:$0xff] }
 0x98e   : > { %v10380_v44 = vpop.permute.xlu1 %10379  ;;  %v7040_v5 = vsel %vm3801_vm3, %v7024_v0, %v10361_v39  ;;  %v7041_v40 = vsel %vm3801_vm3, %v7025_v25, %v10362_v38  ;;  %vm16709_vm11 = vcmp.lt.s32.totalorder %v16708_v22, 12  ;;  %vm761_vm15 = vcmp.ge.s32.totalorder %v16708_v22, 12 }
 0x98f   : > { %v10390_v41 = vpop.permute.xlu0 %10389  ;;  %v10382_v19 = vunpack.i.h.bf16 %v10380_v44  ;;  %v10381_v62 = vunpack.i.l.bf16 %v10380_v44  ;;  %v7088_v48 = vpack.c.bf16 %v7041_v40, %v7040_v5  ;;  %v6597_v9 = vsel %vm16709_vm11, %v14840_v20, 0.0 }
 0x990   : > { %v10392_v50 = vunpack.i.h.bf16 %v10390_v41  ;;  %v10391_v29 = vunpack.i.l.bf16 %v10390_v41 }
 0x991   : > { %7281 = vmatmul.mubr.bf16.gmra.mxu0 %v7088_v48  ;;  %v7058_v59 = vsel %vm2310_vm5, %v14982_v47, %v10381_v62  ;;  %v7059_v21 = vsel %vm2310_vm5, %v6595_v53, %v10382_v19 }
 0x992   : > { %v7026_v43 = vsel %vm3784_vm1, %v7010_v7, %v10391_v29  ;;  %v7027_v52 = vsel %vm3784_vm1, %v7011_v32, %v10392_v50  ;;  %v10395_v54 = vpop.permute.xlu1 %10394 }
 0x993   : > { %v10405_v46 = vpop.permute.xlu0 %10404  ;;  %v10397_v11 = vunpack.i.h.bf16 %v10395_v54  ;;  %v10396_v28 = vunpack.i.l.bf16 %v10395_v54  ;;  %v7042_v2 = vsel %vm3801_vm3, %v7026_v43, %v10386_v37  ;;  %v7043_v34 = vsel %vm3801_vm3, %v7027_v52, %v10387_v58  ;;  %v15167_v43 = vld [vmem:[%s11763_s20 + $0x18] sm:$0xff] }
 0x994   : > { %v10407_v27 = vunpack.i.h.bf16 %v10405_v46  ;;  %v10406_v51 = vunpack.i.l.bf16 %v10405_v46  ;;  %v7090_v39 = vpack.c.bf16 %v7043_v34, %v7042_v2  ;;  %v15174_v52 = vld [vmem:[%s15964_s9 + $0x2] ss:$0 sm:$0xff] }
 0x995   : > { %v7074_v14 = vsel %vm3784_vm1, %v7058_v59, %v10396_v28  ;;  %v7075_v13 = vsel %vm3784_vm1, %v7059_v21, %v10397_v11 }
 0x996   : > { %v7091_v36 = vpack.c.bf16 %v7075_v13, %v7074_v14  ;;  %v10400_v60 = vpop.permute.xlu1 %10399  ;;  %v7061_v42 = vsel %vm2310_vm5, %v6597_v9, %v10407_v27  ;;  %v7060_v38 = vsel %vm2310_vm5, %v15002_v17, %v10406_v51  ;;  %v6517_v17 = vsel %vm761_vm15, %v14962_v31, 0.0 }
 0x997   : > { %v10410_v35 = vpop.permute.xlu0 %10409  ;;  %v10402_v20 = vunpack.i.h.bf16 %v10400_v60  ;;  %v10401_v44 = vunpack.i.l.bf16 %v10400_v60  ;;  %v7347_v31 = vrot.slane %v15167_v43, %v16667_v33 }
 0x998   : > { %v10412_v47 = vunpack.i.h.bf16 %v10410_v35  ;;  %v10411_v61 = vunpack.i.l.bf16 %v10410_v35  ;;  %8963 = vmatprep.mubr.msk.bf16.mxu0 %vm3801_vm3, %v7091_v36 }
 0x999   : > { %7289 = vmatmul.mubr.bf16.gmra.mxu0 %v7090_v39  ;;  %v7012_v50 = vsel %vm2310_vm5, 0.0, %v10401_v44  ;;  %v7013_v29 = vsel %vm2310_vm5, %v6517_v17, %v10402_v20  ;;  %v7363_v54 = vrot.slane %v7347_v31, %v16667_v33  ;;  %v7355_v59 = vcombine.high %v7347_v31, %v7347_v31 }
 0x99a   : > { %v7076_v10 = vsel %vm3784_vm1, %v7060_v38, %v10411_v61  ;;  %v7077_v3 = vsel %vm3784_vm1, %v7061_v42, %v10412_v47  ;;  %v10415_v25 = vpop.permute.xlu1 %10414 }
 0x99b   : > { %v7093_v0 = vpack.c.bf16 %v7077_v3, %v7076_v10  ;;  %v10417_v41 = vunpack.i.h.bf16 %v10415_v25  ;;  %v10416_v5 = vunpack.i.l.bf16 %v10415_v25  ;;  %v7392_v28 = vrot.slane %v7363_v54, %v16668_v1 }
 0x99c   : > { %v7377_v34 = vrot.slane %v7355_v59, %v16667_v33  ;;  %v7385_v25 = vcombine.high %v7363_v54, %v7363_v54 }
 0x99d   : > { %8964 = vmatprep.mubr.msk.bf16.mxu0 %vm3801_vm3, %v7093_v0  ;;  %v7029_v62 = vsel %vm3784_vm1, %v7013_v29, %v10417_v41  ;;  %v7028_v48 = vsel %vm3784_vm1, %v7012_v50, %v10416_v5 }
 0x99e   : > { %v10420_v40 = vpop.permute.xlu1 %10419  ;;  %v7396_v61 = vrot.slane %v7377_v34, %v16668_v1  ;;  %v7400_v50 = vrot.slane %v7385_v25, %v16668_v1 }
 0x99f   : > { %v10422_v16 = vunpack.i.h.bf16 %v10420_v40  ;;  %v10421_v19 = vunpack.i.l.bf16 %v10420_v40 }
 0x9a1   : > { %v7044_v32 = vsel %vm3801_vm3, %v7028_v48, %v10421_v19  ;;  %v7045_v7 = vsel %vm3801_vm3, %v7029_v62, %v10422_v16 }
 0x9a2   : > { %v7092_v53 = vpack.c.bf16 %v7045_v7, %v7044_v32  ;;  %v7387_v7 = vcombine.high %v7377_v34, %v7377_v34 }
 0x9a4   : > { %7297 = vmatmul.mubr.bf16.gmra.mxu0 %v7092_v53  ;;  %v7340_v53 = vcombine.high %v15167_v43, %v15167_v43 }
 0x9a6   : > { %v7354_v59 = vrot.slane %v7340_v53, %v16667_v33 }
 0xa29   : > { %v7242_v46 = vpop.f32.mrf.mxu0 }
 0xa2a   : > { %v7243_v58 = vadd.f32 %v15174_v52, %v7242_v46 }
 0xa2b   : > { %v7244_v37 = vpop.f32.mrf.mxu0 }
 0xa2c   : > { %v7305_v11 = vmax.f32 %v7243_v58, 0.0 }
 0xa2d   : > { %v7245_v21 = vpop.f32.mrf.mxu0 }
 0xa2e   : > { %v15180_v27 = vadd.f32 %v7305_v11, %v14429_v26  ;;  %v7246_v51 = vadd.f32 %v15174_v52, %v7245_v21 }
 0xa2f   : > { %v7247_v14 = vpop.f32.mrf.mxu0 }
 0xa30   : > { %v7306_v13 = vmax.f32 %v7246_v51, 0.0  ;;  %v15184_v2 = vadd.f32 %v7392_v28, %v15180_v27 }
 0xa31   : > { %v7250_v36 = vpop.f32.mrf.mxu0 }
 0xa32   : > { %v15188_v60 = vadd.f32 %v7306_v13, %v14444_v18  ;;  %v7251_v35 = vadd.f32 %v15174_v52, %v7250_v36  ;;  %v7445_v22 = vsel %vm2310_vm5, %v15184_v2, 0.0  ;;  %v7370_v36 = vrot.slane %v7354_v59, %v16667_v33 }
 0xa33   : > { %v7252_v26 = vpop.f32.mrf.mxu0  ;;  %7446 = vadd.xlane.f32.xlu0 %v7445_v22 }
 0xa34   : > { %v7307_v9 = vmax.f32 %v7251_v35, 0.0  ;;  %v15194_v47 = vadd.f32 %v7392_v28, %v15188_v60  ;;  %v7404_v28 = vrot.slane %v7387_v7, %v16668_v1 }
 0xa35   : > { %v7253_v42 = vpop.f32.mrf.mxu0 }
 0xa36   : > { %v15198_v38 = vadd.f32 %v7307_v9, %v14460_v15  ;;  %v7254_v18 = vadd.f32 %v15174_v52, %v7253_v42  ;;  %v7448_v39 = vsel %vm2310_vm5, %v15194_v47, 0.0 }
 0xa37   : > { %v7255_v10 = vpop.f32.mrf.mxu0  ;;  %7449 = vadd.xlane.f32.xlu1 %v7448_v39 }
 0xa38   : > { %v7308_v3 = vmax.f32 %v7254_v18, 0.0  ;;  %v15204_v0 = vadd.f32 %v7396_v61, %v15198_v38  ;;  %v7408_v18 = vrot.slane %v7370_v36, %v16668_v1  ;;  %v7356_v10 = vcombine.high %v7354_v59, %v7354_v59 }
 0xa39   : > { %v7258_v20 = vpop.f32.mrf.mxu0 }
 0xa3a   : > { %v15207_v44 = vadd.f32 %v7308_v3, %v14477_v4  ;;  %v7259_v41 = vadd.f32 %v15174_v52, %v7258_v20  ;;  %v7451_v15 = vsel %vm2310_vm5, %v15204_v0, 0.0 }
 0xa3b   : > { %v7260_v5 = vpop.f32.mrf.mxu0  ;;  %7452 = vadd.xlane.f32.xlu0 %v7451_v15 }
 0xa3c   : > { %v7309_v17 = vmax.f32 %v7259_v41, 0.0  ;;  %v15213_v40 = vadd.f32 %v7396_v61, %v15207_v44  ;;  %v7384_v5 = vrot.slane %v7356_v10, %v16667_v33 }
 0xa3d   : > { %v7261_v29 = vpop.f32.mrf.mxu0 }
 0xa3e   : > { %v15217_v16 = vadd.f32 %v7309_v17, %v14490_v6  ;;  %v7262_v4 = vadd.f32 %v15174_v52, %v7261_v29  ;;  %v7454_v19 = vsel %vm2310_vm5, %v15213_v40, 0.0  ;;  %v7388_v10 = vcombine.high %v7384_v5, %v7384_v5 }
 0xa3f   : > { %v7263_v62 = vpop.f32.mrf.mxu0  ;;  %7455 = vadd.xlane.f32.xlu0 %v7454_v19 }
 0xa40   : > { %v7310_v48 = vmax.f32 %v7262_v4, 0.0  ;;  %v15223_v32 = vadd.f32 %v7400_v50, %v15217_v16 }
 0xa41   : > { %v7266_v31 = vpop.f32.mrf.mxu0 }
 0xa42   : > { %v15228_v54 = vadd.f32 %v7310_v48, %v14502_v57  ;;  %v7267_v6 = vadd.f32 %v15174_v52, %v7266_v31  ;;  %v7457_v46 = vsel %vm2310_vm5, %v15223_v32, 0.0  ;;  %v7412_v48 = vrot.slane %v7384_v5, %v16668_v1 }
 0xa43   : > { %v7268_v58 = vpop.f32.mrf.mxu0  ;;  %7458 = vadd.xlane.f32.xlu1 %v7457_v46 }
 0xa44   : > { %v7311_v37 = vmax.f32 %v7267_v6, 0.0  ;;  %v15234_v11 = vadd.f32 %v7400_v50, %v15228_v54 }
 0xa45   : > { %v7269_v43 = vpop.f32.mrf.mxu0 }
 0xa46   : > { %v15239_v21 = vadd.f32 %v7311_v37, %v14513_v8  ;;  %v7270_v57 = vadd.f32 %v15174_v52, %v7269_v43  ;;  %v7460_v51 = vsel %vm2310_vm5, %v15234_v11, 0.0  ;;  %v7386_v37 = vcombine.high %v7370_v36, %v7370_v36 }
 0xa47   : > { %v7271_v14 = vpop.f32.mrf.mxu0  ;;  %7461 = vadd.xlane.f32.xlu0 %v7460_v51 }
 0xa48   : > { %v7312_v13 = vmax.f32 %v7270_v57, 0.0  ;;  %v15245_v34 = vadd.f32 %v7404_v28, %v15239_v21 }
 0xa49   : > { %v7274_v35 = vpop.f32.mrf.mxu0 }
 0xa4a   : > { %v15249_v22 = vadd.f32 %v7312_v13, %v14525_v56  ;;  %v7275_v8 = vadd.f32 %v15174_v52, %v7274_v35  ;;  %v7463_v26 = vsel %vm2310_vm5, %v15245_v34, 0.0  ;;  %v7416_v13 = vrot.slane %v7386_v37, %v16668_v1 }
 0xa4b   : > { %v7276_v9 = vpop.f32.mrf.mxu0  ;;  %7464 = vadd.xlane.f32.xlu1 %v7463_v26 }
 0xa4c   : > { %v7313_v61 = vmax.f32 %v7275_v8, 0.0  ;;  %v15255_v42 = vadd.f32 %v7404_v28, %v15249_v22 }
 0xa4d   : > { %v7277_v39 = vpop.f32.mrf.mxu0 }
 0xa4e   : > { %v15259_v3 = vadd.f32 %v7313_v61, %v14536_v30  ;;  %v7278_v56 = vadd.f32 %v15174_v52, %v7277_v39  ;;  %v7466_v25 = vsel %vm2310_vm5, %v15255_v42, 0.0 }
 0xa4f   : > { %v7279_v20 = vpop.f32.mrf.mxu0  ;;  %7467 = vadd.xlane.f32.xlu0 %v7466_v25 }
 0xa50   : > { %v7314_v41 = vmax.f32 %v7278_v56, 0.0  ;;  %v15265_v15 = vadd.f32 %v7408_v18, %v15259_v3 }
 0xa51   : > { %v7282_v50 = vpop.f32.mrf.mxu0 }
 0xa52   : > { %v15269_v17 = vadd.f32 %v7314_v41, %v14546_v12  ;;  %v7469_v30 = vsel %vm2310_vm5, %v15265_v15, 0.0  ;;  %v7283_v29 = vadd.f32 %v15174_v52, %v7282_v50 }
 0xa53   : > { %7470 = vadd.xlane.f32.xlu1 %v7469_v30  ;;  %v7284_v4 = vpop.f32.mrf.mxu0  ;;  %v7420_v30 = vrot.slane %v7388_v10, %v16668_v1 }
 0xa54   : > { %v15275_v19 = vadd.f32 %v7408_v18, %v15269_v17  ;;  %v7315_v62 = vmax.f32 %v7283_v29, 0.0 }
 0xa55   : > { %v7285_v7 = vpop.f32.mrf.mxu0 }
 0xa56   : > { %v7472_v53 = vsel %vm2310_vm5, %v15275_v19, 0.0  ;;  %v15281_v12 = vadd.f32 %v7315_v62, %v14561_v55  ;;  %v7286_v31 = vadd.f32 %v15174_v52, %v7285_v7 }
 0xa57   : > { %7473 = vadd.xlane.f32.xlu0 %v7472_v53  ;;  %v7287_v6 = vpop.f32.mrf.mxu0 }
 0xa58   : > { %v7316_v46 = vmax.f32 %v7286_v31, 0.0  ;;  %v15285_v58 = vadd.f32 %v7412_v48, %v15281_v12 }
 0xa59   : > { %v7290_v28 = vpop.f32.mrf.mxu0 }
 0xa5a   : > { %v15288_v59 = vadd.f32 %v7316_v46, %v14571_v63  ;;  %v7291_v43 = vadd.f32 %v15174_v52, %v7290_v28  ;;  %v7475_v57 = vsel %vm2310_vm5, %v15285_v58, 0.0 }
 0xa5b   : > { %v7292_v55 = vpop.f32.mrf.mxu0  ;;  %7476 = vadd.xlane.f32.xlu1 %v7475_v57 }
 0xa5c   : > { %v7317_v51 = vmax.f32 %v7291_v43, 0.0  ;;  %v15294_v14 = vadd.f32 %v7412_v48, %v15288_v59 }
 0xa5d   : > { %v7293_v35 = vpop.f32.mrf.mxu0 }
 0xa5e   : > { %v15298_v36 = vadd.f32 %v7317_v51, %v14584_v49  ;;  %v7294_v63 = vadd.f32 %v15174_v52, %v7293_v35  ;;  %v7478_v8 = vsel %vm2310_vm5, %v15294_v14, 0.0 }
 0xa5f   : > { %v7295_v26 = vpop.f32.mrf.mxu0  ;;  %7479 = vadd.xlane.f32.xlu0 %v7478_v8 }
 0xa60   : > { %v7318_v9 = vmax.f32 %v7294_v63, 0.0  ;;  %v15304_v61 = vadd.f32 %v7416_v13, %v15298_v36 }
 0xa62   : > { %v15307_v18 = vadd.f32 %v7318_v9, %v14592_v45  ;;  %v7481_v39 = vsel %vm2310_vm5, %v15304_v61, 0.0 }
 0xa63   : > { %7482 = vadd.xlane.f32.xlu1 %v7481_v39 }
 0xa64   : > { %v7298_v49 = vpop.f32.mrf.mxu0  ;;  %v15313_v25 = vadd.f32 %v7416_v13, %v15307_v18 }
 0xa65   : > { %v7299_v56 = vadd.f32 %v15174_v52, %v7298_v49 }
 0xa66   : > { %v7300_v20 = vpop.f32.mrf.mxu0  ;;  %v7484_v50 = vsel %vm2310_vm5, %v15313_v25, 0.0 }
 0xa67   : > { %v7319_v41 = vmax.f32 %v7299_v56, 0.0  ;;  %7485 = vadd.xlane.f32.xlu0 %v7484_v50 }
 0xa68   : > { %v7301_v45 = vpop.f32.mrf.mxu0 }
 0xa69   : > { %v15319_v29 = vadd.f32 %v7319_v41, %v14579_v24  ;;  %v7302_v5 = vadd.f32 %v15174_v52, %v7301_v45 }
 0xa6a   : > { %v7303_v4 = vpop.f32.mrf.mxu0 }
 0xa6b   : > { %v7320_v62 = vmax.f32 %v7302_v5, 0.0  ;;  %v15323_v48 = vadd.f32 %v7420_v30, %v15319_v29 }
 0xa6d   : > { %v15326_v7 = vadd.f32 %v7320_v62, %v14455_v23  ;;  %v7487_v53 = vsel %vm2310_vm5, %v15323_v48, 0.0 }
 0xa6e   : > { %7488 = vadd.xlane.f32.xlu1 %v7487_v53 }
 0xa6f   : > { %v15331_v31 = vadd.f32 %v7420_v30, %v15326_v7 }
 0xa71   : > { %v7490_v24 = vsel %vm2310_vm5, %v15331_v31, 0.0 }
 0xa72   : > { %7491 = vadd.xlane.f32.xlu0 %v7490_v24 }
 0xabc   : > { %v7447_v52 = vpop.xlane.xlu0 %7446 }
 0xabd   : > { %v7493_v6 = vmul.f32 0.03125, %v7447_v52 }
 0xabf   : > { %v15336_v46 = vsub.f32 %v15184_v2, %v7493_v6 }
 0xac0   : > { %v7450_v37 = vpop.xlane.xlu1 %7449 }
 0xac1   : > { %v7494_v28 = vmul.f32 0.03125, %v7450_v37  ;;  %v7525_v23 = vmul.f32 %v15336_v46, %v15336_v46 }
 0xac3   : > { %v15341_v43 = vsub.f32 %v15194_v47, %v7494_v28  ;;  %v7541_v57 = vsel %vm2310_vm5, %v7525_v23, 0.0 }
 0xac4   : > { %7542 = vadd.xlane.f32.xlu1 %v7541_v57  ;;  %v7453_v55 = vpop.xlane.xlu0 %7452 }
 0xac5   : > { %v7495_v51 = vmul.f32 0.03125, %v7453_v55  ;;  %v7526_v13 = vmul.f32 %v15341_v43, %v15341_v43 }
 0xac7   : > { %v15347_v35 = vsub.f32 %v15204_v0, %v7495_v51  ;;  %v7544_v2 = vsel %vm2310_vm5, %v7526_v13, 0.0 }
 0xac8   : > { %7545 = vadd.xlane.f32.xlu0 %v7544_v2  ;;  %v7456_v63 = vpop.xlane.xlu0 %7455 }
 0xac9   : > { %v7496_v8 = vmul.f32 0.03125, %v7456_v63  ;;  %v7527_v47 = vmul.f32 %v15347_v35, %v15347_v35 }
 0xacb   : > { %v15353_v26 = vsub.f32 %v15213_v40, %v7496_v8  ;;  %v7547_v9 = vsel %vm2310_vm5, %v7527_v47, 0.0 }
 0xacc   : > { %v7459_v39 = vpop.xlane.xlu1 %7458  ;;  %7548 = vadd.xlane.f32.xlu1 %v7547_v9 }
 0xacd   : > { %v7497_v10 = vmul.f32 0.03125, %v7459_v39  ;;  %v7528_v0 = vmul.f32 %v15353_v26, %v15353_v26 }
 0xacf   : > { %v15359_v49 = vsub.f32 %v15223_v32, %v7497_v10  ;;  %v7550_v56 = vsel %vm2310_vm5, %v7528_v0, 0.0 }
 0xad0   : > { %7551 = vadd.xlane.f32.xlu0 %v7550_v56  ;;  %v7462_v20 = vpop.xlane.xlu0 %7461 }
 0xad1   : > { %v7498_v41 = vmul.f32 0.03125, %v7462_v20  ;;  %v7529_v40 = vmul.f32 %v15359_v49, %v15359_v49 }
 0xad3   : > { %v15365_v50 = vsub.f32 %v15234_v11, %v7498_v41  ;;  %v7553_v30 = vsel %vm2310_vm5, %v7529_v40, 0.0 }
 0xad4   : > { %v7465_v45 = vpop.xlane.xlu1 %7464  ;;  %7554 = vadd.xlane.f32.xlu1 %v7553_v30 }
 0xad5   : > { %v7499_v5 = vmul.f32 0.03125, %v7465_v45  ;;  %v7530_v32 = vmul.f32 %v15365_v50, %v15365_v50 }
 0xad7   : > { %v15371_v4 = vsub.f32 %v15245_v34, %v7499_v5  ;;  %v7556_v62 = vsel %vm2310_vm5, %v7530_v32, 0.0 }
 0xad8   : > { %7557 = vadd.xlane.f32.xlu0 %v7556_v62  ;;  %v7468_v53 = vpop.xlane.xlu0 %7467  ;;  %v10481_v62 = vld [vmem:[%s15961_s6] sm:$0xff]  }
 0xad9   : > { %v7500_v24 = vmul.f32 0.03125, %v7468_v53  ;;  %v7531_v11 = vmul.f32 %v15371_v4, %v15371_v4 }
 0xadb   : > { %v15377_v52 = vsub.f32 %v15255_v42, %v7500_v24  ;;  %v7559_v6 = vsel %vm2310_vm5, %v7531_v11, 0.0 }
 0xadc   : > { %v7471_v37 = vpop.xlane.xlu1 %7470  ;;  %7560 = vadd.xlane.f32.xlu1 %v7559_v6 }
 0xadd   : > { %v7501_v28 = vmul.f32 0.03125, %v7471_v37  ;;  %v7532_v34 = vmul.f32 %v15377_v52, %v15377_v52 }
 0xadf   : > { %v15383_v23 = vsub.f32 %v15265_v15, %v7501_v28  ;;  %v7562_v57 = vsel %vm2310_vm5, %v7532_v34, 0.0 }
 0xae0   : > { %7563 = vadd.xlane.f32.xlu0 %v7562_v57  ;;  %v7474_v55 = vpop.xlane.xlu0 %7473 }
 0xae1   : > { %v7502_v51 = vmul.f32 0.03125, %v7474_v55  ;;  %v7533_v42 = vmul.f32 %v15383_v23, %v15383_v23 }
 0xae3   : > { %v15389_v13 = vsub.f32 %v15275_v19, %v7502_v51  ;;  %v7565_v2 = vsel %vm2310_vm5, %v7533_v42, 0.0 }
 0xae4   : > { %7566 = vadd.xlane.f32.xlu1 %v7565_v2  ;;  %v7477_v63 = vpop.xlane.xlu1 %7476 }
 0xae5   : > { %v7534_v8 = vmul.f32 %v15389_v13, %v15389_v13  ;;  %v7503_v15 = vmul.f32 0.03125, %v7477_v63 }
 0xae7   : > { %v7568_v47 = vsel %vm2310_vm5, %v7534_v8, 0.0  ;;  %v15396_v9 = vsub.f32 %v15285_v58, %v7503_v15  ;;  %v10480_v58 = vld [vmem:[%s15961_s6 + $0x8] sm:$0xff]  }
 0xae8   : > { %7569 = vadd.xlane.f32.xlu0 %v7568_v47  ;;  %v7480_v39 = vpop.xlane.xlu0 %7479  ;;  %9287 = vmatprep.subr.bf16.mxu1 %v10480_v58 }
 0xae9   : > { %v7504_v10 = vmul.f32 0.03125, %v7480_v39  ;;  %v7535_v19 = vmul.f32 %v15396_v9, %v15396_v9  ;;  %9288 = vmatpush3.bf16.msra.mxu1 %v10480_v58 }
 0xaea   : > { %9289 = vmatprep.subr.bf16.mxu1 %v10481_v62 }
 0xaeb   : > { %v15401_v0 = vsub.f32 %v15294_v14, %v7504_v10  ;;  %v7571_v56 = vsel %vm2310_vm5, %v7535_v19, 0.0 }
 0xaec   : > { %v7483_v20 = vpop.xlane.xlu1 %7482  ;;  %7572 = vadd.xlane.f32.xlu1 %v7571_v56 }
 0xaed   : > { %v7505_v41 = vmul.f32 0.03125, %v7483_v20  ;;  %v7536_v40 = vmul.f32 %v15401_v0, %v15401_v0  ;;  %9290 = vmatpush3.bf16.msra.mxu1 %v10481_v62 }
 0xaef   : > { %v15410_v30 = vsub.f32 %v15304_v61, %v7505_v41  ;;  %v7574_v45 = vsel %vm2310_vm5, %v7536_v40, 0.0 }
 0xaf0   : > { %7575 = vadd.xlane.f32.xlu0 %v7574_v45  ;;  %v7486_v14 = vpop.xlane.xlu0 %7485 }
 0xaf1   : > { %v7506_v5 = vmul.f32 0.03125, %v7486_v14  ;;  %v7537_v32 = vmul.f32 %v15410_v30, %v15410_v30 }
 0xaf3   : > { %v15419_v53 = vsub.f32 %v15313_v25, %v7506_v5  ;;  %v7577_v61 = vsel %vm2310_vm5, %v7537_v32, 0.0  ;;  %v15441_v32 = vld [vmem:[%s15963_s8 + $0x3] ss:$0 sm:$0xff] }
 0xaf4   : > { %7578 = vadd.xlane.f32.xlu1 %v7577_v61 }
 0xaf5   : > { %v7538_v24 = vmul.f32 %v15419_v53, %v15419_v53 }
 0xaf7   : > { %v7489_v11 = vpop.xlane.xlu1 %7488  ;;  %v7580_v37 = vsel %vm2310_vm5, %v7538_v24, 0.0 }
 0xaf8   : > { %v7507_v6 = vmul.f32 0.03125, %v7489_v11  ;;  %7581 = vadd.xlane.f32.xlu0 %v7580_v37 }
 0xafa   : > { %v15426_v28 = vsub.f32 %v15323_v48, %v7507_v6 }
 0xafb   : > { %v7492_v34 = vpop.xlane.xlu0 %7491 }
 0xafc   : > { %v7508_v57 = vmul.f32 0.03125, %v7492_v34  ;;  %v7539_v25 = vmul.f32 %v15426_v28, %v15426_v28 }
 0xafe   : > { %v15431_v55 = vsub.f32 %v15331_v31, %v7508_v57  ;;  %v7583_v51 = vsel %vm2310_vm5, %v7539_v25, 0.0  ;;  %v15448_v57 = vld [vmem:[%s15963_s8 + $0x8] ss:$0 sm:$0xff] }
 0xaff   : > { %7584 = vadd.xlane.f32.xlu1 %v7583_v51 }
 0xb00   : > { %v7540_v42 = vmul.f32 %v15431_v55, %v15431_v55 }
 0xb02   : > { %v7586_v2 = vsel %vm2310_vm5, %v7540_v42, 0.0 }
 0xb03   : > { %7587 = vadd.xlane.f32.xlu0 %v7586_v2 }
 0xb4d   : > { %v7543_v63 = vpop.xlane.xlu1 %7542 }
 0xb4e   : > { %v7589_v48 = vmul.f32 0.03125, %v7543_v63 }
 0xb50   : > { %v7605_v8 = vadd.f32 1e-05, %v7589_v48 }
 0xb51   : > { %v7546_v15 = vpop.xlane.xlu0 %7545 }
 0xb52   : > { %10585 = vrsqrt.f32 %v7605_v8  ;;  %v7590_v47 = vmul.f32 0.03125, %v7546_v15 }
 0xb54   : > { %v7606_v39 = vadd.f32 1e-05, %v7590_v47 }
 0xb55   : > { %v7549_v10 = vpop.xlane.xlu1 %7548 }
 0xb56   : > { %10587 = vrsqrt.f32 %v7606_v39  ;;  %v7591_v31 = vmul.f32 0.03125, %v7549_v10 }
 0xb58   : > { %v7607_v19 = vadd.f32 1e-05, %v7591_v31 }
 0xb59   : > { %v7552_v56 = vpop.xlane.xlu0 %7551 }
 0xb5a   : > { %10589 = vrsqrt.f32 %v7607_v19  ;;  %v7592_v20 = vmul.f32 0.03125, %v7552_v56 }
 0xb5c   : > { %v7608_v41 = vadd.f32 1e-05, %v7592_v20 }
 0xb5d   : > { %v7555_v40 = vpop.xlane.xlu1 %7554 }
 0xb5e   : > { %10591 = vrsqrt.f32 %v7608_v41  ;;  %v7593_v58 = vmul.f32 0.03125, %v7555_v40 }
 0xb5f   : > { %v10586_v45 = vpop.eup %10585 }
 0xb60   : > { %v7609_v14 = vadd.f32 1e-05, %v7593_v58  ;;  %v7637_v5 = vmul.f32 %v10586_v45, %v15336_v46 }
 0xb61   : > { %v7558_v62 = vpop.xlane.xlu0 %7557 }
 0xb62   : > { %10593 = vrsqrt.f32 %v7609_v14  ;;  %v7594_v61 = vmul.f32 0.03125, %v7558_v62  ;;  %v7661_v37 = vmul.f32 %v15441_v32, %v7637_v5 }
 0xb63   : > { %v10588_v24 = vpop.eup %10587 }
 0xb64   : > { %v7610_v11 = vadd.f32 1e-05, %v7594_v61  ;;  %v7638_v6 = vmul.f32 %v10588_v24, %v15341_v43  ;;  %v7685_v63 = vadd.f32 %v15448_v57, %v7661_v37 }
 0xb65   : > { %v7561_v34 = vpop.xlane.xlu1 %7560 }
 0xb66   : > { %10595 = vrsqrt.f32 %v7610_v11  ;;  %v7595_v46 = vmul.f32 0.03125, %v7561_v34  ;;  %v7662_v25 = vmul.f32 %v15441_v32, %v7638_v6 }
 0xb67   : > { %v10590_v51 = vpop.eup %10589 }
 0xb68   : > { %v7639_v42 = vmul.f32 %v10590_v51, %v15347_v35  ;;  %v7611_v2 = vadd.f32 1e-05, %v7595_v46  ;;  %v7686_v43 = vadd.f32 %v15448_v57, %v7662_v25 }
 0xb69   : > { %v7564_v48 = vpop.xlane.xlu0 %7563 }
 0xb6a   : > { %10597 = vrsqrt.f32 %v7611_v2  ;;  %v7596_v8 = vmul.f32 0.03125, %v7564_v48  ;;  %v7707_v15 = vpack.c.bf16 %v7686_v43, %v7685_v63  ;;  %v7663_v39 = vmul.f32 %v15441_v32, %v7639_v42 }
 0xb6b   : > { %v10592_v47 = vpop.eup %10591 }
 0xb6c   : > { %v7640_v10 = vmul.f32 %v10592_v47, %v15353_v26  ;;  %v7612_v31 = vadd.f32 1e-05, %v7596_v8  ;;  %9291 = vmatprep.mubr.msk.bf16.mxu1 %vm2310_vm5, %v7707_v15  ;;  %v7687_v40 = vadd.f32 %v15448_v57, %v7663_v39 }
 0xb6d   : > { %v7567_v19 = vpop.xlane.xlu1 %7566 }
 0xb6e   : > { %v7664_v35 = vmul.f32 %v15441_v32, %v7640_v10  ;;  %10599 = vrsqrt.f32 %v7612_v31  ;;  %v7597_v56 = vmul.f32 0.03125, %v7567_v19 }
 0xb6f   : > { %v10594_v20 = vpop.eup %10593 }
 0xb70   : > { %v7613_v41 = vadd.f32 1e-05, %v7597_v56  ;;  %v7688_v58 = vadd.f32 %v15448_v57, %v7664_v35  ;;  %v7641_v45 = vmul.f32 %v10594_v20, %v15359_v49 }
 0xb71   : > { %v7570_v14 = vpop.xlane.xlu0 %7569 }
 0xb72   : > { %10601 = vrsqrt.f32 %v7613_v41  ;;  %v7598_v5 = vmul.f32 0.03125, %v7570_v14  ;;  %v7708_v26 = vpack.c.bf16 %v7688_v58, %v7687_v40  ;;  %v7665_v11 = vmul.f32 %v15441_v32, %v7641_v45 }
 0xb73   : > { %v10596_v62 = vpop.eup %10595 }
 0xb74   : > { %v7614_v61 = vadd.f32 1e-05, %v7598_v5  ;;  %9292 = vmatmul.mubr.msk.bf16.vlgmr.msra.gmra.mxu1 %vm2310_vm5, %v7708_v26  ;;  %v7642_v24 = vmul.f32 %v10596_v62, %v15365_v50  ;;  %v7689_v49 = vadd.f32 %v15448_v57, %v7665_v11 }
 0xb75   : > { %v7573_v6 = vpop.xlane.xlu1 %7572 }
 0xb76   : > { %10603 = vrsqrt.f32 %v7614_v61  ;;  %v7666_v37 = vmul.f32 %v15441_v32, %v7642_v24  ;;  %v7599_v46 = vmul.f32 0.03125, %v7573_v6 }
 0xb77   : > { %v10598_v34 = vpop.eup %10597 }
 0xb78   : > { %v7690_v25 = vadd.f32 %v15448_v57, %v7666_v37  ;;  %v7643_v51 = vmul.f32 %v10598_v34, %v15371_v4  ;;  %v7615_v42 = vadd.f32 1e-05, %v7599_v46 }
 0xb79   : > { %v7576_v2 = vpop.xlane.xlu0 %7575 }
 0xb7a   : > { %v7709_v63 = vpack.c.bf16 %v7690_v25, %v7689_v49  ;;  %10605 = vrsqrt.f32 %v7615_v42  ;;  %v7600_v50 = vmul.f32 0.03125, %v7576_v2  ;;  %v7667_v8 = vmul.f32 %v15441_v32, %v7643_v51 }
 0xb7b   : > { %v10600_v43 = vpop.eup %10599 }
 0xb7c   : > { %9295 = vmatprep.mubr.msk.bf16.mxu1 %vm2310_vm5, %v7709_v63  ;;  %v7644_v48 = vmul.f32 %v10600_v43, %v15377_v52  ;;  %v7616_v15 = vadd.f32 1e-05, %v7600_v50  ;;  %v7691_v4 = vadd.f32 %v15448_v57, %v7667_v8 }
 0xb7d   : > { %v7579_v47 = vpop.xlane.xlu1 %7578 }
 0xb7e   : > { %v7668_v39 = vmul.f32 %v15441_v32, %v7644_v48  ;;  %10607 = vrsqrt.f32 %v7616_v15  ;;  %v7601_v31 = vmul.f32 0.03125, %v7579_v47 }
 0xb7f   : > { %v10602_v10 = vpop.eup %10601 }
 0xb80   : > { %v7692_v19 = vadd.f32 %v15448_v57, %v7668_v39  ;;  %v7645_v35 = vmul.f32 %v10602_v10, %v15383_v23  ;;  %v7617_v56 = vadd.f32 1e-05, %v7601_v31 }
 0xb81   : > { %v7582_v20 = vpop.xlane.xlu0 %7581 }
 0xb82   : > { %v7710_v41 = vpack.c.bf16 %v7692_v19, %v7691_v4  ;;  %10609 = vrsqrt.f32 %v7617_v56  ;;  %v7602_v52 = vmul.f32 0.03125, %v7582_v20  ;;  %v7669_v45 = vmul.f32 %v15441_v32, %v7645_v35 }
 0xb83   : > { %v10604_v40 = vpop.eup %10603 }
 0xb84   : > { %9296 = vmatmul.mubr.msk.bf16.gmra.mxu1 %vm2310_vm5, %v7710_v41  ;;  %v7646_v58 = vmul.f32 %v10604_v40, %v15389_v13  ;;  %v7618_v14 = vadd.f32 1e-05, %v7602_v52  ;;  %v7693_v23 = vadd.f32 %v15448_v57, %v7669_v45  ;;  %v8982_v40 = vld [vmem:[%s11763_s20 + $0x20] sm:$0xff]  ;;  %s15911_s20 = scalar_lea.vmem %s15968_s13, %s9024_s24 }
 0xb85   : > { %v7896_v52 = vrot.slane %v8982_v40, %v16667_v33 }
 0xb86   : > { %v7670_v5 = vmul.f32 %v15441_v32, %v7646_v58  ;;  %10611 = vrsqrt.f32 %v7618_v14 }
 0xb87   : > { %v10606_v26 = vpop.eup %10605 }
 0xb88   : > { %v7585_v62 = vpop.xlane.xlu1 %7584  ;;  %v7694_v61 = vadd.f32 %v15448_v57, %v7670_v5  ;;  %v7647_v11 = vmul.f32 %v10606_v26, %v15396_v9 }
 0xb89   : > { %v7603_v24 = vmul.f32 0.03125, %v7585_v62 }
 0xb8a   : > { %v7711_v6 = vpack.c.bf16 %v7694_v61, %v7693_v23  ;;  %v7671_v25 = vmul.f32 %v15441_v32, %v7647_v11 }
 0xb8b   : > { %v7619_v37 = vadd.f32 1e-05, %v7603_v24  ;;  %v10608_v34 = vpop.eup %10607 }
 0xb8c   : > { %9299 = vmatprep.mubr.msk.bf16.mxu1 %vm2310_vm5, %v7711_v6  ;;  %v7588_v13 = vpop.xlane.xlu0 %7587  ;;  %v7648_v49 = vmul.f32 %v10608_v34, %v15401_v0  ;;  %v7695_v63 = vadd.f32 %v15448_v57, %v7671_v25 }
 0xb8d   : > { %10613 = vrsqrt.f32 %v7619_v37  ;;  %v7604_v46 = vmul.f32 0.03125, %v7588_v13 }
 0xb8e   : > { %v7672_v42 = vmul.f32 %v15441_v32, %v7648_v49 }
 0xb8f   : > { %v7620_v51 = vadd.f32 1e-05, %v7604_v46  ;;  %v10610_v2 = vpop.eup %10609 }
 0xb90   : > { %v7696_v9 = vadd.f32 %v15448_v57, %v7672_v42  ;;  %v7649_v43 = vmul.f32 %v10610_v2, %v15410_v30 }
 0xb91   : > { %10615 = vrsqrt.f32 %v7620_v51 }
 0xb92   : > { %v7712_v50 = vpack.c.bf16 %v7696_v9, %v7695_v63  ;;  %v7673_v0 = vmul.f32 %v15441_v32, %v7649_v43 }
 0xb93   : > { %v10612_v48 = vpop.eup %10611 }
 0xb94   : > { %9300 = vmatmul.mubr.msk.bf16.gmra.mxu1 %vm2310_vm5, %v7712_v50  ;;  %v7650_v8 = vmul.f32 %v10612_v48, %v15419_v53  ;;  %v7697_v47 = vadd.f32 %v15448_v57, %v7673_v0 }
 0xb96   : > { %v7674_v15 = vmul.f32 %v15441_v32, %v7650_v8 }
 0xb98   : > { %v7698_v39 = vadd.f32 %v15448_v57, %v7674_v15 }
 0xb9a   : > { %v10614_v10 = vpop.eup %10613  ;;  %v7713_v31 = vpack.c.bf16 %v7698_v39, %v7697_v47 }
 0xb9b   : > { %v7651_v4 = vmul.f32 %v10614_v10, %v15426_v28  ;;  %v15508_v28 = vld [vmem:[%s15964_s9 + $0x3] ss:$0 sm:$0xff] }
 0xb9c   : > { %9303 = vmatprep.mubr.msk.bf16.mxu1 %vm2310_vm5, %v7713_v31 }
 0xb9d   : > { %v7675_v53 = vmul.f32 %v15441_v32, %v7651_v4 }
 0xb9e   : > { %v10616_v30 = vpop.eup %10615 }
 0xb9f   : > { %v7652_v19 = vmul.f32 %v10616_v30, %v15431_v55  ;;  %v7699_v56 = vadd.f32 %v15448_v57, %v7675_v53  ;;  %v7904_v55 = vcombine.high %v7896_v52, %v7896_v52  ;;  %v7889_v53 = vcombine.high %v8982_v40, %v8982_v40 }
 0xba1   : > { %v7676_v35 = vmul.f32 %v15441_v32, %v7652_v19  ;;  %v7912_v32 = vrot.slane %v7896_v52, %v16667_v33 }
 0xba3   : > { %v7700_v20 = vadd.f32 %v15448_v57, %v7676_v35  ;;  %v7926_v57 = vrot.slane %v7904_v55, %v16667_v33  ;;  %v7941_v24 = vrot.slane %v7912_v32, %v16668_v1  ;;  %v7934_v50 = vcombine.high %v7912_v32, %v7912_v32 }
 0xba5   : > { %v7714_v41 = vpack.c.bf16 %v7700_v20, %v7699_v56  ;;  %v7945_v6 = vrot.slane %v7926_v57, %v16668_v1  ;;  %v7936_v8 = vcombine.high %v7926_v57, %v7926_v57  ;;  %v7949_v4 = vrot.slane %v7934_v50, %v16668_v1 }
 0xba7   : > { %9304 = vmatmul.mubr.msk.bf16.gmra.mxu1 %vm2310_vm5, %v7714_v41  ;;  %v7953_v19 = vrot.slane %v7936_v8, %v16668_v1 }
 0xc34   : > { %v9293_v58 = vpop.f32.mrf.mxu1 }
 0xc35   : > { %v7800_v45 = vadd.f32 %v9293_v58, %v15508_v28  ;;  %v7903_v58 = vrot.slane %v7889_v53, %v16667_v33 }
 0xc36   : > { %v7791_v14 = vpop.f32.mrf.mxu1 }
 0xc37   : > { %v7856_v5 = vmax.f32 %v7800_v45, 0.0  ;;  %v7792_v26 = vadd.f32 %v15508_v28, %v7791_v14 }
 0xc38   : > { %v9294_v62 = vpop.f32.mrf.mxu1 }
 0xc39   : > { %v7854_v23 = vmax.f32 %v7792_v26, 0.0  ;;  %v7803_v61 = vadd.f32 %v9294_v62, %v15508_v28  ;;  %v15518_v37 = vadd.f32 %v7856_v5, %v15198_v38  ;;  %v7919_v62 = vrot.slane %v7903_v58, %v16667_v33 }
 0xc3a   : > { %v7794_v11 = vpop.f32.mrf.mxu1 }
 0xc3b   : > { %v15521_v34 = vadd.f32 %v7854_v23, %v15180_v27  ;;  %v7857_v13 = vmax.f32 %v7803_v61, 0.0  ;;  %v7795_v46 = vadd.f32 %v15508_v28, %v7794_v11  ;;  %v15536_v2 = vadd.f32 %v7945_v6, %v15518_v37 }
 0xc3d   : > { %v7855_v49 = vmax.f32 %v7795_v46, 0.0  ;;  %v15525_v25 = vadd.f32 %v7941_v24, %v15521_v34  ;;  %v15528_v51 = vadd.f32 %v7857_v13, %v15207_v44  ;;  %v8000_v44 = vsel %vm2310_vm5, %v15536_v2, 0.0 }
 0xc3f   : > { %v15531_v42 = vadd.f32 %v7855_v49, %v15188_v60  ;;  %v7994_v38 = vsel %vm2310_vm5, %v15525_v25, 0.0  ;;  %v15546_v9 = vadd.f32 %v7945_v6, %v15528_v51 }
 0xc40   : > { %7995 = vadd.xlane.f32.xlu1 %v7994_v38  ;;  %v7957_v38 = vrot.slane %v7919_v62, %v16668_v1 }
 0xc41   : > { %v15539_v27 = vadd.f32 %v7941_v24, %v15531_v42  ;;  %v8003_v47 = vsel %vm2310_vm5, %v15546_v9, 0.0 }
 0xc43   : > { %v7997_v63 = vsel %vm2310_vm5, %v15539_v27, 0.0 }
 0xc44   : > { %7998 = vadd.xlane.f32.xlu0 %v7997_v63  ;;  %8001 = vadd.xlane.f32.xlu1 %v8000_v44  ;;  %v9297_v60 = vpop.f32.mrf.mxu1 }
 0xc45   : > { %v7816_v43 = vadd.f32 %v9297_v60, %v15508_v28 }
 0xc46   : > { %v7807_v48 = vpop.f32.mrf.mxu1 }
 0xc47   : > { %v7860_v0 = vmax.f32 %v7816_v43, 0.0  ;;  %v7808_v15 = vadd.f32 %v15508_v28, %v7807_v48 }
 0xc48   : > { %8004 = vadd.xlane.f32.xlu0 %v8003_v47  ;;  %v9298_v39 = vpop.f32.mrf.mxu1 }
 0xc49   : > { %v7858_v10 = vmax.f32 %v7808_v15, 0.0  ;;  %v7819_v31 = vadd.f32 %v9298_v39, %v15508_v28  ;;  %v15556_v35 = vadd.f32 %v7860_v0, %v15239_v21 }
 0xc4a   : > { %v7810_v30 = vpop.f32.mrf.mxu1 }
 0xc4b   : > { %v15559_v56 = vadd.f32 %v7858_v10, %v15217_v16  ;;  %v7861_v20 = vmax.f32 %v7819_v31, 0.0  ;;  %v7811_v41 = vadd.f32 %v15508_v28, %v7810_v30  ;;  %v15575_v16 = vadd.f32 %v7953_v19, %v15556_v35 }
 0xc4c   : > { %v7935_v30 = vcombine.high %v7919_v62, %v7919_v62 }
 0xc4d   : > { %v7859_v52 = vmax.f32 %v7811_v41, 0.0  ;;  %v15563_v55 = vadd.f32 %v7949_v4, %v15559_v56  ;;  %v15567_v45 = vadd.f32 %v7861_v20, %v15249_v22  ;;  %v8012_v22 = vsel %vm2310_vm5, %v15575_v16, 0.0 }
 0xc4f   : > { %v15570_v40 = vadd.f32 %v7859_v52, %v15228_v54  ;;  %v8006_v21 = vsel %vm2310_vm5, %v15563_v55, 0.0  ;;  %v15585_v57 = vadd.f32 %v7953_v19, %v15567_v45  ;;  %v7905_v54 = vcombine.high %v7903_v58, %v7903_v58 }
 0xc50   : > { %8007 = vadd.xlane.f32.xlu1 %v8006_v21 }
 0xc51   : > { %v15578_v32 = vadd.f32 %v7949_v4, %v15570_v40  ;;  %v8015_v61 = vsel %vm2310_vm5, %v15585_v57, 0.0  ;;  %v7933_v24 = vrot.slane %v7905_v54, %v16667_v33 }
 0xc53   : > { %v8009_v14 = vsel %vm2310_vm5, %v15578_v32, 0.0  ;;  %v7961_v44 = vrot.slane %v7933_v24, %v16668_v1  ;;  %v7937_v53 = vcombine.high %v7933_v24, %v7933_v24 }
 0xc54   : > { %8010 = vadd.xlane.f32.xlu0 %v8009_v14  ;;  %8013 = vadd.xlane.f32.xlu1 %v8012_v22  ;;  %v9301_v5 = vpop.f32.mrf.mxu1  ;;  %v7965_v14 = vrot.slane %v7935_v30, %v16668_v1 }
 0xc55   : > { %v7832_v26 = vadd.f32 %v9301_v5, %v15508_v28  ;;  %v7969_v54 = vrot.slane %v7937_v53, %v16668_v1 }
 0xc56   : > { %v7823_v23 = vpop.f32.mrf.mxu1 }
 0xc57   : > { %v7864_v11 = vmax.f32 %v7832_v26, 0.0  ;;  %v7824_v6 = vadd.f32 %v15508_v28, %v7823_v23 }
 0xc58   : > { %8016 = vadd.xlane.f32.xlu0 %v8015_v61  ;;  %v9302_v13 = vpop.f32.mrf.mxu1 }
 0xc59   : > { %v7862_v46 = vmax.f32 %v7824_v6, 0.0  ;;  %v7835_v49 = vadd.f32 %v9302_v13, %v15508_v28  ;;  %v15597_v60 = vadd.f32 %v7864_v11, %v15281_v12 }
 0xc5a   : > { %v7826_v63 = vpop.f32.mrf.mxu1 }
 0xc5b   : > { %v15600_v43 = vadd.f32 %v7862_v46, %v15259_v3  ;;  %v7865_v33 = vmax.f32 %v7835_v49, 0.0  ;;  %v7827_v50 = vadd.f32 %v15508_v28, %v7826_v63  ;;  %v15615_v47 = vadd.f32 %v7961_v44, %v15597_v60 }
 0xc5d   : > { %v7863_v48 = vmax.f32 %v7827_v50, 0.0  ;;  %v15604_v8 = vadd.f32 %v7957_v38, %v15600_v43  ;;  %v15607_v0 = vadd.f32 %v7865_v33, %v15288_v59  ;;  %v8024_v59 = vsel %vm2310_vm5, %v15615_v47, 0.0 }
 0xc5f   : > { %v15610_v15 = vadd.f32 %v7863_v48, %v15269_v17  ;;  %v8018_v12 = vsel %vm2310_vm5, %v15604_v8, 0.0  ;;  %v15625_v10 = vadd.f32 %v7961_v44, %v15607_v0 }
 0xc60   : > { %8019 = vadd.xlane.f32.xlu1 %v8018_v12 }
 0xc61   : > { %v15618_v3 = vadd.f32 %v7957_v38, %v15610_v15  ;;  %v8027_v4 = vsel %vm2310_vm5, %v15625_v10, 0.0 }
 0xc63   : > { %v8021_v39 = vsel %vm2310_vm5, %v15618_v3, 0.0 }
 0xc64   : > { %8022 = vadd.xlane.f32.xlu0 %v8021_v39  ;;  %8025 = vadd.xlane.f32.xlu1 %v8024_v59 }
 0xc67   : > { %v9305_v17 = vpop.f32.mrf.mxu1 }
 0xc68   : > { %v7848_v31 = vadd.f32 %v9305_v17, %v15508_v28  ;;  %8028 = vadd.xlane.f32.xlu0 %v8027_v4 }
 0xc69   : > { %v7839_v19 = vpop.f32.mrf.mxu1 }
 0xc6a   : > { %v7868_v20 = vmax.f32 %v7848_v31, 0.0  ;;  %v7840_v41 = vadd.f32 %v15508_v28, %v7839_v19 }
 0xc6b   : > { %v9306_v52 = vpop.f32.mrf.mxu1 }
 0xc6c   : > { %v7866_v58 = vmax.f32 %v7840_v41, 0.0  ;;  %v7851_v21 = vadd.f32 %v9306_v52, %v15508_v28  ;;  %v15635_v5 = vadd.f32 %v7868_v20, %v15319_v29 }
 0xc6d   : > { %v7842_v22 = vpop.f32.mrf.mxu1 }
 0xc6e   : > { %v15638_v26 = vadd.f32 %v7866_v58, %v15298_v36  ;;  %v7869_v62 = vmax.f32 %v7851_v21, 0.0  ;;  %v7843_v23 = vadd.f32 %v15508_v28, %v7842_v22  ;;  %v15653_v29 = vadd.f32 %v7969_v54, %v15635_v5 }
 0xc70   : > { %v7867_v61 = vmax.f32 %v7843_v23, 0.0  ;;  %v15642_v24 = vadd.f32 %v7965_v14, %v15638_v26  ;;  %v15645_v11 = vadd.f32 %v7869_v62, %v15326_v7  ;;  %v8036_v7 = vsel %vm2310_vm5, %v15653_v29, 0.0 }
 0xc72   : > { %v15648_v6 = vadd.f32 %v7867_v61, %v15307_v18  ;;  %v8030_v1 = vsel %vm2310_vm5, %v15642_v24, 0.0  ;;  %v15663_v13 = vadd.f32 %v7969_v54, %v15645_v11 }
 0xc73   : > { %8031 = vadd.xlane.f32.xlu1 %v8030_v1 }
 0xc74   : > { %v15656_v36 = vadd.f32 %v7965_v14, %v15648_v6  ;;  %v8039_v18 = vsel %vm2310_vm5, %v15663_v13, 0.0 }
 0xc76   : > { %v8033_v28 = vsel %vm2310_vm5, %v15656_v36, 0.0 }
 0xc77   : > { %8034 = vadd.xlane.f32.xlu0 %v8033_v28  ;;  %8037 = vadd.xlane.f32.xlu1 %v8036_v7 }
 0xc7b   : > { %8040 = vadd.xlane.f32.xlu0 %v8039_v18 }
 0xcc9   : > { %v7996_v46 = vpop.xlane.xlu1 %7995 }
 0xcca   : > { %v8042_v49 = vmul.f32 0.03125, %v7996_v46 }
 0xccc   : > { %v15668_v38 = vsub.f32 %v15525_v25, %v8042_v49 }
 0xccd   : > { %v8002_v63 = vpop.xlane.xlu1 %8001  ;;  %v7999_v44 = vpop.xlane.xlu0 %7998 }
 0xcce   : > { %v8044_v33 = vmul.f32 0.03125, %v8002_v63  ;;  %v8043_v50 = vmul.f32 0.03125, %v7999_v44  ;;  %v8074_v48 = vmul.f32 %v15668_v38, %v15668_v38 }
 0xcd0   : > { %v15673_v12 = vsub.f32 %v15536_v2, %v8044_v33  ;;  %v15676_v39 = vsub.f32 %v15539_v27, %v8043_v50  ;;  %v8090_v59 = vsel %vm2310_vm5, %v8074_v48, 0.0 }
 0xcd1   : > { %8091 = vadd.xlane.f32.xlu1 %v8090_v59  ;;  %v8005_v17 = vpop.xlane.xlu0 %8004 }
 0xcd2   : > { %v8045_v31 = vmul.f32 0.03125, %v8005_v17  ;;  %v8076_v25 = vmul.f32 %v15673_v12, %v15673_v12  ;;  %v8075_v4 = vmul.f32 %v15676_v39, %v15676_v39 }
 0xcd4   : > { %v15684_v30 = vsub.f32 %v15546_v9, %v8045_v31  ;;  %v8096_v2 = vsel %vm2310_vm5, %v8076_v25, 0.0  ;;  %v8093_v19 = vsel %vm2310_vm5, %v8075_v4, 0.0 }
 0xcd5   : > { %8097 = vadd.xlane.f32.xlu1 %v8096_v2  ;;  %8094 = vadd.xlane.f32.xlu0 %v8093_v19 }
 0xcd6   : > { %v8077_v27 = vmul.f32 %v15684_v30, %v15684_v30 }
 0xcd8   : > { %v8099_v53 = vsel %vm2310_vm5, %v8077_v27, 0.0 }
 0xcd9   : > { %v8008_v20 = vpop.xlane.xlu1 %8007  ;;  %8100 = vadd.xlane.f32.xlu0 %v8099_v53 }
 0xcda   : > { %v8046_v41 = vmul.f32 0.03125, %v8008_v20  ;;  %v10483_v20 = vld [vmem:[%s15962_s7 + $0x8] sm:$0xff]  }
 0xcdb   : > { %9307 = vmatprep.subr.bf16.mxu1 %v10483_v20 }
 0xcdc   : > { %v15692_v52 = vsub.f32 %v15563_v55, %v8046_v41  ;;  %v10484_v41 = vld [vmem:[%s15962_s7] sm:$0xff]   ;;  %9308 = vmatpush3.bf16.msra.mxu1 %v10483_v20 }
 0xcdd   : > { %v8014_v58 = vpop.xlane.xlu1 %8013  ;;  %v8011_v9 = vpop.xlane.xlu0 %8010  ;;  %9309 = vmatprep.subr.bf16.mxu1 %v10484_v41 }
 0xcde   : > { %v8048_v21 = vmul.f32 0.03125, %v8014_v58  ;;  %v8047_v14 = vmul.f32 0.03125, %v8011_v9  ;;  %v8078_v22 = vmul.f32 %v15692_v52, %v15692_v52 }
 0xce0   : > { %v15697_v54 = vsub.f32 %v15575_v16, %v8048_v21  ;;  %v15700_v62 = vsub.f32 %v15578_v32, %v8047_v14  ;;  %v8102_v23 = vsel %vm2310_vm5, %v8078_v22, 0.0  ;;  %9310 = vmatpush3.bf16.msra.mxu1 %v10484_v41 }
 0xce1   : > { %8103 = vadd.xlane.f32.xlu1 %v8102_v23  ;;  %v8017_v61 = vpop.xlane.xlu0 %8016 }
 0xce2   : > { %v8049_v1 = vmul.f32 0.03125, %v8017_v61  ;;  %v8080_v55 = vmul.f32 %v15697_v54, %v15697_v54  ;;  %v8079_v28 = vmul.f32 %v15700_v62, %v15700_v62 }
 0xce4   : > { %v15708_v7 = vsub.f32 %v15585_v57, %v8049_v1  ;;  %v8108_v16 = vsel %vm2310_vm5, %v8080_v55, 0.0  ;;  %v8105_v18 = vsel %vm2310_vm5, %v8079_v28, 0.0 }
 0xce5   : > { %8109 = vadd.xlane.f32.xlu1 %v8108_v16  ;;  %8106 = vadd.xlane.f32.xlu0 %v8105_v18 }
 0xce6   : > { %v8081_v32 = vmul.f32 %v15708_v7, %v15708_v7 }
 0xce8   : > { %v8111_v46 = vsel %vm2310_vm5, %v8081_v32, 0.0 }
 0xce9   : > { %8112 = vadd.xlane.f32.xlu0 %v8111_v46  ;;  %v8020_v49 = vpop.xlane.xlu1 %8019 }
 0xcea   : > { %v8050_v63 = vmul.f32 0.03125, %v8020_v49 }
 0xcec   : > { %v15716_v44 = vsub.f32 %v15604_v8, %v8050_v63 }
 0xced   : > { %v8026_v33 = vpop.xlane.xlu1 %8025  ;;  %v8023_v57 = vpop.xlane.xlu0 %8022 }
 0xcee   : > { %v8052_v50 = vmul.f32 0.03125, %v8026_v33  ;;  %v8051_v48 = vmul.f32 0.03125, %v8023_v57  ;;  %v8082_v59 = vmul.f32 %v15716_v44, %v15716_v44 }
 0xcf0   : > { %v15721_v17 = vsub.f32 %v15615_v47, %v8052_v50  ;;  %v15724_v31 = vsub.f32 %v15618_v3, %v8051_v48  ;;  %v8114_v25 = vsel %vm2310_vm5, %v8082_v59, 0.0 }
 0xcf1   : > { %8115 = vadd.xlane.f32.xlu1 %v8114_v25  ;;  %v8029_v4 = vpop.xlane.xlu0 %8028 }
 0xcf2   : > { %v8053_v2 = vmul.f32 0.03125, %v8029_v4  ;;  %v8084_v8 = vmul.f32 %v15721_v17, %v15721_v17  ;;  %v8083_v19 = vmul.f32 %v15724_v31, %v15724_v31 }
 0xcf4   : > { %v15732_v27 = vsub.f32 %v15625_v10, %v8053_v2  ;;  %v8120_v47 = vsel %vm2310_vm5, %v8084_v8, 0.0  ;;  %v8117_v53 = vsel %vm2310_vm5, %v8083_v19, 0.0 }
 0xcf5   : > { %8121 = vadd.xlane.f32.xlu1 %v8120_v47  ;;  %8118 = vadd.xlane.f32.xlu0 %v8117_v53 }
 0xcf6   : > { %v8085_v3 = vmul.f32 %v15732_v27, %v15732_v27 }
 0xcf8   : > { %v8123_v10 = vsel %vm2310_vm5, %v8085_v3, 0.0 }
 0xcf9   : > { %8124 = vadd.xlane.f32.xlu0 %v8123_v10 }
 0xcfc   : > { %v8032_v58 = vpop.xlane.xlu1 %8031 }
 0xcfd   : > { %v8054_v9 = vmul.f32 0.03125, %v8032_v58 }
 0xcff   : > { %v15746_v21 = vsub.f32 %v15642_v24, %v8054_v9 }
 0xd00   : > { %v8038_v14 = vpop.xlane.xlu1 %8037  ;;  %v8035_v22 = vpop.xlane.xlu0 %8034 }
 0xd01   : > { %v8056_v23 = vmul.f32 0.03125, %v8038_v14  ;;  %v8055_v61 = vmul.f32 0.03125, %v8035_v22  ;;  %v8086_v1 = vmul.f32 %v15746_v21, %v15746_v21  ;;  %v15773_v22 = vld [vmem:[%s15963_s8 + $0x4] ss:$0 sm:$0xff] }
 0xd03   : > { %v15751_v55 = vsub.f32 %v15653_v29, %v8056_v23  ;;  %v15754_v28 = vsub.f32 %v15656_v36, %v8055_v61  ;;  %v8126_v16 = vsel %vm2310_vm5, %v8086_v1, 0.0 }
 0xd04   : > { %8127 = vadd.xlane.f32.xlu1 %v8126_v16  ;;  %v8041_v18 = vpop.xlane.xlu0 %8040 }
 0xd05   : > { %v8057_v32 = vmul.f32 0.03125, %v8041_v18  ;;  %v8088_v24 = vmul.f32 %v15751_v55, %v15751_v55  ;;  %v8087_v46 = vmul.f32 %v15754_v28, %v15754_v28 }
 0xd07   : > { %v15762_v49 = vsub.f32 %v15663_v13, %v8057_v32  ;;  %v8132_v29 = vsel %vm2310_vm5, %v8088_v24, 0.0  ;;  %v8129_v63 = vsel %vm2310_vm5, %v8087_v46, 0.0 }
 0xd08   : > { %8133 = vadd.xlane.f32.xlu1 %v8132_v29  ;;  %8130 = vadd.xlane.f32.xlu0 %v8129_v63 }
 0xd09   : > { %v8089_v36 = vmul.f32 %v15762_v49, %v15762_v49 }
 0xd0b   : > { %v8135_v33 = vsel %vm2310_vm5, %v8089_v36, 0.0  ;;  %v15781_v36 = vld [vmem:[%s15963_s8 + $0x9] ss:$0 sm:$0xff] }
 0xd0c   : > { %8136 = vadd.xlane.f32.xlu0 %v8135_v33 }
 0xd5a   : > { %v8092_v57 = vpop.xlane.xlu1 %8091 }
 0xd5b   : > { %v8138_v50 = vmul.f32 0.03125, %v8092_v57 }
 0xd5d   : > { %v8154_v48 = vadd.f32 1e-05, %v8138_v50 }
 0xd5e   : > { %v8098_v59 = vpop.xlane.xlu1 %8097  ;;  %v8095_v25 = vpop.xlane.xlu0 %8094 }
 0xd5f   : > { %10617 = vrsqrt.f32 %v8154_v48  ;;  %v8140_v13 = vmul.f32 0.03125, %v8098_v59  ;;  %v8139_v4 = vmul.f32 0.03125, %v8095_v25 }
 0xd61   : > { %v8156_v2 = vadd.f32 1e-05, %v8140_v13  ;;  %v8155_v8 = vadd.f32 1e-05, %v8139_v4 }
 0xd62   : > { %v8101_v19 = vpop.xlane.xlu0 %8100 }
 0xd63   : > { %10619 = vrsqrt.f32 %v8156_v2  ;;  %v8141_v47 = vmul.f32 0.03125, %v8101_v19 }
 0xd64   : > { %10621 = vrsqrt.f32 %v8155_v8 }
 0xd65   : > { %v8157_v53 = vadd.f32 1e-05, %v8141_v47 }
 0xd67   : > { %10623 = vrsqrt.f32 %v8157_v53 }
 0xd6a   : > { %v8104_v3 = vpop.xlane.xlu1 %8103 }
 0xd6b   : > { %v8142_v20 = vmul.f32 0.03125, %v8104_v3 }
 0xd6c   : > { %v10618_v41 = vpop.eup %10617 }
 0xd6d   : > { %v8158_v10 = vadd.f32 1e-05, %v8142_v20  ;;  %v8186_v14 = vmul.f32 %v10618_v41, %v15668_v38 }
 0xd6e   : > { %v8110_v58 = vpop.xlane.xlu1 %8109  ;;  %v8107_v9 = vpop.xlane.xlu0 %8106 }
 0xd6f   : > { %10625 = vrsqrt.f32 %v8158_v10  ;;  %v8144_v23 = vmul.f32 0.03125, %v8110_v58  ;;  %v8143_v61 = vmul.f32 0.03125, %v8107_v9  ;;  %v8210_v63 = vmul.f32 %v15773_v22, %v8186_v14 }
 0xd70   : > { %v10620_v1 = vpop.eup %10619 }
 0xd71   : > { %v10622_v16 = vpop.eup %10621  ;;  %v8188_v18 = vmul.f32 %v10620_v1, %v15673_v12  ;;  %v8160_v32 = vadd.f32 1e-05, %v8144_v23  ;;  %v8159_v24 = vadd.f32 1e-05, %v8143_v61 }
 0xd72   : > { %v8113_v46 = vpop.xlane.xlu0 %8112  ;;  %v8187_v29 = vmul.f32 %v10622_v16, %v15676_v39  ;;  %v8234_v39 = vadd.f32 %v15781_v36, %v8210_v63 }
 0xd73   : > { %10627 = vrsqrt.f32 %v8160_v32  ;;  %v8145_v38 = vmul.f32 0.03125, %v8113_v46  ;;  %v8212_v12 = vmul.f32 %v15773_v22, %v8188_v18 }
 0xd74   : > { %v10624_v33 = vpop.eup %10623  ;;  %10629 = vrsqrt.f32 %v8159_v24  ;;  %v8211_v57 = vmul.f32 %v15773_v22, %v8187_v29 }
 0xd75   : > { %v8189_v50 = vmul.f32 %v10624_v33, %v15684_v30  ;;  %v8161_v48 = vadd.f32 1e-05, %v8145_v38  ;;  %v8236_v4 = vadd.f32 %v15781_v36, %v8212_v12 }
 0xd76   : > { %v8235_v59 = vadd.f32 %v15781_v36, %v8211_v57 }
 0xd77   : > { %v8213_v25 = vmul.f32 %v15773_v22, %v8189_v50  ;;  %10631 = vrsqrt.f32 %v8161_v48 }
 0xd78   : > { %v8256_v13 = vpack.c.bf16 %v8235_v59, %v8234_v39 }
 0xd79   : > { %v8237_v2 = vadd.f32 %v15781_v36, %v8213_v25 }
 0xd7a   : > { %9311 = vmatprep.mubr.msk.bf16.mxu1 %vm2310_vm5, %v8256_v13  ;;  %v8116_v8 = vpop.xlane.xlu1 %8115 }
 0xd7b   : > { %v8257_v19 = vpack.c.bf16 %v8237_v2, %v8236_v4  ;;  %v8146_v53 = vmul.f32 0.03125, %v8116_v8 }
 0xd7c   : > { %v10626_v47 = vpop.eup %10625 }
 0xd7d   : > { %9312 = vmatmul.mubr.msk.bf16.vlgmr.msra.gmra.mxu1 %vm2310_vm5, %v8257_v19  ;;  %v8162_v30 = vadd.f32 1e-05, %v8146_v53  ;;  %v8190_v3 = vmul.f32 %v10626_v47, %v15692_v52 }
 0xd7e   : > { %v8122_v20 = vpop.xlane.xlu1 %8121  ;;  %v8119_v41 = vpop.xlane.xlu0 %8118 }
 0xd7f   : > { %10633 = vrsqrt.f32 %v8162_v30  ;;  %v8148_v58 = vmul.f32 0.03125, %v8122_v20  ;;  %v8147_v9 = vmul.f32 0.03125, %v8119_v41  ;;  %v8214_v18 = vmul.f32 %v15773_v22, %v8190_v3 }
 0xd80   : > { %v10628_v10 = vpop.eup %10627 }
 0xd81   : > { %v10630_v14 = vpop.eup %10629  ;;  %v8192_v23 = vmul.f32 %v10628_v10, %v15697_v54  ;;  %v8164_v61 = vadd.f32 1e-05, %v8148_v58  ;;  %v8163_v1 = vadd.f32 1e-05, %v8147_v9  ;;  %v8238_v54 = vadd.f32 %v15781_v36, %v8214_v18 }
 0xd82   : > { %v8191_v16 = vmul.f32 %v10630_v14, %v15700_v62  ;;  %v8125_v32 = vpop.xlane.xlu0 %8124 }
 0xd83   : > { %10635 = vrsqrt.f32 %v8164_v61  ;;  %v8149_v46 = vmul.f32 0.03125, %v8125_v32  ;;  %v8216_v63 = vmul.f32 %v15773_v22, %v8192_v23 }
 0xd84   : > { %v10632_v24 = vpop.eup %10631  ;;  %v8215_v52 = vmul.f32 %v15773_v22, %v8191_v16  ;;  %10637 = vrsqrt.f32 %v8163_v1 }
 0xd85   : > { %v8193_v29 = vmul.f32 %v10632_v24, %v15708_v7  ;;  %v8165_v38 = vadd.f32 1e-05, %v8149_v46  ;;  %v8240_v12 = vadd.f32 %v15781_v36, %v8216_v63 }
 0xd86   : > { %v8239_v33 = vadd.f32 %v15781_v36, %v8215_v52 }
 0xd87   : > { %v8217_v62 = vmul.f32 %v15773_v22, %v8193_v29  ;;  %10639 = vrsqrt.f32 %v8165_v38 }
 0xd88   : > { %v8258_v57 = vpack.c.bf16 %v8239_v33, %v8238_v54 }
 0xd89   : > { %v8241_v50 = vadd.f32 %v15781_v36, %v8217_v62 }
 0xd8a   : > { %9315 = vmatprep.mubr.msk.bf16.mxu1 %vm2310_vm5, %v8258_v57 }
 0xd8b   : > { %v8259_v48 = vpack.c.bf16 %v8241_v50, %v8240_v12 }
 0xd8c   : > { %v10634_v39 = vpop.eup %10633 }
 0xd8d   : > { %v8128_v7 = vpop.xlane.xlu1 %8127  ;;  %9316 = vmatmul.mubr.msk.bf16.gmra.mxu1 %vm2310_vm5, %v8259_v48  ;;  %v8194_v25 = vmul.f32 %v10634_v39, %v15716_v44 }
 0xd8e   : > { %v8150_v59 = vmul.f32 0.03125, %v8128_v7 }
 0xd8f   : > { %v8218_v3 = vmul.f32 %v15773_v22, %v8194_v25  ;;  %v10486_v25 = vld [vmem:[%s15965_s10] sm:$0xff]  }
 0xd90   : > { %v8166_v13 = vadd.f32 1e-05, %v8150_v59  ;;  %v10636_v4 = vpop.eup %10635 }
 0xd91   : > { %v8134_v2 = vpop.xlane.xlu1 %8133  ;;  %v8131_v8 = vpop.xlane.xlu0 %8130  ;;  %v8196_v20 = vmul.f32 %v10636_v4, %v15721_v17  ;;  %v8242_v1 = vadd.f32 %v15781_v36, %v8218_v3 }
 0xd92   : > { %v10638_v19 = vpop.eup %10637  ;;  %10641 = vrsqrt.f32 %v8166_v13  ;;  %v8152_v47 = vmul.f32 0.03125, %v8134_v2  ;;  %v8151_v53 = vmul.f32 0.03125, %v8131_v8  ;;  %v15847_v13 = vld [vmem:[%s15964_s9 + $0x4] ss:$0 sm:$0xff] }
 0xd93   : > { %v8195_v30 = vmul.f32 %v10638_v19, %v15724_v31  ;;  %v8220_v61 = vmul.f32 %v15773_v22, %v8196_v20 }
 0xd94   : > { %v8168_v41 = vadd.f32 1e-05, %v8152_v47  ;;  %v8167_v10 = vadd.f32 1e-05, %v8151_v53  ;;  %v10640_v58 = vpop.eup %10639 }
 0xd95   : > { %v8137_v9 = vpop.xlane.xlu0 %8136  ;;  %v8219_v44 = vmul.f32 %v15773_v22, %v8195_v30  ;;  %v8197_v23 = vmul.f32 %v10640_v58, %v15732_v27  ;;  %v8244_v32 = vadd.f32 %v15781_v36, %v8220_v61 }
 0xd96   : > { %10643 = vrsqrt.f32 %v8168_v41  ;;  %v8153_v14 = vmul.f32 0.03125, %v8137_v9 }
 0xd97   : > { %10645 = vrsqrt.f32 %v8167_v10  ;;  %v8243_v31 = vadd.f32 %v15781_v36, %v8219_v44  ;;  %v8221_v17 = vmul.f32 %v15773_v22, %v8197_v23 }
 0xd98   : > { %v8169_v16 = vadd.f32 1e-05, %v8153_v14 }
 0xd99   : > { %v8260_v18 = vpack.c.bf16 %v8243_v31, %v8242_v1  ;;  %v8245_v24 = vadd.f32 %v15781_v36, %v8221_v17 }
 0xd9a   : > { %10647 = vrsqrt.f32 %v8169_v16 }
 0xd9b   : > { %9319 = vmatprep.mubr.msk.bf16.mxu1 %vm2310_vm5, %v8260_v18  ;;  %v8261_v46 = vpack.c.bf16 %v8245_v24, %v8244_v32 }
 0xd9d   : > { %9320 = vmatmul.mubr.msk.bf16.gmra.mxu1 %vm2310_vm5, %v8261_v46 }
 0xd9f   : > { %v10642_v27 = vpop.eup %10641 }
 0xda0   : > { %v8198_v52 = vmul.f32 %v10642_v27, %v15746_v21 }
 0xda2   : > { %v8222_v33 = vmul.f32 %v15773_v22, %v8198_v52 }
 0xda3   : > { %v10644_v29 = vpop.eup %10643 }
 0xda4   : > { %v10646_v63 = vpop.eup %10645  ;;  %v8200_v38 = vmul.f32 %v10644_v29, %v15751_v55  ;;  %v8246_v48 = vadd.f32 %v15781_v36, %v8222_v33 }
 0xda5   : > { %v8199_v54 = vmul.f32 %v10646_v63, %v15754_v28 }
 0xda6   : > { %v8224_v50 = vmul.f32 %v15773_v22, %v8200_v38 }
 0xda7   : > { %v10648_v62 = vpop.eup %10647  ;;  %v8223_v57 = vmul.f32 %v15773_v22, %v8199_v54 }
 0xda8   : > { %v8201_v12 = vmul.f32 %v10648_v62, %v15762_v49  ;;  %v8248_v55 = vadd.f32 %v15781_v36, %v8224_v50  ;;  %v10485_v49 = vld [vmem:[%s15965_s10 + $0x8] sm:$0xff]  }
 0xda9   : > { %v8247_v39 = vadd.f32 %v15781_v36, %v8223_v57  ;;  %9327 = vmatprep.subr.bf16.mxu1 %v10485_v49 }
 0xdaa   : > { %v8225_v21 = vmul.f32 %v15773_v22, %v8201_v12  ;;  %9328 = vmatpush3.bf16.msra.mxu1 %v10485_v49  ;;  %v10487_v22 = vld [vmem:[%s15966_s11 + $0x8] sm:$0xff]  }
 0xdab   : > { %v8262_v7 = vpack.c.bf16 %v8247_v39, %v8246_v48  ;;  %9329 = vmatprep.subr.bf16.mxu1 %v10486_v25  ;;  %9347 = vmatprep.subr.bf16.mxu0 %v10487_v22 }
 0xdac   : > { %v8249_v28 = vadd.f32 %v15781_v36, %v8225_v21  ;;  %9348 = vmatpush3.bf16.msra.mxu0 %v10487_v22 }
 0xdad   : > { %9323 = vmatprep.mubr.msk.bf16.mxu1 %vm2310_vm5, %v8262_v7 }
 0xdae   : > { %v8263_v59 = vpack.c.bf16 %v8249_v28, %v8248_v55  ;;  %9330 = vmatpush3.bf16.msra.mxu1 %v10486_v25 }
 0xdb0   : > { %9324 = vmatmul.mubr.msk.bf16.gmra.mxu1 %vm2310_vm5, %v8263_v59 }
 0xe3d   : > { %v9313_v36 = vpop.f32.mrf.mxu1 }
 0xe3e   : > { %v8349_v8 = vadd.f32 %v9313_v36, %v15847_v13 }
 0xe3f   : > { %v8340_v4 = vpop.f32.mrf.mxu1 }
 0xe40   : > { %v8341_v2 = vadd.f32 %v15847_v13, %v8340_v4  ;;  %v8405_v41 = vmax.f32 %v8349_v8, 0.0 }
 0xe41   : > { %v9314_v19 = vpop.f32.mrf.mxu1 }
 0xe42   : > { %v8352_v47 = vadd.f32 %v9314_v19, %v15847_v13  ;;  %v8403_v30 = vmax.f32 %v8341_v2, 0.0  ;;  %v8421_v14 = vadd.f32 %v8405_v41, %v15518_v37 }
 0xe43   : > { %v8343_v53 = vpop.f32.mrf.mxu1 }
 0xe44   : > { %v8406_v3 = vmax.f32 %v8352_v47, 0.0  ;;  %v8344_v20 = vadd.f32 %v15847_v13, %v8343_v53  ;;  %v8419_v9 = vadd.f32 %v8403_v30, %v15521_v34 }
 0xe46   : > { %v8404_v10 = vmax.f32 %v8344_v20, 0.0  ;;  %v8422_v58 = vadd.f32 %v8406_v3, %v15528_v51 }
 0xe48   : > { %v8420_v44 = vadd.f32 %v8404_v10, %v15531_v42  ;;  %v8436_v61 = vpack.c.bf16 %v8422_v58, %v8421_v14 }
 0xe4a   : > { %v8435_v23 = vpack.c.bf16 %v8420_v44, %v8419_v9 }
 0xe4c   : > { %9331 = vmatprep.mubr.msk.bf16.mxu1 %vm2310_vm5, %v8435_v23 }
 0xe4d   : > { %v9317_v1 = vpop.f32.mrf.mxu1  ;;  %9332 = vmatmul.mubr.msk.bf16.vlgmr.msra.gmra.mxu1 %vm2310_vm5, %v8436_v61 }
 0xe4e   : > { %v8365_v17 = vadd.f32 %v9317_v1, %v15847_v13 }
 0xe4f   : > { %v8356_v31 = vpop.f32.mrf.mxu1 }
 0xe50   : > { %v8357_v16 = vadd.f32 %v15847_v13, %v8356_v31  ;;  %v8409_v24 = vmax.f32 %v8365_v17, 0.0 }
 0xe51   : > { %v9318_v18 = vpop.f32.mrf.mxu1 }
 0xe52   : > { %v8368_v51 = vadd.f32 %v9318_v18, %v15847_v13  ;;  %v8407_v32 = vmax.f32 %v8357_v16, 0.0  ;;  %v8425_v63 = vadd.f32 %v8409_v24, %v15556_v35 }
 0xe53   : > { %v8359_v34 = vpop.f32.mrf.mxu1 }
 0xe54   : > { %v8410_v42 = vmax.f32 %v8368_v51, 0.0  ;;  %v8360_v37 = vadd.f32 %v15847_v13, %v8359_v34  ;;  %v8423_v52 = vadd.f32 %v8407_v32, %v15559_v56 }
 0xe56   : > { %v8408_v46 = vmax.f32 %v8360_v37, 0.0  ;;  %v8426_v27 = vadd.f32 %v8410_v42, %v15567_v45 }
 0xe58   : > { %v8424_v29 = vadd.f32 %v8408_v46, %v15570_v40  ;;  %v8438_v54 = vpack.c.bf16 %v8426_v27, %v8425_v63 }
 0xe5a   : > { %v8437_v38 = vpack.c.bf16 %v8424_v29, %v8423_v52 }
 0xe5c   : > { %9335 = vmatprep.mubr.msk.bf16.mxu1 %vm2310_vm5, %v8437_v38 }
 0xe5d   : > { %9336 = vmatmul.mubr.msk.bf16.gmra.mxu1 %vm2310_vm5, %v8438_v54  ;;  %v9321_v33 = vpop.f32.mrf.mxu1 }
 0xe5e   : > { %v8381_v12 = vadd.f32 %v9321_v33, %v15847_v13 }
 0xe5f   : > { %v8372_v62 = vpop.f32.mrf.mxu1 }
 0xe60   : > { %v8373_v57 = vadd.f32 %v15847_v13, %v8372_v62  ;;  %v8413_v39 = vmax.f32 %v8381_v12, 0.0 }
 0xe61   : > { %v9322_v50 = vpop.f32.mrf.mxu1 }
 0xe62   : > { %v8384_v45 = vadd.f32 %v9322_v50, %v15847_v13  ;;  %v8411_v48 = vmax.f32 %v8373_v57, 0.0  ;;  %v8429_v59 = vadd.f32 %v8413_v39, %v15597_v60 }
 0xe63   : > { %v8375_v56 = vpop.f32.mrf.mxu1 }
 0xe64   : > { %v8414_v40 = vmax.f32 %v8384_v45, 0.0  ;;  %v8376_v35 = vadd.f32 %v15847_v13, %v8375_v56  ;;  %v8427_v55 = vadd.f32 %v8411_v48, %v15600_v43 }
 0xe66   : > { %v8412_v21 = vmax.f32 %v8376_v35, 0.0  ;;  %v8430_v7 = vadd.f32 %v8414_v40, %v15607_v0 }
 0xe68   : > { %v8428_v28 = vadd.f32 %v8412_v21, %v15610_v15  ;;  %v8440_v25 = vpack.c.bf16 %v8430_v7, %v8429_v59 }
 0xe6a   : > { %v8439_v49 = vpack.c.bf16 %v8428_v28, %v8427_v55 }
 0xe6c   : > { %9339 = vmatprep.mubr.msk.bf16.mxu1 %vm2310_vm5, %v8439_v49 }
 0xe6d   : > { %9340 = vmatmul.mubr.msk.bf16.gmra.mxu1 %vm2310_vm5, %v8440_v25 }
 0xe70   : > { %v9325_v22 = vpop.f32.mrf.mxu1 }
 0xe71   : > { %v8397_v2 = vadd.f32 %v9325_v22, %v15847_v13 }
 0xe72   : > { %v8388_v36 = vpop.f32.mrf.mxu1 }
 0xe73   : > { %v8389_v4 = vadd.f32 %v15847_v13, %v8388_v36  ;;  %v8417_v47 = vmax.f32 %v8397_v2, 0.0 }
 0xe74   : > { %v9326_v8 = vpop.f32.mrf.mxu1 }
 0xe75   : > { %v8400_v0 = vadd.f32 %v9326_v8, %v15847_v13  ;;  %v8415_v19 = vmax.f32 %v8389_v4, 0.0  ;;  %v8433_v41 = vadd.f32 %v8417_v47, %v15635_v5 }
 0xe76   : > { %v8391_v43 = vpop.f32.mrf.mxu1 }
 0xe77   : > { %v8418_v15 = vmax.f32 %v8400_v0, 0.0  ;;  %v8392_v60 = vadd.f32 %v15847_v13, %v8391_v43  ;;  %v8431_v3 = vadd.f32 %v8415_v19, %v15638_v26  ;;  %v10488_v13 = vld [vmem:[%s15966_s11] sm:$0xff]  }
 0xe78   : > { %9349 = vmatprep.subr.bf16.mxu0 %v10488_v13  ;;  %v9000_v26 = vld [vmem:[%s15964_s9 + $0x6] ss:$0 sm:$0xff] }
 0xe79   : > { %v8416_v53 = vmax.f32 %v8392_v60, 0.0  ;;  %v8434_v30 = vadd.f32 %v8418_v15, %v15645_v11  ;;  %9350 = vmatpush3.bf16.msra.mxu0 %v10488_v13 }
 0xe7b   : > { %v8432_v20 = vadd.f32 %v8416_v53, %v15648_v6  ;;  %v8442_v58 = vpack.c.bf16 %v8434_v30, %v8433_v41  ;;  %v9011_v30 = vld [vmem:[%s15967_s12] ss:$0 sm:$0xff] }
 0xe7d   : > { %v8441_v10 = vpack.c.bf16 %v8432_v20, %v8431_v3 }
 0xe7f   : > { %9343 = vmatprep.mubr.msk.bf16.mxu1 %vm2310_vm5, %v8441_v10 }
 0xe80   : > { %9344 = vmatmul.mubr.msk.bf16.gmra.mxu1 %vm2310_vm5, %v8442_v58 }
 0xf0d   : > { %v9333_v9 = vpop.f32.mrf.mxu1 }
 0xf0e   : > { %v8534_v14 = vadd.f32 %v9333_v9, %v9000_v26 }
 0xf0f   : > { %v8525_v11 = vpop.f32.mrf.mxu1 }
 0xf10   : > { %v8526_v5 = vadd.f32 %v9000_v26, %v8525_v11  ;;  %v8590_v17 = vmax.f32 %v8534_v14, 0.0 }
 0xf11   : > { %v9334_v6 = vpop.f32.mrf.mxu1 }
 0xf12   : > { %v8537_v44 = vadd.f32 %v9334_v6, %v9000_v26  ;;  %v8588_v31 = vmax.f32 %v8526_v5, 0.0 }
 0xf13   : > { %v8528_v23 = vpop.f32.mrf.mxu1 }
 0xf14   : > { %v8529_v61 = vadd.f32 %v9000_v26, %v8528_v23  ;;  %v8591_v1 = vmax.f32 %v8537_v44, 0.0 }
 0xf16   : > { %v8589_v16 = vmax.f32 %v8529_v61, 0.0  ;;  %v8605_v51 = vpack.c.bf16 %v8591_v1, %v8590_v17 }
 0xf18   : > { %v8604_v18 = vpack.c.bf16 %v8589_v16, %v8588_v31 }
 0xf1a   : > { %9351 = vmatprep.mubr.msk.bf16.mxu0 %vm2310_vm5, %v8604_v18 }
 0xf1b   : > { %9352 = vmatmul.mubr.msk.bf16.vlgmr.msra.gmra.mxu0 %vm2310_vm5, %v8605_v51 }
 0xf1d   : > { %v9337_v34 = vpop.f32.mrf.mxu1 }
 0xf1e   : > { %v8550_v46 = vadd.f32 %v9337_v34, %v9000_v26 }
 0xf1f   : > { %v8541_v32 = vpop.f32.mrf.mxu1 }
 0xf20   : > { %v8542_v37 = vadd.f32 %v9000_v26, %v8541_v32  ;;  %v8594_v54 = vmax.f32 %v8550_v46, 0.0 }
 0xf21   : > { %v9338_v42 = vpop.f32.mrf.mxu1 }
 0xf22   : > { %v8553_v24 = vadd.f32 %v9338_v42, %v9000_v26  ;;  %v8592_v63 = vmax.f32 %v8542_v37, 0.0 }
 0xf23   : > { %v8544_v27 = vpop.f32.mrf.mxu1 }
 0xf24   : > { %v8545_v52 = vadd.f32 %v9000_v26, %v8544_v27  ;;  %v8595_v29 = vmax.f32 %v8553_v24, 0.0 }
 0xf26   : > { %v8593_v38 = vmax.f32 %v8545_v52, 0.0  ;;  %v8607_v62 = vpack.c.bf16 %v8595_v29, %v8594_v54 }
 0xf28   : > { %v8606_v33 = vpack.c.bf16 %v8593_v38, %v8592_v63 }
 0xf2a   : > { %9355 = vmatprep.mubr.msk.bf16.mxu0 %vm2310_vm5, %v8606_v33 }
 0xf2b   : > { %9356 = vmatmul.mubr.msk.bf16.gmra.mxu0 %vm2310_vm5, %v8607_v62 }
 0xf2d   : > { %v9341_v57 = vpop.f32.mrf.mxu1 }
 0xf2e   : > { %v8566_v48 = vadd.f32 %v9341_v57, %v9000_v26 }
 0xf2f   : > { %v8557_v12 = vpop.f32.mrf.mxu1 }
 0xf30   : > { %v8558_v45 = vadd.f32 %v9000_v26, %v8557_v12  ;;  %v8598_v55 = vmax.f32 %v8566_v48, 0.0 }
 0xf31   : > { %v9342_v50 = vpop.f32.mrf.mxu1 }
 0xf32   : > { %v8569_v56 = vadd.f32 %v9342_v50, %v9000_v26  ;;  %v8596_v21 = vmax.f32 %v8558_v45, 0.0 }
 0xf33   : > { %v8560_v40 = vpop.f32.mrf.mxu1 }
 0xf34   : > { %v8561_v35 = vadd.f32 %v9000_v26, %v8560_v40  ;;  %v8599_v39 = vmax.f32 %v8569_v56, 0.0 }
 0xf36   : > { %v8597_v7 = vmax.f32 %v8561_v35, 0.0  ;;  %v8609_v59 = vpack.c.bf16 %v8599_v39, %v8598_v55 }
 0xf38   : > { %v8608_v28 = vpack.c.bf16 %v8597_v7, %v8596_v21 }
 0xf3a   : > { %9359 = vmatprep.mubr.msk.bf16.mxu0 %vm2310_vm5, %v8608_v28 }
 0xf3b   : > { %9360 = vmatmul.mubr.msk.bf16.gmra.mxu0 %vm2310_vm5, %v8609_v59 }
 0xf40   : > { %v9345_v49 = vpop.f32.mrf.mxu1 }
 0xf41   : > { %v8582_v2 = vadd.f32 %v9345_v49, %v9000_v26 }
 0xf42   : > { %v8573_v25 = vpop.f32.mrf.mxu1 }
 0xf43   : > { %v8574_v36 = vadd.f32 %v9000_v26, %v8573_v25  ;;  %v8602_v60 = vmax.f32 %v8582_v2, 0.0 }
 0xf44   : > { %v9346_v22 = vpop.f32.mrf.mxu1 }
 0xf45   : > { %v8585_v4 = vadd.f32 %v9346_v22, %v9000_v26  ;;  %v8600_v19 = vmax.f32 %v8574_v36, 0.0 }
 0xf46   : > { %v8576_v8 = vpop.f32.mrf.mxu1 }
 0xf47   : > { %v8577_v0 = vadd.f32 %v9000_v26, %v8576_v8  ;;  %v8603_v43 = vmax.f32 %v8585_v4, 0.0 }
 0xf49   : > { %v8601_v15 = vmax.f32 %v8577_v0, 0.0  ;;  %v8611_v53 = vpack.c.bf16 %v8603_v43, %v8602_v60 }
 0xf4b   : > { %v8610_v47 = vpack.c.bf16 %v8601_v15, %v8600_v19 }
 0xf4d   : > { %9363 = vmatprep.mubr.msk.bf16.mxu0 %vm2310_vm5, %v8610_v47 }
 0xf4e   : > { %9364 = vmatmul.mubr.msk.bf16.gmra.mxu0 %vm2310_vm5, %v8611_v53 }
 0xfdb   : > { %v9353_v3 = vpop.f32.mrf.mxu0 }
 0xfdc   : > { %v8702_v20 = vadd.f32 %v9353_v3, %v9011_v30 }
 0xfdd   : > { %v8693_v41 = vpop.f32.mrf.mxu0 }
 0xfde   : > { %8758 = vst.msk [vmem:[%s15911_s20 + $0x10] sm:$0xff] %vm2191_vm10, %v8702_v20  ;;  %v8694_v10 = vadd.f32 %v9011_v30, %v8693_v41 }
 0xfdf   : > { %v9354_v58 = vpop.f32.mrf.mxu0 }
 0xfe0   : > { %8756 = vst.msk [vmem:[%s15911_s20] sm:$0xff] %vm2191_vm10, %v8694_v10  ;;  %v8705_v13 = vadd.f32 %v9354_v58, %v9011_v30 }
 0xfe1   : > { %v8696_v9 = vpop.f32.mrf.mxu0 }
 0xfe2   : > { %8759 = vst.msk [vmem:[%s15911_s20 + $0x18] sm:$0xff] %vm2191_vm10, %v8705_v13  ;;  %v8697_v11 = vadd.f32 %v9011_v30, %v8696_v9 }
 0xfe4   : > { %8757 = vst.msk [vmem:[%s15911_s20 + $0x8] sm:$0xff] %vm2191_vm10, %v8697_v11 }
 0xfeb   : > { %v9357_v26 = vpop.f32.mrf.mxu0 }
 0xfec   : > { %v8718_v6 = vadd.f32 %v9357_v26, %v9011_v30 }
 0xfed   : > { %v8709_v5 = vpop.f32.mrf.mxu0 }
 0xfee   : > { %8762 = vst.msk [vmem:[%s15911_s20 + $0x30] sm:$0xff] %vm2191_vm10, %v8718_v6  ;;  %v8710_v44 = vadd.f32 %v9011_v30, %v8709_v5 }
 0xfef   : > { %v9358_v14 = vpop.f32.mrf.mxu0 }
 0xff0   : > { %8760 = vst.msk [vmem:[%s15911_s20 + $0x20] sm:$0xff] %vm2191_vm10, %v8710_v44  ;;  %v8721_v23 = vadd.f32 %v9358_v14, %v9011_v30 }
 0xff1   : > { %v8712_v61 = vpop.f32.mrf.mxu0 }
 0xff2   : > { %8763 = vst.msk [vmem:[%s15911_s20 + $0x38] sm:$0xff] %vm2191_vm10, %v8721_v23  ;;  %v8713_v1 = vadd.f32 %v9011_v30, %v8712_v61 }
 0xff4   : > { %8761 = vst.msk [vmem:[%s15911_s20 + $0x28] sm:$0xff] %vm2191_vm10, %v8713_v1 }
 0xffb   : > { %v9361_v31 = vpop.f32.mrf.mxu0 }
 0xffc   : > { %v8734_v16 = vadd.f32 %v9361_v31, %v9011_v30 }
 0xffd   : > { %v8725_v17 = vpop.f32.mrf.mxu0 }
 0xffe   : > { %8766 = vst.msk [vmem:[%s15911_s20 + $0x50] sm:$0xff] %vm2191_vm10, %v8734_v16  ;;  %v8726_v18 = vadd.f32 %v9011_v30, %v8725_v17 }
 0xfff   : > { %v9362_v51 = vpop.f32.mrf.mxu0 }
0x1000   : > { %8764 = vst.msk [vmem:[%s15911_s20 + $0x40] sm:$0xff] %vm2191_vm10, %v8726_v18  ;;  %v8737_v34 = vadd.f32 %v9362_v51, %v9011_v30 }
0x1001   : > { %v8728_v32 = vpop.f32.mrf.mxu0 }
0x1002   : > { %8767 = vst.msk [vmem:[%s15911_s20 + $0x58] sm:$0xff] %vm2191_vm10, %v8737_v34  ;;  %v8729_v42 = vadd.f32 %v9011_v30, %v8728_v32 }
0x1004   : > { %8765 = vst.msk [vmem:[%s15911_s20 + $0x48] sm:$0xff] %vm2191_vm10, %v8729_v42 }
0x100e   : > { %v9365_v37 = vpop.f32.mrf.mxu0 }
0x100f   : > { %v8750_v24 = vadd.f32 %v9365_v37, %v9011_v30 }
0x1010   : > { %v8741_v46 = vpop.f32.mrf.mxu0 }
0x1011   : > { %8770 = vst.msk [vmem:[%s15911_s20 + $0x70] sm:$0xff] %vm2191_vm10, %v8750_v24  ;;  %v8742_v27 = vadd.f32 %v9011_v30, %v8741_v46 }
0x1012   : > { %v9366_v52 = vpop.f32.mrf.mxu0 }
0x1013   : > { %8768 = vst.msk [vmem:[%s15911_s20 + $0x60] sm:$0xff] %vm2191_vm10, %v8742_v27  ;;  %v8753_v29 = vadd.f32 %v9366_v52, %v9011_v30 }
0x1014   : > { %v8744_v63 = vpop.f32.mrf.mxu0 }
0x1015   : > { %8771 = vst.msk [vmem:[%s15911_s20 + $0x78] sm:$0xff] %vm2191_vm10, %v8753_v29  ;;  %v8745_v38 = vadd.f32 %v9011_v30, %v8744_v63 }
0x1017   : > { %8769 = vst.msk [vmem:[%s15911_s20 + $0x68] sm:$0xff] %vm2191_vm10, %v8745_v38 }
0x1018 PF: > { %p20_p9 = scmp.ge.s32.totalorder %s10774_s29, 4   ;;  %s16710_s25 = smov %s10668_s26 }
0x1019   : > { %s16711_s26 = smov %s10783_s15  ;;  %s16712_s27 = smov %s10774_s29 }
0x101a   :  { %22 = sbr.rel (!%p20_p9) target bundleno = 2 (0x2), region = 167 }

</bundles_post_ra>
